<compile_context>
chip_gen: v6e
topology: v6e:2x2x1
jax: 0.10.0
libtpu: 0.0.40
codegen_flags: <defaults>
</compile_context>

<pallas_src>
import jax
import jax.numpy as jnp
from jax.experimental import pallas as pl
from jax.experimental.pallas import tpu as pltpu

EPS = 1e-5
SLOPE = 0.2
CONV_VMEM = 8 * 1024 * 1024    # whole-block conv kernels need ~1-2 MiB
FC_VMEM = 16 * 1024 * 1024     # int8 weight blocks: 2 MiB x 2 buffers + small refs


# ----------------------------------------------------------------------------
# Pallas kernels
# ----------------------------------------------------------------------------
def conv_lrelu_kernel(a_ref, w_ref, b_ref, o_ref):
    """out = LeakyReLU(a @ w + b); bf16 in, f32 accumulate, bf16 out."""
    acc = jnp.dot(a_ref[...], w_ref[...], preferred_element_type=jnp.float32)
    acc = acc + b_ref[...]
    y = jnp.where(acc >= 0, acc, SLOPE * acc)
    o_ref[...] = y.astype(o_ref.dtype)


def conv_bn_lrelu_kernel(a_ref, w_ref, b_ref, g_ref, beta_ref, o_ref):
    """out = LeakyReLU(BatchNorm(a @ w + b)); BN stats over rows (= N*H*W)."""
    acc = jnp.dot(a_ref[...], w_ref[...], preferred_element_type=jnp.float32)
    acc = acc + b_ref[...]
    mean = jnp.mean(acc, axis=0, keepdims=True)
    var = jnp.mean((acc - mean) ** 2, axis=0, keepdims=True)
    y = (acc - mean) * jax.lax.rsqrt(var + EPS) * g_ref[...] + beta_ref[...]
    y = jnp.where(y >= 0, y, SLOPE * y)
    o_ref[...] = y.astype(o_ref.dtype)


def fc_fused_kernel(x_ref, w1_ref, s_ref, b1_ref, g_ref, beta_ref, w2_ref,
                    o_ref, acc_ref):
    """Grid = (n_split 'parallel', K-tiles 'arbitrary').

    Streams int8 fc1 weight blocks (cast to bf16 for the MXU), accumulates in
    f32, and on the last K step dequantizes by the per-column scale, applies
    bias + BatchNorm1d + LeakyReLU, and emits this feature-half's partial fc2
    dot product.  Sum + fc2 bias + sigmoid happen in the wrapper."""
    k = pl.program_id(1)

    @pl.when(k == 0)
    def _():
        acc_ref[...] = jnp.zeros_like(acc_ref)

    w = w1_ref[...].astype(jnp.bfloat16)          # int8 -> bf16 is exact
    acc_ref[...] += jnp.dot(x_ref[...], w, preferred_element_type=jnp.float32)

    @pl.when(k == pl.num_programs(1) - 1)
    def _():
        y = acc_ref[...] * s_ref[...] + b1_ref[...]     # dequant + bias
        mean = jnp.mean(y, axis=0, keepdims=True)
        var = jnp.mean((y - mean) ** 2, axis=0, keepdims=True)
        z = (y - mean) * jax.lax.rsqrt(var + EPS) * g_ref[...] + beta_ref[...]
        z = jnp.where(z >= 0, z, SLOPE * z)
        # partial logit for this half of the 1024 features
        o_ref[...] = jnp.dot(z, w2_ref[...], preferred_element_type=jnp.float32)


# ----------------------------------------------------------------------------
# Wrappers (pallas_call glue)
# ----------------------------------------------------------------------------
def _full_spec(shape):
    return pl.BlockSpec(shape, lambda: (0,) * len(shape))


def conv_lrelu_call(patches, w2d, b):
    # TODO(synk): if batch grows, add an M grid (dimension_semantics=("parallel",))
    M, K = patches.shape
    N = w2d.shape[1]
    return pl.pallas_call(
        conv_lrelu_kernel,
        out_shape=jax.ShapeDtypeStruct((M, N), jnp.bfloat16),
        in_specs=[_full_spec((M, K)), _full_spec((K, N)), _full_spec((1, N))],
        out_specs=_full_spec((M, N)),
        compiler_params=pltpu.CompilerParams(vmem_limit_bytes=CONV_VMEM),
    )(patches, w2d, b.reshape(1, N))


def conv_bn_lrelu_call(patches, w2d, b, gamma, beta):
    M, K = patches.shape
    N = w2d.shape[1]
    return pl.pallas_call(
        conv_bn_lrelu_kernel,
        out_shape=jax.ShapeDtypeStruct((M, N), jnp.bfloat16),
        in_specs=[_full_spec((M, K)), _full_spec((K, N)),
                  _full_spec((1, N)), _full_spec((1, N)), _full_spec((1, N))],
        out_specs=_full_spec((M, N)),
        compiler_params=pltpu.CompilerParams(vmem_limit_bytes=CONV_VMEM),
    )(patches, w2d, b.reshape(1, N), gamma.reshape(1, N), beta.reshape(1, N))


def fc_fused_call(x, w1_q, w1_scale, b1, gamma, beta, w2, *, tk=4096, n_split=2):
    """Fused fc1 (int8-weight Linear + BN1d + LeakyReLU) + partial fc2 dots.

    Returns per-feature-half partial logits of shape (n_split, M, 1)."""
    M, K = x.shape
    N = w1_q.shape[1]
    assert K % tk == 0 and N % n_split == 0
    nh = N // n_split
    assert nh % 128 == 0
    return pl.pallas_call(
        fc_fused_kernel,
        out_shape=jax.ShapeDtypeStruct((n_split, M, 1), jnp.float32),
        grid=(n_split, K // tk),
        in_specs=[pl.BlockSpec((M, tk), lambda n, k: (0, k)),    # x (bf16)
                  pl.BlockSpec((tk, nh), lambda n, k: (k, n)),   # fc1 weight (int8)
                  pl.BlockSpec((1, nh), lambda n, k: (0, n)),    # dequant scale
                  pl.BlockSpec((1, nh), lambda n, k: (0, n)),    # fc1 bias
                  pl.BlockSpec((1, nh), lambda n, k: (0, n)),    # bn gamma
                  pl.BlockSpec((1, nh), lambda n, k: (0, n)),    # bn beta
                  pl.BlockSpec((nh, 1), lambda n, k: (n, 0))],   # fc2 weight
        out_specs=pl.BlockSpec((None, M, 1), lambda n, k: (n, 0, 0)),
        scratch_shapes=[pltpu.VMEM((M, nh), jnp.float32)],
        compiler_params=pltpu.CompilerParams(
            dimension_semantics=("parallel", "arbitrary"),
            vmem_limit_bytes=FC_VMEM),
    )(x, w1_q, w1_scale, b1.reshape(1, N), gamma.reshape(1, N),
      beta.reshape(1, N), w2)


# ----------------------------------------------------------------------------
# im2col (plain-JAX glue over the 4x4 taps, NHWC, K ordered (kh, kw, C))
# ----------------------------------------------------------------------------
def im2col_nhwc(x, k, s, p):
    B, H, W, C = x.shape
    Ho = (H + 2 * p - k) // s + 1
    Wo = (W + 2 * p - k) // s + 1
    xp = jnp.pad(x, ((0, 0), (p, p), (p, p), (0, 0)))
    taps = []
    for di in range(k):
        for dj in range(k):
            taps.append(xp[:, di:di + s * Ho:s, dj:dj + s * Wo:s, :])
    pat = jnp.stack(taps, axis=3)                      # (B, Ho, Wo, k*k, C)
    return pat.reshape(B * Ho * Wo, k * k * C), Ho, Wo


# ----------------------------------------------------------------------------
# Parameters (PyTorch layout, matching initialize_weights), then a one-time
# prep step that reorders / pads / quantizes them into kernel-ready form.
# ----------------------------------------------------------------------------
def init_params(key):
    k1, k2, k3, k4 = jax.random.split(key, 4)
    return {
        "conv1_w": 0.02 * jax.random.normal(k1, (64, 3, 4, 4), jnp.float32),
        "conv1_b": jnp.zeros((64,), jnp.float32),
        "conv2_w": 0.02 * jax.random.normal(k2, (128, 64, 4, 4), jnp.float32),
        "conv2_b": jnp.zeros((128,), jnp.float32),
        "bn2_g": jnp.ones((128,), jnp.float32),
        "bn2_b": jnp.zeros((128,), jnp.float32),
        # stored already transposed: (in_features, out_features),
        # in_features ordered like PyTorch's NCHW flatten (C, H, W).
        "fc1_w": 0.02 * jax.random.normal(k3, (128 * 8 * 8, 1024), jnp.float32),
        "fc1_b": jnp.zeros((1024,), jnp.float32),
        "bn3_g": jnp.ones((1024,), jnp.float32),
        "bn3_b": jnp.zeros((1024,), jnp.float32),
        "fc2_w": 0.02 * jax.random.normal(k4, (1024, 1), jnp.float32),
        "fc2_b": jnp.zeros((1,), jnp.float32),
    }


def prepare_params(p):
    # conv1: pad Cin 3->4 (MXU contraction alignment) and Cout 64->128
    # (lane-dense output stores); reorder K as (kh, kw, Cin).
    w1 = jnp.pad(p["conv1_w"], ((0, 64), (0, 1), (0, 0), (0, 0)))   # (128,4,4,4)
    w1 = w1.transpose(2, 3, 1, 0).reshape(4 * 4 * 4, 128)           # (64, 128)
    b1 = jnp.pad(p["conv1_b"], (0, 64))                             # (128,)
    # conv2: fold conv1's channel padding into the weight -- pad Cin 64->128
    # with zero rows so no activation slice is needed; K ordered (kh, kw, Cin),
    # contraction K = 2048 (lane/MXU aligned).
    w2 = jnp.pad(p["conv2_w"], ((0, 0), (0, 64), (0, 0), (0, 0)))   # (128,128,4,4)
    w2 = w2.transpose(2, 3, 1, 0).reshape(4 * 4 * 128, 128)         # (2048, 128)
    # fc1: permute rows once so NHWC-flattened activations reproduce PyTorch's
    # NCHW .view(-1, 128*8*8) ordering, then weight-only int8 quantization with
    # a per-output-column f32 scale (dequantized in the kernel epilogue).
    fw1 = (p["fc1_w"].reshape(128, 8, 8, 1024)
           .transpose(1, 2, 0, 3).reshape(128 * 8 * 8, 1024))
    amax = jnp.max(jnp.abs(fw1), axis=0, keepdims=True)             # (1, 1024)
    fc1_scale = jnp.maximum(amax, 1e-12) / 127.0
    fc1_q = jnp.clip(jnp.round(fw1 / fc1_scale), -127.0, 127.0).astype(jnp.int8)
    return {
        "w1": w1.astype(jnp.bfloat16), "b1": b1,
        "w2": w2.astype(jnp.bfloat16), "b2": p["conv2_b"],
        "bn2_g": p["bn2_g"], "bn2_b": p["bn2_b"],
        "fc1_w_q": fc1_q, "fc1_scale": fc1_scale, "fc1_b": p["fc1_b"],
        "bn3_g": p["bn3_g"], "bn3_b": p["bn3_b"],
        "fc2_w": p["fc2_w"], "fc2_b": p["fc2_b"],
    }


# ----------------------------------------------------------------------------
# Forward pass (NHWC end-to-end inside; NCHW at the external boundary)
# ----------------------------------------------------------------------------
def discriminator_forward(x, kp):
    B = x.shape[0]
    assert B >= 2, "training-mode BatchNorm needs batch >= 2"
    x_nhwc = jnp.transpose(x, (0, 2, 3, 1))                     # (B,32,32,3)
    x_nhwc = jnp.pad(x_nhwc, ((0, 0), (0, 0), (0, 0), (0, 1)))  # C 3->4 (zeros)
    x_nhwc = x_nhwc.astype(jnp.bfloat16)

    # conv1: Conv2d(3, 64, 4, 2, 1) + LeakyReLU(0.2)   (channels padded to 128)
    p1, ho1, wo1 = im2col_nhwc(x_nhwc, 4, 2, 1)                 # (B*256, 64)
    y1 = conv_lrelu_call(p1, kp["w1"], kp["b1"])                # (B*256, 128)
    y1_img = y1.reshape(B, ho1, wo1, 128)      # keep padded channels (zeroed in w2)

    # conv2: Conv2d(64, 128, 4, 2, 1) + BatchNorm2d(128) + LeakyReLU(0.2)
    p2, ho2, wo2 = im2col_nhwc(y1_img, 4, 2, 1)                 # (B*64, 2048)
    y2 = conv_bn_lrelu_call(p2, kp["w2"], kp["b2"],
                            kp["bn2_g"], kp["bn2_b"])           # (B*64, 128)
    y2_flat = y2.reshape(B, ho2 * wo2 * 128)                    # NHWC flatten

    # fc1 (int8-weight Linear 8192->1024 + BN1d + LeakyReLU) fused with partial
    # fc2 dots, split over two feature halves (both TCs on v7x).
    partials = fc_fused_call(y2_flat, kp["fc1_w_q"], kp["fc1_scale"],
                             kp["fc1_b"], kp["bn3_g"], kp["bn3_b"],
                             kp["fc2_w"])                       # (2, B, 1)
    logit = partials.sum(axis=0) + kp["fc2_b"]                  # (B, 1)
    return jax.nn.sigmoid(logit)


if __name__ == "__main__":
    key = jax.random.PRNGKey(0)
    pkey, xkey = jax.random.split(key)
    params = prepare_params(init_params(pkey))
    # CIFAR-10 32x32 RGB, batch of 2 (BatchNorm needs batch > 1 in training mode)
    x = jax.random.normal(xkey, (2, 3, 32, 32), jnp.float32)

    fwd = jax.jit(discriminator_forward)
    out = jax.block_until_ready(fwd(x, params))
    assert out.shape == (2, 1)
    assert bool(jnp.all(jnp.isfinite(out)))
    assert bool(jnp.all((out >= 0.0) & (out <= 1.0)))
    print("KERNEL_OK")
</pallas_src>

<mosaic_0001>
module attributes {stable_mosaic.version = 11 : i64} {
  func.func @conv_lrelu_kernel(%arg0: memref<512x64xbf16, #tpu.memory_space<vmem>>, %arg1: memref<64x128xbf16, #tpu.memory_space<vmem>>, %arg2: memref<1x128xf32, #tpu.memory_space<vmem>>, %arg3: memref<512x128xbf16, #tpu.memory_space<vmem>>) attributes {dimension_semantics = [], scalar_prefetch = 0 : i64, scratch_operands = 0 : i64, tpu.core_type = #tpu.core_type<tc>} {
    %c0 = arith.constant 0 : index
    %c0_0 = arith.constant 0 : index
    %0 = vector.load %arg0[%c0, %c0_0] : memref<512x64xbf16, #tpu.memory_space<vmem>>, vector<512x64xbf16>
    %c0_1 = arith.constant 0 : index
    %c0_2 = arith.constant 0 : index
    %1 = vector.load %arg1[%c0_1, %c0_2] : memref<64x128xbf16, #tpu.memory_space<vmem>>, vector<64x128xbf16>
    %cst = arith.constant dense<0.000000e+00> : vector<512x128xf32>
    %2 = tpu.matmul %0, %1, %cst {dimension_numbers = #tpu.dot_dimension_numbers<[1], [0], [0], [1], [0, 0, 1, 1], [], []>} : vector<512x64xbf16>, vector<64x128xbf16>, vector<512x128xf32> -> vector<512x128xf32>
    %c0_3 = arith.constant 0 : index
    %c0_4 = arith.constant 0 : index
    %3 = vector.load %arg2[%c0_3, %c0_4] : memref<1x128xf32, #tpu.memory_space<vmem>>, vector<1x128xf32>
    %4 = vector.broadcast %3 : vector<1x128xf32> to vector<512x128xf32>
    %5 = arith.addf %2, %4 : vector<512x128xf32>
    %cst_5 = arith.constant 0.000000e+00 : f32
    %6 = vector.broadcast %cst_5 : f32 to vector<512x128xf32>
    %7 = arith.cmpf oge, %5, %6 : vector<512x128xf32>
    %cst_6 = arith.constant 2.000000e-01 : f32
    %8 = vector.broadcast %cst_6 : f32 to vector<512x128xf32>
    %9 = arith.mulf %8, %5 : vector<512x128xf32>
    %10 = arith.select %7, %5, %9 : vector<512x128xi1>, vector<512x128xf32>
    %11 = arith.truncf %10 : vector<512x128xf32> to vector<512x128xbf16>
    %c0_7 = arith.constant 0 : index
    %c0_8 = arith.constant 0 : index
    %12 = vector.load %arg3[%c0_7, %c0_8] : memref<512x128xbf16, #tpu.memory_space<vmem>>, vector<512x128xbf16>
    tpu.vector_store %arg3[%c0_7, %c0_8], %11 {strides = array<i32>} : memref<512x128xbf16, #tpu.memory_space<vmem>>, vector<512x128xbf16>,
    return
  }
}

module attributes {stable_mosaic.version = 11 : i64} {
  func.func @conv_bn_lrelu_kernel(%arg0: memref<128x2048xbf16, #tpu.memory_space<vmem>>, %arg1: memref<2048x128xbf16, #tpu.memory_space<vmem>>, %arg2: memref<1x128xf32, #tpu.memory_space<vmem>>, %arg3: memref<1x128xf32, #tpu.memory_space<vmem>>, %arg4: memref<1x128xf32, #tpu.memory_space<vmem>>, %arg5: memref<128x128xbf16, #tpu.memory_space<vmem>>) attributes {dimension_semantics = [], scalar_prefetch = 0 : i64, scratch_operands = 0 : i64, tpu.core_type = #tpu.core_type<tc>} {
    %c0 = arith.constant 0 : index
    %c0_0 = arith.constant 0 : index
    %0 = vector.load %arg0[%c0, %c0_0] : memref<128x2048xbf16, #tpu.memory_space<vmem>>, vector<128x2048xbf16>
    %c0_1 = arith.constant 0 : index
    %c0_2 = arith.constant 0 : index
    %1 = vector.load %arg1[%c0_1, %c0_2] : memref<2048x128xbf16, #tpu.memory_space<vmem>>, vector<2048x128xbf16>
    %cst = arith.constant dense<0.000000e+00> : vector<128x128xf32>
    %2 = tpu.matmul %0, %1, %cst {dimension_numbers = #tpu.dot_dimension_numbers<[1], [0], [0], [1], [0, 0, 1, 1], [], []>} : vector<128x2048xbf16>, vector<2048x128xbf16>, vector<128x128xf32> -> vector<128x128xf32>
    %c0_3 = arith.constant 0 : index
    %c0_4 = arith.constant 0 : index
    %3 = vector.load %arg2[%c0_3, %c0_4] : memref<1x128xf32, #tpu.memory_space<vmem>>, vector<1x128xf32>
    %4 = vector.broadcast %3 : vector<1x128xf32> to vector<128x128xf32>
    %5 = arith.addf %2, %4 : vector<128x128xf32>
    %cst_5 = arith.constant dense<0.000000e+00> : vector<128xf32>
    %6 = vector.multi_reduction <add>, %5, %cst_5 [0] : vector<128x128xf32> to vector<128xf32>
    %7 = vector.shape_cast %6 : vector<128xf32> to vector<1x128xf32>
    %cst_6 = arith.constant 1.280000e+02 : f32
    %8 = vector.broadcast %cst_6 : f32 to vector<1x128xf32>
    %9 = arith.divf %7, %8 : vector<1x128xf32>
    %10 = vector.broadcast %9 : vector<1x128xf32> to vector<128x128xf32>
    %11 = arith.subf %5, %10 : vector<128x128xf32>
    %12 = arith.mulf %11, %11 : vector<128x128xf32>
    %cst_7 = arith.constant dense<0.000000e+00> : vector<128xf32>
    %13 = vector.multi_reduction <add>, %12, %cst_7 [0] : vector<128x128xf32> to vector<128xf32>
    %14 = vector.shape_cast %13 : vector<128xf32> to vector<1x128xf32>
    %cst_8 = arith.constant 1.280000e+02 : f32
    %15 = vector.broadcast %cst_8 : f32 to vector<1x128xf32>
    %16 = arith.divf %14, %15 : vector<1x128xf32>
    %17 = vector.broadcast %9 : vector<1x128xf32> to vector<128x128xf32>
    %18 = arith.subf %5, %17 : vector<128x128xf32>
    %cst_9 = arith.constant 9.99999974E-6 : f32
    %19 = vector.broadcast %cst_9 : f32 to vector<1x128xf32>
    %20 = arith.addf %16, %19 : vector<1x128xf32>
    %21 = math.rsqrt %20 : vector<1x128xf32>
    %22 = vector.broadcast %21 : vector<1x128xf32> to vector<128x128xf32>
    %23 = arith.mulf %18, %22 : vector<128x128xf32>
    %c0_10 = arith.constant 0 : index
    %c0_11 = arith.constant 0 : index
    %24 = vector.load %arg3[%c0_10, %c0_11] : memref<1x128xf32, #tpu.memory_space<vmem>>, vector<1x128xf32>
    %25 = vector.broadcast %24 : vector<1x128xf32> to vector<128x128xf32>
    %26 = arith.mulf %23, %25 : vector<128x128xf32>
    %c0_12 = arith.constant 0 : index
    %c0_13 = arith.constant 0 : index
    %27 = vector.load %arg4[%c0_12, %c0_13] : memref<1x128xf32, #tpu.memory_space<vmem>>, vector<1x128xf32>
    %28 = vector.broadcast %27 : vector<1x128xf32> to vector<128x128xf32>
    %29 = arith.addf %26, %28 : vector<128x128xf32>
    %cst_14 = arith.constant 0.000000e+00 : f32
    %30 = vector.broadcast %cst_14 : f32 to vector<128x128xf32>
    %31 = arith.cmpf oge, %29, %30 : vector<128x128xf32>
    %cst_15 = arith.constant 2.000000e-01 : f32
    %32 = vector.broadcast %cst_15 : f32 to vector<128x128xf32>
    %33 = arith.mulf %32, %29 : vector<128x128xf32>
    %34 = arith.select %31, %29, %33 : vector<128x128xi1>, vector<128x128xf32>
    %35 = arith.truncf %34 : vector<128x128xf32> to vector<128x128xbf16>
    %c0_16 = arith.constant 0 : index
    %c0_17 = arith.constant 0 : index
    %36 = vector.load %arg5[%c0_16, %c0_17] : memref<128x128xbf16, #tpu.memory_space<vmem>>, vector<128x128xbf16>
    tpu.vector_store %arg5[%c0_16, %c0_17], %35 {strides = array<i32>} : memref<128x128xbf16, #tpu.memory_space<vmem>>, vector<128x128xbf16>,
    return
  }
}

module attributes {stable_mosaic.version = 11 : i64} {
  func.func @fc_fused_kernel(%arg0: i32, %arg1: i32, %arg2: memref<2x4096xbf16, #tpu.memory_space<vmem>>, %arg3: memref<4096x512xi8, #tpu.memory_space<vmem>>, %arg4: memref<1x512xf32, #tpu.memory_space<vmem>>, %arg5: memref<1x512xf32, #tpu.memory_space<vmem>>, %arg6: memref<1x512xf32, #tpu.memory_space<vmem>>, %arg7: memref<1x512xf32, #tpu.memory_space<vmem>>, %arg8: memref<512x1xf32, #tpu.memory_space<vmem>>, %arg9: memref<1x2x1xf32, #tpu.memory_space<vmem>>, %arg10: memref<2x512xf32, #tpu.memory_space<vmem>>) attributes {dimension_semantics = [#tpu.dimension_semantics<parallel>, #tpu.dimension_semantics<arbitrary>], iteration_bounds = array<i64: 2, 2>, scalar_prefetch = 0 : i64, scratch_operands = 1 : i64, tpu.core_type = #tpu.core_type<tc>, window_params = [{transform_indices = @transform_0, window_bounds = array<i64: 2, 4096>}, {transform_indices = @transform_1, window_bounds = array<i64: 4096, 512>}, {transform_indices = @transform_2, window_bounds = array<i64: 1, 512>}, {transform_indices = @transform_3, window_bounds = array<i64: 1, 512>}, {transform_indices = @transform_4, window_bounds = array<i64: 1, 512>}, {transform_indices = @transform_5, window_bounds = array<i64: 1, 512>}, {transform_indices = @transform_6, window_bounds = array<i64: 512, 1>}, {transform_indices = @transform_7, window_bounds = array<i64: 1, 2, 1>}]} {
    %c0_i32 = arith.constant 0 : i32
    %0 = arith.cmpi eq, %arg1, %c0_i32 : i32
    %1 = arith.extui %0 : i1 to i32
    %c0_i32_0 = arith.constant 0 : i32
    %2 = arith.cmpi ne, %1, %c0_i32_0 : i32
    scf.if %2 {
      %cst_9 = arith.constant 0.000000e+00 : f32
      %13 = vector.broadcast %cst_9 : f32 to vector<2x512xf32>
      %c0_10 = arith.constant 0 : index
      %c0_11 = arith.constant 0 : index
      %14 = vector.load %arg10[%c0_10, %c0_11] : memref<2x512xf32, #tpu.memory_space<vmem>>, vector<2x512xf32>
      tpu.vector_store %arg10[%c0_10, %c0_11], %13 {strides = array<i32>} : memref<2x512xf32, #tpu.memory_space<vmem>>, vector<2x512xf32>,
    } else {
    }
    %c0 = arith.constant 0 : index
    %c0_1 = arith.constant 0 : index
    %3 = vector.load %arg3[%c0, %c0_1] : memref<4096x512xi8, #tpu.memory_space<vmem>>, vector<4096x512xi8>
    %4 = arith.sitofp %3 : vector<4096x512xi8> to vector<4096x512xbf16>
    %c0_2 = arith.constant 0 : index
    %c0_3 = arith.constant 0 : index
    %5 = vector.load %arg10[%c0_2, %c0_3] : memref<2x512xf32, #tpu.memory_space<vmem>>, vector<2x512xf32>
    %c0_4 = arith.constant 0 : index
    %c0_5 = arith.constant 0 : index
    %6 = vector.load %arg2[%c0_4, %c0_5] : memref<2x4096xbf16, #tpu.memory_space<vmem>>, vector<2x4096xbf16>
    %cst = arith.constant dense<0.000000e+00> : vector<2x512xf32>
    %7 = tpu.matmul %6, %4, %cst {dimension_numbers = #tpu.dot_dimension_numbers<[1], [0], [0], [1], [0, 0, 1, 1], [], []>} : vector<2x4096xbf16>, vector<4096x512xbf16>, vector<2x512xf32> -> vector<2x512xf32>
    %8 = arith.addf %5, %7 : vector<2x512xf32>
    %c0_6 = arith.constant 0 : index
    %c0_7 = arith.constant 0 : index
    %9 = vector.load %arg10[%c0_6, %c0_7] : memref<2x512xf32, #tpu.memory_space<vmem>>, vector<2x512xf32>
    tpu.vector_store %arg10[%c0_6, %c0_7], %8 {strides = array<i32>} : memref<2x512xf32, #tpu.memory_space<vmem>>, vector<2x512xf32>,
    %c1_i32 = arith.constant 1 : i32
    %10 = arith.cmpi eq, %arg1, %c1_i32 : i32
    %11 = arith.extui %10 : i1 to i32
    %c0_i32_8 = arith.constant 0 : i32
    %12 = arith.cmpi ne, %11, %c0_i32_8 : i32
    scf.if %12 {
      %c0_9 = arith.constant 0 : index
      %c0_10 = arith.constant 0 : index
      %13 = vector.load %arg10[%c0_9, %c0_10] : memref<2x512xf32, #tpu.memory_space<vmem>>, vector<2x512xf32>
      %c0_11 = arith.constant 0 : index
      %c0_12 = arith.constant 0 : index
      %14 = vector.load %arg4[%c0_11, %c0_12] : memref<1x512xf32, #tpu.memory_space<vmem>>, vector<1x512xf32>
      %15 = vector.broadcast %14 : vector<1x512xf32> to vector<2x512xf32>
      %16 = arith.mulf %13, %15 : vector<2x512xf32>
      %c0_13 = arith.constant 0 : index
      %c0_14 = arith.constant 0 : index
      %17 = vector.load %arg5[%c0_13, %c0_14] : memref<1x512xf32, #tpu.memory_space<vmem>>, vector<1x512xf32>
      %18 = vector.broadcast %17 : vector<1x512xf32> to vector<2x512xf32>
      %19 = arith.addf %16, %18 : vector<2x512xf32>
      %cst_15 = arith.constant dense<0.000000e+00> : vector<512xf32>
      %20 = vector.multi_reduction <add>, %19, %cst_15 [0] : vector<2x512xf32> to vector<512xf32>
      %21 = vector.shape_cast %20 : vector<512xf32> to vector<1x512xf32>
      %cst_16 = arith.constant 2.000000e+00 : f32
      %22 = vector.broadcast %cst_16 : f32 to vector<1x512xf32>
      %23 = arith.divf %21, %22 : vector<1x512xf32>
      %24 = vector.broadcast %23 : vector<1x512xf32> to vector<2x512xf32>
      %25 = arith.subf %19, %24 : vector<2x512xf32>
      %26 = arith.mulf %25, %25 : vector<2x512xf32>
      %cst_17 = arith.constant dense<0.000000e+00> : vector<512xf32>
      %27 = vector.multi_reduction <add>, %26, %cst_17 [0] : vector<2x512xf32> to vector<512xf32>
      %28 = vector.shape_cast %27 : vector<512xf32> to vector<1x512xf32>
      %cst_18 = arith.constant 2.000000e+00 : f32
      %29 = vector.broadcast %cst_18 : f32 to vector<1x512xf32>
      %30 = arith.divf %28, %29 : vector<1x512xf32>
      %31 = vector.broadcast %23 : vector<1x512xf32> to vector<2x512xf32>
      %32 = arith.subf %19, %31 : vector<2x512xf32>
      %cst_19 = arith.constant 9.99999974E-6 : f32
      %33 = vector.broadcast %cst_19 : f32 to vector<1x512xf32>
      %34 = arith.addf %30, %33 : vector<1x512xf32>
      %35 = math.rsqrt %34 : vector<1x512xf32>
      %36 = vector.broadcast %35 : vector<1x512xf32> to vector<2x512xf32>
      %37 = arith.mulf %32, %36 : vector<2x512xf32>
      %c0_20 = arith.constant 0 : index
      %c0_21 = arith.constant 0 : index
      %38 = vector.load %arg6[%c0_20, %c0_21] : memref<1x512xf32, #tpu.memory_space<vmem>>, vector<1x512xf32>
      %39 = vector.broadcast %38 : vector<1x512xf32> to vector<2x512xf32>
      %40 = arith.mulf %37, %39 : vector<2x512xf32>
      %c0_22 = arith.constant 0 : index
      %c0_23 = arith.constant 0 : index
      %41 = vector.load %arg7[%c0_22, %c0_23] : memref<1x512xf32, #tpu.memory_space<vmem>>, vector<1x512xf32>
      %42 = vector.broadcast %41 : vector<1x512xf32> to vector<2x512xf32>
      %43 = arith.addf %40, %42 : vector<2x512xf32>
      %cst_24 = arith.constant 0.000000e+00 : f32
      %44 = vector.broadcast %cst_24 : f32 to vector<2x512xf32>
      %45 = arith.cmpf oge, %43, %44 : vector<2x512xf32>
      %cst_25 = arith.constant 2.000000e-01 : f32
      %46 = vector.broadcast %cst_25 : f32 to vector<2x512xf32>
      %47 = arith.mulf %46, %43 : vector<2x512xf32>
      %48 = arith.select %45, %43, %47 : vector<2x512xi1>, vector<2x512xf32>
      %c0_26 = arith.constant 0 : index
      %c0_27 = arith.constant 0 : index
      %49 = vector.load %arg8[%c0_26, %c0_27] : memref<512x1xf32, #tpu.memory_space<vmem>>, vector<512x1xf32>
      %cst_28 = arith.constant dense<0.000000e+00> : vector<2x1xf32>
      %50 = tpu.matmul %48, %49, %cst_28 {dimension_numbers = #tpu.dot_dimension_numbers<[1], [0], [0], [1], [0, 0, 1, 1], [], []>} : vector<2x512xf32>, vector<512x1xf32>, vector<2x1xf32> -> vector<2x1xf32>
      %c0_29 = arith.constant 0 : index
      %c0_30 = arith.constant 0 : index
      %c0_31 = arith.constant 0 : index
      %51 = vector.load %arg9[%c0_29, %c0_30, %c0_31] : memref<1x2x1xf32, #tpu.memory_space<vmem>>, vector<1x2x1xf32>
      %52 = vector.shape_cast %51 : vector<1x2x1xf32> to vector<2x1xf32>
      %53 = vector.shape_cast %50 : vector<2x1xf32> to vector<1x2x1xf32>
      tpu.vector_store %arg9[%c0_29, %c0_30, %c0_31], %53 {strides = array<i32>} : memref<1x2x1xf32, #tpu.memory_space<vmem>>, vector<1x2x1xf32>,
    } else {
    }
    return
  }
  func.func @transform_0(%arg0: i32, %arg1: i32) -> (i32, i32) {
    %c0_i32 = arith.constant 0 : i32
    %c0_i32_0 = arith.constant 0 : i32
    return %c0_i32, %arg1 : i32, i32
  }
  func.func @transform_1(%arg0: i32, %arg1: i32) -> (i32, i32) {
    %c0_i32 = arith.constant 0 : i32
    return %arg1, %arg0 : i32, i32
  }
  func.func @transform_2(%arg0: i32, %arg1: i32) -> (i32, i32) {
    %c0_i32 = arith.constant 0 : i32
    %c0_i32_0 = arith.constant 0 : i32
    return %c0_i32, %arg0 : i32, i32
  }
  func.func @transform_3(%arg0: i32, %arg1: i32) -> (i32, i32) {
    %c0_i32 = arith.constant 0 : i32
    %c0_i32_0 = arith.constant 0 : i32
    return %c0_i32, %arg0 : i32, i32
  }
  func.func @transform_4(%arg0: i32, %arg1: i32) -> (i32, i32) {
    %c0_i32 = arith.constant 0 : i32
    %c0_i32_0 = arith.constant 0 : i32
    return %c0_i32, %arg0 : i32, i32
  }
  func.func @transform_5(%arg0: i32, %arg1: i32) -> (i32, i32) {
    %c0_i32 = arith.constant 0 : i32
    %c0_i32_0 = arith.constant 0 : i32
    return %c0_i32, %arg0 : i32, i32
  }
  func.func @transform_6(%arg0: i32, %arg1: i32) -> (i32, i32) {
    %c0_i32 = arith.constant 0 : i32
    %c0_i32_0 = arith.constant 0 : i32
    return %arg0, %c0_i32 : i32, i32
  }
  func.func @transform_7(%arg0: i32, %arg1: i32) -> (i32, i32, i32) {
    %c0_i32 = arith.constant 0 : i32
    %c0_i32_0 = arith.constant 0 : i32
    %c0_i32_1 = arith.constant 0 : i32
    return %arg0, %c0_i32, %c0_i32_0 : i32, i32, i32
  }
}

</mosaic_0001>

<bundles_post_ra>
// kernel: discriminator_forward.3
= control target key start
LH: loop header
LB: loop body
LE: loop exit
PB: predicated region body
PF: predicated region fallthrough
CT: control target
= control target key end

     0   :  { %8 = vsyncpa [#allocation3], 0  ;;  %s2119_s0 = inlined_call_operand.vmem [shape: bf16[512,64], index: 0, kind: input, shape index: {}]   ;;  %s2120_s1 = inlined_call_operand.hbm [shape: bf16[64,128], index: 1, kind: input, shape index: {}]   ;;  %s2121_s2 = inlined_call_operand.hbm [shape: f32[1,128], index: 2, kind: input, shape index: {}]   ;;  %s2122_s3 = inlined_call_operand.vmem [shape: bf16[512,128], index: 3, kind: output, shape index: {}]  }
   0x1   :  { %9 = vsyncpa [#allocation5], 0  ;;  %s1796_s12 = smov [#allocation2]  }
   0x2   :  { %s17_s13 = sshll.u32 %s1796_s12, 4  ;;  %s18_s13 = int_to_ptr.vmem [resolvable:$true] %s17_s13 }
   0x3   :  { %s1760_s14 = scalar_lea.vmem %s18_s13, 512  ;;  %p1765_p1 = scmp.lt.s32.totalorder %s18_s13, %s18_s13 }
   0x4   :  { %p1761_p0 = scmp.ne.s32.totalorder %s18_s13, %s1760_s14  ;;  %p1766_p2 = scmp.lt.s32.totalorder %s1760_s14, %s1760_s14 }
   0x6   :  { %p1767_p3 = por %p1766_p2, %p1765_p1 }
   0x8   :  { %p1768_p4 = pnand %p1767_p3, %p1761_p0 }
   0xa   :  { %1771 = shalt.err (!%p1768_p4)
}
   0xb   :  { %s1797_s15 = smov 64   ;;  %s1798_s16 = smov 4  }
   0xc   :  { %23 = dma.hbm_to_vmem [thread:$0]  %s2120_s1, 512, %s18_s13, [#allocation3], %s1797_s15, %s1797_s15, %s1798_s16  }
   0xd   :  { %s1799_s19 = smov [#allocation4]  }
   0xe   :  { %s30_s20 = sshll.u32 %s1799_s19, 4  ;;  %s31_s20 = int_to_ptr.vmem [resolvable:$true] %s30_s20 }
   0xf   :  { %s1780_s21 = scalar_lea.vmem %s31_s20, 16  ;;  %s1784_s22 = scalar_lea.vmem %s31_s20, 32 }
  0x10   :  { %p1781_p5 = scmp.ne.s32.totalorder %s31_s20, %s1780_s21  ;;  %p1785_p6 = scmp.lt.s32.totalorder %s31_s20, %s31_s20 }
  0x11   :  { %p1786_p7 = scmp.lt.s32.totalorder %s1784_s22, %s1780_s21 }
  0x13   :  { %p1787_p8 = por %p1786_p7, %p1785_p6 }
  0x15   :  { %p1788_p9 = pnand %p1787_p8, %p1781_p5 }
  0x17   :  { %1791 = shalt.err (!%p1788_p9)
}
  0x18   :  { %33 = dma.hbm_to_vmem [thread:$0]  %s2121_s2, 16, %s31_s20, [#allocation5]  }
  0x19   :  { %1792 = dma.done.wait [#allocation3], 512  }
  0x1a   :  { %1793 = vsyncadd [#allocation3], 4294966784 }
  0x1b   :  { %1794 = dma.done.wait [#allocation5], 16  }
  0x1c   :  { %1795 = vsyncadd [#allocation5], 4294967280  ;;  %v1716_v0 = vld [vmem:[#allocation2 + $0x18] sm:$0xff]   ;;  %v1717_v1 = vld [vmem:[#allocation2 + $0x10] sm:$0xff]   ;;  %vm304_vm0 = vcmask 523264  }
  0x1d   :  { %1632 = vmatprep.subr.bf16.mxu0 %v1716_v0  ;;  %1704 = vmatprep.subr.bf16.mxu1 %v1716_v0  ;;  %v1718_v2 = vld [vmem:[#allocation2 + $0x8] sm:$0xff]   ;;  %v1720_v3 = vld [vmem:[%s2119_s0] sm:$0xff]   ;;  %v1724_v8 = vld [vmem:[%s2119_s0 + $0x10] sm:$0xff]  }
  0x1e   :  { %1633 = vmatpush3.bf16.msra.mxu0 %v1716_v0  ;;  %1708 = vmatpush3.bf16.msra.mxu1 %v1716_v0  ;;  %v1721_v4 = vld [vmem:[%s2119_s0 + $0x80] sm:$0xff]   ;;  %v1722_v6 = vld [vmem:[%s2119_s0 + $0x8] sm:$0xff]   ;;  %v1725_v9 = vld [vmem:[%s2119_s0 + $0x90] sm:$0xff]  }
  0x1f   :  { %1634 = vmatprep.subr.bf16.mxu0 %v1717_v1  ;;  %1705 = vmatprep.subr.bf16.mxu1 %v1717_v1  ;;  %v1719_v5 = vld [vmem:[#allocation2] sm:$0xff]   ;;  %v1723_v7 = vld [vmem:[%s2119_s0 + $0x88] sm:$0xff]   ;;  %v1726_v10 = vld [vmem:[%s2119_s0 + $0x18] sm:$0xff]  }
  0x20   :  { %1640 = vmatprep.mubr.msk.bf16.mxu0 %vm304_vm0, %v1720_v3  ;;  %1672 = vmatprep.mubr.msk.bf16.mxu1 %vm304_vm0, %v1721_v4  ;;  %v1727_v11 = vld [vmem:[%s2119_s0 + $0x98] sm:$0xff]   ;;  %v1728_v12 = vld [vmem:[%s2119_s0 + $0x20] sm:$0xff]   ;;  %v1730_v14 = vld [vmem:[%s2119_s0 + $0x28] sm:$0xff]  }
  0x21   :  { %v1729_v13 = vld [vmem:[%s2119_s0 + $0xa0] sm:$0xff]   ;;  %v1731_v15 = vld [vmem:[%s2119_s0 + $0xa8] sm:$0xff]   ;;  %v1732_v16 = vld [vmem:[%s2119_s0 + $0x30] sm:$0xff]  }
  0x22   :  { %1635 = vmatpush3.bf16.msra.mxu0 %v1717_v1  ;;  %1709 = vmatpush3.bf16.msra.mxu1 %v1717_v1  ;;  %v1733_v17 = vld [vmem:[%s2119_s0 + $0xb0] sm:$0xff]   ;;  %v1734_v18 = vld [vmem:[%s2119_s0 + $0x38] sm:$0xff]   ;;  %v1736_v20 = vld [vmem:[%s2119_s0 + $0x40] sm:$0xff]  }
  0x23   :  { %1636 = vmatprep.subr.bf16.mxu0 %v1718_v2  ;;  %1706 = vmatprep.subr.bf16.mxu1 %v1718_v2  ;;  %v1735_v19 = vld [vmem:[%s2119_s0 + $0xb8] sm:$0xff]   ;;  %v1737_v21 = vld [vmem:[%s2119_s0 + $0xc0] sm:$0xff]   ;;  %v1738_v22 = vld [vmem:[%s2119_s0 + $0x48] sm:$0xff]  }
  0x24   :  { %v1739_v23 = vld [vmem:[%s2119_s0 + $0xc8] sm:$0xff]   ;;  %v1740_v24 = vld [vmem:[%s2119_s0 + $0x50] sm:$0xff]   ;;  %v1742_v26 = vld [vmem:[%s2119_s0 + $0x58] sm:$0xff]  }
  0x25   :  { %v1741_v25 = vld [vmem:[%s2119_s0 + $0xd0] sm:$0xff]   ;;  %v1743_v27 = vld [vmem:[%s2119_s0 + $0xd8] sm:$0xff]   ;;  %v1744_v28 = vld [vmem:[%s2119_s0 + $0x60] sm:$0xff]  }
  0x26   :  { %1637 = vmatpush3.bf16.msra.mxu0 %v1718_v2  ;;  %1710 = vmatpush3.bf16.msra.mxu1 %v1718_v2  ;;  %v1745_v29 = vld [vmem:[%s2119_s0 + $0xe0] sm:$0xff]   ;;  %v1746_v30 = vld [vmem:[%s2119_s0 + $0x68] sm:$0xff]   ;;  %v1748_v32 = vld [vmem:[%s2119_s0 + $0x70] sm:$0xff]  }
  0x27   :  { %1638 = vmatprep.subr.bf16.mxu0 %v1719_v5  ;;  %1707 = vmatprep.subr.bf16.mxu1 %v1719_v5  ;;  %v1747_v31 = vld [vmem:[%s2119_s0 + $0xe8] sm:$0xff]   ;;  %v1749_v33 = vld [vmem:[%s2119_s0 + $0xf0] sm:$0xff]   ;;  %v1750_v34 = vld [vmem:[%s2119_s0 + $0x78] sm:$0xff]  }
  0x28   :  { %v1751_v35 = vld [vmem:[%s2119_s0 + $0xf8] sm:$0xff]   ;;  %v1954_v36 = vld [vmem:[#allocation4] ss:$0 sm:$0xff] }
  0x2a   :  { %1639 = vmatpush3.bf16.msra.mxu0 %v1719_v5  ;;  %1711 = vmatpush3.bf16.msra.mxu1 %v1719_v5 }
  0x2d   :  { %1641 = vmatmul.mubr.msk.bf16.vlgmr.msra.gmra.mxu0 %vm304_vm0, %v1722_v6  ;;  %1673 = vmatmul.mubr.msk.bf16.vlgmr.msra.gmra.mxu1 %vm304_vm0, %v1723_v7 }
  0x2e   :  { %1644 = vmatprep.mubr.msk.bf16.mxu0 %vm304_vm0, %v1724_v8  ;;  %1676 = vmatprep.mubr.msk.bf16.mxu1 %vm304_vm0, %v1725_v9 }
  0x35   :  { %1645 = vmatmul.mubr.msk.bf16.gmra.mxu0 %vm304_vm0, %v1726_v10  ;;  %1677 = vmatmul.mubr.msk.bf16.gmra.mxu1 %vm304_vm0, %v1727_v11 }
  0x36   :  { %1648 = vmatprep.mubr.msk.bf16.mxu0 %vm304_vm0, %v1728_v12  ;;  %1680 = vmatprep.mubr.msk.bf16.mxu1 %vm304_vm0, %v1729_v13 }
  0x3d   :  { %1649 = vmatmul.mubr.msk.bf16.gmra.mxu0 %vm304_vm0, %v1730_v14  ;;  %1681 = vmatmul.mubr.msk.bf16.gmra.mxu1 %vm304_vm0, %v1731_v15 }
  0x3e   :  { %1652 = vmatprep.mubr.msk.bf16.mxu0 %vm304_vm0, %v1732_v16  ;;  %1684 = vmatprep.mubr.msk.bf16.mxu1 %vm304_vm0, %v1733_v17 }
  0x45   :  { %1653 = vmatmul.mubr.msk.bf16.gmra.mxu0 %vm304_vm0, %v1734_v18  ;;  %1685 = vmatmul.mubr.msk.bf16.gmra.mxu1 %vm304_vm0, %v1735_v19 }
  0x46   :  { %1656 = vmatprep.mubr.msk.bf16.mxu0 %vm304_vm0, %v1736_v20  ;;  %1688 = vmatprep.mubr.msk.bf16.mxu1 %vm304_vm0, %v1737_v21 }
  0x4d   :  { %1657 = vmatmul.mubr.msk.bf16.gmra.mxu0 %vm304_vm0, %v1738_v22  ;;  %1689 = vmatmul.mubr.msk.bf16.gmra.mxu1 %vm304_vm0, %v1739_v23 }
  0x4e   :  { %1660 = vmatprep.mubr.msk.bf16.mxu0 %vm304_vm0, %v1740_v24  ;;  %1692 = vmatprep.mubr.msk.bf16.mxu1 %vm304_vm0, %v1741_v25 }
  0x55   :  { %1661 = vmatmul.mubr.msk.bf16.gmra.mxu0 %vm304_vm0, %v1742_v26  ;;  %1693 = vmatmul.mubr.msk.bf16.gmra.mxu1 %vm304_vm0, %v1743_v27 }
  0x56   :  { %1664 = vmatprep.mubr.msk.bf16.mxu0 %vm304_vm0, %v1744_v28  ;;  %1696 = vmatprep.mubr.msk.bf16.mxu1 %vm304_vm0, %v1745_v29 }
  0x5d   :  { %1665 = vmatmul.mubr.msk.bf16.gmra.mxu0 %vm304_vm0, %v1746_v30  ;;  %1697 = vmatmul.mubr.msk.bf16.gmra.mxu1 %vm304_vm0, %v1747_v31 }
  0x5e   :  { %1668 = vmatprep.mubr.msk.bf16.mxu0 %vm304_vm0, %v1748_v32  ;;  %1700 = vmatprep.mubr.msk.bf16.mxu1 %vm304_vm0, %v1749_v33 }
  0x65   :  { %1669 = vmatmul.mubr.msk.bf16.gmra.mxu0 %vm304_vm0, %v1750_v34  ;;  %1701 = vmatmul.mubr.msk.bf16.gmra.mxu1 %vm304_vm0, %v1751_v35 }
  0xed   :  { %v1642_v37 = vpop.f32.mrf.mxu0  ;;  %v1674_v38 = vpop.f32.mrf.mxu1 }
  0xee   :  { %v444_v39 = vadd.f32 %v1642_v37, %v1954_v36  ;;  %v572_v40 = vadd.f32 %v1674_v38, %v1954_v36 }
  0xef   :  { %v435_v41 = vpop.f32.mrf.mxu0  ;;  %v563_v42 = vpop.f32.mrf.mxu1 }
  0xf0   :  { %vm692_vm1 = vcmp.ge.f32.partialorder %v444_v39, 0.0  ;;  %v756_v43 = vmul.f32 0.2, %v444_v39  ;;  %vm724_vm2 = vcmp.ge.f32.partialorder %v572_v40, 0.0  ;;  %v788_v44 = vmul.f32 0.2, %v572_v40 }
  0xf1   :  { %v436_v45 = vadd.f32 %v1954_v36, %v435_v41  ;;  %v564_v46 = vadd.f32 %v1954_v36, %v563_v42  ;;  %v1643_v47 = vpop.f32.mrf.mxu0  ;;  %v1675_v48 = vpop.f32.mrf.mxu1 }
  0xf2   :  { %v820_v49 = vsel %vm692_vm1, %v444_v39, %v756_v43  ;;  %v447_v50 = vadd.f32 %v1643_v47, %v1954_v36  ;;  %v575_v51 = vadd.f32 %v1675_v48, %v1954_v36  ;;  %v852_v52 = vsel %vm724_vm2, %v572_v40, %v788_v44 }
  0xf3   :  { %vm690_vm3 = vcmp.ge.f32.partialorder %v436_v45, 0.0  ;;  %v754_v53 = vmul.f32 0.2, %v436_v45  ;;  %vm722_vm4 = vcmp.ge.f32.partialorder %v564_v46, 0.0  ;;  %v438_v54 = vpop.f32.mrf.mxu0  ;;  %v566_v55 = vpop.f32.mrf.mxu1  ;;  %v786_v59 = vmul.f32 0.2, %v564_v46 }
  0xf4   :  { %vm693_vm5 = vcmp.ge.f32.partialorder %v447_v50, 0.0  ;;  %v757_v56 = vmul.f32 0.2, %v447_v50  ;;  %vm725_vm6 = vcmp.ge.f32.partialorder %v575_v51, 0.0  ;;  %v789_v57 = vmul.f32 0.2, %v575_v51 }
  0xf5   :  { %v818_v58 = vsel %vm690_vm3, %v436_v45, %v754_v53  ;;  %v439_v60 = vadd.f32 %v1954_v36, %v438_v54  ;;  %v567_v61 = vadd.f32 %v1954_v36, %v566_v55  ;;  %v1646_v62 = vpop.f32.mrf.mxu0  ;;  %v1678_v63 = vpop.f32.mrf.mxu1  ;;  %v850_v11 = vsel %vm722_vm4, %v564_v46, %v786_v59 }
  0xf6   :  { %v821_v0 = vsel %vm693_vm5, %v447_v50, %v757_v56  ;;  %v853_v1 = vsel %vm725_vm6, %v575_v51, %v789_v57  ;;  %v460_v2 = vadd.f32 %v1646_v62, %v1954_v36  ;;  %v588_v3 = vadd.f32 %v1678_v63, %v1954_v36 }
  0xf7   :  { %v1413_v4 = vpack.c.bf16 %v821_v0, %v820_v49  ;;  %v1493_v5 = vpack.c.bf16 %v853_v1, %v852_v52  ;;  %vm691_vm7 = vcmp.ge.f32.partialorder %v439_v60, 0.0  ;;  %v755_v6 = vmul.f32 0.2, %v439_v60  ;;  %v451_v7 = vpop.f32.mrf.mxu0  ;;  %v579_v8 = vpop.f32.mrf.mxu1 }
  0xf8   :  { %vm723_vm8 = vcmp.ge.f32.partialorder %v567_v61, 0.0  ;;  %v787_v9 = vmul.f32 0.2, %v567_v61  ;;  %vm696_vm9 = vcmp.ge.f32.partialorder %v460_v2, 0.0  ;;  %v760_v10 = vmul.f32 0.2, %v460_v2 }
  0xf9   :  { %1565 = vst [vmem:[%s2122_s3 + $0x8] sm:$0xff] %v1413_v4   ;;  %1581 = vst [vmem:[%s2122_s3 + $0x88] sm:$0xff] %v1493_v5   ;;  %v819_v12 = vsel %vm691_vm7, %v439_v60, %v755_v6  ;;  %v792_v13 = vmul.f32 0.2, %v588_v3  ;;  %v452_v14 = vadd.f32 %v1954_v36, %v451_v7  ;;  %v1647_v15 = vpop.f32.mrf.mxu0  ;;  %v1679_v16 = vpop.f32.mrf.mxu1  ;;  %vm728_vm10 = vcmp.ge.f32.partialorder %v588_v3, 0.0 }
  0xfa   :  { %v1408_v17 = vpack.c.bf16 %v819_v12, %v818_v58  ;;  %v851_v18 = vsel %vm723_vm8, %v567_v61, %v787_v9  ;;  %v580_v19 = vadd.f32 %v1954_v36, %v579_v8  ;;  %v824_v21 = vsel %vm696_vm9, %v460_v2, %v760_v10 }
  0xfb   :  { %v1488_v20 = vpack.c.bf16 %v851_v18, %v850_v11  ;;  %vm694_vm11 = vcmp.ge.f32.partialorder %v452_v14, 0.0  ;;  %v758_v22 = vmul.f32 0.2, %v452_v14  ;;  %v454_v23 = vpop.f32.mrf.mxu0  ;;  %v582_v24 = vpop.f32.mrf.mxu1  ;;  %v463_v26 = vadd.f32 %v1647_v15, %v1954_v36 }
  0xfc   :  { %1409 = vst [vmem:[%s2122_s3] sm:$0xff] %v1408_v17   ;;  %vm726_vm12 = vcmp.ge.f32.partialorder %v580_v19, 0.0  ;;  %v790_v25 = vmul.f32 0.2, %v580_v19  ;;  %v591_v27 = vadd.f32 %v1679_v16, %v1954_v36  ;;  %v856_v28 = vsel %vm728_vm10, %v588_v3, %v792_v13 }
  0xfd   :  { %1580 = vst [vmem:[%s2122_s3 + $0x80] sm:$0xff] %v1488_v20   ;;  %v822_v29 = vsel %vm694_vm11, %v452_v14, %v758_v22  ;;  %v455_v30 = vadd.f32 %v1954_v36, %v454_v23  ;;  %v583_v31 = vadd.f32 %v1954_v36, %v582_v24  ;;  %v1650_v32 = vpop.f32.mrf.mxu0  ;;  %v1682_v33 = vpop.f32.mrf.mxu1  ;;  %vm697_vm13 = vcmp.ge.f32.partialorder %v463_v26, 0.0 }
  0xfe   :  { %v854_v34 = vsel %vm726_vm12, %v580_v19, %v790_v25  ;;  %v761_v35 = vmul.f32 0.2, %v463_v26  ;;  %vm729_vm14 = vcmp.ge.f32.partialorder %v591_v27, 0.0  ;;  %v793_v37 = vmul.f32 0.2, %v591_v27 }
  0xff   :  { %vm695_vm15 = vcmp.ge.f32.partialorder %v455_v30, 0.0  ;;  %v759_v38 = vmul.f32 0.2, %v455_v30  ;;  %vm727_vm0 = vcmp.ge.f32.partialorder %v583_v31, 0.0  ;;  %v467_v39 = vpop.f32.mrf.mxu0  ;;  %v595_v40 = vpop.f32.mrf.mxu1  ;;  %v791_v42 = vmul.f32 0.2, %v583_v31 }
 0x100   :  { %v825_v41 = vsel %vm697_vm13, %v463_v26, %v761_v35  ;;  %v476_v43 = vadd.f32 %v1650_v32, %v1954_v36  ;;  %v604_v44 = vadd.f32 %v1682_v33, %v1954_v36  ;;  %v857_v46 = vsel %vm729_vm14, %v591_v27, %v793_v37 }
 0x101   :  { %v1423_v45 = vpack.c.bf16 %v825_v41, %v824_v21  ;;  %v823_v47 = vsel %vm695_vm15, %v455_v30, %v759_v38  ;;  %v468_v48 = vadd.f32 %v1954_v36, %v467_v39  ;;  %v1651_v49 = vpop.f32.mrf.mxu0  ;;  %v1683_v50 = vpop.f32.mrf.mxu1  ;;  %v1503_v51 = vpack.c.bf16 %v857_v46, %v856_v28 }
 0x102   :  { %v1418_v52 = vpack.c.bf16 %v823_v47, %v822_v29  ;;  %v855_v53 = vsel %vm727_vm0, %v583_v31, %v791_v42  ;;  %vm700_vm1 = vcmp.ge.f32.partialorder %v476_v43, 0.0  ;;  %v764_v55 = vmul.f32 0.2, %v476_v43 }
 0x103   :  { %1567 = vst [vmem:[%s2122_s3 + $0x18] sm:$0xff] %v1423_v45   ;;  %v1498_v54 = vpack.c.bf16 %v855_v53, %v854_v34  ;;  %vm732_vm2 = vcmp.ge.f32.partialorder %v604_v44, 0.0  ;;  %v796_v56 = vmul.f32 0.2, %v604_v44  ;;  %v470_v57 = vpop.f32.mrf.mxu0  ;;  %v598_v58 = vpop.f32.mrf.mxu1  ;;  %1583 = vst [vmem:[%s2122_s3 + $0x98] sm:$0xff] %v1503_v51   ;;  %vm698_vm3 = vcmp.ge.f32.partialorder %v468_v48, 0.0 }
 0x104   :  { %1566 = vst [vmem:[%s2122_s3 + $0x10] sm:$0xff] %v1418_v52   ;;  %v762_v59 = vmul.f32 0.2, %v468_v48  ;;  %v596_v60 = vadd.f32 %v1954_v36, %v595_v40  ;;  %v479_v61 = vadd.f32 %v1651_v49, %v1954_v36  ;;  %v828_v62 = vsel %vm700_vm1, %v476_v43, %v764_v55 }
 0x105   :  { %1582 = vst [vmem:[%s2122_s3 + $0x90] sm:$0xff] %v1498_v54   ;;  %v860_v63 = vsel %vm732_vm2, %v604_v44, %v796_v56  ;;  %v607_v0 = vadd.f32 %v1683_v50, %v1954_v36  ;;  %v471_v1 = vadd.f32 %v1954_v36, %v470_v57  ;;  %v1654_v2 = vpop.f32.mrf.mxu0  ;;  %v1686_v3 = vpop.f32.mrf.mxu1  ;;  %v599_v12 = vadd.f32 %v1954_v36, %v598_v58 }
 0x106   :  { %v826_v4 = vsel %vm698_vm3, %v468_v48, %v762_v59  ;;  %vm730_vm4 = vcmp.ge.f32.partialorder %v596_v60, 0.0  ;;  %v794_v5 = vmul.f32 0.2, %v596_v60  ;;  %vm701_vm5 = vcmp.ge.f32.partialorder %v479_v61, 0.0 }
 0x107   :  { %v765_v6 = vmul.f32 0.2, %v479_v61  ;;  %vm733_vm6 = vcmp.ge.f32.partialorder %v607_v0, 0.0  ;;  %v797_v7 = vmul.f32 0.2, %v607_v0  ;;  %vm699_vm7 = vcmp.ge.f32.partialorder %v471_v1, 0.0  ;;  %v483_v8 = vpop.f32.mrf.mxu0  ;;  %v611_v9 = vpop.f32.mrf.mxu1 }
 0x108   :  { %v858_v10 = vsel %vm730_vm4, %v596_v60, %v794_v5  ;;  %v763_v11 = vmul.f32 0.2, %v471_v1  ;;  %v492_v13 = vadd.f32 %v1654_v2, %v1954_v36  ;;  %v620_v16 = vadd.f32 %v1686_v3, %v1954_v36 }
 0x109   :  { %v829_v14 = vsel %vm701_vm5, %v479_v61, %v765_v6  ;;  %v861_v15 = vsel %vm733_vm6, %v607_v0, %v797_v7  ;;  %v484_v17 = vadd.f32 %v1954_v36, %v483_v8  ;;  %v1655_v18 = vpop.f32.mrf.mxu0  ;;  %v1687_v19 = vpop.f32.mrf.mxu1  ;;  %vm731_vm8 = vcmp.ge.f32.partialorder %v599_v12, 0.0 }
 0x10a   :  { %v1433_v20 = vpack.c.bf16 %v829_v14, %v828_v62  ;;  %v1513_v21 = vpack.c.bf16 %v861_v15, %v860_v63  ;;  %v827_v22 = vsel %vm699_vm7, %v471_v1, %v763_v11  ;;  %v795_v24 = vmul.f32 0.2, %v599_v12 }
 0x10b   :  { %v1428_v23 = vpack.c.bf16 %v827_v22, %v826_v4  ;;  %vm704_vm9 = vcmp.ge.f32.partialorder %v492_v13, 0.0  ;;  %v768_v25 = vmul.f32 0.2, %v492_v13  ;;  %v486_v26 = vpop.f32.mrf.mxu0  ;;  %v614_v27 = vpop.f32.mrf.mxu1  ;;  %vm736_vm10 = vcmp.ge.f32.partialorder %v620_v16, 0.0 }
 0x10c   :  { %1569 = vst [vmem:[%s2122_s3 + $0x28] sm:$0xff] %v1433_v20   ;;  %1585 = vst [vmem:[%s2122_s3 + $0xa8] sm:$0xff] %v1513_v21   ;;  %v800_v28 = vmul.f32 0.2, %v620_v16  ;;  %vm702_vm11 = vcmp.ge.f32.partialorder %v484_v17, 0.0  ;;  %v859_v30 = vsel %vm731_vm8, %v599_v12, %v795_v24  ;;  %v612_v32 = vadd.f32 %v1954_v36, %v611_v9 }
 0x10d   :  { %v766_v29 = vmul.f32 0.2, %v484_v17  ;;  %1568 = vst [vmem:[%s2122_s3 + $0x20] sm:$0xff] %v1428_v23   ;;  %v832_v31 = vsel %vm704_vm9, %v492_v13, %v768_v25  ;;  %v495_v33 = vadd.f32 %v1655_v18, %v1954_v36  ;;  %v1658_v34 = vpop.f32.mrf.mxu0  ;;  %v1690_v35 = vpop.f32.mrf.mxu1  ;;  %v1508_v37 = vpack.c.bf16 %v859_v30, %v858_v10 }
 0x10e   :  { %v864_v38 = vsel %vm736_vm10, %v620_v16, %v800_v28  ;;  %v623_v40 = vadd.f32 %v1687_v19, %v1954_v36  ;;  %vm734_vm12 = vcmp.ge.f32.partialorder %v612_v32, 0.0  ;;  %v798_v41 = vmul.f32 0.2, %v612_v32 }
 0x10f   :  { %v830_v39 = vsel %vm702_vm11, %v484_v17, %v766_v29  ;;  %vm705_vm13 = vcmp.ge.f32.partialorder %v495_v33, 0.0  ;;  %v769_v42 = vmul.f32 0.2, %v495_v33  ;;  %v499_v43 = vpop.f32.mrf.mxu0  ;;  %v627_v44 = vpop.f32.mrf.mxu1  ;;  %1584 = vst [vmem:[%s2122_s3 + $0xa0] sm:$0xff] %v1508_v37   ;;  %v487_v46 = vadd.f32 %v1954_v36, %v486_v26 }
 0x110   :  { %vm737_vm14 = vcmp.ge.f32.partialorder %v623_v40, 0.0  ;;  %v801_v45 = vmul.f32 0.2, %v623_v40  ;;  %v615_v47 = vadd.f32 %v1954_v36, %v614_v27  ;;  %v862_v48 = vsel %vm734_vm12, %v612_v32, %v798_v41 }
 0x111   :  { %v833_v49 = vsel %vm705_vm13, %v495_v33, %v769_v42  ;;  %v508_v50 = vadd.f32 %v1658_v34, %v1954_v36  ;;  %v636_v51 = vadd.f32 %v1690_v35, %v1954_v36  ;;  %v1659_v52 = vpop.f32.mrf.mxu0  ;;  %v1691_v53 = vpop.f32.mrf.mxu1  ;;  %vm703_vm15 = vcmp.ge.f32.partialorder %v487_v46, 0.0 }
 0x112   :  { %v1443_v54 = vpack.c.bf16 %v833_v49, %v832_v31  ;;  %v865_v55 = vsel %vm737_vm14, %v623_v40, %v801_v45  ;;  %v767_v56 = vmul.f32 0.2, %v487_v46  ;;  %vm735_vm0 = vcmp.ge.f32.partialorder %v615_v47, 0.0 }
 0x113   :  { %v1523_v57 = vpack.c.bf16 %v865_v55, %v864_v38  ;;  %v799_v58 = vmul.f32 0.2, %v615_v47  ;;  %vm708_vm1 = vcmp.ge.f32.partialorder %v508_v50, 0.0  ;;  %v502_v59 = vpop.f32.mrf.mxu0  ;;  %v630_v60 = vpop.f32.mrf.mxu1  ;;  %v772_v62 = vmul.f32 0.2, %v508_v50 }
 0x114   :  { %1571 = vst [vmem:[%s2122_s3 + $0x38] sm:$0xff] %v1443_v54   ;;  %v831_v61 = vsel %vm703_vm15, %v487_v46, %v767_v56  ;;  %vm740_vm2 = vcmp.ge.f32.partialorder %v636_v51, 0.0  ;;  %v804_v63 = vmul.f32 0.2, %v636_v51  ;;  %v500_v2 = vadd.f32 %v1954_v36, %v499_v43 }
 0x115   :  { %1587 = vst [vmem:[%s2122_s3 + $0xb8] sm:$0xff] %v1523_v57   ;;  %v1438_v0 = vpack.c.bf16 %v831_v61, %v830_v39  ;;  %v863_v1 = vsel %vm735_vm0, %v615_v47, %v799_v58  ;;  %v628_v3 = vadd.f32 %v1954_v36, %v627_v44  ;;  %v1662_v4 = vpop.f32.mrf.mxu0  ;;  %v1694_v5 = vpop.f32.mrf.mxu1  ;;  %v836_v7 = vsel %vm708_vm1, %v508_v50, %v772_v62 }
 0x116   :  { %v1518_v6 = vpack.c.bf16 %v863_v1, %v862_v48  ;;  %v868_v8 = vsel %vm740_vm2, %v636_v51, %v804_v63  ;;  %v511_v9 = vadd.f32 %v1659_v52, %v1954_v36  ;;  %vm706_vm3 = vcmp.ge.f32.partialorder %v500_v2, 0.0 }
 0x117   :  { %1570 = vst [vmem:[%s2122_s3 + $0x30] sm:$0xff] %v1438_v0   ;;  %v770_v10 = vmul.f32 0.2, %v500_v2  ;;  %vm738_vm4 = vcmp.ge.f32.partialorder %v628_v3, 0.0  ;;  %v802_v11 = vmul.f32 0.2, %v628_v3  ;;  %v515_v12 = vpop.f32.mrf.mxu0  ;;  %v643_v13 = vpop.f32.mrf.mxu1  ;;  %v639_v15 = vadd.f32 %v1691_v53, %v1954_v36 }
 0x118   :  { %1586 = vst [vmem:[%s2122_s3 + $0xb0] sm:$0xff] %v1518_v6   ;;  %vm709_vm5 = vcmp.ge.f32.partialorder %v511_v9, 0.0  ;;  %v773_v14 = vmul.f32 0.2, %v511_v9  ;;  %v503_v16 = vadd.f32 %v1954_v36, %v502_v59  ;;  %v631_v19 = vadd.f32 %v1954_v36, %v630_v60 }
 0x119   :  { %v834_v17 = vsel %vm706_vm3, %v500_v2, %v770_v10  ;;  %v866_v18 = vsel %vm738_vm4, %v628_v3, %v802_v11  ;;  %v524_v20 = vadd.f32 %v1662_v4, %v1954_v36  ;;  %v1663_v21 = vpop.f32.mrf.mxu0  ;;  %v1695_v22 = vpop.f32.mrf.mxu1  ;;  %vm741_vm6 = vcmp.ge.f32.partialorder %v639_v15, 0.0 }
 0x11a   :  { %v837_v23 = vsel %vm709_vm5, %v511_v9, %v773_v14  ;;  %v805_v24 = vmul.f32 0.2, %v639_v15  ;;  %vm707_vm7 = vcmp.ge.f32.partialorder %v503_v16, 0.0  ;;  %v771_v26 = vmul.f32 0.2, %v503_v16 }
 0x11b   :  { %v1453_v25 = vpack.c.bf16 %v837_v23, %v836_v7  ;;  %vm739_vm8 = vcmp.ge.f32.partialorder %v631_v19, 0.0  ;;  %v803_v27 = vmul.f32 0.2, %v631_v19  ;;  %v518_v28 = vpop.f32.mrf.mxu0  ;;  %v646_v29 = vpop.f32.mrf.mxu1  ;;  %vm712_vm9 = vcmp.ge.f32.partialorder %v524_v20, 0.0 }
 0x11c   :  { %v869_v30 = vsel %vm741_vm6, %v639_v15, %v805_v24  ;;  %v776_v31 = vmul.f32 0.2, %v524_v20  ;;  %v652_v32 = vadd.f32 %v1694_v5, %v1954_v36  ;;  %v835_v34 = vsel %vm707_vm7, %v503_v16, %v771_v26 }
 0x11d   :  { %1573 = vst [vmem:[%s2122_s3 + $0x48] sm:$0xff] %v1453_v25   ;;  %v1533_v33 = vpack.c.bf16 %v869_v30, %v868_v8  ;;  %v867_v35 = vsel %vm739_vm8, %v631_v19, %v803_v27  ;;  %v516_v37 = vadd.f32 %v1954_v36, %v515_v12  ;;  %v1666_v38 = vpop.f32.mrf.mxu0  ;;  %v1698_v39 = vpop.f32.mrf.mxu1  ;;  %v1448_v40 = vpack.c.bf16 %v835_v34, %v834_v17 }
 0x11e   :  { %v1528_v41 = vpack.c.bf16 %v867_v35, %v866_v18  ;;  %v840_v42 = vsel %vm712_vm9, %v524_v20, %v776_v31  ;;  %vm744_vm10 = vcmp.ge.f32.partialorder %v652_v32, 0.0  ;;  %v808_v43 = vmul.f32 0.2, %v652_v32 }
 0x11f   :  { %1589 = vst [vmem:[%s2122_s3 + $0xc8] sm:$0xff] %v1533_v33   ;;  %vm710_vm11 = vcmp.ge.f32.partialorder %v516_v37, 0.0  ;;  %v774_v44 = vmul.f32 0.2, %v516_v37  ;;  %v644_v45 = vadd.f32 %v1954_v36, %v643_v13  ;;  %v531_v46 = vpop.f32.mrf.mxu0  ;;  %v659_v47 = vpop.f32.mrf.mxu1  ;;  %1572 = vst [vmem:[%s2122_s3 + $0x40] sm:$0xff] %v1448_v40   ;;  %v527_v48 = vadd.f32 %v1663_v21, %v1954_v36 }
 0x120   :  { %1588 = vst [vmem:[%s2122_s3 + $0xc0] sm:$0xff] %v1528_v41   ;;  %v655_v49 = vadd.f32 %v1695_v22, %v1954_v36  ;;  %v519_v50 = vadd.f32 %v1954_v36, %v518_v28  ;;  %v647_v51 = vadd.f32 %v1954_v36, %v646_v29  ;;  %v872_v52 = vsel %vm744_vm10, %v652_v32, %v808_v43 }
 0x121   :  { %v838_v53 = vsel %vm710_vm11, %v516_v37, %v774_v44  ;;  %vm742_vm12 = vcmp.ge.f32.partialorder %v644_v45, 0.0  ;;  %v806_v54 = vmul.f32 0.2, %v644_v45  ;;  %v1667_v55 = vpop.f32.mrf.mxu0  ;;  %v1699_v56 = vpop.f32.mrf.mxu1  ;;  %vm713_vm13 = vcmp.ge.f32.partialorder %v527_v48, 0.0 }
 0x122   :  { %v777_v57 = vmul.f32 0.2, %v527_v48  ;;  %vm745_vm14 = vcmp.ge.f32.partialorder %v655_v49, 0.0  ;;  %v809_v58 = vmul.f32 0.2, %v655_v49  ;;  %vm711_vm15 = vcmp.ge.f32.partialorder %v519_v50, 0.0 }
 0x123   :  { %v870_v59 = vsel %vm742_vm12, %v644_v45, %v806_v54  ;;  %v775_v60 = vmul.f32 0.2, %v519_v50  ;;  %vm743_vm0 = vcmp.ge.f32.partialorder %v647_v51, 0.0  ;;  %v534_v61 = vpop.f32.mrf.mxu0  ;;  %v662_v62 = vpop.f32.mrf.mxu1  ;;  %v807_v1 = vmul.f32 0.2, %v647_v51 }
 0x124   :  { %v841_v63 = vsel %vm713_vm13, %v527_v48, %v777_v57  ;;  %v873_v0 = vsel %vm745_vm14, %v655_v49, %v809_v58  ;;  %v540_v2 = vadd.f32 %v1666_v38, %v1954_v36  ;;  %v668_v6 = vadd.f32 %v1698_v39, %v1954_v36 }
 0x125   :  { %v1463_v3 = vpack.c.bf16 %v841_v63, %v840_v42  ;;  %v1543_v4 = vpack.c.bf16 %v873_v0, %v872_v52  ;;  %v839_v5 = vsel %vm711_vm15, %v519_v50, %v775_v60  ;;  %v1670_v7 = vpop.f32.mrf.mxu0  ;;  %v1702_v8 = vpop.f32.mrf.mxu1  ;;  %v871_v10 = vsel %vm743_vm0, %v647_v51, %v807_v1 }
 0x126   :  { %v1458_v9 = vpack.c.bf16 %v839_v5, %v838_v53  ;;  %vm716_vm1 = vcmp.ge.f32.partialorder %v540_v2, 0.0  ;;  %v780_v11 = vmul.f32 0.2, %v540_v2  ;;  %v1538_v12 = vpack.c.bf16 %v871_v10, %v870_v59 }
 0x127   :  { %1575 = vst [vmem:[%s2122_s3 + $0x58] sm:$0xff] %v1463_v3   ;;  %1591 = vst [vmem:[%s2122_s3 + $0xd8] sm:$0xff] %v1543_v4   ;;  %vm748_vm2 = vcmp.ge.f32.partialorder %v668_v6, 0.0  ;;  %v812_v13 = vmul.f32 0.2, %v668_v6  ;;  %v532_v14 = vadd.f32 %v1954_v36, %v531_v46  ;;  %v660_v15 = vadd.f32 %v1954_v36, %v659_v47  ;;  %v547_v21 = vpop.f32.mrf.mxu0  ;;  %v675_v22 = vpop.f32.mrf.mxu1 }
 0x128   :  { %1574 = vst [vmem:[%s2122_s3 + $0x50] sm:$0xff] %v1458_v9   ;;  %v543_v16 = vadd.f32 %v1667_v55, %v1954_v36  ;;  %v671_v17 = vadd.f32 %v1699_v56, %v1954_v36  ;;  %1590 = vst [vmem:[%s2122_s3 + $0xd0] sm:$0xff] %v1538_v12   ;;  %v844_v18 = vsel %vm716_vm1, %v540_v2, %v780_v11 }
 0x129   :  { %vm714_vm3 = vcmp.ge.f32.partialorder %v532_v14, 0.0  ;;  %v778_v19 = vmul.f32 0.2, %v532_v14  ;;  %v535_v20 = vadd.f32 %v1954_v36, %v534_v61  ;;  %v876_v23 = vsel %vm748_vm2, %v668_v6, %v812_v13  ;;  %v1671_v35 = vpop.f32.mrf.mxu0  ;;  %v1703_v37 = vpop.f32.mrf.mxu1 }
 0x12a   :  { %vm746_vm4 = vcmp.ge.f32.partialorder %v660_v15, 0.0  ;;  %vm717_vm5 = vcmp.ge.f32.partialorder %v543_v16, 0.0  ;;  %v781_v24 = vmul.f32 0.2, %v543_v16  ;;  %v810_v25 = vmul.f32 0.2, %v660_v15 }
 0x12b   :  { %vm749_vm6 = vcmp.ge.f32.partialorder %v671_v17, 0.0  ;;  %v813_v26 = vmul.f32 0.2, %v671_v17  ;;  %vm715_vm7 = vcmp.ge.f32.partialorder %v535_v20, 0.0  ;;  %v842_v27 = vsel %vm714_vm3, %v532_v14, %v778_v19  ;;  %v550_v51 = vpop.f32.mrf.mxu0  ;;  %v678_v52 = vpop.f32.mrf.mxu1 }
 0x12c   :  { %v845_v28 = vsel %vm717_vm5, %v543_v16, %v781_v24  ;;  %v779_v29 = vmul.f32 0.2, %v535_v20  ;;  %v663_v30 = vadd.f32 %v1954_v36, %v662_v62  ;;  %v556_v33 = vadd.f32 %v1670_v7, %v1954_v36 }
 0x12d   :  { %v1473_v31 = vpack.c.bf16 %v845_v28, %v844_v18  ;;  %v877_v32 = vsel %vm749_vm6, %v671_v17, %v813_v26  ;;  %v684_v34 = vadd.f32 %v1702_v8, %v1954_v36  ;;  %v874_v41 = vsel %vm746_vm4, %v660_v15, %v810_v25 }
 0x12e   :  { %v1553_v38 = vpack.c.bf16 %v877_v32, %v876_v23  ;;  %v843_v39 = vsel %vm715_vm7, %v535_v20, %v779_v29  ;;  %vm747_vm8 = vcmp.ge.f32.partialorder %v663_v30, 0.0  ;;  %v811_v40 = vmul.f32 0.2, %v663_v30 }
 0x12f   :  { %1577 = vst [vmem:[%s2122_s3 + $0x68] sm:$0xff] %v1473_v31   ;;  %v1468_v42 = vpack.c.bf16 %v843_v39, %v842_v27  ;;  %vm720_vm9 = vcmp.ge.f32.partialorder %v556_v33, 0.0  ;;  %v784_v43 = vmul.f32 0.2, %v556_v33  ;;  %vm752_vm10 = vcmp.ge.f32.partialorder %v684_v34, 0.0 }
 0x130   :  { %1593 = vst [vmem:[%s2122_s3 + $0xe8] sm:$0xff] %v1553_v38   ;;  %v875_v44 = vsel %vm747_vm8, %v663_v30, %v811_v40  ;;  %v816_v45 = vmul.f32 0.2, %v684_v34  ;;  %v548_v46 = vadd.f32 %v1954_v36, %v547_v21  ;;  %v676_v48 = vadd.f32 %v1954_v36, %v675_v22 }
 0x131   :  { %1576 = vst [vmem:[%s2122_s3 + $0x60] sm:$0xff] %v1468_v42   ;;  %v1548_v47 = vpack.c.bf16 %v875_v44, %v874_v41  ;;  %v559_v49 = vadd.f32 %v1671_v35, %v1954_v36  ;;  %v687_v50 = vadd.f32 %v1703_v37, %v1954_v36  ;;  %v848_v53 = vsel %vm720_vm9, %v556_v33, %v784_v43 }
 0x132   :  { %v880_v54 = vsel %vm752_vm10, %v684_v34, %v816_v45  ;;  %v782_v56 = vmul.f32 0.2, %v548_v46  ;;  %v551_v58 = vadd.f32 %v1954_v36, %v550_v51  ;;  %v679_v59 = vadd.f32 %v1954_v36, %v678_v52 }
 0x133   :  { %1592 = vst [vmem:[%s2122_s3 + $0xe0] sm:$0xff] %v1548_v47   ;;  %vm721_vm11 = vcmp.ge.f32.partialorder %v559_v49, 0.0  ;;  %v785_v55 = vmul.f32 0.2, %v559_v49  ;;  %vm753_vm12 = vcmp.ge.f32.partialorder %v687_v50, 0.0  ;;  %vm718_vm13 = vcmp.ge.f32.partialorder %v548_v46, 0.0 }
 0x134   :  { %v817_v57 = vmul.f32 0.2, %v687_v50  ;;  %vm750_vm14 = vcmp.ge.f32.partialorder %v676_v48, 0.0  ;;  %v814_v60 = vmul.f32 0.2, %v676_v48  ;;  %vm719_vm15 = vcmp.ge.f32.partialorder %v551_v58, 0.0 }
 0x135   :  { %v849_v61 = vsel %vm721_vm11, %v559_v49, %v785_v55  ;;  %v783_v0 = vmul.f32 0.2, %v551_v58  ;;  %vm751_vm0 = vcmp.ge.f32.partialorder %v679_v59, 0.0  ;;  %v815_v2 = vmul.f32 0.2, %v679_v59 }
 0x136   :  { %v1483_v62 = vpack.c.bf16 %v849_v61, %v848_v53  ;;  %v881_v63 = vsel %vm753_vm12, %v687_v50, %v817_v57  ;;  %v846_v3 = vsel %vm718_vm13, %v548_v46, %v782_v56  ;;  %v878_v5 = vsel %vm750_vm14, %v676_v48, %v814_v60 }
 0x137   :  { %v1563_v1 = vpack.c.bf16 %v881_v63, %v880_v54  ;;  %v847_v4 = vsel %vm719_vm15, %v551_v58, %v783_v0  ;;  %v879_v6 = vsel %vm751_vm0, %v679_v59, %v815_v2 }
 0x138   :  { %1579 = vst [vmem:[%s2122_s3 + $0x78] sm:$0xff] %v1483_v62   ;;  %v1478_v36 = vpack.c.bf16 %v847_v4, %v846_v3  ;;  %v1558_v7 = vpack.c.bf16 %v879_v6, %v878_v5 }
 0x139   :  { %1595 = vst [vmem:[%s2122_s3 + $0xf8] sm:$0xff] %v1563_v1  }
 0x13a   :  { %1578 = vst [vmem:[%s2122_s3 + $0x70] sm:$0xff] %v1478_v36   ;;  %1594 = vst [vmem:[%s2122_s3 + $0xf0] sm:$0xff] %v1558_v7  }
 0x13b   :  { %1206 = vsyncpa [#allocation3], 1 }
 0x13c   :  { %1207 = vsyncpa [#allocation5], 1 }

// kernel: discriminator_forward.4
= control target key start
LH: loop header
LB: loop body
LE: loop exit
PB: predicated region body
PF: predicated region fallthrough
CT: control target
= control target key end

     0   :  { %10 = vsyncpa [#allocation3], 0  ;;  %s4680_s0 = inlined_call_operand.vmem [shape: bf16[128,2048], index: 0, kind: input, shape index: {}]   ;;  %s4681_s1 = inlined_call_operand.hbm [shape: bf16[2048,128], index: 1, kind: input, shape index: {}]   ;;  %s4682_s2 = inlined_call_operand.hbm [shape: f32[1,128], index: 2, kind: input, shape index: {}]   ;;  %s4683_s3 = inlined_call_operand.hbm [shape: f32[1,128], index: 3, kind: input, shape index: {}]   ;;  %s4684_s4 = inlined_call_operand.hbm [shape: f32[1,128], index: 4, kind: input, shape index: {}]   ;;  %s4685_s5 = inlined_call_operand.vmem [shape: bf16[128,128], index: 5, kind: output, shape index: {}]  }
   0x1   :  { %11 = vsyncpa [#allocation5], 0 }
   0x2   :  { %12 = vsyncpa [#allocation8], 0  ;;  %s3993_s18 = smov [#allocation4]   ;;  %s3994_s20 = smov [#allocation2]  }
   0x3   :  { %s33_s19 = sshll.u32 %s3993_s18, 4  ;;  %s20_s21 = sshll.u32 %s3994_s20, 4  ;;  %s34_s19 = int_to_ptr.vmem [resolvable:$true] %s33_s19  ;;  %s21_s21 = int_to_ptr.vmem [resolvable:$true] %s20_s21 }
   0x4   :  { %s3915_s22 = scalar_lea.vmem %s34_s19, 16  ;;  %s3919_s23 = scalar_lea.vmem %s34_s19, 32 }
   0x5   :  { %p3916_p0 = scmp.ne.s32.totalorder %s34_s19, %s3915_s22  ;;  %p3920_p1 = scmp.lt.s32.totalorder %s34_s19, %s34_s19 }
   0x6   :  { %p3921_p2 = scmp.lt.s32.totalorder %s3919_s23, %s3915_s22 }
   0x8   :  { %p3922_p3 = por %p3921_p2, %p3920_p1 }
   0xa   :  { %p3923_p4 = pnand %p3922_p3, %p3916_p0 }
   0xc   :  { %3926 = shalt.err (!%p3923_p4)
}
   0xd   :  { %36 = dma.hbm_to_vmem [thread:$0]  %s4682_s2, 16, %s34_s19, [#allocation5]  }
   0xe   :  { %s3935_s26 = scalar_lea.vmem %s21_s21, 16384  ;;  %p3940_p6 = scmp.lt.s32.totalorder %s21_s21, %s21_s21 }
   0xf   :  { %p3936_p5 = scmp.ne.s32.totalorder %s21_s21, %s3935_s26  ;;  %p3941_p7 = scmp.lt.s32.totalorder %s3935_s26, %s3935_s26 }
  0x11   :  { %p3942_p8 = por %p3941_p7, %p3940_p6 }
  0x13   :  { %p3943_p9 = pnand %p3942_p8, %p3936_p5 }
  0x15   :  { %3946 = shalt.err (!%p3943_p9)
}
  0x16   :  { %s3995_s27 = smov 64   ;;  %s3996_s28 = smov 4  }
  0x17   :  { %26 = dma.hbm_to_vmem [thread:$0]  %s4681_s1, 16384, %s21_s21, [#allocation3], %s3995_s27, %s3995_s27, %s3996_s28  }
  0x18   :  { %s3997_s6 = smov [#allocation6]   ;;  %s3998_s8 = smov [#allocation7]  }
  0x19   :  { %s43_s7 = sshll.u32 %s3997_s6, 4  ;;  %s53_s9 = sshll.u32 %s3998_s8, 4  ;;  %s44_s7 = int_to_ptr.vmem [resolvable:$true] %s43_s7  ;;  %s54_s9 = int_to_ptr.vmem [resolvable:$true] %s53_s9 }
  0x1a   :  { %s3955_s2 = scalar_lea.vmem %s44_s7, 16  ;;  %s3959_s10 = scalar_lea.vmem %s44_s7, 32 }
  0x1b   :  { %p3956_p10 = scmp.ne.s32.totalorder %s44_s7, %s3955_s2  ;;  %p3960_p11 = scmp.lt.s32.totalorder %s44_s7, %s44_s7 }
  0x1c   :  { %p3961_p12 = scmp.lt.s32.totalorder %s3959_s10, %s3955_s2 }
  0x1e   :  { %p3962_p13 = por %p3961_p12, %p3960_p11 }
  0x20   :  { %p3963_p0 = pnand %p3962_p13, %p3956_p10 }
  0x22   :  { %3966 = shalt.err (!%p3963_p0)
}
  0x23   :  { %46 = dma.hbm_to_vmem [thread:$0]  %s4683_s3, 16, %s44_s7, [#allocation5]  }
  0x24   :  { %s3975_s13 = scalar_lea.vmem %s54_s9, 16  ;;  %s3979_s1 = scalar_lea.vmem %s54_s9, 32 }
  0x25   :  { %p3976_p1 = scmp.ne.s32.totalorder %s54_s9, %s3975_s13  ;;  %p3980_p2 = scmp.lt.s32.totalorder %s54_s9, %s54_s9 }
  0x26   :  { %p3981_p3 = scmp.lt.s32.totalorder %s3979_s1, %s3975_s13 }
  0x28   :  { %p3982_p4 = por %p3981_p3, %p3980_p2 }
  0x2a   :  { %p3983_p5 = pnand %p3982_p4, %p3976_p1 }
  0x2c   :  { %3986 = shalt.err (!%p3983_p5)
}
  0x2d   :  { %56 = dma.hbm_to_vmem [thread:$0]  %s4684_s4, 16, %s54_s9, [#allocation8]  }
  0x2e   :  { %3987 = dma.done.wait [#allocation3], 16384  }
  0x2f   :  { %3988 = vsyncadd [#allocation3], 4294950912 }
  0x30   :  { %3989 = dma.done.wait [#allocation5], 32  }
  0x31   :  { %3990 = vsyncadd [#allocation5], 4294967264 }
  0x32   :  { %3991 = dma.done.wait [#allocation8], 16  }
  0x33   :  { %3992 = vsyncadd [#allocation8], 4294967280  ;;  %v3777_v0 = vld [vmem:[#allocation2 + $0x78] sm:$0xff]   ;;  %v3781_v4 = vld [vmem:[#allocation2 + $0x70] sm:$0xff]  }
  0x34   :  { %v3778_v1 = vld [vmem:[#allocation2 + $0xf8] sm:$0xff]   ;;  %3259 = vmatprep.subr.bf16.mxu0 %v3777_v0  ;;  %v3782_v5 = vld [vmem:[#allocation2 + $0xf0] sm:$0xff]   ;;  %v3785_v8 = vld [vmem:[#allocation2 + $0x68] sm:$0xff]  }
  0x35   :  { %v3779_v2 = vld [vmem:[#allocation2 + $0x38] sm:$0xff]   ;;  %3323 = vmatprep.subr.bf16.mxu1 %v3778_v1  ;;  %v3783_v6 = vld [vmem:[#allocation2 + $0x30] sm:$0xff]   ;;  %v3786_v9 = vld [vmem:[#allocation2 + $0xe8] sm:$0xff]  }
  0x36   :  { %v3780_v3 = vld [vmem:[#allocation2 + $0xb8] sm:$0xff]   ;;  %3260 = vmatpush3.bf16.msra.mxu0 %v3779_v2  ;;  %v3784_v7 = vld [vmem:[#allocation2 + $0xb0] sm:$0xff]   ;;  %v3787_v10 = vld [vmem:[#allocation2 + $0x28] sm:$0xff]  }
  0x37   :  { %3324 = vmatpush3.bf16.msra.mxu1 %v3780_v3  ;;  %3261 = vmatprep.subr.bf16.mxu0 %v3781_v4  ;;  %v3788_v11 = vld [vmem:[#allocation2 + $0xa8] sm:$0xff]   ;;  %v3789_v12 = vld [vmem:[#allocation2 + $0x60] sm:$0xff]   ;;  %v3793_v16 = vld [vmem:[#allocation2 + $0x58] sm:$0xff]  }
  0x38   :  { %3325 = vmatprep.subr.bf16.mxu1 %v3782_v5  ;;  %v3790_v13 = vld [vmem:[#allocation2 + $0xe0] sm:$0xff]   ;;  %v3794_v17 = vld [vmem:[#allocation2 + $0xd8] sm:$0xff]   ;;  %v3797_v20 = vld [vmem:[#allocation2 + $0x50] sm:$0xff]  }
  0x39   :  { %v3791_v14 = vld [vmem:[#allocation2 + $0x20] sm:$0xff]   ;;  %v3795_v18 = vld [vmem:[#allocation2 + $0x18] sm:$0xff]   ;;  %v3798_v21 = vld [vmem:[#allocation2 + $0xd0] sm:$0xff]  }
  0x3a   :  { %3262 = vmatpush3.bf16.msra.mxu0 %v3783_v6  ;;  %v3792_v15 = vld [vmem:[#allocation2 + $0xa0] sm:$0xff]   ;;  %v3796_v19 = vld [vmem:[#allocation2 + $0x98] sm:$0xff]   ;;  %v3799_v22 = vld [vmem:[#allocation2 + $0x10] sm:$0xff]  }
  0x3b   :  { %3326 = vmatpush3.bf16.msra.mxu1 %v3784_v7  ;;  %3263 = vmatprep.subr.bf16.mxu0 %v3785_v8  ;;  %v3800_v23 = vld [vmem:[#allocation2 + $0x90] sm:$0xff]   ;;  %v3801_v24 = vld [vmem:[#allocation2 + $0x48] sm:$0xff]   ;;  %v3805_v28 = vld [vmem:[#allocation2 + $0x40] sm:$0xff]  }
  0x3c   :  { %3327 = vmatprep.subr.bf16.mxu1 %v3786_v9  ;;  %v3802_v25 = vld [vmem:[#allocation2 + $0xc8] sm:$0xff]   ;;  %v3806_v29 = vld [vmem:[#allocation2 + $0xc0] sm:$0xff]   ;;  %v3809_v40 = vld [vmem:[#allocation2 + $0x178] sm:$0xff]  }
  0x3d   :  { %v3803_v26 = vld [vmem:[#allocation2 + $0x8] sm:$0xff]   ;;  %v3807_v30 = vld [vmem:[#allocation2] sm:$0xff]   ;;  %v3810_v41 = vld [vmem:[#allocation2 + $0x138] sm:$0xff]  }
  0x3e   :  { %3264 = vmatpush3.bf16.msra.mxu0 %v3787_v10  ;;  %v3804_v27 = vld [vmem:[#allocation2 + $0x88] sm:$0xff]   ;;  %v3808_v31 = vld [vmem:[#allocation2 + $0x80] sm:$0xff]   ;;  %v3811_v42 = vld [vmem:[#allocation2 + $0x1f8] sm:$0xff]  }
  0x3f   :  { %3328 = vmatpush3.bf16.msra.mxu1 %v3788_v11  ;;  %3265 = vmatprep.subr.bf16.mxu0 %v3789_v12  ;;  %v70_v32 = vld [vmem:[%s4680_s0] sm:$0xff]  ;;  %v71_v34 = vld [vmem:[%s4680_s0 + $0x8] sm:$0xff]  ;;  %v3812_v43 = vld [vmem:[#allocation2 + $0x1b8] sm:$0xff]  }
  0x40   :  { %3329 = vmatprep.subr.bf16.mxu1 %v3790_v13  ;;  %v78_v33 = vld [vmem:[%s4680_s0 + $0x40] sm:$0xff]  ;;  %v79_v37 = vld [vmem:[%s4680_s0 + $0x48] sm:$0xff]  ;;  %v3813_v50 = vld [vmem:[#allocation2 + $0x170] sm:$0xff]  }
  0x41   :  { %v2922_v35 = vcombine.low %v70_v32, %v78_v33  ;;  %v2923_v36 = vcombine.high %v70_v32, %v78_v33  ;;  %v2924_v38 = vcombine.low %v71_v34, %v79_v37  ;;  %v2925_v39 = vcombine.high %v71_v34, %v79_v37  ;;  %v86_v44 = vld [vmem:[%s4680_s0 + $0x80] sm:$0xff]  ;;  %v87_v47 = vld [vmem:[%s4680_s0 + $0x88] sm:$0xff]  ;;  %v3814_v52 = vld [vmem:[#allocation2 + $0x130] sm:$0xff]  }
  0x42   :  { %3266 = vmatpush3.bf16.msra.mxu0 %v3791_v14  ;;  %v94_v45 = vld [vmem:[%s4680_s0 + $0xc0] sm:$0xff]  ;;  %v95_v48 = vld [vmem:[%s4680_s0 + $0xc8] sm:$0xff]  ;;  %v3815_v54 = vld [vmem:[#allocation2 + $0x1f0] sm:$0xff]  }
  0x43   :  { %3330 = vmatpush3.bf16.msra.mxu1 %v3792_v15  ;;  %3267 = vmatprep.subr.bf16.mxu0 %v3793_v16  ;;  %v2939_v46 = vcombine.high %v86_v44, %v94_v45  ;;  %v2941_v49 = vcombine.high %v87_v47, %v95_v48  ;;  %v2938_v51 = vcombine.low %v86_v44, %v94_v45  ;;  %v3816_v55 = vld [vmem:[#allocation2 + $0x1b0] sm:$0xff]   ;;  %v102_v56 = vld [vmem:[%s4680_s0 + $0x100] sm:$0xff]  ;;  %v103_v58 = vld [vmem:[%s4680_s0 + $0x108] sm:$0xff] }
  0x44   :  { %3331 = vmatprep.subr.bf16.mxu1 %v3794_v17  ;;  %1901 = vmatprep.mubr.bf16.mxu0 %v2923_v36  ;;  %v2940_v53 = vcombine.low %v87_v47, %v95_v48  ;;  %v110_v57 = vld [vmem:[%s4680_s0 + $0x140] sm:$0xff]  ;;  %v111_v59 = vld [vmem:[%s4680_s0 + $0x148] sm:$0xff]  ;;  %v3831_v32 = vld [vmem:[#allocation2 + $0x1d0] sm:$0xff]  }
  0x45   :  { %1998 = vmatprep.mubr.bf16.mxu1 %v2925_v39  ;;  %v2955_v60 = vcombine.high %v102_v56, %v110_v57  ;;  %v2957_v61 = vcombine.high %v103_v58, %v111_v59  ;;  %v3817_v62 = vld [vmem:[#allocation2 + $0x168] sm:$0xff]   ;;  %v2954_v2 = vcombine.low %v102_v56, %v110_v57  ;;  %v118_v3 = vld [vmem:[%s4680_s0 + $0x180] sm:$0xff]  ;;  %v2956_v6 = vcombine.low %v103_v58, %v111_v59  ;;  %v3832_v33 = vld [vmem:[#allocation2 + $0x190] sm:$0xff]  }
  0x46   :  { %3268 = vmatpush3.bf16.msra.mxu0 %v3795_v18  ;;  %v3818_v63 = vld [vmem:[#allocation2 + $0x128] sm:$0xff]   ;;  %v126_v4 = vld [vmem:[%s4680_s0 + $0x1c0] sm:$0xff]  ;;  %v3825_v18 = vld [vmem:[#allocation2 + $0x158] sm:$0xff]  }
  0x47   :  { %3332 = vmatpush3.bf16.msra.mxu1 %v3796_v19  ;;  %3269 = vmatprep.subr.bf16.mxu0 %v3797_v20  ;;  %v3819_v0 = vld [vmem:[#allocation2 + $0x1e8] sm:$0xff]   ;;  %v2971_v7 = vcombine.high %v118_v3, %v126_v4  ;;  %v3821_v10 = vld [vmem:[#allocation2 + $0x160] sm:$0xff]   ;;  %v2970_v19 = vcombine.low %v118_v3, %v126_v4  ;;  %v3826_v20 = vld [vmem:[#allocation2 + $0x118] sm:$0xff]  }
  0x48   :  { %3333 = vmatprep.subr.bf16.mxu1 %v3798_v21  ;;  %v3820_v1 = vld [vmem:[#allocation2 + $0x1a8] sm:$0xff]   ;;  %v3822_v11 = vld [vmem:[#allocation2 + $0x120] sm:$0xff]   ;;  %v3841_v56 = vld [vmem:[#allocation2 + $0x278] sm:$0xff]  }
  0x49   :  { %v119_v5 = vld [vmem:[%s4680_s0 + $0x188] sm:$0xff]  ;;  %v3823_v12 = vld [vmem:[#allocation2 + $0x1e0] sm:$0xff]   ;;  %v3843_v58 = vld [vmem:[#allocation2 + $0x2f8] sm:$0xff]  }
  0x4a   :  { %3270 = vmatpush3.bf16.msra.mxu0 %v3799_v22  ;;  %v127_v8 = vld [vmem:[%s4680_s0 + $0x1c8] sm:$0xff]  ;;  %v3824_v13 = vld [vmem:[#allocation2 + $0x1a0] sm:$0xff]   ;;  %v81_v3 = vld [vmem:[%s4680_s0 + $0x58] sm:$0xff] }
  0x4b   :  { %3334 = vmatpush3.bf16.msra.mxu1 %v3800_v23  ;;  %3271 = vmatprep.subr.bf16.mxu0 %v3801_v24  ;;  %v2973_v9 = vcombine.high %v119_v5, %v127_v8  ;;  %v134_v14 = vld [vmem:[%s4680_s0 + $0x200] sm:$0xff]  ;;  %v135_v16 = vld [vmem:[%s4680_s0 + $0x208] sm:$0xff]  ;;  %v2972_v21 = vcombine.low %v119_v5, %v127_v8  ;;  %v3827_v23 = vld [vmem:[#allocation2 + $0x1d8] sm:$0xff]  }
  0x4c   :  { %3335 = vmatprep.subr.bf16.mxu1 %v3802_v25  ;;  %v142_v15 = vld [vmem:[%s4680_s0 + $0x240] sm:$0xff]  ;;  %v143_v17 = vld [vmem:[%s4680_s0 + $0x248] sm:$0xff]  ;;  %v3828_v25 = vld [vmem:[#allocation2 + $0x198] sm:$0xff]  }
  0x4d   :  { %v2987_v22 = vcombine.high %v134_v14, %v142_v15  ;;  %v2989_v24 = vcombine.high %v135_v16, %v143_v17  ;;  %v2986_v34 = vcombine.low %v134_v14, %v142_v15  ;;  %v3834_v39 = vld [vmem:[#allocation2 + $0x108] sm:$0xff]   ;;  %v3838_v48 = vld [vmem:[#allocation2 + $0x100] sm:$0xff]   ;;  %v88_v8 = vld [vmem:[%s4680_s0 + $0x90] sm:$0xff] }
  0x4e   :  { %3272 = vmatpush3.bf16.msra.mxu0 %v3803_v26  ;;  %v150_v26 = vld [vmem:[%s4680_s0 + $0x280] sm:$0xff]  ;;  %v167_v44 = vld [vmem:[%s4680_s0 + $0x308] sm:$0xff]  ;;  %v3844_v15 = vld [vmem:[#allocation2 + $0x2b8] sm:$0xff]  }
  0x4f   :  { %3336 = vmatpush3.bf16.msra.mxu1 %v3804_v27  ;;  %3273 = vmatprep.subr.bf16.mxu0 %v3805_v28  ;;  %v158_v27 = vld [vmem:[%s4680_s0 + $0x2c0] sm:$0xff]  ;;  %v3829_v28 = vld [vmem:[#allocation2 + $0x150] sm:$0xff]   ;;  %v175_v45 = vld [vmem:[%s4680_s0 + $0x348] sm:$0xff] }
  0x50   :  { %3337 = vmatprep.subr.bf16.mxu1 %v3806_v29  ;;  %v151_v29 = vld [vmem:[%s4680_s0 + $0x288] sm:$0xff]  ;;  %v3003_v36 = vcombine.high %v150_v26, %v158_v27  ;;  %v3002_v47 = vcombine.low %v150_v26, %v158_v27 }
  0x51   :  { %v183_v57 = vld [vmem:[%s4680_s0 + $0x388] sm:$0xff] }
  0x52   :  { %3274 = vmatpush3.bf16.msra.mxu0 %v3807_v30  ;;  %v159_v30 = vld [vmem:[%s4680_s0 + $0x2c8] sm:$0xff] }
  0x53   :  { %3338 = vmatpush3.bf16.msra.mxu1 %v3808_v31  ;;  %3387 = vmatprep.subr.bf16.mxu0 %v3809_v40  ;;  %v3830_v31 = vld [vmem:[#allocation2 + $0x110] sm:$0xff]   ;;  %v3005_v37 = vcombine.high %v151_v29, %v159_v30  ;;  %v3835_v40 = vld [vmem:[#allocation2 + $0x1c8] sm:$0xff]  }
  0x54   :  { %3451 = vmatprep.subr.bf16.mxu1 %v3811_v42  ;;  %v174_v42 = vld [vmem:[%s4680_s0 + $0x340] sm:$0xff]  ;;  %v191_v59 = vld [vmem:[%s4680_s0 + $0x3c8] sm:$0xff] }
  0x55   :  { %1902 = vmatmul.mubr.bf16.vlgmr.msra.gmra.mxu0 %v2922_v35  ;;  %v2988_v35 = vcombine.low %v135_v16, %v143_v17  ;;  %v3036_v5 = vcombine.low %v183_v57, %v191_v59  ;;  %v3845_v17 = vld [vmem:[#allocation2 + $0x270] sm:$0xff]   ;;  %v3849_v26 = vld [vmem:[#allocation2 + $0x268] sm:$0xff]  }
  0x56   :  { %1999 = vmatmul.mubr.bf16.vlgmr.msra.gmra.mxu1 %v2924_v38  ;;  %3388 = vmatpush3.bf16.msra.mxu0 %v3810_v41  ;;  %v3833_v38 = vld [vmem:[#allocation2 + $0x148] sm:$0xff]   ;;  %v166_v41 = vld [vmem:[%s4680_s0 + $0x300] sm:$0xff] }
  0x57   :  { %3452 = vmatpush3.bf16.msra.mxu1 %v3812_v43  ;;  %1909 = vmatprep.mubr.bf16.mxu0 %v2939_v46  ;;  %v3836_v43 = vld [vmem:[#allocation2 + $0x188] sm:$0xff]   ;;  %v3837_v46 = vld [vmem:[#allocation2 + $0x140] sm:$0xff]  }
  0x58   :  { %2006 = vmatprep.mubr.bf16.mxu1 %v2941_v49  ;;  %3389 = vmatprep.subr.bf16.mxu0 %v3813_v50  ;;  %v3004_v49 = vcombine.low %v151_v29, %v159_v30  ;;  %v3019_v50 = vcombine.high %v166_v41, %v174_v42  ;;  %v3851_v27 = vld [vmem:[#allocation2 + $0x2e8] sm:$0xff]  }
  0x59   :  { %3453 = vmatprep.subr.bf16.mxu1 %v3815_v54  ;;  %v182_v54 = vld [vmem:[%s4680_s0 + $0x380] sm:$0xff] }
  0x5a   :  { %3390 = vmatpush3.bf16.msra.mxu0 %v3814_v52  ;;  %v3021_v52 = vcombine.high %v167_v44, %v175_v45 }
  0x5b   :  { %3454 = vmatpush3.bf16.msra.mxu1 %v3816_v55  ;;  %3391 = vmatprep.subr.bf16.mxu0 %v3817_v62  ;;  %v190_v55 = vld [vmem:[%s4680_s0 + $0x3c0] sm:$0xff] }
  0x5c   :  { %3455 = vmatprep.subr.bf16.mxu1 %v3819_v0  ;;  %v3035_v62 = vcombine.high %v182_v54, %v190_v55  ;;  %v72_v0 = vld [vmem:[%s4680_s0 + $0x10] sm:$0xff]  ;;  %v3034_v4 = vcombine.low %v182_v54, %v190_v55  ;;  %v137_v54 = vld [vmem:[%s4680_s0 + $0x218] sm:$0xff] }
  0x5d   :  { %1910 = vmatmul.mubr.bf16.gmra.mxu0 %v2938_v51  ;;  %v3839_v51 = vld [vmem:[#allocation2 + $0x1c0] sm:$0xff]   ;;  %v145_v55 = vld [vmem:[%s4680_s0 + $0x258] sm:$0xff] }
  0x5e   :  { %2007 = vmatmul.mubr.bf16.gmra.mxu1 %v2940_v53  ;;  %1917 = vmatprep.mubr.bf16.mxu0 %v2955_v60  ;;  %v3840_v53 = vld [vmem:[#allocation2 + $0x180] sm:$0xff]   ;;  %v3018_v60 = vcombine.low %v166_v41, %v174_v42  ;;  %v3857_v42 = vld [vmem:[#allocation2 + $0x258] sm:$0xff]  }
  0x5f   :  { %2014 = vmatprep.mubr.bf16.mxu1 %v2957_v61  ;;  %3392 = vmatpush3.bf16.msra.mxu0 %v3818_v63  ;;  %v3020_v61 = vcombine.low %v167_v44, %v175_v45  ;;  %v3037_v63 = vcombine.high %v183_v57, %v191_v59  ;;  %v3856_v41 = vld [vmem:[#allocation2 + $0x2a0] sm:$0xff]   ;;  %v3859_v44 = vld [vmem:[#allocation2 + $0x2d8] sm:$0xff]   ;;  %v3864_v57 = vld [vmem:[#allocation2 + $0x290] sm:$0xff]  }
  0x60   :  { %3456 = vmatpush3.bf16.msra.mxu1 %v3820_v1  ;;  %3393 = vmatprep.subr.bf16.mxu0 %v3821_v10  ;;  %v80_v1 = vld [vmem:[%s4680_s0 + $0x50] sm:$0xff] }
  0x61   :  { %3457 = vmatprep.subr.bf16.mxu1 %v3823_v12  ;;  %v2926_v10 = vcombine.low %v72_v0, %v80_v1  ;;  %v89_v12 = vld [vmem:[%s4680_s0 + $0x98] sm:$0xff] }
  0x63   :  { %3394 = vmatpush3.bf16.msra.mxu0 %v3822_v11  ;;  %v3842_v11 = vld [vmem:[#allocation2 + $0x238] sm:$0xff]  }
  0x64   :  { %3458 = vmatpush3.bf16.msra.mxu1 %v3824_v13  ;;  %3395 = vmatprep.subr.bf16.mxu0 %v3825_v18  ;;  %v97_v13 = vld [vmem:[%s4680_s0 + $0xd8] sm:$0xff] }
  0x65   :  { %1918 = vmatmul.mubr.bf16.gmra.mxu0 %v2954_v2  ;;  %3459 = vmatprep.subr.bf16.mxu1 %v3827_v23  ;;  %v73_v2 = vld [vmem:[%s4680_s0 + $0x18] sm:$0xff]  ;;  %v2945_v18 = vcombine.high %v89_v12, %v97_v13  ;;  %v112_v23 = vld [vmem:[%s4680_s0 + $0x150] sm:$0xff]  ;;  %v2944_v29 = vcombine.low %v89_v12, %v97_v13  ;;  %v2992_v13 = vcombine.low %v137_v54, %v145_v55 }
  0x66   :  { %2015 = vmatmul.mubr.bf16.gmra.mxu1 %v2956_v6  ;;  %1925 = vmatprep.mubr.bf16.mxu0 %v2971_v7  ;;  %v2927_v6 = vcombine.high %v72_v0, %v80_v1  ;;  %v2929_v7 = vcombine.high %v73_v2, %v81_v3  ;;  %v2928_v14 = vcombine.low %v73_v2, %v81_v3  ;;  %v3866_v0 = vld [vmem:[#allocation2 + $0x208] sm:$0xff]   ;;  %v3869_v2 = vld [vmem:[#allocation2 + $0x240] sm:$0xff]   ;;  %v152_v3 = vld [vmem:[%s4680_s0 + $0x290] sm:$0xff] }
  0x67   :  { %2022 = vmatprep.mubr.bf16.mxu1 %v2973_v9  ;;  %3396 = vmatpush3.bf16.msra.mxu0 %v3826_v20  ;;  %v96_v9 = vld [vmem:[%s4680_s0 + $0xd0] sm:$0xff]  ;;  %v3868_v1 = vld [vmem:[#allocation2 + $0x288] sm:$0xff]   ;;  %v3875_v12 = vld [vmem:[#allocation2 + $0x3f8] sm:$0xff]  }
  0x68   :  { %3460 = vmatpush3.bf16.msra.mxu1 %v3828_v25  ;;  %3397 = vmatprep.subr.bf16.mxu0 %v3829_v28  ;;  %v2943_v16 = vcombine.high %v88_v8, %v96_v9  ;;  %v3847_v20 = vld [vmem:[#allocation2 + $0x2f0] sm:$0xff]   ;;  %v113_v25 = vld [vmem:[%s4680_s0 + $0x158] sm:$0xff]  ;;  %v2942_v28 = vcombine.low %v88_v8, %v96_v9  ;;  %v3870_v8 = vld [vmem:[#allocation2 + $0x200] sm:$0xff]  }
  0x69   :  { %3461 = vmatprep.subr.bf16.mxu1 %v3831_v32  ;;  %v3850_v32 = vld [vmem:[#allocation2 + $0x228] sm:$0xff]   ;;  %v3872_v9 = vld [vmem:[#allocation2 + $0x280] sm:$0xff]  }
  0x6b   :  { %3398 = vmatpush3.bf16.msra.mxu0 %v3830_v31 }
  0x6c   :  { %3462 = vmatpush3.bf16.msra.mxu1 %v3832_v33  ;;  %3399 = vmatprep.subr.bf16.mxu0 %v3833_v38  ;;  %v3852_v33 = vld [vmem:[#allocation2 + $0x2a8] sm:$0xff]   ;;  %v121_v38 = vld [vmem:[%s4680_s0 + $0x198] sm:$0xff] }
  0x6d   :  { %1926 = vmatmul.mubr.bf16.gmra.mxu0 %v2970_v19  ;;  %3463 = vmatprep.subr.bf16.mxu1 %v3835_v40  ;;  %v3846_v19 = vld [vmem:[#allocation2 + $0x230] sm:$0xff]   ;;  %v3854_v40 = vld [vmem:[#allocation2 + $0x220] sm:$0xff]  }
  0x6e   :  { %2023 = vmatmul.mubr.bf16.gmra.mxu1 %v2972_v21  ;;  %1933 = vmatprep.mubr.bf16.mxu0 %v2987_v22  ;;  %v3848_v21 = vld [vmem:[#allocation2 + $0x2b0] sm:$0xff]  }
  0x6f   :  { %2030 = vmatprep.mubr.bf16.mxu1 %v2989_v24  ;;  %3400 = vmatpush3.bf16.msra.mxu0 %v3834_v39  ;;  %v104_v22 = vld [vmem:[%s4680_s0 + $0x110] sm:$0xff]  ;;  %v105_v24 = vld [vmem:[%s4680_s0 + $0x118] sm:$0xff] }
  0x70   :  { %3464 = vmatpush3.bf16.msra.mxu1 %v3836_v43  ;;  %3401 = vmatprep.subr.bf16.mxu0 %v3837_v46  ;;  %v2959_v30 = vcombine.high %v104_v22, %v112_v23  ;;  %v2961_v31 = vcombine.high %v105_v24, %v113_v25  ;;  %v129_v39 = vld [vmem:[%s4680_s0 + $0x1d8] sm:$0xff]  ;;  %v2958_v43 = vcombine.low %v104_v22, %v112_v23 }
  0x71   :  { %3465 = vmatprep.subr.bf16.mxu1 %v3839_v51  ;;  %v2960_v45 = vcombine.low %v105_v24, %v113_v25  ;;  %v136_v51 = vld [vmem:[%s4680_s0 + $0x210] sm:$0xff] }
  0x72   :  { %v184_v24 = vld [vmem:[%s4680_s0 + $0x390] sm:$0xff] }
  0x73   :  { %3402 = vmatpush3.bf16.msra.mxu0 %v3838_v48  ;;  %v2977_v48 = vcombine.high %v121_v38, %v129_v39  ;;  %v192_v25 = vld [vmem:[%s4680_s0 + $0x3d0] sm:$0xff] }
  0x74   :  { %3466 = vmatpush3.bf16.msra.mxu1 %v3840_v53  ;;  %3515 = vmatprep.subr.bf16.mxu0 %v3841_v56  ;;  %v144_v53 = vld [vmem:[%s4680_s0 + $0x250] sm:$0xff] }
  0x75   :  { %1934 = vmatmul.mubr.bf16.gmra.mxu0 %v2986_v34  ;;  %3579 = vmatprep.subr.bf16.mxu1 %v3843_v58  ;;  %v3853_v34 = vld [vmem:[#allocation2 + $0x260] sm:$0xff]   ;;  %v3862_v56 = vld [vmem:[#allocation2 + $0x210] sm:$0xff]   ;;  %v3865_v58 = vld [vmem:[#allocation2 + $0x248] sm:$0xff]  }
  0x76   :  { %2031 = vmatmul.mubr.bf16.gmra.mxu1 %v2988_v35  ;;  %1941 = vmatprep.mubr.bf16.mxu0 %v3003_v36  ;;  %v120_v35 = vld [vmem:[%s4680_s0 + $0x190] sm:$0xff] }
  0x77   :  { %2038 = vmatprep.mubr.bf16.mxu1 %v3005_v37  ;;  %v128_v36 = vld [vmem:[%s4680_s0 + $0x1d0] sm:$0xff]  ;;  %v3855_v37 = vld [vmem:[#allocation2 + $0x2e0] sm:$0xff]  }
  0x78   :  { %v2975_v46 = vcombine.high %v120_v35, %v128_v36  ;;  %v2974_v59 = vcombine.low %v120_v35, %v128_v36  ;;  %v83_v35 = vld [vmem:[%s4680_s0 + $0x68] sm:$0xff]  ;;  %v3038_v36 = vcombine.low %v184_v24, %v192_v25 }
  0x7d   :  { %1942 = vmatmul.mubr.bf16.gmra.mxu0 %v3002_v47  ;;  %v3858_v47 = vld [vmem:[#allocation2 + $0x218] sm:$0xff]  }
  0x7e   :  { %2039 = vmatmul.mubr.bf16.gmra.mxu1 %v3004_v49  ;;  %1949 = vmatprep.mubr.bf16.mxu0 %v3019_v50  ;;  %v3860_v49 = vld [vmem:[#allocation2 + $0x298] sm:$0xff]   ;;  %v3861_v50 = vld [vmem:[#allocation2 + $0x250] sm:$0xff]  }
  0x7f   :  { %2046 = vmatprep.mubr.bf16.mxu1 %v3021_v52  ;;  %v3863_v52 = vld [vmem:[#allocation2 + $0x2d0] sm:$0xff]  }
  0x85   :  { %1950 = vmatmul.mubr.bf16.gmra.mxu0 %v3018_v60  ;;  %v3867_v60 = vld [vmem:[#allocation2 + $0x2c8] sm:$0xff]  }
  0x86   :  { %2047 = vmatmul.mubr.bf16.gmra.mxu1 %v3020_v61  ;;  %1957 = vmatprep.mubr.bf16.mxu0 %v3035_v62  ;;  %v2976_v61 = vcombine.low %v121_v38, %v129_v39  ;;  %v2991_v62 = vcombine.high %v136_v51, %v144_v53 }
  0x87   :  { %2054 = vmatprep.mubr.bf16.mxu1 %v3037_v63  ;;  %v2993_v63 = vcombine.high %v137_v54, %v145_v55  ;;  %v106_v54 = vld [vmem:[%s4680_s0 + $0x120] sm:$0xff] }
  0x88   :  { %v114_v55 = vld [vmem:[%s4680_s0 + $0x160] sm:$0xff] }
  0x8d   :  { %1958 = vmatmul.mubr.bf16.gmra.mxu0 %v3034_v4  ;;  %v160_v4 = vld [vmem:[%s4680_s0 + $0x2d0] sm:$0xff] }
  0x8e   :  { %2055 = vmatmul.mubr.bf16.gmra.mxu1 %v3036_v5  ;;  %2095 = vmatprep.mubr.bf16.mxu0 %v2927_v6  ;;  %v3871_v5 = vld [vmem:[#allocation2 + $0x2c0] sm:$0xff]   ;;  %v153_v6 = vld [vmem:[%s4680_s0 + $0x298] sm:$0xff] }
  0x8f   :  { %2192 = vmatprep.mubr.bf16.mxu1 %v2929_v7  ;;  %v161_v7 = vld [vmem:[%s4680_s0 + $0x2d8] sm:$0xff] }
  0x95   :  { %2096 = vmatmul.mubr.bf16.vlgmr.msra.gmra.mxu0 %v2926_v10  ;;  %v3873_v10 = vld [vmem:[#allocation2 + $0x378] sm:$0xff]  }
  0x96   :  { %2193 = vmatmul.mubr.bf16.vlgmr.msra.gmra.mxu1 %v2928_v14  ;;  %3516 = vmatpush3.bf16.msra.mxu0 %v3842_v11  ;;  %v2990_v11 = vcombine.low %v136_v51, %v144_v53  ;;  %v3007_v14 = vcombine.high %v152_v3, %v160_v4  ;;  %v3879_v51 = vld [vmem:[#allocation2 + $0x3f0] sm:$0xff]  }
  0x97   :  { %3580 = vmatpush3.bf16.msra.mxu1 %v3844_v15  ;;  %2103 = vmatprep.mubr.bf16.mxu0 %v2943_v16  ;;  %v3009_v15 = vcombine.high %v153_v6, %v161_v7  ;;  %v168_v16 = vld [vmem:[%s4680_s0 + $0x310] sm:$0xff] }
  0x98   :  { %2200 = vmatprep.mubr.bf16.mxu1 %v2945_v18  ;;  %3517 = vmatprep.subr.bf16.mxu0 %v3845_v17  ;;  %v176_v17 = vld [vmem:[%s4680_s0 + $0x350] sm:$0xff]  ;;  %v169_v18 = vld [vmem:[%s4680_s0 + $0x318] sm:$0xff] }
  0x99   :  { %3581 = vmatprep.subr.bf16.mxu1 %v3847_v20  ;;  %v3006_v20 = vcombine.low %v152_v3, %v160_v4  ;;  %v3023_v22 = vcombine.high %v168_v16, %v176_v17  ;;  %v3880_v53 = vld [vmem:[#allocation2 + $0x3b0] sm:$0xff]   ;;  %v3887_v3 = vld [vmem:[#allocation2 + $0x3e0] sm:$0xff]  }
  0x9a   :  { %3518 = vmatpush3.bf16.msra.mxu0 %v3846_v19  ;;  %v177_v19 = vld [vmem:[%s4680_s0 + $0x358] sm:$0xff]  ;;  %v122_v4 = vld [vmem:[%s4680_s0 + $0x1a0] sm:$0xff] }
  0x9b   :  { %3582 = vmatpush3.bf16.msra.mxu1 %v3848_v21  ;;  %3519 = vmatprep.subr.bf16.mxu0 %v3849_v26  ;;  %v3008_v21 = vcombine.low %v153_v6, %v161_v7  ;;  %v3025_v23 = vcombine.high %v169_v18, %v177_v19  ;;  %v185_v26 = vld [vmem:[%s4680_s0 + $0x398] sm:$0xff]  ;;  %v123_v6 = vld [vmem:[%s4680_s0 + $0x1a8] sm:$0xff]  ;;  %v3886_v7 = vld [vmem:[#allocation2 + $0x320] sm:$0xff]  }
  0x9c   :  { %3583 = vmatprep.subr.bf16.mxu1 %v3851_v27  ;;  %v193_v27 = vld [vmem:[%s4680_s0 + $0x3d8] sm:$0xff] }
  0x9d   :  { %2104 = vmatmul.mubr.bf16.gmra.mxu0 %v2942_v28  ;;  %v3022_v28 = vcombine.low %v168_v16, %v176_v17  ;;  %v3890_v16 = vld [vmem:[#allocation2 + $0x318] sm:$0xff]  }
  0x9e   :  { %2201 = vmatmul.mubr.bf16.gmra.mxu1 %v2944_v29  ;;  %2111 = vmatprep.mubr.bf16.mxu0 %v2959_v30  ;;  %v3024_v29 = vcombine.low %v169_v18, %v177_v19  ;;  %v3039_v30 = vcombine.high %v184_v24, %v192_v25  ;;  %v3892_v17 = vld [vmem:[#allocation2 + $0x398] sm:$0xff]   ;;  %v3893_v18 = vld [vmem:[#allocation2 + $0x350] sm:$0xff]   ;;  %v147_v24 = vld [vmem:[%s4680_s0 + $0x268] sm:$0xff] }
  0x9f   :  { %2208 = vmatprep.mubr.bf16.mxu1 %v2961_v31  ;;  %3520 = vmatpush3.bf16.msra.mxu0 %v3850_v32  ;;  %v3041_v31 = vcombine.high %v185_v26, %v193_v27  ;;  %v74_v32 = vld [vmem:[%s4680_s0 + $0x20] sm:$0xff]  ;;  %v3895_v19 = vld [vmem:[#allocation2 + $0x3d0] sm:$0xff]  }
  0xa0   :  { %3584 = vmatpush3.bf16.msra.mxu1 %v3852_v33  ;;  %3521 = vmatprep.subr.bf16.mxu0 %v3853_v34  ;;  %v82_v33 = vld [vmem:[%s4680_s0 + $0x60] sm:$0xff]  ;;  %v75_v34 = vld [vmem:[%s4680_s0 + $0x28] sm:$0xff]  ;;  %v3896_v25 = vld [vmem:[#allocation2 + $0x390] sm:$0xff]  }
  0xa1   :  { %3585 = vmatprep.subr.bf16.mxu1 %v3855_v37  ;;  %v3040_v37 = vcombine.low %v185_v26, %v193_v27  ;;  %v2931_v38 = vcombine.high %v74_v32, %v82_v33  ;;  %v2933_v39 = vcombine.high %v75_v34, %v83_v35  ;;  %v3897_v26 = vld [vmem:[#allocation2 + $0x348] sm:$0xff]  }
  0xa3   :  { %3522 = vmatpush3.bf16.msra.mxu0 %v3854_v40  ;;  %v90_v40 = vld [vmem:[%s4680_s0 + $0xa0] sm:$0xff] }
  0xa4   :  { %3586 = vmatpush3.bf16.msra.mxu1 %v3856_v41  ;;  %3523 = vmatprep.subr.bf16.mxu0 %v3857_v42  ;;  %v98_v41 = vld [vmem:[%s4680_s0 + $0xe0] sm:$0xff]  ;;  %v2930_v42 = vcombine.low %v74_v32, %v82_v33  ;;  %v3898_v32 = vld [vmem:[#allocation2 + $0x308] sm:$0xff]  }
  0xa5   :  { %2112 = vmatmul.mubr.bf16.gmra.mxu0 %v2958_v43  ;;  %3587 = vmatprep.subr.bf16.mxu1 %v3859_v44  ;;  %v91_v43 = vld [vmem:[%s4680_s0 + $0xa8] sm:$0xff] }
  0xa6   :  { %2209 = vmatmul.mubr.bf16.gmra.mxu1 %v2960_v45  ;;  %2119 = vmatprep.mubr.bf16.mxu0 %v2975_v46  ;;  %v99_v44 = vld [vmem:[%s4680_s0 + $0xe8] sm:$0xff]  ;;  %v2932_v45 = vcombine.low %v75_v34, %v83_v35  ;;  %v3874_v46 = vld [vmem:[#allocation2 + $0x338] sm:$0xff]   ;;  %v3901_v34 = vld [vmem:[#allocation2 + $0x340] sm:$0xff]  }
  0xa7   :  { %2216 = vmatprep.mubr.bf16.mxu1 %v2977_v48  ;;  %3524 = vmatpush3.bf16.msra.mxu0 %v3858_v47  ;;  %v3876_v47 = vld [vmem:[#allocation2 + $0x3b8] sm:$0xff]   ;;  %v2947_v48 = vcombine.high %v90_v40, %v98_v41  ;;  %v3900_v33 = vld [vmem:[#allocation2 + $0x388] sm:$0xff]   ;;  %v3903_v35 = vld [vmem:[#allocation2 + $0x3c0] sm:$0xff]  }
  0xa8   :  { %3588 = vmatpush3.bf16.msra.mxu1 %v3860_v49  ;;  %3525 = vmatprep.subr.bf16.mxu0 %v3861_v50  ;;  %v2949_v49 = vcombine.high %v91_v43, %v99_v44  ;;  %v3877_v50 = vld [vmem:[#allocation2 + $0x370] sm:$0xff]  }
  0xa9   :  { %3589 = vmatprep.subr.bf16.mxu1 %v3863_v52  ;;  %v3878_v52 = vld [vmem:[#allocation2 + $0x330] sm:$0xff]  }
  0xab   :  { %3526 = vmatpush3.bf16.msra.mxu0 %v3862_v56  ;;  %v3881_v56 = vld [vmem:[#allocation2 + $0x368] sm:$0xff]  }
  0xac   :  { %3590 = vmatpush3.bf16.msra.mxu1 %v3864_v57  ;;  %3527 = vmatprep.subr.bf16.mxu0 %v3865_v58  ;;  %v107_v57 = vld [vmem:[%s4680_s0 + $0x128] sm:$0xff] }
  0xad   :  { %2120 = vmatmul.mubr.bf16.gmra.mxu0 %v2974_v59  ;;  %3591 = vmatprep.subr.bf16.mxu1 %v3867_v60  ;;  %v115_v58 = vld [vmem:[%s4680_s0 + $0x168] sm:$0xff]  ;;  %v2946_v60 = vcombine.low %v90_v40, %v98_v41  ;;  %v3904_v41 = vld [vmem:[#allocation2 + $0x380] sm:$0xff]  }
  0xae   :  { %2217 = vmatmul.mubr.bf16.gmra.mxu1 %v2976_v61  ;;  %2127 = vmatprep.mubr.bf16.mxu0 %v2991_v62  ;;  %v3883_v59 = vld [vmem:[#allocation2 + $0x3e8] sm:$0xff]   ;;  %v2948_v61 = vcombine.low %v91_v43, %v99_v44  ;;  %v2963_v62 = vcombine.high %v106_v54, %v114_v55 }
  0xaf   :  { %2224 = vmatprep.mubr.bf16.mxu1 %v2993_v63  ;;  %3528 = vmatpush3.bf16.msra.mxu0 %v3866_v0  ;;  %v2965_v63 = vcombine.high %v107_v57, %v115_v58  ;;  %v3882_v0 = vld [vmem:[#allocation2 + $0x328] sm:$0xff]  }
  0xb0   :  { %3592 = vmatpush3.bf16.msra.mxu1 %v3868_v1  ;;  %3529 = vmatprep.subr.bf16.mxu0 %v3869_v2  ;;  %v3884_v1 = vld [vmem:[#allocation2 + $0x3a8] sm:$0xff]   ;;  %v3885_v2 = vld [vmem:[#allocation2 + $0x360] sm:$0xff]  }
  0xb1   :  { %3593 = vmatprep.subr.bf16.mxu1 %v3871_v5  ;;  %v130_v5 = vld [vmem:[%s4680_s0 + $0x1e0] sm:$0xff]  ;;  %v163_v40 = vld [vmem:[%s4680_s0 + $0x2e8] sm:$0xff] }
  0xb2   :  { %v2978_v27 = vcombine.low %v122_v4, %v130_v5 }
  0xb3   :  { %3530 = vmatpush3.bf16.msra.mxu0 %v3870_v8  ;;  %v131_v8 = vld [vmem:[%s4680_s0 + $0x1e8] sm:$0xff] }
  0xb4   :  { %3594 = vmatpush3.bf16.msra.mxu1 %v3872_v9  ;;  %3643 = vmatprep.subr.bf16.mxu0 %v3873_v10  ;;  %v3888_v9 = vld [vmem:[#allocation2 + $0x3a0] sm:$0xff]   ;;  %v3889_v10 = vld [vmem:[#allocation2 + $0x358] sm:$0xff]  }
  0xb5   :  { %2128 = vmatmul.mubr.bf16.gmra.mxu0 %v2990_v11  ;;  %3707 = vmatprep.subr.bf16.mxu1 %v3875_v12  ;;  %v2962_v11 = vcombine.low %v106_v54, %v114_v55  ;;  %v3891_v12 = vld [vmem:[#allocation2 + $0x3d8] sm:$0xff]   ;;  %v186_v54 = vld [vmem:[%s4680_s0 + $0x3a0] sm:$0xff] }
  0xb6   :  { %2225 = vmatmul.mubr.bf16.gmra.mxu1 %v2992_v13  ;;  %2135 = vmatprep.mubr.bf16.mxu0 %v3007_v14  ;;  %v2964_v13 = vcombine.low %v107_v57, %v115_v58  ;;  %v2979_v14 = vcombine.high %v122_v4, %v130_v5  ;;  %v194_v55 = vld [vmem:[%s4680_s0 + $0x3e0] sm:$0xff]  ;;  %v195_v57 = vld [vmem:[%s4680_s0 + $0x3e8] sm:$0xff] }
  0xb7   :  { %2232 = vmatprep.mubr.bf16.mxu1 %v3009_v15  ;;  %v2981_v15 = vcombine.high %v123_v6, %v131_v8 }
  0xbd   :  { %2136 = vmatmul.mubr.bf16.gmra.mxu0 %v3006_v20  ;;  %v138_v20 = vld [vmem:[%s4680_s0 + $0x220] sm:$0xff] }
  0xbe   :  { %2233 = vmatmul.mubr.bf16.gmra.mxu1 %v3008_v21  ;;  %2143 = vmatprep.mubr.bf16.mxu0 %v3023_v22  ;;  %v146_v21 = vld [vmem:[%s4680_s0 + $0x260] sm:$0xff]  ;;  %v139_v22 = vld [vmem:[%s4680_s0 + $0x228] sm:$0xff] }
  0xbf   :  { %2240 = vmatprep.mubr.bf16.mxu1 %v3025_v23  ;;  %v3894_v23 = vld [vmem:[#allocation2 + $0x310] sm:$0xff]   ;;  %v2996_v43 = vcombine.low %v139_v22, %v147_v24 }
  0xc5   :  { %2144 = vmatmul.mubr.bf16.gmra.mxu0 %v3022_v28  ;;  %v3899_v28 = vld [vmem:[#allocation2 + $0x3c8] sm:$0xff]  }
  0xc6   :  { %2241 = vmatmul.mubr.bf16.gmra.mxu1 %v3024_v29  ;;  %2151 = vmatprep.mubr.bf16.mxu0 %v3039_v30  ;;  %v2980_v29 = vcombine.low %v123_v6, %v131_v8  ;;  %v2995_v30 = vcombine.high %v138_v20, %v146_v21  ;;  %v92_v6 = vld [vmem:[%s4680_s0 + $0xb0] sm:$0xff]  ;;  %v93_v8 = vld [vmem:[%s4680_s0 + $0xb8] sm:$0xff] }
  0xc7   :  { %2248 = vmatprep.mubr.bf16.mxu1 %v3041_v31  ;;  %v2997_v31 = vcombine.high %v139_v22, %v147_v24  ;;  %v109_v22 = vld [vmem:[%s4680_s0 + $0x138] sm:$0xff] }
  0xcd   :  { %2152 = vmatmul.mubr.bf16.gmra.mxu0 %v3038_v36  ;;  %v154_v36 = vld [vmem:[%s4680_s0 + $0x2a0] sm:$0xff] }
  0xce   :  { %2249 = vmatmul.mubr.bf16.gmra.mxu1 %v3040_v37  ;;  %2289 = vmatprep.mubr.bf16.mxu0 %v2931_v38  ;;  %v162_v37 = vld [vmem:[%s4680_s0 + $0x2e0] sm:$0xff] }
  0xcf   :  { %2386 = vmatprep.mubr.bf16.mxu1 %v2933_v39  ;;  %v3902_v38 = vld [vmem:[#allocation2 + $0x300] sm:$0xff]   ;;  %v155_v39 = vld [vmem:[%s4680_s0 + $0x2a8] sm:$0xff]  ;;  %v3011_v44 = vcombine.high %v154_v36, %v162_v37 }
  0xd5   :  { %2290 = vmatmul.mubr.bf16.vlgmr.msra.gmra.mxu0 %v2930_v42  ;;  %v2994_v42 = vcombine.low %v138_v20, %v146_v21 }
  0xd6   :  { %2387 = vmatmul.mubr.bf16.vlgmr.msra.gmra.mxu1 %v2932_v45  ;;  %3644 = vmatpush3.bf16.msra.mxu0 %v3874_v46  ;;  %v3013_v45 = vcombine.high %v155_v39, %v163_v40  ;;  %v170_v46 = vld [vmem:[%s4680_s0 + $0x320] sm:$0xff] }
  0xd7   :  { %3708 = vmatpush3.bf16.msra.mxu1 %v3876_v47  ;;  %2297 = vmatprep.mubr.bf16.mxu0 %v2947_v48  ;;  %v178_v47 = vld [vmem:[%s4680_s0 + $0x360] sm:$0xff]  ;;  %v171_v48 = vld [vmem:[%s4680_s0 + $0x328] sm:$0xff] }
  0xd8   :  { %2394 = vmatprep.mubr.bf16.mxu1 %v2949_v49  ;;  %3645 = vmatprep.subr.bf16.mxu0 %v3877_v50  ;;  %v179_v49 = vld [vmem:[%s4680_s0 + $0x368] sm:$0xff]  ;;  %v3010_v50 = vcombine.low %v154_v36, %v162_v37  ;;  %v3026_v58 = vcombine.low %v170_v46, %v178_v47 }
  0xd9   :  { %3709 = vmatprep.subr.bf16.mxu1 %v3879_v51  ;;  %v3012_v51 = vcombine.low %v155_v39, %v163_v40 }
  0xda   :  { %3646 = vmatpush3.bf16.msra.mxu0 %v3878_v52  ;;  %v3027_v52 = vcombine.high %v170_v46, %v178_v47  ;;  %v125_v46 = vld [vmem:[%s4680_s0 + $0x1b8] sm:$0xff] }
  0xdb   :  { %3710 = vmatpush3.bf16.msra.mxu1 %v3880_v53  ;;  %3647 = vmatprep.subr.bf16.mxu0 %v3881_v56  ;;  %v3029_v53 = vcombine.high %v171_v48, %v179_v49  ;;  %v187_v56 = vld [vmem:[%s4680_s0 + $0x3a8] sm:$0xff]  ;;  %v133_v47 = vld [vmem:[%s4680_s0 + $0x1f8] sm:$0xff] }
  0xdc   :  { %3711 = vmatprep.subr.bf16.mxu1 %v3883_v59  ;;  %v3028_v59 = vcombine.low %v171_v48, %v179_v49 }
  0xdd   :  { %2298 = vmatmul.mubr.bf16.gmra.mxu0 %v2946_v60  ;;  %v3043_v60 = vcombine.high %v186_v54, %v194_v55 }
  0xde   :  { %2395 = vmatmul.mubr.bf16.gmra.mxu1 %v2948_v61  ;;  %2305 = vmatprep.mubr.bf16.mxu0 %v2963_v62  ;;  %v3045_v61 = vcombine.high %v187_v56, %v195_v57  ;;  %v76_v62 = vld [vmem:[%s4680_s0 + $0x30] sm:$0xff] }
  0xdf   :  { %2402 = vmatprep.mubr.bf16.mxu1 %v2965_v63  ;;  %3648 = vmatpush3.bf16.msra.mxu0 %v3882_v0  ;;  %v84_v63 = vld [vmem:[%s4680_s0 + $0x70] sm:$0xff]  ;;  %v77_v0 = vld [vmem:[%s4680_s0 + $0x38] sm:$0xff] }
  0xe0   :  { %3712 = vmatpush3.bf16.msra.mxu1 %v3884_v1  ;;  %3649 = vmatprep.subr.bf16.mxu0 %v3885_v2  ;;  %v85_v1 = vld [vmem:[%s4680_s0 + $0x78] sm:$0xff]  ;;  %v3042_v2 = vcombine.low %v186_v54, %v194_v55  ;;  %v2935_v4 = vcombine.high %v76_v62, %v84_v63 }
  0xe1   :  { %3713 = vmatprep.subr.bf16.mxu1 %v3887_v3  ;;  %v3044_v3 = vcombine.low %v187_v56, %v195_v57  ;;  %v2937_v5 = vcombine.high %v77_v0, %v85_v1  ;;  %v2985_v56 = vcombine.high %v125_v46, %v133_v47 }
  0xe3   :  { %3650 = vmatpush3.bf16.msra.mxu0 %v3886_v7  ;;  %v100_v7 = vld [vmem:[%s4680_s0 + $0xf0] sm:$0xff] }
  0xe4   :  { %3714 = vmatpush3.bf16.msra.mxu1 %v3888_v9  ;;  %3651 = vmatprep.subr.bf16.mxu0 %v3889_v10  ;;  %v101_v9 = vld [vmem:[%s4680_s0 + $0xf8] sm:$0xff]  ;;  %v2934_v10 = vcombine.low %v76_v62, %v84_v63 }
  0xe5   :  { %2306 = vmatmul.mubr.bf16.gmra.mxu0 %v2962_v11  ;;  %3715 = vmatprep.subr.bf16.mxu1 %v3891_v12  ;;  %v2936_v11 = vcombine.low %v77_v0, %v85_v1  ;;  %v2951_v12 = vcombine.high %v92_v6, %v100_v7  ;;  %v140_v1 = vld [vmem:[%s4680_s0 + $0x230] sm:$0xff] }
  0xe6   :  { %2403 = vmatmul.mubr.bf16.gmra.mxu1 %v2964_v13  ;;  %2313 = vmatprep.mubr.bf16.mxu0 %v2979_v14  ;;  %v2953_v13 = vcombine.high %v93_v8, %v101_v9 }
  0xe7   :  { %2410 = vmatprep.mubr.bf16.mxu1 %v2981_v15  ;;  %3652 = vmatpush3.bf16.msra.mxu0 %v3890_v16  ;;  %v4353_v16 = vld [vmem:[#allocation4] ss:$0 sm:$0xff] }
  0xe8   :  { %3716 = vmatpush3.bf16.msra.mxu1 %v3892_v17  ;;  %3653 = vmatprep.subr.bf16.mxu0 %v3893_v18  ;;  %v108_v18 = vld [vmem:[%s4680_s0 + $0x130] sm:$0xff] }
  0xe9   :  { %3717 = vmatprep.subr.bf16.mxu1 %v3895_v19  ;;  %v116_v19 = vld [vmem:[%s4680_s0 + $0x170] sm:$0xff] }
  0xeb   :  { %3654 = vmatpush3.bf16.msra.mxu0 %v3894_v23  ;;  %v117_v23 = vld [vmem:[%s4680_s0 + $0x178] sm:$0xff] }
  0xec   :  { %3718 = vmatpush3.bf16.msra.mxu1 %v3896_v25  ;;  %3655 = vmatprep.subr.bf16.mxu0 %v3897_v26  ;;  %v2950_v26 = vcombine.low %v92_v6, %v100_v7  ;;  %v141_v6 = vld [vmem:[%s4680_s0 + $0x238] sm:$0xff] }
  0xed   :  { %2314 = vmatmul.mubr.bf16.gmra.mxu0 %v2978_v27  ;;  %3719 = vmatprep.subr.bf16.mxu1 %v3899_v28  ;;  %v149_v7 = vld [vmem:[%s4680_s0 + $0x278] sm:$0xff] }
  0xee   :  { %2411 = vmatmul.mubr.bf16.gmra.mxu1 %v2980_v29  ;;  %2321 = vmatprep.mubr.bf16.mxu0 %v2995_v30  ;;  %v2952_v29 = vcombine.low %v93_v8, %v101_v9  ;;  %v2967_v30 = vcombine.high %v108_v18, %v116_v19 }
  0xef   :  { %2418 = vmatprep.mubr.bf16.mxu1 %v2997_v31  ;;  %3656 = vmatpush3.bf16.msra.mxu0 %v3898_v32  ;;  %v2969_v32 = vcombine.high %v109_v22, %v117_v23 }
  0xf0   :  { %3720 = vmatpush3.bf16.msra.mxu1 %v3900_v33  ;;  %3657 = vmatprep.subr.bf16.mxu0 %v3901_v34 }
  0xf1   :  { %3721 = vmatprep.subr.bf16.mxu1 %v3903_v35 }
  0xf3   :  { %3658 = vmatpush3.bf16.msra.mxu0 %v3902_v38 }
  0xf4   :  { %3722 = vmatpush3.bf16.msra.mxu1 %v3904_v41  ;;  %v124_v41 = vld [vmem:[%s4680_s0 + $0x1b0] sm:$0xff] }
  0xf5   :  { %2322 = vmatmul.mubr.bf16.gmra.mxu0 %v2994_v42  ;;  %v132_v42 = vld [vmem:[%s4680_s0 + $0x1f0] sm:$0xff] }
  0xf6   :  { %2419 = vmatmul.mubr.bf16.gmra.mxu1 %v2996_v43  ;;  %2329 = vmatprep.mubr.bf16.mxu0 %v3011_v44  ;;  %v2983_v54 = vcombine.high %v124_v41, %v132_v42 }
  0xf7   :  { %2426 = vmatprep.mubr.bf16.mxu1 %v3013_v45 }
  0xfd   :  { %2330 = vmatmul.mubr.bf16.gmra.mxu0 %v3010_v50  ;;  %v2966_v50 = vcombine.low %v108_v18, %v116_v19 }
  0xfe   :  { %2427 = vmatmul.mubr.bf16.gmra.mxu1 %v3012_v51  ;;  %2337 = vmatprep.mubr.bf16.mxu0 %v3027_v52 }
  0xff   :  { %2434 = vmatprep.mubr.bf16.mxu1 %v3029_v53  ;;  %v2968_v53 = vcombine.low %v109_v22, %v117_v23 }
 0x105   :  { %2338 = vmatmul.mubr.bf16.gmra.mxu0 %v3026_v58 }
 0x106   :  { %2435 = vmatmul.mubr.bf16.gmra.mxu1 %v3028_v59  ;;  %2345 = vmatprep.mubr.bf16.mxu0 %v3043_v60 }
 0x107   :  { %2442 = vmatprep.mubr.bf16.mxu1 %v3045_v61 }
 0x10d   :  { %2346 = vmatmul.mubr.bf16.gmra.mxu0 %v3042_v2  ;;  %v148_v2 = vld [vmem:[%s4680_s0 + $0x270] sm:$0xff] }
 0x10e   :  { %2443 = vmatmul.mubr.bf16.gmra.mxu1 %v3044_v3  ;;  %2483 = vmatprep.mubr.bf16.mxu0 %v2935_v4 }
 0x10f   :  { %2580 = vmatprep.mubr.bf16.mxu1 %v2937_v5 }
 0x115   :  { %v3275_v14 = vpop.f32.mrf.mxu0  ;;  %2484 = vmatmul.mubr.bf16.vlgmr.msra.gmra.mxu0 %v2934_v10  ;;  %v2982_v10 = vcombine.low %v124_v41, %v132_v42 }
 0x116   :  { %v3339_v15 = vpop.f32.mrf.mxu1  ;;  %2581 = vmatmul.mubr.bf16.vlgmr.msra.gmra.mxu1 %v2936_v11  ;;  %2491 = vmatprep.mubr.bf16.mxu0 %v2951_v12 }
 0x117   :  { %v3276_v17 = vpop.f32.mrf.mxu0  ;;  %2588 = vmatprep.mubr.bf16.mxu1 %v2953_v13  ;;  %v2984_v13 = vcombine.low %v125_v46, %v133_v47 }
 0x118   :  { %v3277_v20 = vadd.f32 %v3276_v17, %v3275_v14  ;;  %v3340_v21 = vpop.f32.mrf.mxu1  ;;  %v2999_v14 = vcombine.high %v140_v1, %v148_v2  ;;  %v3001_v17 = vcombine.high %v141_v6, %v149_v7 }
 0x119   :  { %v3341_v24 = vadd.f32 %v3340_v21, %v3339_v15  ;;  %v3278_v25 = vpop.f32.mrf.mxu0 }
 0x11a   :  { %v1904_v27 = vadd.f32 %v3277_v20, %v4353_v16  ;;  %v3342_v28 = vpop.f32.mrf.mxu1 }
 0x11b   :  { %v3279_v31 = vpop.f32.mrf.mxu0 }
 0x11c   :  { %v4368_v33 = vadd.f32 %v3341_v24, %v1904_v27  ;;  %v3280_v34 = vadd.f32 %v3279_v31, %v3278_v25  ;;  %v3343_v35 = vpop.f32.mrf.mxu1  ;;  %v164_v27 = vld [vmem:[%s4680_s0 + $0x2f0] sm:$0xff]  ;;  %v157_v31 = vld [vmem:[%s4680_s0 + $0x2b8] sm:$0xff] }
 0x11d   :  { %v3344_v36 = vadd.f32 %v3343_v35, %v3342_v28  ;;  %v3281_v37 = vpop.f32.mrf.mxu0  ;;  %2492 = vmatmul.mubr.bf16.gmra.mxu0 %v2950_v26  ;;  %v156_v26 = vld [vmem:[%s4680_s0 + $0x2b0] sm:$0xff] }
 0x11e   :  { %v1907_v38 = vadd.f32 %v3280_v34, %v4353_v16  ;;  %v3345_v39 = vpop.f32.mrf.mxu1  ;;  %2589 = vmatmul.mubr.bf16.gmra.mxu1 %v2952_v29  ;;  %2499 = vmatprep.mubr.bf16.mxu0 %v2967_v30 }
 0x11f   :  { %v3282_v40 = vpop.f32.mrf.mxu0  ;;  %2596 = vmatprep.mubr.bf16.mxu1 %v2969_v32  ;;  %v165_v32 = vld [vmem:[%s4680_s0 + $0x2f8] sm:$0xff] }
 0x120   :  { %v4377_v43 = vadd.f32 %v3344_v36, %v1907_v38  ;;  %v3283_v44 = vadd.f32 %v3282_v40, %v3281_v37  ;;  %v3346_v45 = vpop.f32.mrf.mxu1  ;;  %v2998_v36 = vcombine.low %v140_v1, %v148_v2  ;;  %v3015_v40 = vcombine.high %v156_v26, %v164_v27 }
 0x121   :  { %v3347_v48 = vadd.f32 %v3346_v45, %v3345_v39  ;;  %v3284_v49 = vpop.f32.mrf.mxu0  ;;  %v3000_v39 = vcombine.low %v141_v6, %v149_v7  ;;  %v3017_v42 = vcombine.high %v157_v31, %v165_v32  ;;  %v3016_v1 = vcombine.low %v157_v31, %v165_v32 }
 0x122   :  { %v1912_v51 = vadd.f32 %v3283_v44, %v4353_v16  ;;  %v3348_v52 = vpop.f32.mrf.mxu1 }
 0x123   :  { %v3285_v55 = vpop.f32.mrf.mxu0 }
 0x124   :  { %v4386_v57 = vadd.f32 %v3347_v48, %v1912_v51  ;;  %v3286_v58 = vadd.f32 %v3285_v55, %v3284_v49  ;;  %v3349_v59 = vpop.f32.mrf.mxu1 }
 0x125   :  { %v3350_v60 = vadd.f32 %v3349_v59, %v3348_v52  ;;  %v3287_v61 = vpop.f32.mrf.mxu0  ;;  %2500 = vmatmul.mubr.bf16.gmra.mxu0 %v2966_v50  ;;  %v172_v52 = vld [vmem:[%s4680_s0 + $0x330] sm:$0xff]  ;;  %v181_v59 = vld [vmem:[%s4680_s0 + $0x378] sm:$0xff] }
 0x126   :  { %v1915_v62 = vadd.f32 %v3286_v58, %v4353_v16  ;;  %v3351_v63 = vpop.f32.mrf.mxu1  ;;  %2597 = vmatmul.mubr.bf16.gmra.mxu1 %v2968_v53  ;;  %2507 = vmatprep.mubr.bf16.mxu0 %v2983_v54  ;;  %v180_v53 = vld [vmem:[%s4680_s0 + $0x370] sm:$0xff]  ;;  %v173_v58 = vld [vmem:[%s4680_s0 + $0x338] sm:$0xff] }
 0x127   :  { %v3288_v0 = vpop.f32.mrf.mxu0  ;;  %2604 = vmatprep.mubr.bf16.mxu1 %v2985_v56  ;;  %v3031_v2 = vcombine.high %v172_v52, %v180_v53 }
 0x128   :  { %v4395_v3 = vadd.f32 %v3350_v60, %v1915_v62  ;;  %v3289_v4 = vadd.f32 %v3288_v0, %v3287_v61  ;;  %v3352_v5 = vpop.f32.mrf.mxu1  ;;  %v3014_v62 = vcombine.low %v156_v26, %v164_v27 }
 0x129   :  { %v3353_v8 = vadd.f32 %v3352_v5, %v3351_v63  ;;  %v3290_v9 = vpop.f32.mrf.mxu0  ;;  %v3033_v5 = vcombine.high %v173_v58, %v181_v59 }
 0x12a   :  { %v1920_v11 = vadd.f32 %v3289_v4, %v4353_v16  ;;  %v3354_v12 = vpop.f32.mrf.mxu1 }
 0x12b   :  { %v3291_v15 = vpop.f32.mrf.mxu0 }
 0x12c   :  { %v4404_v18 = vadd.f32 %v3353_v8, %v1920_v11  ;;  %v3292_v19 = vadd.f32 %v3291_v15, %v3290_v9  ;;  %v3355_v20 = vpop.f32.mrf.mxu1  ;;  %v196_v15 = vld [vmem:[%s4680_s0 + $0x3f0] sm:$0xff] }
 0x12d   :  { %v3356_v21 = vadd.f32 %v3355_v20, %v3354_v12  ;;  %v3293_v22 = vpop.f32.mrf.mxu0  ;;  %2508 = vmatmul.mubr.bf16.gmra.mxu0 %v2982_v10 }
 0x12e   :  { %v1923_v23 = vadd.f32 %v3292_v19, %v4353_v16  ;;  %v3357_v24 = vpop.f32.mrf.mxu1  ;;  %2605 = vmatmul.mubr.bf16.gmra.mxu1 %v2984_v13  ;;  %2515 = vmatprep.mubr.bf16.mxu0 %v2999_v14  ;;  %v188_v14 = vld [vmem:[%s4680_s0 + $0x3b0] sm:$0xff] }
 0x12f   :  { %v3294_v25 = vpop.f32.mrf.mxu0  ;;  %2612 = vmatprep.mubr.bf16.mxu1 %v3001_v17 }
 0x130   :  { %v4413_v28 = vadd.f32 %v3356_v21, %v1923_v23  ;;  %v3295_v29 = vadd.f32 %v3294_v25, %v3293_v22  ;;  %v3358_v30 = vpop.f32.mrf.mxu1  ;;  %v189_v21 = vld [vmem:[%s4680_s0 + $0x3b8] sm:$0xff]  ;;  %v3030_v25 = vcombine.low %v172_v52, %v180_v53 }
 0x131   :  { %v3359_v34 = vadd.f32 %v3358_v30, %v3357_v24  ;;  %v3296_v35 = vpop.f32.mrf.mxu0  ;;  %v197_v22 = vld [vmem:[%s4680_s0 + $0x3f8] sm:$0xff]  ;;  %v3047_v30 = vcombine.high %v188_v14, %v196_v15 }
 0x132   :  { %v1928_v37 = vadd.f32 %v3295_v29, %v4353_v16  ;;  %v3360_v38 = vpop.f32.mrf.mxu1  ;;  %v3032_v29 = vcombine.low %v173_v58, %v181_v59  ;;  %v3049_v32 = vcombine.high %v189_v21, %v197_v22  ;;  %v3048_v52 = vcombine.low %v189_v21, %v197_v22 }
 0x133   :  { %v3297_v41 = vpop.f32.mrf.mxu0 }
 0x134   :  { %v4422_v44 = vadd.f32 %v3359_v34, %v1928_v37  ;;  %v3298_v45 = vadd.f32 %v3297_v41, %v3296_v35  ;;  %v3361_v46 = vpop.f32.mrf.mxu1 }
 0x135   :  { %v3362_v47 = vadd.f32 %v3361_v46, %v3360_v38  ;;  %v3299_v48 = vpop.f32.mrf.mxu0  ;;  %2516 = vmatmul.mubr.bf16.gmra.mxu0 %v2998_v36 }
 0x136   :  { %v1931_v49 = vadd.f32 %v3298_v45, %v4353_v16  ;;  %v3363_v50 = vpop.f32.mrf.mxu1  ;;  %2613 = vmatmul.mubr.bf16.gmra.mxu1 %v3000_v39  ;;  %2523 = vmatprep.mubr.bf16.mxu0 %v3015_v40 }
 0x137   :  { %v3300_v51 = vpop.f32.mrf.mxu0  ;;  %2620 = vmatprep.mubr.bf16.mxu1 %v3017_v42 }
 0x138   :  { %v4431_v54 = vadd.f32 %v3362_v47, %v1931_v49  ;;  %v3301_v55 = vadd.f32 %v3300_v51, %v3299_v48  ;;  %v3364_v56 = vpop.f32.mrf.mxu1  ;;  %v3046_v49 = vcombine.low %v188_v14, %v196_v15 }
 0x139   :  { %v3365_v60 = vadd.f32 %v3364_v56, %v3363_v50  ;;  %v3302_v61 = vpop.f32.mrf.mxu0 }
 0x13a   :  { %v1936_v63 = vadd.f32 %v3301_v55, %v4353_v16  ;;  %v3366_v0 = vpop.f32.mrf.mxu1 }
 0x13b   :  { %v3303_v4 = vpop.f32.mrf.mxu0 }
 0x13c   :  { %v4440_v6 = vadd.f32 %v3365_v60, %v1936_v63  ;;  %v3304_v7 = vadd.f32 %v3303_v4, %v3302_v61  ;;  %v3367_v8 = vpop.f32.mrf.mxu1 }
 0x13d   :  { %v3368_v9 = vadd.f32 %v3367_v8, %v3366_v0  ;;  %v3305_v10 = vpop.f32.mrf.mxu0  ;;  %2524 = vmatmul.mubr.bf16.gmra.mxu0 %v3014_v62 }
 0x13e   :  { %v1939_v11 = vadd.f32 %v3304_v7, %v4353_v16  ;;  %v3369_v12 = vpop.f32.mrf.mxu1  ;;  %2621 = vmatmul.mubr.bf16.gmra.mxu1 %v3016_v1  ;;  %2531 = vmatprep.mubr.bf16.mxu0 %v3031_v2 }
 0x13f   :  { %v3306_v13 = vpop.f32.mrf.mxu0  ;;  %2628 = vmatprep.mubr.bf16.mxu1 %v3033_v5 }
 0x140   :  { %v4449_v17 = vadd.f32 %v3368_v9, %v1939_v11  ;;  %v3307_v19 = vadd.f32 %v3306_v13, %v3305_v10  ;;  %v3370_v20 = vpop.f32.mrf.mxu1 }
 0x141   :  { %v3371_v23 = vadd.f32 %v3370_v20, %v3369_v12  ;;  %v3308_v24 = vpop.f32.mrf.mxu0 }
 0x142   :  { %v1944_v26 = vadd.f32 %v3307_v19, %v4353_v16  ;;  %v3372_v27 = vpop.f32.mrf.mxu1 }
 0x143   :  { %v3309_v31 = vpop.f32.mrf.mxu0 }
 0x144   :  { %v4458_v34 = vadd.f32 %v3371_v23, %v1944_v26  ;;  %v3310_v35 = vadd.f32 %v3309_v31, %v3308_v24  ;;  %v3373_v36 = vpop.f32.mrf.mxu1 }
 0x145   :  { %v3374_v37 = vadd.f32 %v3373_v36, %v3372_v27  ;;  %v3311_v38 = vpop.f32.mrf.mxu0  ;;  %2532 = vmatmul.mubr.bf16.gmra.mxu0 %v3030_v25 }
 0x146   :  { %v1947_v39 = vadd.f32 %v3310_v35, %v4353_v16  ;;  %v3375_v40 = vpop.f32.mrf.mxu1  ;;  %2629 = vmatmul.mubr.bf16.gmra.mxu1 %v3032_v29  ;;  %2539 = vmatprep.mubr.bf16.mxu0 %v3047_v30 }
 0x147   :  { %v3312_v41 = vpop.f32.mrf.mxu0  ;;  %2636 = vmatprep.mubr.bf16.mxu1 %v3049_v32 }
 0x148   :  { %v4461_v42 = vadd.f32 %v3374_v37, %v1947_v39  ;;  %v3313_v45 = vadd.f32 %v3312_v41, %v3311_v38  ;;  %v3376_v46 = vpop.f32.mrf.mxu1 }
 0x149   :  { %v3377_v47 = vadd.f32 %v3376_v46, %v3375_v40  ;;  %v3314_v48 = vpop.f32.mrf.mxu0 }
 0x14a   :  { %v1952_v50 = vadd.f32 %v3313_v45, %v4353_v16  ;;  %v3378_v51 = vpop.f32.mrf.mxu1 }
 0x14b   :  { %v3315_v53 = vpop.f32.mrf.mxu0 }
 0x14c   :  { %v4464_v55 = vadd.f32 %v3377_v47, %v1952_v50  ;;  %v3316_v56 = vadd.f32 %v3315_v53, %v3314_v48  ;;  %v3379_v58 = vpop.f32.mrf.mxu1 }
 0x14d   :  { %v3380_v59 = vadd.f32 %v3379_v58, %v3378_v51  ;;  %v3317_v60 = vpop.f32.mrf.mxu0  ;;  %2540 = vmatmul.mubr.bf16.gmra.mxu0 %v3046_v49 }
 0x14e   :  { %v1955_v61 = vadd.f32 %v3316_v56, %v4353_v16  ;;  %v3381_v62 = vpop.f32.mrf.mxu1  ;;  %2637 = vmatmul.mubr.bf16.gmra.mxu1 %v3048_v52 }
 0x14f   :  { %v3318_v63 = vpop.f32.mrf.mxu0 }
 0x150   :  { %v4467_v0 = vadd.f32 %v3380_v59, %v1955_v61  ;;  %v3319_v1 = vadd.f32 %v3318_v63, %v3317_v60  ;;  %v3382_v2 = vpop.f32.mrf.mxu1 }
 0x151   :  { %v3383_v4 = vadd.f32 %v3382_v2, %v3381_v62  ;;  %v3320_v5 = vpop.f32.mrf.mxu0 }
 0x152   :  { %v1960_v7 = vadd.f32 %v3319_v1, %v4353_v16  ;;  %v3384_v8 = vpop.f32.mrf.mxu1 }
 0x153   :  { %v3321_v9 = vpop.f32.mrf.mxu0 }
 0x154   :  { %v4470_v10 = vadd.f32 %v3383_v4, %v1960_v7  ;;  %v3322_v11 = vadd.f32 %v3321_v9, %v3320_v5  ;;  %v3385_v12 = vpop.f32.mrf.mxu1 }
 0x155   :  { %v3386_v13 = vadd.f32 %v3385_v12, %v3384_v8  ;;  %v3403_v14 = vpop.f32.mrf.mxu0 }
 0x156   :  { %v1963_v15 = vadd.f32 %v3322_v11, %v4353_v16  ;;  %v3467_v19 = vpop.f32.mrf.mxu1 }
 0x157   :  { %v3404_v20 = vpop.f32.mrf.mxu0 }
 0x158   :  { %v4473_v21 = vadd.f32 %v3386_v13, %v1963_v15  ;;  %v3405_v22 = vadd.f32 %v3404_v20, %v3403_v14  ;;  %v3468_v23 = vpop.f32.mrf.mxu1 }
 0x159   :  { %v3469_v24 = vadd.f32 %v3468_v23, %v3467_v19  ;;  %v3406_v25 = vpop.f32.mrf.mxu0 }
 0x15a   :  { %v2098_v26 = vadd.f32 %v3405_v22, %v4368_v33  ;;  %v3470_v27 = vpop.f32.mrf.mxu1 }
 0x15b   :  { %v3407_v29 = vpop.f32.mrf.mxu0 }
 0x15c   :  { %v4476_v30 = vadd.f32 %v3469_v24, %v2098_v26  ;;  %v3408_v31 = vadd.f32 %v3407_v29, %v3406_v25  ;;  %v3471_v32 = vpop.f32.mrf.mxu1 }
 0x15d   :  { %v3472_v35 = vadd.f32 %v3471_v32, %v3470_v27  ;;  %v3409_v36 = vpop.f32.mrf.mxu0 }
 0x15e   :  { %v2101_v16 = vadd.f32 %v3408_v31, %v4377_v43  ;;  %v3473_v37 = vpop.f32.mrf.mxu1 }
 0x15f   :  { %v3410_v38 = vpop.f32.mrf.mxu0 }
 0x160   :  { %v4479_v39 = vadd.f32 %v3472_v35, %v2101_v16  ;;  %v3411_v40 = vadd.f32 %v3410_v38, %v3409_v36  ;;  %v3474_v41 = vpop.f32.mrf.mxu1 }
 0x161   :  { %v3475_v45 = vadd.f32 %v3474_v41, %v3473_v37  ;;  %v3412_v46 = vpop.f32.mrf.mxu0 }
 0x162   :  { %v2106_v33 = vadd.f32 %v3411_v40, %v4386_v57  ;;  %v3476_v47 = vpop.f32.mrf.mxu1 }
 0x163   :  { %v3413_v48 = vpop.f32.mrf.mxu0 }
 0x164   :  { %v4482_v49 = vadd.f32 %v3475_v45, %v2106_v33  ;;  %v3414_v50 = vadd.f32 %v3413_v48, %v3412_v46  ;;  %v3477_v51 = vpop.f32.mrf.mxu1 }
 0x165   :  { %v3478_v52 = vadd.f32 %v3477_v51, %v3476_v47  ;;  %v3415_v53 = vpop.f32.mrf.mxu0 }
 0x166   :  { %v2109_v43 = vadd.f32 %v3414_v50, %v4395_v3  ;;  %v3479_v56 = vpop.f32.mrf.mxu1 }
 0x167   :  { %v3416_v58 = vpop.f32.mrf.mxu0 }
 0x168   :  { %v4485_v59 = vadd.f32 %v3478_v52, %v2109_v43  ;;  %v3417_v60 = vadd.f32 %v3416_v58, %v3415_v53  ;;  %v3480_v61 = vpop.f32.mrf.mxu1 }
 0x169   :  { %v3481_v62 = vadd.f32 %v3480_v61, %v3479_v56  ;;  %v3418_v63 = vpop.f32.mrf.mxu0 }
 0x16a   :  { %v2114_v57 = vadd.f32 %v3417_v60, %v4404_v18  ;;  %v3482_v1 = vpop.f32.mrf.mxu1 }
 0x16b   :  { %v3419_v2 = vpop.f32.mrf.mxu0 }
 0x16c   :  { %v4488_v4 = vadd.f32 %v3481_v62, %v2114_v57  ;;  %v3420_v5 = vadd.f32 %v3419_v2, %v3418_v63  ;;  %v3483_v7 = vpop.f32.mrf.mxu1 }
 0x16d   :  { %v3484_v8 = vadd.f32 %v3483_v7, %v3482_v1  ;;  %v3421_v9 = vpop.f32.mrf.mxu0 }
 0x16e   :  { %v2117_v3 = vadd.f32 %v3420_v5, %v4413_v28  ;;  %v3485_v11 = vpop.f32.mrf.mxu1 }
 0x16f   :  { %v3422_v12 = vpop.f32.mrf.mxu0 }
 0x170   :  { %v4491_v13 = vadd.f32 %v3484_v8, %v2117_v3  ;;  %v3423_v14 = vadd.f32 %v3422_v12, %v3421_v9  ;;  %v3486_v15 = vpop.f32.mrf.mxu1 }
 0x171   :  { %v3487_v19 = vadd.f32 %v3486_v15, %v3485_v11  ;;  %v3424_v20 = vpop.f32.mrf.mxu0 }
 0x172   :  { %v2122_v18 = vadd.f32 %v3423_v14, %v4422_v44  ;;  %v3488_v22 = vpop.f32.mrf.mxu1 }
 0x173   :  { %v3425_v23 = vpop.f32.mrf.mxu0 }
 0x174   :  { %v4494_v24 = vadd.f32 %v3487_v19, %v2122_v18  ;;  %v3426_v25 = vadd.f32 %v3425_v23, %v3424_v20  ;;  %v3489_v26 = vpop.f32.mrf.mxu1 }
 0x175   :  { %v3490_v27 = vadd.f32 %v3489_v26, %v3488_v22  ;;  %v3427_v29 = vpop.f32.mrf.mxu0 }
 0x176   :  { %v2125_v28 = vadd.f32 %v3426_v25, %v4431_v54  ;;  %v3491_v31 = vpop.f32.mrf.mxu1 }
 0x177   :  { %v3428_v32 = vpop.f32.mrf.mxu0 }
 0x178   :  { %v4497_v35 = vadd.f32 %v3490_v27, %v2125_v28  ;;  %v3429_v36 = vadd.f32 %v3428_v32, %v3427_v29  ;;  %v3492_v16 = vpop.f32.mrf.mxu1 }
 0x179   :  { %v3493_v37 = vadd.f32 %v3492_v16, %v3491_v31  ;;  %v3430_v38 = vpop.f32.mrf.mxu0 }
 0x17a   :  { %v2130_v44 = vadd.f32 %v3429_v36, %v4440_v6  ;;  %v3494_v40 = vpop.f32.mrf.mxu1 }
 0x17b   :  { %v3431_v41 = vpop.f32.mrf.mxu0 }
 0x17c   :  { %v4500_v45 = vadd.f32 %v3493_v37, %v2130_v44  ;;  %v3432_v46 = vadd.f32 %v3431_v41, %v3430_v38  ;;  %v3495_v33 = vpop.f32.mrf.mxu1 }
 0x17d   :  { %v3496_v47 = vadd.f32 %v3495_v33, %v3494_v40  ;;  %v3433_v48 = vpop.f32.mrf.mxu0 }
 0x17e   :  { %v2133_v54 = vadd.f32 %v3432_v46, %v4449_v17  ;;  %v3497_v50 = vpop.f32.mrf.mxu1 }
 0x17f   :  { %v3434_v51 = vpop.f32.mrf.mxu0 }
 0x180   :  { %v4503_v52 = vadd.f32 %v3496_v47, %v2133_v54  ;;  %v3435_v53 = vadd.f32 %v3434_v51, %v3433_v48  ;;  %v3498_v43 = vpop.f32.mrf.mxu1 }
 0x181   :  { %v3499_v56 = vadd.f32 %v3498_v43, %v3497_v50  ;;  %v3436_v58 = vpop.f32.mrf.mxu0 }
 0x182   :  { %v2138_v6 = vadd.f32 %v3435_v53, %v4458_v34  ;;  %v3500_v60 = vpop.f32.mrf.mxu1 }
 0x183   :  { %v3437_v61 = vpop.f32.mrf.mxu0 }
 0x184   :  { %v4506_v62 = vadd.f32 %v3499_v56, %v2138_v6  ;;  %v3438_v63 = vadd.f32 %v3437_v61, %v3436_v58  ;;  %v3501_v57 = vpop.f32.mrf.mxu1 }
 0x185   :  { %v3502_v1 = vadd.f32 %v3501_v57, %v3500_v60  ;;  %v3439_v2 = vpop.f32.mrf.mxu0 }
 0x186   :  { %v2141_v17 = vadd.f32 %v3438_v63, %v4461_v42  ;;  %v3503_v5 = vpop.f32.mrf.mxu1 }
 0x187   :  { %v3440_v7 = vpop.f32.mrf.mxu0 }
 0x188   :  { %v4509_v8 = vadd.f32 %v3502_v1, %v2141_v17  ;;  %v3441_v9 = vadd.f32 %v3440_v7, %v3439_v2  ;;  %v3504_v3 = vpop.f32.mrf.mxu1 }
 0x189   :  { %v3505_v11 = vadd.f32 %v3504_v3, %v3503_v5  ;;  %v3442_v12 = vpop.f32.mrf.mxu0 }
 0x18a   :  { %v2146_v34 = vadd.f32 %v3441_v9, %v4464_v55  ;;  %v3506_v14 = vpop.f32.mrf.mxu1 }
 0x18b   :  { %v3443_v15 = vpop.f32.mrf.mxu0 }
 0x18c   :  { %v4512_v19 = vadd.f32 %v3505_v11, %v2146_v34  ;;  %v3444_v20 = vadd.f32 %v3443_v15, %v3442_v12  ;;  %v3507_v18 = vpop.f32.mrf.mxu1 }
 0x18d   :  { %v3508_v22 = vadd.f32 %v3507_v18, %v3506_v14  ;;  %v3445_v23 = vpop.f32.mrf.mxu0 }
 0x18e   :  { %v2149_v42 = vadd.f32 %v3444_v20, %v4467_v0  ;;  %v3509_v25 = vpop.f32.mrf.mxu1 }
 0x18f   :  { %v3446_v26 = vpop.f32.mrf.mxu0 }
 0x190   :  { %v4515_v27 = vadd.f32 %v3508_v22, %v2149_v42  ;;  %v3447_v29 = vadd.f32 %v3446_v26, %v3445_v23  ;;  %v3510_v28 = vpop.f32.mrf.mxu1 }
 0x191   :  { %v3511_v31 = vadd.f32 %v3510_v28, %v3509_v25  ;;  %v3448_v32 = vpop.f32.mrf.mxu0 }
 0x192   :  { %v2154_v55 = vadd.f32 %v3447_v29, %v4470_v10  ;;  %v3512_v36 = vpop.f32.mrf.mxu1 }
 0x193   :  { %v3449_v16 = vpop.f32.mrf.mxu0 }
 0x194   :  { %v4518_v37 = vadd.f32 %v3511_v31, %v2154_v55  ;;  %v3450_v38 = vadd.f32 %v3449_v16, %v3448_v32  ;;  %v3513_v44 = vpop.f32.mrf.mxu1 }
 0x195   :  { %v3514_v40 = vadd.f32 %v3513_v44, %v3512_v36  ;;  %v3531_v41 = vpop.f32.mrf.mxu0 }
 0x196   :  { %v2157_v0 = vadd.f32 %v3450_v38, %v4473_v21  ;;  %v3595_v46 = vpop.f32.mrf.mxu1 }
 0x197   :  { %v3532_v33 = vpop.f32.mrf.mxu0 }
 0x198   :  { %v4521_v47 = vadd.f32 %v3514_v40, %v2157_v0  ;;  %v3533_v48 = vadd.f32 %v3532_v33, %v3531_v41  ;;  %v3596_v54 = vpop.f32.mrf.mxu1 }
 0x199   :  { %v3597_v50 = vadd.f32 %v3596_v54, %v3595_v46  ;;  %v3534_v51 = vpop.f32.mrf.mxu0 }
 0x19a   :  { %v2292_v10 = vadd.f32 %v3533_v48, %v4476_v30  ;;  %v3598_v53 = vpop.f32.mrf.mxu1 }
 0x19b   :  { %v3535_v43 = vpop.f32.mrf.mxu0 }
 0x19c   :  { %v4524_v56 = vadd.f32 %v3597_v50, %v2292_v10  ;;  %v3536_v58 = vadd.f32 %v3535_v43, %v3534_v51  ;;  %v3599_v6 = vpop.f32.mrf.mxu1 }
 0x19d   :  { %v3600_v60 = vadd.f32 %v3599_v6, %v3598_v53  ;;  %v3537_v61 = vpop.f32.mrf.mxu0 }
 0x19e   :  { %v2295_v21 = vadd.f32 %v3536_v58, %v4479_v39  ;;  %v3601_v63 = vpop.f32.mrf.mxu1 }
 0x19f   :  { %v3538_v57 = vpop.f32.mrf.mxu0 }
 0x1a0   :  { %v4527_v1 = vadd.f32 %v3600_v60, %v2295_v21  ;;  %v3539_v2 = vadd.f32 %v3538_v57, %v3537_v61  ;;  %v3602_v17 = vpop.f32.mrf.mxu1 }
 0x1a1   :  { %v3603_v5 = vadd.f32 %v3602_v17, %v3601_v63  ;;  %v3540_v7 = vpop.f32.mrf.mxu0 }
 0x1a2   :  { %v2300_v30 = vadd.f32 %v3539_v2, %v4482_v49  ;;  %v3604_v9 = vpop.f32.mrf.mxu1 }
 0x1a3   :  { %v3541_v3 = vpop.f32.mrf.mxu0 }
 0x1a4   :  { %v4530_v11 = vadd.f32 %v3603_v5, %v2300_v30  ;;  %v3542_v12 = vadd.f32 %v3541_v3, %v3540_v7  ;;  %v3605_v34 = vpop.f32.mrf.mxu1 }
 0x1a5   :  { %v3606_v14 = vadd.f32 %v3605_v34, %v3604_v9  ;;  %v3543_v15 = vpop.f32.mrf.mxu0 }
 0x1a6   :  { %v2303_v39 = vadd.f32 %v3542_v12, %v4485_v59  ;;  %v3607_v20 = vpop.f32.mrf.mxu1 }
 0x1a7   :  { %v3544_v18 = vpop.f32.mrf.mxu0 }
 0x1a8   :  { %v4533_v22 = vadd.f32 %v3606_v14, %v2303_v39  ;;  %v3545_v23 = vadd.f32 %v3544_v18, %v3543_v15  ;;  %v3608_v42 = vpop.f32.mrf.mxu1 }
 0x1a9   :  { %v3609_v25 = vadd.f32 %v3608_v42, %v3607_v20  ;;  %v3546_v26 = vpop.f32.mrf.mxu0 }
 0x1aa   :  { %v2308_v49 = vadd.f32 %v3545_v23, %v4488_v4  ;;  %v3610_v29 = vpop.f32.mrf.mxu1 }
 0x1ab   :  { %v3547_v28 = vpop.f32.mrf.mxu0 }
 0x1ac   :  { %v4536_v31 = vadd.f32 %v3609_v25, %v2308_v49  ;;  %v3548_v32 = vadd.f32 %v3547_v28, %v3546_v26  ;;  %v3611_v55 = vpop.f32.mrf.mxu1 }
 0x1ad   :  { %v3612_v36 = vadd.f32 %v3611_v55, %v3610_v29  ;;  %v3549_v16 = vpop.f32.mrf.mxu0 }
 0x1ae   :  { %v2311_v59 = vadd.f32 %v3548_v32, %v4491_v13  ;;  %v3613_v38 = vpop.f32.mrf.mxu1 }
 0x1af   :  { %v3550_v44 = vpop.f32.mrf.mxu0 }
 0x1b0   :  { %v4539_v40 = vadd.f32 %v3612_v36, %v2311_v59  ;;  %v3551_v41 = vadd.f32 %v3550_v44, %v3549_v16  ;;  %v3614_v0 = vpop.f32.mrf.mxu1 }
 0x1b1   :  { %v3615_v46 = vadd.f32 %v3614_v0, %v3613_v38  ;;  %v3552_v33 = vpop.f32.mrf.mxu0 }
 0x1b2   :  { %v2316_v4 = vadd.f32 %v3551_v41, %v4494_v24  ;;  %v3616_v48 = vpop.f32.mrf.mxu1 }
 0x1b3   :  { %v3553_v54 = vpop.f32.mrf.mxu0 }
 0x1b4   :  { %v4542_v50 = vadd.f32 %v3615_v46, %v2316_v4  ;;  %v3554_v51 = vadd.f32 %v3553_v54, %v3552_v33  ;;  %v3617_v10 = vpop.f32.mrf.mxu1 }
 0x1b5   :  { %v3618_v53 = vadd.f32 %v3617_v10, %v3616_v48  ;;  %v3555_v43 = vpop.f32.mrf.mxu0 }
 0x1b6   :  { %v2319_v13 = vadd.f32 %v3554_v51, %v4497_v35  ;;  %v3619_v58 = vpop.f32.mrf.mxu1 }
 0x1b7   :  { %v3556_v6 = vpop.f32.mrf.mxu0 }
 0x1b8   :  { %v4545_v60 = vadd.f32 %v3618_v53, %v2319_v13  ;;  %v3557_v61 = vadd.f32 %v3556_v6, %v3555_v43  ;;  %v3620_v21 = vpop.f32.mrf.mxu1 }
 0x1b9   :  { %v3621_v63 = vadd.f32 %v3620_v21, %v3619_v58  ;;  %v3558_v57 = vpop.f32.mrf.mxu0 }
 0x1ba   :  { %v2324_v24 = vadd.f32 %v3557_v61, %v4500_v45  ;;  %v3622_v2 = vpop.f32.mrf.mxu1 }
 0x1bb   :  { %v3559_v17 = vpop.f32.mrf.mxu0 }
 0x1bc   :  { %v4548_v5 = vadd.f32 %v3621_v63, %v2324_v24  ;;  %v3560_v7 = vadd.f32 %v3559_v17, %v3558_v57  ;;  %v3623_v30 = vpop.f32.mrf.mxu1 }
 0x1bd   :  { %v3624_v9 = vadd.f32 %v3623_v30, %v3622_v2  ;;  %v3561_v3 = vpop.f32.mrf.mxu0 }
 0x1be   :  { %v2327_v35 = vadd.f32 %v3560_v7, %v4503_v52  ;;  %v3625_v12 = vpop.f32.mrf.mxu1 }
 0x1bf   :  { %v3562_v34 = vpop.f32.mrf.mxu0 }
 0x1c0   :  { %v4551_v14 = vadd.f32 %v3624_v9, %v2327_v35  ;;  %v3563_v15 = vadd.f32 %v3562_v34, %v3561_v3  ;;  %v3626_v39 = vpop.f32.mrf.mxu1 }
 0x1c1   :  { %v3627_v20 = vadd.f32 %v3626_v39, %v3625_v12  ;;  %v3564_v18 = vpop.f32.mrf.mxu0 }
 0x1c2   :  { %v2332_v45 = vadd.f32 %v3563_v15, %v4506_v62  ;;  %v3628_v23 = vpop.f32.mrf.mxu1 }
 0x1c3   :  { %v3565_v42 = vpop.f32.mrf.mxu0 }
 0x1c4   :  { %v4554_v25 = vadd.f32 %v3627_v20, %v2332_v45  ;;  %v3566_v26 = vadd.f32 %v3565_v42, %v3564_v18  ;;  %v3629_v49 = vpop.f32.mrf.mxu1 }
 0x1c5   :  { %v3630_v29 = vadd.f32 %v3629_v49, %v3628_v23  ;;  %v3567_v28 = vpop.f32.mrf.mxu0 }
 0x1c6   :  { %v2335_v52 = vadd.f32 %v3566_v26, %v4509_v8  ;;  %v3631_v32 = vpop.f32.mrf.mxu1 }
 0x1c7   :  { %v3568_v55 = vpop.f32.mrf.mxu0 }
 0x1c8   :  { %v4557_v36 = vadd.f32 %v3630_v29, %v2335_v52  ;;  %v3569_v16 = vadd.f32 %v3568_v55, %v3567_v28  ;;  %v3632_v59 = vpop.f32.mrf.mxu1 }
 0x1c9   :  { %v3633_v38 = vadd.f32 %v3632_v59, %v3631_v32  ;;  %v3570_v44 = vpop.f32.mrf.mxu0 }
 0x1ca   :  { %v2340_v62 = vadd.f32 %v3569_v16, %v4512_v19  ;;  %v3634_v41 = vpop.f32.mrf.mxu1 }
 0x1cb   :  { %v3571_v0 = vpop.f32.mrf.mxu0 }
 0x1cc   :  { %v4560_v46 = vadd.f32 %v3633_v38, %v2340_v62  ;;  %v3572_v33 = vadd.f32 %v3571_v0, %v3570_v44  ;;  %v3635_v4 = vpop.f32.mrf.mxu1 }
 0x1cd   :  { %v3636_v48 = vadd.f32 %v3635_v4, %v3634_v41  ;;  %v3573_v54 = vpop.f32.mrf.mxu0 }
 0x1ce   :  { %v2343_v8 = vadd.f32 %v3572_v33, %v4515_v27  ;;  %v3637_v51 = vpop.f32.mrf.mxu1 }
 0x1cf   :  { %v3574_v10 = vpop.f32.mrf.mxu0 }
 0x1d0   :  { %v4563_v53 = vadd.f32 %v3636_v48, %v2343_v8  ;;  %v3575_v43 = vadd.f32 %v3574_v10, %v3573_v54  ;;  %v3638_v13 = vpop.f32.mrf.mxu1 }
 0x1d1   :  { %v4565_v58 = vpop.f32.mrf.mxu0  ;;  %v3639_v6 = vadd.f32 %v3638_v13, %v3637_v51 }
 0x1d2   :  { %v2348_v19 = vadd.f32 %v3575_v43, %v4518_v37  ;;  %v4568_v61 = vpop.f32.mrf.mxu1 }
 0x1d3   :  { %v4570_v21 = vpop.f32.mrf.mxu0 }
 0x1d4   :  { %v4572_v63 = vadd.f32 %v3639_v6, %v2348_v19  ;;  %v4574_v57 = vpop.f32.mrf.mxu1 }
 0x1d5   :  { %v3659_v27 = vpop.f32.mrf.mxu0 }
 0x1d6   :  { %v3723_v24 = vpop.f32.mrf.mxu1 }
 0x1d7   :  { %v3660_v2 = vpop.f32.mrf.mxu0 }
 0x1d8   :  { %v3661_v17 = vadd.f32 %v3660_v2, %v3659_v27  ;;  %v3724_v7 = vpop.f32.mrf.mxu1 }
 0x1d9   :  { %v3662_v30 = vpop.f32.mrf.mxu0  ;;  %v3725_v15 = vadd.f32 %v3724_v7, %v3723_v24 }
 0x1da   :  { %v3726_v9 = vpop.f32.mrf.mxu1  ;;  %v2486_v35 = vadd.f32 %v3661_v17, %v4524_v56 }
 0x1db   :  { %v3663_v3 = vpop.f32.mrf.mxu0 }
 0x1dc   :  { %v3664_v37 = vadd.f32 %v3663_v3, %v3662_v30  ;;  %v3727_v12 = vpop.f32.mrf.mxu1  ;;  %v4578_v23 = vadd.f32 %v3725_v15, %v2486_v35 }
 0x1dd   :  { %v3665_v34 = vpop.f32.mrf.mxu0  ;;  %v3728_v20 = vadd.f32 %v3727_v12, %v3726_v9 }
 0x1de   :  { %v2489_v39 = vadd.f32 %v3664_v37, %v4527_v1  ;;  %v3729_v18 = vpop.f32.mrf.mxu1 }
 0x1df   :  { %v3666_v45 = vpop.f32.mrf.mxu0 }
 0x1e0   :  { %v4580_v42 = vadd.f32 %v3728_v20, %v2489_v39  ;;  %v3667_v26 = vadd.f32 %v3666_v45, %v3665_v34  ;;  %v3730_v49 = vpop.f32.mrf.mxu1 }
 0x1e1   :  { %v3668_v29 = vpop.f32.mrf.mxu0  ;;  %v3731_v52 = vadd.f32 %v3730_v49, %v3729_v18 }
 0x1e2   :  { %v2645_v28 = vadd.f32 %v4580_v42, %v4578_v23  ;;  %v2494_v56 = vadd.f32 %v3667_v26, %v4530_v11  ;;  %v3732_v32 = vpop.f32.mrf.mxu1 }
 0x1e3   :  { %v3669_v55 = vpop.f32.mrf.mxu0 }
 0x1e4   :  { %v4585_v16 = vadd.f32 %v3731_v52, %v2494_v56  ;;  %v3670_v1 = vadd.f32 %v3669_v55, %v3668_v29  ;;  %v3733_v59 = vpop.f32.mrf.mxu1 }
 0x1e5   :  { %v3671_v38 = vpop.f32.mrf.mxu0  ;;  %v3734_v41 = vadd.f32 %v3733_v59, %v3732_v32 }
 0x1e6   :  { %v2646_v44 = vadd.f32 %v2645_v28, %v4585_v16  ;;  %v2497_v62 = vadd.f32 %v3670_v1, %v4533_v22  ;;  %v3735_v0 = vpop.f32.mrf.mxu1 }
 0x1e7   :  { %v3672_v33 = vpop.f32.mrf.mxu0 }
 0x1e8   :  { %v4589_v4 = vadd.f32 %v3734_v41, %v2497_v62  ;;  %v3673_v48 = vadd.f32 %v3672_v33, %v3671_v38  ;;  %v3736_v54 = vpop.f32.mrf.mxu1 }
 0x1e9   :  { %v3674_v11 = vpop.f32.mrf.mxu0  ;;  %v3737_v10 = vadd.f32 %v3736_v54, %v3735_v0 }
 0x1ea   :  { %v2647_v8 = vadd.f32 %v2646_v44, %v4589_v4  ;;  %v2502_v51 = vadd.f32 %v3673_v48, %v4536_v31  ;;  %v3738_v43 = vpop.f32.mrf.mxu1 }
 0x1eb   :  { %v3675_v13 = vpop.f32.mrf.mxu0 }
 0x1ec   :  { %v4593_v19 = vadd.f32 %v3737_v10, %v2502_v51  ;;  %v3676_v6 = vadd.f32 %v3675_v13, %v3674_v11  ;;  %v3739_v27 = vpop.f32.mrf.mxu1 }
 0x1ed   :  { %v3677_v22 = vpop.f32.mrf.mxu0  ;;  %v3740_v17 = vadd.f32 %v3739_v27, %v3738_v43 }
 0x1ee   :  { %v2648_v24 = vadd.f32 %v2647_v8, %v4593_v19  ;;  %v2505_v2 = vadd.f32 %v3676_v6, %v4539_v40  ;;  %v3741_v7 = vpop.f32.mrf.mxu1 }
 0x1ef   :  { %v3678_v30 = vpop.f32.mrf.mxu0 }
 0x1f0   :  { %v4597_v9 = vadd.f32 %v3740_v17, %v2505_v2  ;;  %v3679_v3 = vadd.f32 %v3678_v30, %v3677_v22  ;;  %v3742_v35 = vpop.f32.mrf.mxu1 }
 0x1f1   :  { %v3680_v31 = vpop.f32.mrf.mxu0  ;;  %v3743_v34 = vadd.f32 %v3742_v35, %v3741_v7 }
 0x1f2   :  { %v2649_v37 = vadd.f32 %v2648_v24, %v4597_v9  ;;  %v2510_v12 = vadd.f32 %v3679_v3, %v4542_v50  ;;  %v3744_v15 = vpop.f32.mrf.mxu1 }
 0x1f3   :  { %v3681_v39 = vpop.f32.mrf.mxu0 }
 0x1f4   :  { %v4601_v20 = vadd.f32 %v3743_v34, %v2510_v12  ;;  %v3682_v18 = vadd.f32 %v3681_v39, %v3680_v31  ;;  %v3745_v45 = vpop.f32.mrf.mxu1 }
 0x1f5   :  { %v3683_v40 = vpop.f32.mrf.mxu0  ;;  %v3746_v29 = vadd.f32 %v3745_v45, %v3744_v15 }
 0x1f6   :  { %v2650_v26 = vadd.f32 %v2649_v37, %v4601_v20  ;;  %v2513_v49 = vadd.f32 %v3682_v18, %v4545_v60  ;;  %v3747_v28 = vpop.f32.mrf.mxu1 }
 0x1f7   :  { %v3684_v56 = vpop.f32.mrf.mxu0 }
 0x1f8   :  { %v4605_v52 = vadd.f32 %v3746_v29, %v2513_v49  ;;  %v3685_v32 = vadd.f32 %v3684_v56, %v3683_v40  ;;  %v3748_v55 = vpop.f32.mrf.mxu1  ;;  %v3578_v29 = vadd.f32 %v4570_v21, %v4565_v58 }
 0x1f9   :  { %v3686_v50 = vpop.f32.mrf.mxu0  ;;  %v3749_v38 = vadd.f32 %v3748_v55, %v3747_v28 }
 0x1fa   :  { %v2651_v1 = vadd.f32 %v2650_v26, %v4605_v52  ;;  %v2518_v59 = vadd.f32 %v3685_v32, %v4548_v5  ;;  %v3750_v44 = vpop.f32.mrf.mxu1 }
 0x1fb   :  { %v3687_v62 = vpop.f32.mrf.mxu0 }
 0x1fc   :  { %v4609_v41 = vadd.f32 %v3749_v38, %v2518_v59  ;;  %v3688_v0 = vadd.f32 %v3687_v62, %v3686_v50  ;;  %v3751_v33 = vpop.f32.mrf.mxu1 }
 0x1fd   :  { %v3689_v60 = vpop.f32.mrf.mxu0  ;;  %v3752_v11 = vadd.f32 %v3751_v33, %v3750_v44  ;;  %v2351_v44 = vadd.f32 %v3578_v29, %v4521_v47 }
 0x1fe   :  { %v2652_v48 = vadd.f32 %v2651_v1, %v4609_v41  ;;  %v2521_v54 = vadd.f32 %v3688_v0, %v4551_v14  ;;  %v3753_v8 = vpop.f32.mrf.mxu1 }
 0x1ff   :  { %v3690_v51 = vpop.f32.mrf.mxu0 }
 0x200   :  { %v4613_v10 = vadd.f32 %v3752_v11, %v2521_v54  ;;  %v3691_v43 = vadd.f32 %v3690_v51, %v3689_v60  ;;  %v3754_v13 = vpop.f32.mrf.mxu1  ;;  %v3642_v60 = vadd.f32 %v4574_v57, %v4568_v61 }
 0x201   :  { %v3692_v5 = vpop.f32.mrf.mxu0  ;;  %v3755_v22 = vadd.f32 %v3754_v13, %v3753_v8 }
 0x202   :  { %v2653_v6 = vadd.f32 %v2652_v48, %v4613_v10  ;;  %v2526_v27 = vadd.f32 %v3691_v43, %v4554_v25  ;;  %v3756_v24 = vpop.f32.mrf.mxu1  ;;  %v2448_v8 = vadd.f32 %v3642_v60, %v2351_v44 }
 0x203   :  { %v3693_v2 = vpop.f32.mrf.mxu0 }
 0x204   :  { %v4617_v17 = vadd.f32 %v3755_v22, %v2526_v27  ;;  %v3694_v7 = vadd.f32 %v3693_v2, %v3692_v5  ;;  %v3757_v30 = vpop.f32.mrf.mxu1 }
 0x205   :  { %v3695_v14 = vpop.f32.mrf.mxu0  ;;  %v3758_v31 = vadd.f32 %v3757_v30, %v3756_v24 }
 0x206   :  { %v2654_v3 = vadd.f32 %v2653_v6, %v4617_v17  ;;  %v2529_v35 = vadd.f32 %v3694_v7, %v4557_v36  ;;  %v3759_v37 = vpop.f32.mrf.mxu1 }
 0x207   :  { %v3696_v12 = vpop.f32.mrf.mxu0 }
 0x208   :  { %v2626_v34 = vadd.f32 %v3758_v31, %v2529_v35  ;;  %v3697_v15 = vadd.f32 %v3696_v12, %v3695_v14  ;;  %v3760_v39 = vpop.f32.mrf.mxu1 }
 0x209   :  { %v3698_v18 = vpop.f32.mrf.mxu0  ;;  %v3761_v40 = vadd.f32 %v3760_v39, %v3759_v37 }
 0x20a   :  { %v2655_v25 = vadd.f32 %v2654_v3, %v2626_v34  ;;  %v2534_v45 = vadd.f32 %v3697_v15, %v4560_v46  ;;  %v3762_v26 = vpop.f32.mrf.mxu1 }
 0x20b   :  { %v3699_v49 = vpop.f32.mrf.mxu0 }
 0x20c   :  { %v2631_v28 = vadd.f32 %v3761_v40, %v2534_v45  ;;  %v3700_v56 = vadd.f32 %v3699_v49, %v3698_v18  ;;  %v3763_v32 = vpop.f32.mrf.mxu1 }
 0x20d   :  { %v3701_v36 = vpop.f32.mrf.mxu0  ;;  %v3764_v1 = vadd.f32 %v3763_v32, %v3762_v26 }
 0x20e   :  { %v2656_v55 = vadd.f32 %v2655_v25, %v2631_v28  ;;  %v2537_v50 = vadd.f32 %v3700_v56, %v4563_v53  ;;  %v3765_v59 = vpop.f32.mrf.mxu1 }
 0x20f   :  { %v3702_v38 = vpop.f32.mrf.mxu0 }
 0x210   :  { %v2634_v62 = vadd.f32 %v3764_v1, %v2537_v50  ;;  %v3703_v46 = vadd.f32 %v3702_v38, %v3701_v36  ;;  %v3766_v0 = vpop.f32.mrf.mxu1 }
 0x211   :  { %v3704_v33 = vpop.f32.mrf.mxu0  ;;  %v3767_v48 = vadd.f32 %v3766_v0, %v3765_v59 }
 0x212   :  { %v2657_v58 = vadd.f32 %v2656_v55, %v2634_v62  ;;  %v2542_v21 = vadd.f32 %v3703_v46, %v4572_v63  ;;  %v3768_v54 = vpop.f32.mrf.mxu1 }
 0x213   :  { %v3705_v11 = vpop.f32.mrf.mxu0 }
 0x214   :  { %v2639_v53 = vadd.f32 %v3767_v48, %v2542_v21  ;;  %v3706_v51 = vadd.f32 %v3705_v11, %v3704_v33  ;;  %v3769_v43 = vpop.f32.mrf.mxu1 }
 0x215   :  { %v3770_v47 = vadd.f32 %v3769_v43, %v3768_v54 }
 0x216   :  { %v2658_v13 = vadd.f32 %v2657_v58, %v2639_v53  ;;  %v2545_v5 = vadd.f32 %v3706_v51, %v2448_v8 }
 0x218   :  { %v2642_v6 = vadd.f32 %v3770_v47, %v2545_v5 }
 0x21a   :  { %v2659_v27 = vadd.f32 %v2658_v13, %v2642_v6 }
 0x21c   :  { %v2660_v22 = vrot.slane %v2659_v27, 4 }
 0x21e   :  { %v2661_v24 = vadd.f32 %v2660_v22, %v2659_v27 }
 0x220   :  { %v2662_v2 = vrot.slane %v2661_v24, 2 }
 0x222   :  { %v2663_v7 = vadd.f32 %v2662_v2, %v2661_v24 }
 0x224   :  { %v2664_v61 = vrot.slane %v2663_v7, 1 }
 0x226   :  { %v2665_v57 = vadd.f32 %v2664_v61, %v2663_v7 }
 0x228   :  { %v2667_v30 = vmul.f32 0.0078125, %v2665_v57 }
 0x22a   :  { %v2668_v63 = vsub.f32 %v4578_v23, %v2667_v30  ;;  %v2669_v14 = vsub.f32 %v4580_v42, %v2667_v30  ;;  %v2670_v3 = vsub.f32 %v4585_v16, %v2667_v30  ;;  %v2671_v35 = vsub.f32 %v4589_v4, %v2667_v30 }
 0x22b   :  { %v2672_v31 = vsub.f32 %v4593_v19, %v2667_v30  ;;  %v2673_v37 = vsub.f32 %v4597_v9, %v2667_v30  ;;  %v2674_v12 = vsub.f32 %v4601_v20, %v2667_v30  ;;  %v2675_v15 = vsub.f32 %v4605_v52, %v2667_v30 }
 0x22c   :  { %v2676_v39 = vsub.f32 %v4609_v41, %v2667_v30  ;;  %v2677_v18 = vsub.f32 %v4613_v10, %v2667_v30  ;;  %v2678_v23 = vsub.f32 %v4617_v17, %v2667_v30  ;;  %v2679_v25 = vsub.f32 %v2626_v34, %v2667_v30 }
 0x22d   :  { %v2680_v42 = vsub.f32 %v2631_v28, %v2667_v30  ;;  %v2681_v45 = vsub.f32 %v2634_v62, %v2667_v30  ;;  %v2682_v16 = vsub.f32 %v2639_v53, %v2667_v30  ;;  %v2683_v40 = vsub.f32 %v2642_v6, %v2667_v30 }
 0x22e   :  { %v2684_v4 = vmul.f32 %v2668_v63, %v2668_v63  ;;  %v2685_v26 = vmul.f32 %v2669_v14, %v2669_v14  ;;  %v2686_v19 = vmul.f32 %v2670_v3, %v2670_v3  ;;  %v2687_v9 = vmul.f32 %v2671_v35, %v2671_v35 }
 0x22f   :  { %v2688_v20 = vmul.f32 %v2672_v31, %v2672_v31  ;;  %v2689_v52 = vmul.f32 %v2673_v37, %v2673_v37  ;;  %v2690_v41 = vmul.f32 %v2674_v12, %v2674_v12  ;;  %v2691_v10 = vmul.f32 %v2675_v15, %v2675_v15 }
 0x230   :  { %v2700_v49 = vadd.f32 %v2685_v26, %v2684_v4  ;;  %v2692_v17 = vmul.f32 %v2676_v39, %v2676_v39  ;;  %v2693_v28 = vmul.f32 %v2677_v18, %v2677_v18  ;;  %v2694_v1 = vmul.f32 %v2678_v23, %v2678_v23  ;;  %v3178_v4 = vld [vmem:[#allocation6] ss:$0 sm:$0xff] }
 0x231   :  { %v2695_v38 = vmul.f32 %v2679_v25, %v2679_v25  ;;  %v2696_v62 = vmul.f32 %v2680_v42, %v2680_v42  ;;  %v2697_v0 = vmul.f32 %v2681_v45, %v2681_v45  ;;  %v2698_v60 = vmul.f32 %v2682_v16, %v2682_v16 }
 0x232   :  { %v2701_v29 = vadd.f32 %v2700_v49, %v2686_v19  ;;  %v2699_v21 = vmul.f32 %v2683_v40, %v2683_v40 }
 0x234   :  { %v2702_v56 = vadd.f32 %v2701_v29, %v2687_v9 }
 0x236   :  { %v2703_v32 = vadd.f32 %v2702_v56, %v2688_v20 }
 0x238   :  { %v2704_v36 = vadd.f32 %v2703_v32, %v2689_v52 }
 0x23a   :  { %v2705_v55 = vadd.f32 %v2704_v36, %v2690_v41 }
 0x23c   :  { %v2706_v34 = vadd.f32 %v2705_v55, %v2691_v10 }
 0x23e   :  { %v2707_v50 = vadd.f32 %v2706_v34, %v2692_v17 }
 0x240   :  { %v2708_v59 = vadd.f32 %v2707_v50, %v2693_v28 }
 0x242   :  { %v2709_v44 = vadd.f32 %v2708_v59, %v2694_v1 }
 0x244   :  { %v2710_v46 = vadd.f32 %v2709_v44, %v2695_v38 }
 0x246   :  { %v2711_v33 = vadd.f32 %v2710_v46, %v2696_v62 }
 0x248   :  { %v2712_v58 = vadd.f32 %v2711_v33, %v2697_v0 }
 0x24a   :  { %v2713_v48 = vadd.f32 %v2712_v58, %v2698_v60 }
 0x24c   :  { %v2714_v54 = vadd.f32 %v2713_v48, %v2699_v21 }
 0x24e   :  { %v2715_v11 = vrot.slane %v2714_v54, 4 }
 0x250   :  { %v2716_v8 = vadd.f32 %v2715_v11, %v2714_v54 }
 0x252   :  { %v2717_v53 = vrot.slane %v2716_v8, 2 }
 0x254   :  { %v2718_v51 = vadd.f32 %v2717_v53, %v2716_v8 }
 0x256   :  { %v2719_v43 = vrot.slane %v2718_v51, 1 }
 0x258   :  { %v2720_v13 = vadd.f32 %v2719_v43, %v2718_v51 }
 0x25a   :  { %v2721_v5 = vmul.f32 0.0078125, %v2720_v13 }
 0x25c   :  { %v2722_v47 = vadd.f32 1e-05, %v2721_v5 }
 0x25e   :  { %3905 = vrsqrt.f32 %v2722_v47 }
 0x26b   :  { %v3906_v6 = vpop.eup %3905 }
 0x26c   :  { %v2724_v27 = vmul.f32 %v3906_v6, %v2668_v63  ;;  %v2725_v22 = vmul.f32 %v3906_v6, %v2669_v14  ;;  %v2726_v24 = vmul.f32 %v3906_v6, %v2670_v3  ;;  %v2727_v2 = vmul.f32 %v3906_v6, %v2671_v35 }
 0x26d   :  { %v2728_v7 = vmul.f32 %v3906_v6, %v2672_v31  ;;  %v2729_v61 = vmul.f32 %v3906_v6, %v2673_v37  ;;  %v2730_v57 = vmul.f32 %v3906_v6, %v2674_v12  ;;  %v2731_v30 = vmul.f32 %v3906_v6, %v2675_v15  ;;  %v3179_v37 = vld [vmem:[#allocation7] ss:$0 sm:$0xff] }
 0x26e   :  { %v2732_v26 = vmul.f32 %v3906_v6, %v2676_v39  ;;  %v2733_v19 = vmul.f32 %v3906_v6, %v2677_v18  ;;  %v2734_v49 = vmul.f32 %v3906_v6, %v2678_v23  ;;  %v2735_v9 = vmul.f32 %v3906_v6, %v2679_v25 }
 0x26f   :  { %v2736_v29 = vmul.f32 %v3906_v6, %v2680_v42  ;;  %v2737_v20 = vmul.f32 %v3906_v6, %v2681_v45  ;;  %v2738_v56 = vmul.f32 %v3906_v6, %v2682_v16  ;;  %v2739_v52 = vmul.f32 %v3906_v6, %v2683_v40 }
 0x270   :  { %v2747_v32 = vmul.f32 %v3178_v4, %v2724_v27  ;;  %v2748_v41 = vmul.f32 %v3178_v4, %v2725_v22  ;;  %v2749_v36 = vmul.f32 %v3178_v4, %v2726_v24  ;;  %v2750_v63 = vmul.f32 %v3178_v4, %v2727_v2 }
 0x271   :  { %v2751_v14 = vmul.f32 %v3178_v4, %v2728_v7  ;;  %v2752_v3 = vmul.f32 %v3178_v4, %v2729_v61  ;;  %v2753_v35 = vmul.f32 %v3178_v4, %v2730_v57  ;;  %v2754_v31 = vmul.f32 %v3178_v4, %v2731_v30 }
 0x272   :  { %v2755_v12 = vmul.f32 %v3178_v4, %v2732_v26  ;;  %v2756_v15 = vmul.f32 %v3178_v4, %v2733_v19  ;;  %v2757_v10 = vmul.f32 %v3178_v4, %v2734_v49  ;;  %v2758_v39 = vmul.f32 %v3178_v4, %v2735_v9 }
 0x273   :  { %v2759_v18 = vmul.f32 %v3178_v4, %v2736_v29  ;;  %v2760_v23 = vmul.f32 %v3178_v4, %v2737_v20  ;;  %v2761_v25 = vmul.f32 %v3178_v4, %v2738_v56  ;;  %v2762_v42 = vmul.f32 %v3178_v4, %v2739_v52 }
 0x274   :  { %v2770_v45 = vadd.f32 %v3179_v37, %v2747_v32  ;;  %v2771_v16 = vadd.f32 %v3179_v37, %v2748_v41  ;;  %v2772_v40 = vadd.f32 %v3179_v37, %v2749_v36  ;;  %v2773_v55 = vadd.f32 %v3179_v37, %v2750_v63 }
 0x275   :  { %v2774_v17 = vadd.f32 %v3179_v37, %v2751_v14  ;;  %v2775_v34 = vadd.f32 %v3179_v37, %v2752_v3  ;;  %v2776_v28 = vadd.f32 %v3179_v37, %v2753_v35  ;;  %v2777_v50 = vadd.f32 %v3179_v37, %v2754_v31 }
 0x276   :  { %v2778_v1 = vadd.f32 %v3179_v37, %v2755_v12  ;;  %v2779_v59 = vadd.f32 %v3179_v37, %v2756_v15  ;;  %v2780_v38 = vadd.f32 %v3179_v37, %v2757_v10  ;;  %v2781_v44 = vadd.f32 %v3179_v37, %v2758_v39 }
 0x277   :  { %v2782_v62 = vadd.f32 %v3179_v37, %v2759_v18  ;;  %v2783_v46 = vadd.f32 %v3179_v37, %v2760_v23  ;;  %v2784_v0 = vadd.f32 %v3179_v37, %v2761_v25  ;;  %v2785_v33 = vadd.f32 %v3179_v37, %v2762_v42 }
 0x278   :  { %vm2786_vm0 = vcmp.ge.f32.partialorder %v2770_v45, 0.0  ;;  %vm2787_vm1 = vcmp.ge.f32.partialorder %v2771_v16, 0.0  ;;  %vm2788_vm2 = vcmp.ge.f32.partialorder %v2772_v40, 0.0  ;;  %vm2789_vm3 = vcmp.ge.f32.partialorder %v2773_v55, 0.0 }
 0x279   :  { %vm2790_vm4 = vcmp.ge.f32.partialorder %v2774_v17, 0.0  ;;  %vm2791_vm5 = vcmp.ge.f32.partialorder %v2775_v34, 0.0  ;;  %vm2792_vm6 = vcmp.ge.f32.partialorder %v2776_v28, 0.0  ;;  %vm2793_vm7 = vcmp.ge.f32.partialorder %v2777_v50, 0.0 }
 0x27a   :  { %vm2794_vm8 = vcmp.ge.f32.partialorder %v2778_v1, 0.0  ;;  %vm2795_vm9 = vcmp.ge.f32.partialorder %v2779_v59, 0.0  ;;  %vm2796_vm10 = vcmp.ge.f32.partialorder %v2780_v38, 0.0  ;;  %vm2797_vm11 = vcmp.ge.f32.partialorder %v2781_v44, 0.0 }
 0x27b   :  { %vm2798_vm12 = vcmp.ge.f32.partialorder %v2782_v62, 0.0  ;;  %vm2799_vm13 = vcmp.ge.f32.partialorder %v2783_v46, 0.0  ;;  %vm2800_vm14 = vcmp.ge.f32.partialorder %v2784_v0, 0.0  ;;  %vm2801_vm15 = vcmp.ge.f32.partialorder %v2785_v33, 0.0 }
 0x27c   :  { %v2802_v60 = vmul.f32 0.2, %v2770_v45  ;;  %v2803_v58 = vmul.f32 0.2, %v2771_v16  ;;  %v2804_v21 = vmul.f32 0.2, %v2772_v40 }
 0x27d   :  { %v2805_v48 = vmul.f32 0.2, %v2773_v55  ;;  %v2806_v54 = vmul.f32 0.2, %v2774_v17  ;;  %v2807_v11 = vmul.f32 0.2, %v2775_v34 }
 0x27e   :  { %v2808_v8 = vmul.f32 0.2, %v2776_v28  ;;  %v2809_v53 = vmul.f32 0.2, %v2777_v50  ;;  %v2810_v51 = vmul.f32 0.2, %v2778_v1  ;;  %v2818_v43 = vsel %vm2786_vm0, %v2770_v45, %v2802_v60 }
 0x27f   :  { %v2811_v13 = vmul.f32 0.2, %v2779_v59  ;;  %v2812_v5 = vmul.f32 0.2, %v2780_v38  ;;  %v2813_v47 = vmul.f32 0.2, %v2781_v44  ;;  %v2819_v6 = vsel %vm2787_vm1, %v2771_v16, %v2803_v58 }
 0x280   :  { %v2814_v27 = vmul.f32 0.2, %v2782_v62  ;;  %v2815_v22 = vmul.f32 0.2, %v2783_v46  ;;  %v2816_v24 = vmul.f32 0.2, %v2784_v0  ;;  %v2820_v2 = vsel %vm2788_vm2, %v2772_v40, %v2804_v21 }
 0x281   :  { %v2817_v7 = vmul.f32 0.2, %v2785_v33  ;;  %v2821_v61 = vsel %vm2789_vm3, %v2773_v55, %v2805_v48  ;;  %v2822_v57 = vsel %vm2790_vm4, %v2774_v17, %v2806_v54  ;;  %v2823_v30 = vsel %vm2791_vm5, %v2775_v34, %v2807_v11 }
 0x282   :  { %v2824_v4 = vsel %vm2792_vm6, %v2776_v28, %v2808_v8  ;;  %v2825_v26 = vsel %vm2793_vm7, %v2777_v50, %v2809_v53  ;;  %v2826_v19 = vsel %vm2794_vm8, %v2778_v1, %v2810_v51  ;;  %v2827_v49 = vsel %vm2795_vm9, %v2779_v59, %v2811_v13 }
 0x283   :  { %v2828_v9 = vsel %vm2796_vm10, %v2780_v38, %v2812_v5  ;;  %v2829_v29 = vsel %vm2797_vm11, %v2781_v44, %v2813_v47  ;;  %v2830_v20 = vsel %vm2798_vm12, %v2782_v62, %v2814_v27  ;;  %v2831_v56 = vsel %vm2799_vm13, %v2783_v46, %v2815_v22 }
 0x284   :  { %v2832_v52 = vsel %vm2800_vm14, %v2784_v0, %v2816_v24  ;;  %v2833_v32 = vsel %vm2801_vm15, %v2785_v33, %v2817_v7  ;;  %v3215_v41 = vpack.c.bf16 %v2819_v6, %v2818_v43  ;;  %v3220_v36 = vpack.c.bf16 %v2821_v61, %v2820_v2 }
 0x285   :  { %v3225_v63 = vpack.c.bf16 %v2823_v30, %v2822_v57  ;;  %v3230_v14 = vpack.c.bf16 %v2825_v26, %v2824_v4  ;;  %v3235_v3 = vpack.c.bf16 %v2827_v49, %v2826_v19  ;;  %v3240_v35 = vpack.c.bf16 %v2829_v29, %v2828_v9 }
 0x286   :  { %3216 = vst [vmem:[%s4685_s5] sm:$0xff] %v3215_v41   ;;  %3252 = vst [vmem:[%s4685_s5 + $0x8] sm:$0xff] %v3220_v36   ;;  %v3245_v31 = vpack.c.bf16 %v2831_v56, %v2830_v20  ;;  %v3250_v37 = vpack.c.bf16 %v2833_v32, %v2832_v52 }
 0x287   :  { %3253 = vst [vmem:[%s4685_s5 + $0x10] sm:$0xff] %v3225_v63   ;;  %3254 = vst [vmem:[%s4685_s5 + $0x18] sm:$0xff] %v3230_v14  }
 0x288   :  { %3255 = vst [vmem:[%s4685_s5 + $0x20] sm:$0xff] %v3235_v3   ;;  %3256 = vst [vmem:[%s4685_s5 + $0x28] sm:$0xff] %v3240_v35  }
 0x289   :  { %3257 = vst [vmem:[%s4685_s5 + $0x30] sm:$0xff] %v3245_v31   ;;  %3258 = vst [vmem:[%s4685_s5 + $0x38] sm:$0xff] %v3250_v37  }
 0x28a   :  { %2918 = vsyncpa [#allocation3], 1 }
 0x28b   :  { %2919 = vsyncpa [#allocation5], 1 }
 0x28c   :  { %2920 = vsyncpa [#allocation8], 1 }

// kernel: discriminator_forward.5
= control target key start
LH: loop header
LB: loop body
LE: loop exit
PB: predicated region body
PF: predicated region fallthrough
CT: control target
= control target key end

     0   :  { %s7656_s0 = inlined_call_operand.vmem [shape: bf16[2,8192], index: 0, kind: input, shape index: {}]   ;;  %s7657_s1 = inlined_call_operand.vmem [shape: s8[8192,1024], index: 1, kind: input, shape index: {}]   ;;  %s7658_s2 = inlined_call_operand.vmem [shape: f32[1,1024], index: 2, kind: input, shape index: {}]   ;;  %s7659_s3 = inlined_call_operand.vmem [shape: f32[1,1024], index: 3, kind: input, shape index: {}]   ;;  %s7660_s4 = inlined_call_operand.vmem [shape: f32[1,1024], index: 4, kind: input, shape index: {}]   ;;  %s7661_s5 = inlined_call_operand.vmem [shape: f32[1,1024], index: 5, kind: input, shape index: {}]   ;;  %s7662_s6 = inlined_call_operand.vmem [shape: f32[1024,1], index: 6, kind: input, shape index: {}]   ;;  %s7663_s7 = inlined_call_operand.vmem [shape: f32[2,2,1], index: 7, kind: output, shape index: {}]  }
   0x1   :  { %7668 = sst [smem:[#allocation8_spill]] %s7656_s0 }
   0x2   :  { %7669 = sst [smem:[#allocation9_spill]] %s7657_s1 }
   0x3   :  { %s5512_s24 = smov 0   ;;  %s5514_s25 = smov 0  }
   0x4   :  { %s5516_s26 = smov 0   ;;  %s5518_s27 = smov 0  }
   0x5   :  { %s5520_s28 = smov 0   ;;  %s5522_s29 = smov 0  }
   0x6   :  { %s5524_s30 = smov 0  }
   0x7 LB: > { %7670 = sst [smem:[#allocation4_spill]] %s5459_s28  ;;  %s26_s8 = sadd.s32 1, %s5459_s28  ;;  %s5467_s30 = sphi %s5524_s30, %s17_s30   ;;  %s5463_s29 = sphi %s5522_s29, %s7679_s29   ;;  %s5459_s28 = sphi %s5520_s28, %s7678_s28   ;;  %s5455_s27 = sphi %s5518_s27, %s7677_s27   ;;  %s5451_s26 = sphi %s5516_s26, %s7676_s26   ;;  %s5447_s25 = sphi %s5514_s25, %s7681_s25   ;;  %s5443_s24 = sphi %s5512_s24, %s7680_s24  }
   0x8   : > { %7671 = sst [smem:[#allocation5_spill]] %s5463_s29  ;;  %p27_p0 = scmp.ge.s32.totalorder %s26_s8, 2 }
   0x9   : > { %s29_s9 = sadd.s32 1, %s5463_s29  ;;  %p71_p1 = scmp.ne.s32.totalorder %s5447_s25, %s5443_s24 }
   0xa   : > { %p72_p2 = scmp.eq.s32.totalorder %s5467_s30, 0  ;;  %s7683_s8 = smov (%p27_p0, %s26_s8), 0 }
   0xb   : > { %7672 = sst [smem:[#allocation6_spill]] %s7683_s8  ;;  %s7685_s9 = smov (!%p27_p0, %s29_s9), %s5463_s29 }
   0xc   : > { %p73_p3 = por %p72_p2, %p71_p1  ;;  %p31_p4 = scmp.ge.s32.totalorder %s7685_s9, 2 }
   0xd   : > { %s59_s10 = ssub.s32 %s5459_s28, %s7683_s8  ;;  %s64_s13 = sadd.s32 1, %s5447_s25 }
   0xe   : > { %s7687_s9 = smov (%p31_p4, %s7685_s9), 0  ;;  %p5251_p6 = scmp.ge.s32.totalorder %s5467_s30, 4 }
   0xf   : > { %7673 = sst [smem:[#allocation7_spill]] %s7687_s9  ;;  %s60_s11 = ssub.s32 %s5463_s29, %s7687_s9 }
  0x10   : > { %s61_s12 = sor.u32 %s60_s11, %s59_s10  ;;  %253 = sbr.rel (%p5251_p6) target bundleno = 287 (0x11f), region = 16 }
  0x11   : > { %p62_p5 = scmp.eq.s32.totalorder %s61_s12, 0 }
  0x13   : > { %s5563_s14 = scalar_select %p62_p5, %s5447_s25, %s64_s13  }
  0x15   : > { %264 = sbr.rel (!%p73_p3) target bundleno = 287 (0x11f), region = 24  ;;  %s266_s15 = sand.u32 (%p73_p3), 1, %s5447_s25  }
  0x16   : > { %s5254_s16 = sshll.u32 (%p73_p3), %s5463_s29, 2  ;;  %s5252_s17 = sshll.u32 (%p73_p3), %s266_s15, 12 }
  0x17   : > { %s5271_s18 = sshll.u32 (%p73_p3), %s5459_s28, 10  ;;  %s7674_s1 = sld [smem:[#allocation9_spill]] (%p73_p3) }
  0x18   : > { %s272_s19 = sadd.s32 (%p73_p3), %s5271_s18, %s5254_s16  ;;  %s5577_s10 = scalar_lea.vmem (%p73_p3), [#allocation3], %s5252_s17 }
  0x19   : > { %s5256_s20 = sshll.u32 (%p73_p3), %s272_s19, 3 }
  0x1d   : > { %s5572_s23 = scalar_lea.vmem %s7674_s1, %s5256_s20 }
  0x1e   : > { %v287_v0 = vld [vmem:[%s5572_s23] sm:$0xff]  ;;  %v289_v1 = vld [vmem:[%s5572_s23 + $0x8] sm:$0xff]  ;;  %v291_v2 = vld [vmem:[%s5572_s23 + $0x10] sm:$0xff] }
  0x1f   : > { %288 = vst [vmem:[%s5577_s10] sm:$0xff] %v287_v0  ;;  %290 = vst [vmem:[%s5577_s10 + $0x8] sm:$0xff] %v289_v1  ;;  %v293_v3 = vld [vmem:[%s5572_s23 + $0x18] sm:$0xff]  ;;  %v295_v4 = vld [vmem:[%s5572_s23 + $0x40] sm:$0xff] }
  0x20   : > { %292 = vst [vmem:[%s5577_s10 + $0x10] sm:$0xff] %v291_v2  ;;  %v297_v5 = vld [vmem:[%s5572_s23 + $0x48] sm:$0xff]  ;;  %294 = vst [vmem:[%s5577_s10 + $0x18] sm:$0xff] %v293_v3  ;;  %v299_v6 = vld [vmem:[%s5572_s23 + $0x50] sm:$0xff] }
  0x21   : > { %296 = vst [vmem:[%s5577_s10 + $0x20] sm:$0xff] %v295_v4  ;;  %298 = vst [vmem:[%s5577_s10 + $0x28] sm:$0xff] %v297_v5  ;;  %v301_v7 = vld [vmem:[%s5572_s23 + $0x58] sm:$0xff]  ;;  %v303_v8 = vld [vmem:[%s5572_s23 + $0x80] sm:$0xff] }
  0x22   : > { %300 = vst [vmem:[%s5577_s10 + $0x30] sm:$0xff] %v299_v6  ;;  %302 = vst [vmem:[%s5577_s10 + $0x38] sm:$0xff] %v301_v7  ;;  %v305_v9 = vld [vmem:[%s5572_s23 + $0x88] sm:$0xff]  ;;  %v307_v10 = vld [vmem:[%s5572_s23 + $0x90] sm:$0xff] }
  0x23   : > { %304 = vst [vmem:[%s5577_s10 + $0x40] sm:$0xff] %v303_v8  ;;  %v309_v11 = vld [vmem:[%s5572_s23 + $0x98] sm:$0xff]  ;;  %306 = vst [vmem:[%s5577_s10 + $0x48] sm:$0xff] %v305_v9  ;;  %v311_v12 = vld [vmem:[%s5572_s23 + $0xc0] sm:$0xff] }
  0x24   : > { %308 = vst [vmem:[%s5577_s10 + $0x50] sm:$0xff] %v307_v10  ;;  %310 = vst [vmem:[%s5577_s10 + $0x58] sm:$0xff] %v309_v11  ;;  %v313_v13 = vld [vmem:[%s5572_s23 + $0xc8] sm:$0xff]  ;;  %v315_v14 = vld [vmem:[%s5572_s23 + $0xd0] sm:$0xff] }
  0x25   : > { %312 = vst [vmem:[%s5577_s10 + $0x60] sm:$0xff] %v311_v12  ;;  %314 = vst [vmem:[%s5577_s10 + $0x68] sm:$0xff] %v313_v13  ;;  %v317_v15 = vld [vmem:[%s5572_s23 + $0xd8] sm:$0xff]  ;;  %v319_v16 = vld [vmem:[%s5572_s23 + $0x100] sm:$0xff] }
  0x26   : > { %316 = vst [vmem:[%s5577_s10 + $0x70] sm:$0xff] %v315_v14  ;;  %v321_v17 = vld [vmem:[%s5572_s23 + $0x108] sm:$0xff]  ;;  %318 = vst [vmem:[%s5577_s10 + $0x78] sm:$0xff] %v317_v15  ;;  %v323_v18 = vld [vmem:[%s5572_s23 + $0x110] sm:$0xff] }
  0x27   : > { %320 = vst [vmem:[%s5577_s10 + $0x80] sm:$0xff] %v319_v16  ;;  %322 = vst [vmem:[%s5577_s10 + $0x88] sm:$0xff] %v321_v17  ;;  %v325_v19 = vld [vmem:[%s5572_s23 + $0x118] sm:$0xff]  ;;  %v327_v20 = vld [vmem:[%s5572_s23 + $0x140] sm:$0xff] }
  0x28   : > { %324 = vst [vmem:[%s5577_s10 + $0x90] sm:$0xff] %v323_v18  ;;  %326 = vst [vmem:[%s5577_s10 + $0x98] sm:$0xff] %v325_v19  ;;  %v329_v21 = vld [vmem:[%s5572_s23 + $0x148] sm:$0xff]  ;;  %v331_v22 = vld [vmem:[%s5572_s23 + $0x150] sm:$0xff] }
  0x29   : > { %328 = vst [vmem:[%s5577_s10 + $0xa0] sm:$0xff] %v327_v20  ;;  %v333_v23 = vld [vmem:[%s5572_s23 + $0x158] sm:$0xff]  ;;  %330 = vst [vmem:[%s5577_s10 + $0xa8] sm:$0xff] %v329_v21  ;;  %v335_v24 = vld [vmem:[%s5572_s23 + $0x180] sm:$0xff] }
  0x2a   : > { %332 = vst [vmem:[%s5577_s10 + $0xb0] sm:$0xff] %v331_v22  ;;  %334 = vst [vmem:[%s5577_s10 + $0xb8] sm:$0xff] %v333_v23  ;;  %v337_v25 = vld [vmem:[%s5572_s23 + $0x188] sm:$0xff]  ;;  %v339_v26 = vld [vmem:[%s5572_s23 + $0x190] sm:$0xff] }
  0x2b   : > { %336 = vst [vmem:[%s5577_s10 + $0xc0] sm:$0xff] %v335_v24  ;;  %338 = vst [vmem:[%s5577_s10 + $0xc8] sm:$0xff] %v337_v25  ;;  %v341_v27 = vld [vmem:[%s5572_s23 + $0x198] sm:$0xff]  ;;  %v343_v28 = vld [vmem:[%s5572_s23 + $0x1c0] sm:$0xff] }
  0x2c   : > { %340 = vst [vmem:[%s5577_s10 + $0xd0] sm:$0xff] %v339_v26  ;;  %v345_v29 = vld [vmem:[%s5572_s23 + $0x1c8] sm:$0xff]  ;;  %342 = vst [vmem:[%s5577_s10 + $0xd8] sm:$0xff] %v341_v27  ;;  %v347_v30 = vld [vmem:[%s5572_s23 + $0x1d0] sm:$0xff] }
  0x2d   : > { %344 = vst [vmem:[%s5577_s10 + $0xe0] sm:$0xff] %v343_v28  ;;  %346 = vst [vmem:[%s5577_s10 + $0xe8] sm:$0xff] %v345_v29  ;;  %v349_v31 = vld [vmem:[%s5572_s23 + $0x1d8] sm:$0xff]  ;;  %v351_v32 = vld [vmem:[%s5572_s23 + $0x200] sm:$0xff] }
  0x2e   : > { %348 = vst [vmem:[%s5577_s10 + $0xf0] sm:$0xff] %v347_v30  ;;  %350 = vst [vmem:[%s5577_s10 + $0xf8] sm:$0xff] %v349_v31  ;;  %v353_v33 = vld [vmem:[%s5572_s23 + $0x208] sm:$0xff]  ;;  %v355_v34 = vld [vmem:[%s5572_s23 + $0x210] sm:$0xff] }
  0x2f   : > { %352 = vst [vmem:[%s5577_s10 + $0x100] sm:$0xff] %v351_v32  ;;  %v357_v35 = vld [vmem:[%s5572_s23 + $0x218] sm:$0xff]  ;;  %354 = vst [vmem:[%s5577_s10 + $0x108] sm:$0xff] %v353_v33  ;;  %v359_v36 = vld [vmem:[%s5572_s23 + $0x240] sm:$0xff] }
  0x30   : > { %356 = vst [vmem:[%s5577_s10 + $0x110] sm:$0xff] %v355_v34  ;;  %358 = vst [vmem:[%s5577_s10 + $0x118] sm:$0xff] %v357_v35  ;;  %v361_v37 = vld [vmem:[%s5572_s23 + $0x248] sm:$0xff]  ;;  %v363_v38 = vld [vmem:[%s5572_s23 + $0x250] sm:$0xff] }
  0x31   : > { %360 = vst [vmem:[%s5577_s10 + $0x120] sm:$0xff] %v359_v36  ;;  %362 = vst [vmem:[%s5577_s10 + $0x128] sm:$0xff] %v361_v37  ;;  %v365_v39 = vld [vmem:[%s5572_s23 + $0x258] sm:$0xff]  ;;  %v367_v40 = vld [vmem:[%s5572_s23 + $0x280] sm:$0xff] }
  0x32   : > { %364 = vst [vmem:[%s5577_s10 + $0x130] sm:$0xff] %v363_v38  ;;  %v369_v41 = vld [vmem:[%s5572_s23 + $0x288] sm:$0xff]  ;;  %366 = vst [vmem:[%s5577_s10 + $0x138] sm:$0xff] %v365_v39  ;;  %v371_v42 = vld [vmem:[%s5572_s23 + $0x290] sm:$0xff] }
  0x33   : > { %368 = vst [vmem:[%s5577_s10 + $0x140] sm:$0xff] %v367_v40  ;;  %370 = vst [vmem:[%s5577_s10 + $0x148] sm:$0xff] %v369_v41  ;;  %v373_v43 = vld [vmem:[%s5572_s23 + $0x298] sm:$0xff]  ;;  %v375_v44 = vld [vmem:[%s5572_s23 + $0x2c0] sm:$0xff] }
  0x34   : > { %372 = vst [vmem:[%s5577_s10 + $0x150] sm:$0xff] %v371_v42  ;;  %374 = vst [vmem:[%s5577_s10 + $0x158] sm:$0xff] %v373_v43  ;;  %v377_v45 = vld [vmem:[%s5572_s23 + $0x2c8] sm:$0xff]  ;;  %v379_v46 = vld [vmem:[%s5572_s23 + $0x2d0] sm:$0xff] }
  0x35   : > { %376 = vst [vmem:[%s5577_s10 + $0x160] sm:$0xff] %v375_v44  ;;  %v381_v47 = vld [vmem:[%s5572_s23 + $0x2d8] sm:$0xff]  ;;  %378 = vst [vmem:[%s5577_s10 + $0x168] sm:$0xff] %v377_v45  ;;  %v383_v48 = vld [vmem:[%s5572_s23 + $0x300] sm:$0xff] }
  0x36   : > { %380 = vst [vmem:[%s5577_s10 + $0x170] sm:$0xff] %v379_v46  ;;  %382 = vst [vmem:[%s5577_s10 + $0x178] sm:$0xff] %v381_v47  ;;  %v385_v49 = vld [vmem:[%s5572_s23 + $0x308] sm:$0xff]  ;;  %v387_v50 = vld [vmem:[%s5572_s23 + $0x310] sm:$0xff] }
  0x37   : > { %384 = vst [vmem:[%s5577_s10 + $0x180] sm:$0xff] %v383_v48  ;;  %386 = vst [vmem:[%s5577_s10 + $0x188] sm:$0xff] %v385_v49  ;;  %v389_v51 = vld [vmem:[%s5572_s23 + $0x318] sm:$0xff]  ;;  %v391_v52 = vld [vmem:[%s5572_s23 + $0x340] sm:$0xff] }
  0x38   : > { %388 = vst [vmem:[%s5577_s10 + $0x190] sm:$0xff] %v387_v50  ;;  %v393_v53 = vld [vmem:[%s5572_s23 + $0x348] sm:$0xff]  ;;  %390 = vst [vmem:[%s5577_s10 + $0x198] sm:$0xff] %v389_v51  ;;  %v395_v54 = vld [vmem:[%s5572_s23 + $0x350] sm:$0xff] }
  0x39   : > { %392 = vst [vmem:[%s5577_s10 + $0x1a0] sm:$0xff] %v391_v52  ;;  %394 = vst [vmem:[%s5577_s10 + $0x1a8] sm:$0xff] %v393_v53  ;;  %v397_v55 = vld [vmem:[%s5572_s23 + $0x358] sm:$0xff]  ;;  %v399_v56 = vld [vmem:[%s5572_s23 + $0x380] sm:$0xff] }
  0x3a   : > { %396 = vst [vmem:[%s5577_s10 + $0x1b0] sm:$0xff] %v395_v54  ;;  %398 = vst [vmem:[%s5577_s10 + $0x1b8] sm:$0xff] %v397_v55  ;;  %v401_v57 = vld [vmem:[%s5572_s23 + $0x388] sm:$0xff]  ;;  %v403_v58 = vld [vmem:[%s5572_s23 + $0x390] sm:$0xff] }
  0x3b   : > { %400 = vst [vmem:[%s5577_s10 + $0x1c0] sm:$0xff] %v399_v56  ;;  %v405_v59 = vld [vmem:[%s5572_s23 + $0x398] sm:$0xff]  ;;  %402 = vst [vmem:[%s5577_s10 + $0x1c8] sm:$0xff] %v401_v57  ;;  %v407_v60 = vld [vmem:[%s5572_s23 + $0x3c0] sm:$0xff] }
  0x3c   : > { %404 = vst [vmem:[%s5577_s10 + $0x1d0] sm:$0xff] %v403_v58  ;;  %406 = vst [vmem:[%s5577_s10 + $0x1d8] sm:$0xff] %v405_v59  ;;  %v409_v61 = vld [vmem:[%s5572_s23 + $0x3c8] sm:$0xff]  ;;  %v411_v62 = vld [vmem:[%s5572_s23 + $0x3d0] sm:$0xff] }
  0x3d   : > { %408 = vst [vmem:[%s5577_s10 + $0x1e0] sm:$0xff] %v407_v60  ;;  %410 = vst [vmem:[%s5577_s10 + $0x1e8] sm:$0xff] %v409_v61  ;;  %v413_v63 = vld [vmem:[%s5572_s23 + $0x3d8] sm:$0xff]  ;;  %v415_v0 = vld [vmem:[%s5572_s23 + $0x400] sm:$0xff] }
  0x3e   : > { %412 = vst [vmem:[%s5577_s10 + $0x1f0] sm:$0xff] %v411_v62  ;;  %v417_v1 = vld [vmem:[%s5572_s23 + $0x408] sm:$0xff]  ;;  %414 = vst [vmem:[%s5577_s10 + $0x1f8] sm:$0xff] %v413_v63  ;;  %v419_v2 = vld [vmem:[%s5572_s23 + $0x410] sm:$0xff] }
  0x3f   : > { %416 = vst [vmem:[%s5577_s10 + $0x200] sm:$0xff] %v415_v0  ;;  %418 = vst [vmem:[%s5577_s10 + $0x208] sm:$0xff] %v417_v1  ;;  %v421_v3 = vld [vmem:[%s5572_s23 + $0x418] sm:$0xff]  ;;  %v423_v4 = vld [vmem:[%s5572_s23 + $0x440] sm:$0xff] }
  0x40   : > { %420 = vst [vmem:[%s5577_s10 + $0x210] sm:$0xff] %v419_v2  ;;  %422 = vst [vmem:[%s5577_s10 + $0x218] sm:$0xff] %v421_v3  ;;  %v425_v5 = vld [vmem:[%s5572_s23 + $0x448] sm:$0xff]  ;;  %v427_v6 = vld [vmem:[%s5572_s23 + $0x450] sm:$0xff] }
  0x41   : > { %424 = vst [vmem:[%s5577_s10 + $0x220] sm:$0xff] %v423_v4  ;;  %v429_v7 = vld [vmem:[%s5572_s23 + $0x458] sm:$0xff]  ;;  %426 = vst [vmem:[%s5577_s10 + $0x228] sm:$0xff] %v425_v5  ;;  %v431_v8 = vld [vmem:[%s5572_s23 + $0x480] sm:$0xff] }
  0x42   : > { %428 = vst [vmem:[%s5577_s10 + $0x230] sm:$0xff] %v427_v6  ;;  %430 = vst [vmem:[%s5577_s10 + $0x238] sm:$0xff] %v429_v7  ;;  %v433_v9 = vld [vmem:[%s5572_s23 + $0x488] sm:$0xff]  ;;  %v435_v10 = vld [vmem:[%s5572_s23 + $0x490] sm:$0xff] }
  0x43   : > { %432 = vst [vmem:[%s5577_s10 + $0x240] sm:$0xff] %v431_v8  ;;  %434 = vst [vmem:[%s5577_s10 + $0x248] sm:$0xff] %v433_v9  ;;  %v437_v11 = vld [vmem:[%s5572_s23 + $0x498] sm:$0xff]  ;;  %v439_v12 = vld [vmem:[%s5572_s23 + $0x4c0] sm:$0xff] }
  0x44   : > { %436 = vst [vmem:[%s5577_s10 + $0x250] sm:$0xff] %v435_v10  ;;  %v441_v13 = vld [vmem:[%s5572_s23 + $0x4c8] sm:$0xff]  ;;  %438 = vst [vmem:[%s5577_s10 + $0x258] sm:$0xff] %v437_v11  ;;  %v443_v14 = vld [vmem:[%s5572_s23 + $0x4d0] sm:$0xff] }
  0x45   : > { %440 = vst [vmem:[%s5577_s10 + $0x260] sm:$0xff] %v439_v12  ;;  %442 = vst [vmem:[%s5577_s10 + $0x268] sm:$0xff] %v441_v13  ;;  %v445_v15 = vld [vmem:[%s5572_s23 + $0x4d8] sm:$0xff]  ;;  %v447_v16 = vld [vmem:[%s5572_s23 + $0x500] sm:$0xff] }
  0x46   : > { %444 = vst [vmem:[%s5577_s10 + $0x270] sm:$0xff] %v443_v14  ;;  %446 = vst [vmem:[%s5577_s10 + $0x278] sm:$0xff] %v445_v15  ;;  %v449_v17 = vld [vmem:[%s5572_s23 + $0x508] sm:$0xff]  ;;  %v451_v18 = vld [vmem:[%s5572_s23 + $0x510] sm:$0xff] }
  0x47   : > { %448 = vst [vmem:[%s5577_s10 + $0x280] sm:$0xff] %v447_v16  ;;  %v453_v19 = vld [vmem:[%s5572_s23 + $0x518] sm:$0xff]  ;;  %450 = vst [vmem:[%s5577_s10 + $0x288] sm:$0xff] %v449_v17  ;;  %v455_v20 = vld [vmem:[%s5572_s23 + $0x540] sm:$0xff] }
  0x48   : > { %452 = vst [vmem:[%s5577_s10 + $0x290] sm:$0xff] %v451_v18  ;;  %454 = vst [vmem:[%s5577_s10 + $0x298] sm:$0xff] %v453_v19  ;;  %v457_v21 = vld [vmem:[%s5572_s23 + $0x548] sm:$0xff]  ;;  %v459_v22 = vld [vmem:[%s5572_s23 + $0x550] sm:$0xff] }
  0x49   : > { %456 = vst [vmem:[%s5577_s10 + $0x2a0] sm:$0xff] %v455_v20  ;;  %458 = vst [vmem:[%s5577_s10 + $0x2a8] sm:$0xff] %v457_v21  ;;  %v461_v23 = vld [vmem:[%s5572_s23 + $0x558] sm:$0xff]  ;;  %v463_v24 = vld [vmem:[%s5572_s23 + $0x580] sm:$0xff] }
  0x4a   : > { %460 = vst [vmem:[%s5577_s10 + $0x2b0] sm:$0xff] %v459_v22  ;;  %v465_v25 = vld [vmem:[%s5572_s23 + $0x588] sm:$0xff]  ;;  %462 = vst [vmem:[%s5577_s10 + $0x2b8] sm:$0xff] %v461_v23  ;;  %v467_v26 = vld [vmem:[%s5572_s23 + $0x590] sm:$0xff] }
  0x4b   : > { %464 = vst [vmem:[%s5577_s10 + $0x2c0] sm:$0xff] %v463_v24  ;;  %466 = vst [vmem:[%s5577_s10 + $0x2c8] sm:$0xff] %v465_v25  ;;  %v469_v27 = vld [vmem:[%s5572_s23 + $0x598] sm:$0xff]  ;;  %v471_v28 = vld [vmem:[%s5572_s23 + $0x5c0] sm:$0xff] }
  0x4c   : > { %468 = vst [vmem:[%s5577_s10 + $0x2d0] sm:$0xff] %v467_v26  ;;  %470 = vst [vmem:[%s5577_s10 + $0x2d8] sm:$0xff] %v469_v27  ;;  %v473_v29 = vld [vmem:[%s5572_s23 + $0x5c8] sm:$0xff]  ;;  %v475_v30 = vld [vmem:[%s5572_s23 + $0x5d0] sm:$0xff] }
  0x4d   : > { %472 = vst [vmem:[%s5577_s10 + $0x2e0] sm:$0xff] %v471_v28  ;;  %v477_v31 = vld [vmem:[%s5572_s23 + $0x5d8] sm:$0xff]  ;;  %474 = vst [vmem:[%s5577_s10 + $0x2e8] sm:$0xff] %v473_v29  ;;  %v479_v32 = vld [vmem:[%s5572_s23 + $0x600] sm:$0xff] }
  0x4e   : > { %476 = vst [vmem:[%s5577_s10 + $0x2f0] sm:$0xff] %v475_v30  ;;  %478 = vst [vmem:[%s5577_s10 + $0x2f8] sm:$0xff] %v477_v31  ;;  %v481_v33 = vld [vmem:[%s5572_s23 + $0x608] sm:$0xff]  ;;  %v483_v34 = vld [vmem:[%s5572_s23 + $0x610] sm:$0xff] }
  0x4f   : > { %480 = vst [vmem:[%s5577_s10 + $0x300] sm:$0xff] %v479_v32  ;;  %482 = vst [vmem:[%s5577_s10 + $0x308] sm:$0xff] %v481_v33  ;;  %v485_v35 = vld [vmem:[%s5572_s23 + $0x618] sm:$0xff]  ;;  %v487_v36 = vld [vmem:[%s5572_s23 + $0x640] sm:$0xff] }
  0x50   : > { %484 = vst [vmem:[%s5577_s10 + $0x310] sm:$0xff] %v483_v34  ;;  %v489_v37 = vld [vmem:[%s5572_s23 + $0x648] sm:$0xff]  ;;  %486 = vst [vmem:[%s5577_s10 + $0x318] sm:$0xff] %v485_v35  ;;  %v491_v38 = vld [vmem:[%s5572_s23 + $0x650] sm:$0xff] }
  0x51   : > { %488 = vst [vmem:[%s5577_s10 + $0x320] sm:$0xff] %v487_v36  ;;  %490 = vst [vmem:[%s5577_s10 + $0x328] sm:$0xff] %v489_v37  ;;  %v493_v39 = vld [vmem:[%s5572_s23 + $0x658] sm:$0xff]  ;;  %v495_v40 = vld [vmem:[%s5572_s23 + $0x680] sm:$0xff] }
  0x52   : > { %492 = vst [vmem:[%s5577_s10 + $0x330] sm:$0xff] %v491_v38  ;;  %494 = vst [vmem:[%s5577_s10 + $0x338] sm:$0xff] %v493_v39  ;;  %v497_v41 = vld [vmem:[%s5572_s23 + $0x688] sm:$0xff]  ;;  %v499_v42 = vld [vmem:[%s5572_s23 + $0x690] sm:$0xff] }
  0x53   : > { %496 = vst [vmem:[%s5577_s10 + $0x340] sm:$0xff] %v495_v40  ;;  %v501_v43 = vld [vmem:[%s5572_s23 + $0x698] sm:$0xff]  ;;  %498 = vst [vmem:[%s5577_s10 + $0x348] sm:$0xff] %v497_v41  ;;  %v503_v44 = vld [vmem:[%s5572_s23 + $0x6c0] sm:$0xff] }
  0x54   : > { %500 = vst [vmem:[%s5577_s10 + $0x350] sm:$0xff] %v499_v42  ;;  %502 = vst [vmem:[%s5577_s10 + $0x358] sm:$0xff] %v501_v43  ;;  %v505_v45 = vld [vmem:[%s5572_s23 + $0x6c8] sm:$0xff]  ;;  %v507_v46 = vld [vmem:[%s5572_s23 + $0x6d0] sm:$0xff] }
  0x55   : > { %504 = vst [vmem:[%s5577_s10 + $0x360] sm:$0xff] %v503_v44  ;;  %506 = vst [vmem:[%s5577_s10 + $0x368] sm:$0xff] %v505_v45  ;;  %v509_v47 = vld [vmem:[%s5572_s23 + $0x6d8] sm:$0xff]  ;;  %v511_v48 = vld [vmem:[%s5572_s23 + $0x700] sm:$0xff] }
  0x56   : > { %508 = vst [vmem:[%s5577_s10 + $0x370] sm:$0xff] %v507_v46  ;;  %v513_v49 = vld [vmem:[%s5572_s23 + $0x708] sm:$0xff]  ;;  %510 = vst [vmem:[%s5577_s10 + $0x378] sm:$0xff] %v509_v47  ;;  %v515_v50 = vld [vmem:[%s5572_s23 + $0x710] sm:$0xff] }
  0x57   : > { %512 = vst [vmem:[%s5577_s10 + $0x380] sm:$0xff] %v511_v48  ;;  %514 = vst [vmem:[%s5577_s10 + $0x388] sm:$0xff] %v513_v49  ;;  %v517_v51 = vld [vmem:[%s5572_s23 + $0x718] sm:$0xff]  ;;  %v519_v52 = vld [vmem:[%s5572_s23 + $0x740] sm:$0xff] }
  0x58   : > { %516 = vst [vmem:[%s5577_s10 + $0x390] sm:$0xff] %v515_v50  ;;  %518 = vst [vmem:[%s5577_s10 + $0x398] sm:$0xff] %v517_v51  ;;  %v521_v53 = vld [vmem:[%s5572_s23 + $0x748] sm:$0xff]  ;;  %v523_v54 = vld [vmem:[%s5572_s23 + $0x750] sm:$0xff] }
  0x59   : > { %520 = vst [vmem:[%s5577_s10 + $0x3a0] sm:$0xff] %v519_v52  ;;  %v525_v55 = vld [vmem:[%s5572_s23 + $0x758] sm:$0xff]  ;;  %522 = vst [vmem:[%s5577_s10 + $0x3a8] sm:$0xff] %v521_v53  ;;  %v527_v56 = vld [vmem:[%s5572_s23 + $0x780] sm:$0xff] }
  0x5a   : > { %524 = vst [vmem:[%s5577_s10 + $0x3b0] sm:$0xff] %v523_v54  ;;  %526 = vst [vmem:[%s5577_s10 + $0x3b8] sm:$0xff] %v525_v55  ;;  %v529_v57 = vld [vmem:[%s5572_s23 + $0x788] sm:$0xff]  ;;  %v531_v58 = vld [vmem:[%s5572_s23 + $0x790] sm:$0xff] }
  0x5b   : > { %528 = vst [vmem:[%s5577_s10 + $0x3c0] sm:$0xff] %v527_v56  ;;  %530 = vst [vmem:[%s5577_s10 + $0x3c8] sm:$0xff] %v529_v57  ;;  %v533_v59 = vld [vmem:[%s5572_s23 + $0x798] sm:$0xff]  ;;  %v535_v60 = vld [vmem:[%s5572_s23 + $0x7c0] sm:$0xff] }
  0x5c   : > { %532 = vst [vmem:[%s5577_s10 + $0x3d0] sm:$0xff] %v531_v58  ;;  %v537_v61 = vld [vmem:[%s5572_s23 + $0x7c8] sm:$0xff]  ;;  %534 = vst [vmem:[%s5577_s10 + $0x3d8] sm:$0xff] %v533_v59  ;;  %v539_v62 = vld [vmem:[%s5572_s23 + $0x7d0] sm:$0xff] }
  0x5d   : > { %536 = vst [vmem:[%s5577_s10 + $0x3e0] sm:$0xff] %v535_v60  ;;  %538 = vst [vmem:[%s5577_s10 + $0x3e8] sm:$0xff] %v537_v61  ;;  %v541_v63 = vld [vmem:[%s5572_s23 + $0x7d8] sm:$0xff]  ;;  %v543_v0 = vld [vmem:[%s5572_s23 + $0x800] sm:$0xff] }
  0x5e   : > { %540 = vst [vmem:[%s5577_s10 + $0x3f0] sm:$0xff] %v539_v62  ;;  %542 = vst [vmem:[%s5577_s10 + $0x3f8] sm:$0xff] %v541_v63  ;;  %v545_v1 = vld [vmem:[%s5572_s23 + $0x808] sm:$0xff]  ;;  %v547_v2 = vld [vmem:[%s5572_s23 + $0x810] sm:$0xff] }
  0x5f   : > { %544 = vst [vmem:[%s5577_s10 + $0x400] sm:$0xff] %v543_v0  ;;  %v549_v3 = vld [vmem:[%s5572_s23 + $0x818] sm:$0xff]  ;;  %546 = vst [vmem:[%s5577_s10 + $0x408] sm:$0xff] %v545_v1  ;;  %v551_v4 = vld [vmem:[%s5572_s23 + $0x840] sm:$0xff] }
  0x60   : > { %548 = vst [vmem:[%s5577_s10 + $0x410] sm:$0xff] %v547_v2  ;;  %550 = vst [vmem:[%s5577_s10 + $0x418] sm:$0xff] %v549_v3  ;;  %v553_v5 = vld [vmem:[%s5572_s23 + $0x848] sm:$0xff]  ;;  %v555_v6 = vld [vmem:[%s5572_s23 + $0x850] sm:$0xff] }
  0x61   : > { %552 = vst [vmem:[%s5577_s10 + $0x420] sm:$0xff] %v551_v4  ;;  %554 = vst [vmem:[%s5577_s10 + $0x428] sm:$0xff] %v553_v5  ;;  %v557_v7 = vld [vmem:[%s5572_s23 + $0x858] sm:$0xff]  ;;  %v559_v8 = vld [vmem:[%s5572_s23 + $0x880] sm:$0xff] }
  0x62   : > { %556 = vst [vmem:[%s5577_s10 + $0x430] sm:$0xff] %v555_v6  ;;  %v561_v9 = vld [vmem:[%s5572_s23 + $0x888] sm:$0xff]  ;;  %558 = vst [vmem:[%s5577_s10 + $0x438] sm:$0xff] %v557_v7  ;;  %v563_v10 = vld [vmem:[%s5572_s23 + $0x890] sm:$0xff] }
  0x63   : > { %560 = vst [vmem:[%s5577_s10 + $0x440] sm:$0xff] %v559_v8  ;;  %562 = vst [vmem:[%s5577_s10 + $0x448] sm:$0xff] %v561_v9  ;;  %v565_v11 = vld [vmem:[%s5572_s23 + $0x898] sm:$0xff]  ;;  %v567_v12 = vld [vmem:[%s5572_s23 + $0x8c0] sm:$0xff] }
  0x64   : > { %564 = vst [vmem:[%s5577_s10 + $0x450] sm:$0xff] %v563_v10  ;;  %566 = vst [vmem:[%s5577_s10 + $0x458] sm:$0xff] %v565_v11  ;;  %v569_v13 = vld [vmem:[%s5572_s23 + $0x8c8] sm:$0xff]  ;;  %v571_v14 = vld [vmem:[%s5572_s23 + $0x8d0] sm:$0xff] }
  0x65   : > { %568 = vst [vmem:[%s5577_s10 + $0x460] sm:$0xff] %v567_v12  ;;  %v573_v15 = vld [vmem:[%s5572_s23 + $0x8d8] sm:$0xff]  ;;  %570 = vst [vmem:[%s5577_s10 + $0x468] sm:$0xff] %v569_v13  ;;  %v575_v16 = vld [vmem:[%s5572_s23 + $0x900] sm:$0xff] }
  0x66   : > { %572 = vst [vmem:[%s5577_s10 + $0x470] sm:$0xff] %v571_v14  ;;  %574 = vst [vmem:[%s5577_s10 + $0x478] sm:$0xff] %v573_v15  ;;  %v577_v17 = vld [vmem:[%s5572_s23 + $0x908] sm:$0xff]  ;;  %v579_v18 = vld [vmem:[%s5572_s23 + $0x910] sm:$0xff] }
  0x67   : > { %576 = vst [vmem:[%s5577_s10 + $0x480] sm:$0xff] %v575_v16  ;;  %578 = vst [vmem:[%s5577_s10 + $0x488] sm:$0xff] %v577_v17  ;;  %v581_v19 = vld [vmem:[%s5572_s23 + $0x918] sm:$0xff]  ;;  %v583_v20 = vld [vmem:[%s5572_s23 + $0x940] sm:$0xff] }
  0x68   : > { %580 = vst [vmem:[%s5577_s10 + $0x490] sm:$0xff] %v579_v18  ;;  %v585_v21 = vld [vmem:[%s5572_s23 + $0x948] sm:$0xff]  ;;  %582 = vst [vmem:[%s5577_s10 + $0x498] sm:$0xff] %v581_v19  ;;  %v587_v22 = vld [vmem:[%s5572_s23 + $0x950] sm:$0xff] }
  0x69   : > { %584 = vst [vmem:[%s5577_s10 + $0x4a0] sm:$0xff] %v583_v20  ;;  %586 = vst [vmem:[%s5577_s10 + $0x4a8] sm:$0xff] %v585_v21  ;;  %v589_v23 = vld [vmem:[%s5572_s23 + $0x958] sm:$0xff]  ;;  %v591_v24 = vld [vmem:[%s5572_s23 + $0x980] sm:$0xff] }
  0x6a   : > { %588 = vst [vmem:[%s5577_s10 + $0x4b0] sm:$0xff] %v587_v22  ;;  %590 = vst [vmem:[%s5577_s10 + $0x4b8] sm:$0xff] %v589_v23  ;;  %v593_v25 = vld [vmem:[%s5572_s23 + $0x988] sm:$0xff]  ;;  %v595_v26 = vld [vmem:[%s5572_s23 + $0x990] sm:$0xff] }
  0x6b   : > { %592 = vst [vmem:[%s5577_s10 + $0x4c0] sm:$0xff] %v591_v24  ;;  %v597_v27 = vld [vmem:[%s5572_s23 + $0x998] sm:$0xff]  ;;  %594 = vst [vmem:[%s5577_s10 + $0x4c8] sm:$0xff] %v593_v25  ;;  %v599_v28 = vld [vmem:[%s5572_s23 + $0x9c0] sm:$0xff] }
  0x6c   : > { %596 = vst [vmem:[%s5577_s10 + $0x4d0] sm:$0xff] %v595_v26  ;;  %598 = vst [vmem:[%s5577_s10 + $0x4d8] sm:$0xff] %v597_v27  ;;  %v601_v29 = vld [vmem:[%s5572_s23 + $0x9c8] sm:$0xff]  ;;  %v603_v30 = vld [vmem:[%s5572_s23 + $0x9d0] sm:$0xff] }
  0x6d   : > { %600 = vst [vmem:[%s5577_s10 + $0x4e0] sm:$0xff] %v599_v28  ;;  %602 = vst [vmem:[%s5577_s10 + $0x4e8] sm:$0xff] %v601_v29  ;;  %v605_v31 = vld [vmem:[%s5572_s23 + $0x9d8] sm:$0xff]  ;;  %v607_v32 = vld [vmem:[%s5572_s23 + $0xa00] sm:$0xff] }
  0x6e   : > { %604 = vst [vmem:[%s5577_s10 + $0x4f0] sm:$0xff] %v603_v30  ;;  %v609_v33 = vld [vmem:[%s5572_s23 + $0xa08] sm:$0xff]  ;;  %606 = vst [vmem:[%s5577_s10 + $0x4f8] sm:$0xff] %v605_v31  ;;  %v611_v34 = vld [vmem:[%s5572_s23 + $0xa10] sm:$0xff] }
  0x6f   : > { %608 = vst [vmem:[%s5577_s10 + $0x500] sm:$0xff] %v607_v32  ;;  %610 = vst [vmem:[%s5577_s10 + $0x508] sm:$0xff] %v609_v33  ;;  %v613_v35 = vld [vmem:[%s5572_s23 + $0xa18] sm:$0xff]  ;;  %v615_v36 = vld [vmem:[%s5572_s23 + $0xa40] sm:$0xff] }
  0x70   : > { %612 = vst [vmem:[%s5577_s10 + $0x510] sm:$0xff] %v611_v34  ;;  %614 = vst [vmem:[%s5577_s10 + $0x518] sm:$0xff] %v613_v35  ;;  %v617_v37 = vld [vmem:[%s5572_s23 + $0xa48] sm:$0xff]  ;;  %v619_v38 = vld [vmem:[%s5572_s23 + $0xa50] sm:$0xff] }
  0x71   : > { %616 = vst [vmem:[%s5577_s10 + $0x520] sm:$0xff] %v615_v36  ;;  %v621_v39 = vld [vmem:[%s5572_s23 + $0xa58] sm:$0xff]  ;;  %618 = vst [vmem:[%s5577_s10 + $0x528] sm:$0xff] %v617_v37  ;;  %v623_v40 = vld [vmem:[%s5572_s23 + $0xa80] sm:$0xff] }
  0x72   : > { %620 = vst [vmem:[%s5577_s10 + $0x530] sm:$0xff] %v619_v38  ;;  %622 = vst [vmem:[%s5577_s10 + $0x538] sm:$0xff] %v621_v39  ;;  %v625_v41 = vld [vmem:[%s5572_s23 + $0xa88] sm:$0xff]  ;;  %v627_v42 = vld [vmem:[%s5572_s23 + $0xa90] sm:$0xff] }
  0x73   : > { %624 = vst [vmem:[%s5577_s10 + $0x540] sm:$0xff] %v623_v40  ;;  %626 = vst [vmem:[%s5577_s10 + $0x548] sm:$0xff] %v625_v41  ;;  %v629_v43 = vld [vmem:[%s5572_s23 + $0xa98] sm:$0xff]  ;;  %v631_v44 = vld [vmem:[%s5572_s23 + $0xac0] sm:$0xff] }
  0x74   : > { %628 = vst [vmem:[%s5577_s10 + $0x550] sm:$0xff] %v627_v42  ;;  %v633_v45 = vld [vmem:[%s5572_s23 + $0xac8] sm:$0xff]  ;;  %630 = vst [vmem:[%s5577_s10 + $0x558] sm:$0xff] %v629_v43  ;;  %v635_v46 = vld [vmem:[%s5572_s23 + $0xad0] sm:$0xff] }
  0x75   : > { %632 = vst [vmem:[%s5577_s10 + $0x560] sm:$0xff] %v631_v44  ;;  %634 = vst [vmem:[%s5577_s10 + $0x568] sm:$0xff] %v633_v45  ;;  %v637_v47 = vld [vmem:[%s5572_s23 + $0xad8] sm:$0xff]  ;;  %v639_v48 = vld [vmem:[%s5572_s23 + $0xb00] sm:$0xff] }
  0x76   : > { %636 = vst [vmem:[%s5577_s10 + $0x570] sm:$0xff] %v635_v46  ;;  %638 = vst [vmem:[%s5577_s10 + $0x578] sm:$0xff] %v637_v47  ;;  %v641_v49 = vld [vmem:[%s5572_s23 + $0xb08] sm:$0xff]  ;;  %v643_v50 = vld [vmem:[%s5572_s23 + $0xb10] sm:$0xff] }
  0x77   : > { %640 = vst [vmem:[%s5577_s10 + $0x580] sm:$0xff] %v639_v48  ;;  %v645_v51 = vld [vmem:[%s5572_s23 + $0xb18] sm:$0xff]  ;;  %642 = vst [vmem:[%s5577_s10 + $0x588] sm:$0xff] %v641_v49  ;;  %v647_v52 = vld [vmem:[%s5572_s23 + $0xb40] sm:$0xff] }
  0x78   : > { %644 = vst [vmem:[%s5577_s10 + $0x590] sm:$0xff] %v643_v50  ;;  %646 = vst [vmem:[%s5577_s10 + $0x598] sm:$0xff] %v645_v51  ;;  %v649_v53 = vld [vmem:[%s5572_s23 + $0xb48] sm:$0xff]  ;;  %v651_v54 = vld [vmem:[%s5572_s23 + $0xb50] sm:$0xff] }
  0x79   : > { %648 = vst [vmem:[%s5577_s10 + $0x5a0] sm:$0xff] %v647_v52  ;;  %650 = vst [vmem:[%s5577_s10 + $0x5a8] sm:$0xff] %v649_v53  ;;  %v653_v55 = vld [vmem:[%s5572_s23 + $0xb58] sm:$0xff]  ;;  %v655_v56 = vld [vmem:[%s5572_s23 + $0xb80] sm:$0xff] }
  0x7a   : > { %652 = vst [vmem:[%s5577_s10 + $0x5b0] sm:$0xff] %v651_v54  ;;  %v657_v57 = vld [vmem:[%s5572_s23 + $0xb88] sm:$0xff]  ;;  %654 = vst [vmem:[%s5577_s10 + $0x5b8] sm:$0xff] %v653_v55  ;;  %v659_v58 = vld [vmem:[%s5572_s23 + $0xb90] sm:$0xff] }
  0x7b   : > { %656 = vst [vmem:[%s5577_s10 + $0x5c0] sm:$0xff] %v655_v56  ;;  %658 = vst [vmem:[%s5577_s10 + $0x5c8] sm:$0xff] %v657_v57  ;;  %v661_v59 = vld [vmem:[%s5572_s23 + $0xb98] sm:$0xff]  ;;  %v663_v60 = vld [vmem:[%s5572_s23 + $0xbc0] sm:$0xff] }
  0x7c   : > { %660 = vst [vmem:[%s5577_s10 + $0x5d0] sm:$0xff] %v659_v58  ;;  %662 = vst [vmem:[%s5577_s10 + $0x5d8] sm:$0xff] %v661_v59  ;;  %v665_v61 = vld [vmem:[%s5572_s23 + $0xbc8] sm:$0xff]  ;;  %v667_v62 = vld [vmem:[%s5572_s23 + $0xbd0] sm:$0xff] }
  0x7d   : > { %664 = vst [vmem:[%s5577_s10 + $0x5e0] sm:$0xff] %v663_v60  ;;  %v669_v63 = vld [vmem:[%s5572_s23 + $0xbd8] sm:$0xff]  ;;  %666 = vst [vmem:[%s5577_s10 + $0x5e8] sm:$0xff] %v665_v61  ;;  %v671_v0 = vld [vmem:[%s5572_s23 + $0xc00] sm:$0xff] }
  0x7e   : > { %668 = vst [vmem:[%s5577_s10 + $0x5f0] sm:$0xff] %v667_v62  ;;  %670 = vst [vmem:[%s5577_s10 + $0x5f8] sm:$0xff] %v669_v63  ;;  %v673_v1 = vld [vmem:[%s5572_s23 + $0xc08] sm:$0xff]  ;;  %v675_v2 = vld [vmem:[%s5572_s23 + $0xc10] sm:$0xff] }
  0x7f   : > { %672 = vst [vmem:[%s5577_s10 + $0x600] sm:$0xff] %v671_v0  ;;  %674 = vst [vmem:[%s5577_s10 + $0x608] sm:$0xff] %v673_v1  ;;  %v677_v3 = vld [vmem:[%s5572_s23 + $0xc18] sm:$0xff]  ;;  %v679_v4 = vld [vmem:[%s5572_s23 + $0xc40] sm:$0xff] }
  0x80   : > { %676 = vst [vmem:[%s5577_s10 + $0x610] sm:$0xff] %v675_v2  ;;  %v681_v5 = vld [vmem:[%s5572_s23 + $0xc48] sm:$0xff]  ;;  %678 = vst [vmem:[%s5577_s10 + $0x618] sm:$0xff] %v677_v3  ;;  %v683_v6 = vld [vmem:[%s5572_s23 + $0xc50] sm:$0xff] }
  0x81   : > { %680 = vst [vmem:[%s5577_s10 + $0x620] sm:$0xff] %v679_v4  ;;  %682 = vst [vmem:[%s5577_s10 + $0x628] sm:$0xff] %v681_v5  ;;  %v685_v7 = vld [vmem:[%s5572_s23 + $0xc58] sm:$0xff]  ;;  %v687_v8 = vld [vmem:[%s5572_s23 + $0xc80] sm:$0xff] }
  0x82   : > { %684 = vst [vmem:[%s5577_s10 + $0x630] sm:$0xff] %v683_v6  ;;  %686 = vst [vmem:[%s5577_s10 + $0x638] sm:$0xff] %v685_v7  ;;  %v689_v9 = vld [vmem:[%s5572_s23 + $0xc88] sm:$0xff]  ;;  %v691_v10 = vld [vmem:[%s5572_s23 + $0xc90] sm:$0xff] }
  0x83   : > { %688 = vst [vmem:[%s5577_s10 + $0x640] sm:$0xff] %v687_v8  ;;  %v693_v11 = vld [vmem:[%s5572_s23 + $0xc98] sm:$0xff]  ;;  %690 = vst [vmem:[%s5577_s10 + $0x648] sm:$0xff] %v689_v9  ;;  %v695_v12 = vld [vmem:[%s5572_s23 + $0xcc0] sm:$0xff] }
  0x84   : > { %692 = vst [vmem:[%s5577_s10 + $0x650] sm:$0xff] %v691_v10  ;;  %694 = vst [vmem:[%s5577_s10 + $0x658] sm:$0xff] %v693_v11  ;;  %v697_v13 = vld [vmem:[%s5572_s23 + $0xcc8] sm:$0xff]  ;;  %v699_v14 = vld [vmem:[%s5572_s23 + $0xcd0] sm:$0xff] }
  0x85   : > { %696 = vst [vmem:[%s5577_s10 + $0x660] sm:$0xff] %v695_v12  ;;  %698 = vst [vmem:[%s5577_s10 + $0x668] sm:$0xff] %v697_v13  ;;  %v701_v15 = vld [vmem:[%s5572_s23 + $0xcd8] sm:$0xff]  ;;  %v703_v16 = vld [vmem:[%s5572_s23 + $0xd00] sm:$0xff] }
  0x86   : > { %700 = vst [vmem:[%s5577_s10 + $0x670] sm:$0xff] %v699_v14  ;;  %v705_v17 = vld [vmem:[%s5572_s23 + $0xd08] sm:$0xff]  ;;  %702 = vst [vmem:[%s5577_s10 + $0x678] sm:$0xff] %v701_v15  ;;  %v707_v18 = vld [vmem:[%s5572_s23 + $0xd10] sm:$0xff] }
  0x87   : > { %704 = vst [vmem:[%s5577_s10 + $0x680] sm:$0xff] %v703_v16  ;;  %706 = vst [vmem:[%s5577_s10 + $0x688] sm:$0xff] %v705_v17  ;;  %v709_v19 = vld [vmem:[%s5572_s23 + $0xd18] sm:$0xff]  ;;  %v711_v20 = vld [vmem:[%s5572_s23 + $0xd40] sm:$0xff] }
  0x88   : > { %708 = vst [vmem:[%s5577_s10 + $0x690] sm:$0xff] %v707_v18  ;;  %710 = vst [vmem:[%s5577_s10 + $0x698] sm:$0xff] %v709_v19  ;;  %v713_v21 = vld [vmem:[%s5572_s23 + $0xd48] sm:$0xff]  ;;  %v715_v22 = vld [vmem:[%s5572_s23 + $0xd50] sm:$0xff] }
  0x89   : > { %712 = vst [vmem:[%s5577_s10 + $0x6a0] sm:$0xff] %v711_v20  ;;  %v717_v23 = vld [vmem:[%s5572_s23 + $0xd58] sm:$0xff]  ;;  %714 = vst [vmem:[%s5577_s10 + $0x6a8] sm:$0xff] %v713_v21  ;;  %v719_v24 = vld [vmem:[%s5572_s23 + $0xd80] sm:$0xff] }
  0x8a   : > { %716 = vst [vmem:[%s5577_s10 + $0x6b0] sm:$0xff] %v715_v22  ;;  %718 = vst [vmem:[%s5577_s10 + $0x6b8] sm:$0xff] %v717_v23  ;;  %v721_v25 = vld [vmem:[%s5572_s23 + $0xd88] sm:$0xff]  ;;  %v723_v26 = vld [vmem:[%s5572_s23 + $0xd90] sm:$0xff] }
  0x8b   : > { %720 = vst [vmem:[%s5577_s10 + $0x6c0] sm:$0xff] %v719_v24  ;;  %722 = vst [vmem:[%s5577_s10 + $0x6c8] sm:$0xff] %v721_v25  ;;  %v725_v27 = vld [vmem:[%s5572_s23 + $0xd98] sm:$0xff]  ;;  %v727_v28 = vld [vmem:[%s5572_s23 + $0xdc0] sm:$0xff] }
  0x8c   : > { %724 = vst [vmem:[%s5577_s10 + $0x6d0] sm:$0xff] %v723_v26  ;;  %v729_v29 = vld [vmem:[%s5572_s23 + $0xdc8] sm:$0xff]  ;;  %726 = vst [vmem:[%s5577_s10 + $0x6d8] sm:$0xff] %v725_v27  ;;  %v731_v30 = vld [vmem:[%s5572_s23 + $0xdd0] sm:$0xff] }
  0x8d   : > { %728 = vst [vmem:[%s5577_s10 + $0x6e0] sm:$0xff] %v727_v28  ;;  %730 = vst [vmem:[%s5577_s10 + $0x6e8] sm:$0xff] %v729_v29  ;;  %v733_v31 = vld [vmem:[%s5572_s23 + $0xdd8] sm:$0xff]  ;;  %v735_v32 = vld [vmem:[%s5572_s23 + $0xe00] sm:$0xff] }
  0x8e   : > { %732 = vst [vmem:[%s5577_s10 + $0x6f0] sm:$0xff] %v731_v30  ;;  %734 = vst [vmem:[%s5577_s10 + $0x6f8] sm:$0xff] %v733_v31  ;;  %v737_v33 = vld [vmem:[%s5572_s23 + $0xe08] sm:$0xff]  ;;  %v739_v34 = vld [vmem:[%s5572_s23 + $0xe10] sm:$0xff] }
  0x8f   : > { %736 = vst [vmem:[%s5577_s10 + $0x700] sm:$0xff] %v735_v32  ;;  %v741_v35 = vld [vmem:[%s5572_s23 + $0xe18] sm:$0xff]  ;;  %738 = vst [vmem:[%s5577_s10 + $0x708] sm:$0xff] %v737_v33  ;;  %v743_v36 = vld [vmem:[%s5572_s23 + $0xe40] sm:$0xff] }
  0x90   : > { %740 = vst [vmem:[%s5577_s10 + $0x710] sm:$0xff] %v739_v34  ;;  %742 = vst [vmem:[%s5577_s10 + $0x718] sm:$0xff] %v741_v35  ;;  %v745_v37 = vld [vmem:[%s5572_s23 + $0xe48] sm:$0xff]  ;;  %v747_v38 = vld [vmem:[%s5572_s23 + $0xe50] sm:$0xff] }
  0x91   : > { %744 = vst [vmem:[%s5577_s10 + $0x720] sm:$0xff] %v743_v36  ;;  %746 = vst [vmem:[%s5577_s10 + $0x728] sm:$0xff] %v745_v37  ;;  %v749_v39 = vld [vmem:[%s5572_s23 + $0xe58] sm:$0xff]  ;;  %v751_v40 = vld [vmem:[%s5572_s23 + $0xe80] sm:$0xff] }
  0x92   : > { %748 = vst [vmem:[%s5577_s10 + $0x730] sm:$0xff] %v747_v38  ;;  %v753_v41 = vld [vmem:[%s5572_s23 + $0xe88] sm:$0xff]  ;;  %750 = vst [vmem:[%s5577_s10 + $0x738] sm:$0xff] %v749_v39  ;;  %v755_v42 = vld [vmem:[%s5572_s23 + $0xe90] sm:$0xff] }
  0x93   : > { %752 = vst [vmem:[%s5577_s10 + $0x740] sm:$0xff] %v751_v40  ;;  %754 = vst [vmem:[%s5577_s10 + $0x748] sm:$0xff] %v753_v41  ;;  %v757_v43 = vld [vmem:[%s5572_s23 + $0xe98] sm:$0xff]  ;;  %v759_v44 = vld [vmem:[%s5572_s23 + $0xec0] sm:$0xff] }
  0x94   : > { %756 = vst [vmem:[%s5577_s10 + $0x750] sm:$0xff] %v755_v42  ;;  %758 = vst [vmem:[%s5577_s10 + $0x758] sm:$0xff] %v757_v43  ;;  %v761_v45 = vld [vmem:[%s5572_s23 + $0xec8] sm:$0xff]  ;;  %v763_v46 = vld [vmem:[%s5572_s23 + $0xed0] sm:$0xff] }
  0x95   : > { %760 = vst [vmem:[%s5577_s10 + $0x760] sm:$0xff] %v759_v44  ;;  %v765_v47 = vld [vmem:[%s5572_s23 + $0xed8] sm:$0xff]  ;;  %762 = vst [vmem:[%s5577_s10 + $0x768] sm:$0xff] %v761_v45  ;;  %v767_v48 = vld [vmem:[%s5572_s23 + $0xf00] sm:$0xff] }
  0x96   : > { %764 = vst [vmem:[%s5577_s10 + $0x770] sm:$0xff] %v763_v46  ;;  %766 = vst [vmem:[%s5577_s10 + $0x778] sm:$0xff] %v765_v47  ;;  %v769_v49 = vld [vmem:[%s5572_s23 + $0xf08] sm:$0xff]  ;;  %v771_v50 = vld [vmem:[%s5572_s23 + $0xf10] sm:$0xff] }
  0x97   : > { %768 = vst [vmem:[%s5577_s10 + $0x780] sm:$0xff] %v767_v48  ;;  %770 = vst [vmem:[%s5577_s10 + $0x788] sm:$0xff] %v769_v49  ;;  %v773_v51 = vld [vmem:[%s5572_s23 + $0xf18] sm:$0xff]  ;;  %v775_v52 = vld [vmem:[%s5572_s23 + $0xf40] sm:$0xff] }
  0x98   : > { %772 = vst [vmem:[%s5577_s10 + $0x790] sm:$0xff] %v771_v50  ;;  %v777_v53 = vld [vmem:[%s5572_s23 + $0xf48] sm:$0xff]  ;;  %774 = vst [vmem:[%s5577_s10 + $0x798] sm:$0xff] %v773_v51  ;;  %v779_v54 = vld [vmem:[%s5572_s23 + $0xf50] sm:$0xff] }
  0x99   : > { %776 = vst [vmem:[%s5577_s10 + $0x7a0] sm:$0xff] %v775_v52  ;;  %778 = vst [vmem:[%s5577_s10 + $0x7a8] sm:$0xff] %v777_v53  ;;  %v781_v55 = vld [vmem:[%s5572_s23 + $0xf58] sm:$0xff]  ;;  %v783_v56 = vld [vmem:[%s5572_s23 + $0xf80] sm:$0xff] }
  0x9a   : > { %780 = vst [vmem:[%s5577_s10 + $0x7b0] sm:$0xff] %v779_v54  ;;  %782 = vst [vmem:[%s5577_s10 + $0x7b8] sm:$0xff] %v781_v55  ;;  %v785_v57 = vld [vmem:[%s5572_s23 + $0xf88] sm:$0xff]  ;;  %v787_v58 = vld [vmem:[%s5572_s23 + $0xf90] sm:$0xff] }
  0x9b   : > { %784 = vst [vmem:[%s5577_s10 + $0x7c0] sm:$0xff] %v783_v56  ;;  %v789_v59 = vld [vmem:[%s5572_s23 + $0xf98] sm:$0xff]  ;;  %786 = vst [vmem:[%s5577_s10 + $0x7c8] sm:$0xff] %v785_v57  ;;  %v791_v60 = vld [vmem:[%s5572_s23 + $0xfc0] sm:$0xff] }
  0x9c   : > { %788 = vst [vmem:[%s5577_s10 + $0x7d0] sm:$0xff] %v787_v58  ;;  %790 = vst [vmem:[%s5577_s10 + $0x7d8] sm:$0xff] %v789_v59  ;;  %v793_v61 = vld [vmem:[%s5572_s23 + $0xfc8] sm:$0xff]  ;;  %v795_v62 = vld [vmem:[%s5572_s23 + $0xfd0] sm:$0xff] }
  0x9d   : > { %792 = vst [vmem:[%s5577_s10 + $0x7e0] sm:$0xff] %v791_v60  ;;  %794 = vst [vmem:[%s5577_s10 + $0x7e8] sm:$0xff] %v793_v61  ;;  %v797_v63 = vld [vmem:[%s5572_s23 + $0xfd8] sm:$0xff]  ;;  %v799_v0 = vld [vmem:[%s5572_s23 + $0x1000] sm:$0xff] }
  0x9e   : > { %796 = vst [vmem:[%s5577_s10 + $0x7f0] sm:$0xff] %v795_v62  ;;  %v801_v1 = vld [vmem:[%s5572_s23 + $0x1008] sm:$0xff]  ;;  %798 = vst [vmem:[%s5577_s10 + $0x7f8] sm:$0xff] %v797_v63  ;;  %v803_v2 = vld [vmem:[%s5572_s23 + $0x1010] sm:$0xff] }
  0x9f   : > { %800 = vst [vmem:[%s5577_s10 + $0x800] sm:$0xff] %v799_v0  ;;  %802 = vst [vmem:[%s5577_s10 + $0x808] sm:$0xff] %v801_v1  ;;  %v805_v3 = vld [vmem:[%s5572_s23 + $0x1018] sm:$0xff]  ;;  %v807_v4 = vld [vmem:[%s5572_s23 + $0x1040] sm:$0xff] }
  0xa0   : > { %804 = vst [vmem:[%s5577_s10 + $0x810] sm:$0xff] %v803_v2  ;;  %806 = vst [vmem:[%s5577_s10 + $0x818] sm:$0xff] %v805_v3  ;;  %v809_v5 = vld [vmem:[%s5572_s23 + $0x1048] sm:$0xff]  ;;  %v811_v6 = vld [vmem:[%s5572_s23 + $0x1050] sm:$0xff] }
  0xa1   : > { %808 = vst [vmem:[%s5577_s10 + $0x820] sm:$0xff] %v807_v4  ;;  %v813_v7 = vld [vmem:[%s5572_s23 + $0x1058] sm:$0xff]  ;;  %810 = vst [vmem:[%s5577_s10 + $0x828] sm:$0xff] %v809_v5  ;;  %v815_v8 = vld [vmem:[%s5572_s23 + $0x1080] sm:$0xff] }
  0xa2   : > { %812 = vst [vmem:[%s5577_s10 + $0x830] sm:$0xff] %v811_v6  ;;  %814 = vst [vmem:[%s5577_s10 + $0x838] sm:$0xff] %v813_v7  ;;  %v817_v9 = vld [vmem:[%s5572_s23 + $0x1088] sm:$0xff]  ;;  %v819_v10 = vld [vmem:[%s5572_s23 + $0x1090] sm:$0xff] }
  0xa3   : > { %816 = vst [vmem:[%s5577_s10 + $0x840] sm:$0xff] %v815_v8  ;;  %818 = vst [vmem:[%s5577_s10 + $0x848] sm:$0xff] %v817_v9  ;;  %v821_v11 = vld [vmem:[%s5572_s23 + $0x1098] sm:$0xff]  ;;  %v823_v12 = vld [vmem:[%s5572_s23 + $0x10c0] sm:$0xff] }
  0xa4   : > { %820 = vst [vmem:[%s5577_s10 + $0x850] sm:$0xff] %v819_v10  ;;  %v825_v13 = vld [vmem:[%s5572_s23 + $0x10c8] sm:$0xff]  ;;  %822 = vst [vmem:[%s5577_s10 + $0x858] sm:$0xff] %v821_v11  ;;  %v827_v14 = vld [vmem:[%s5572_s23 + $0x10d0] sm:$0xff] }
  0xa5   : > { %824 = vst [vmem:[%s5577_s10 + $0x860] sm:$0xff] %v823_v12  ;;  %826 = vst [vmem:[%s5577_s10 + $0x868] sm:$0xff] %v825_v13  ;;  %v829_v15 = vld [vmem:[%s5572_s23 + $0x10d8] sm:$0xff]  ;;  %v831_v16 = vld [vmem:[%s5572_s23 + $0x1100] sm:$0xff] }
  0xa6   : > { %828 = vst [vmem:[%s5577_s10 + $0x870] sm:$0xff] %v827_v14  ;;  %830 = vst [vmem:[%s5577_s10 + $0x878] sm:$0xff] %v829_v15  ;;  %v833_v17 = vld [vmem:[%s5572_s23 + $0x1108] sm:$0xff]  ;;  %v835_v18 = vld [vmem:[%s5572_s23 + $0x1110] sm:$0xff] }
  0xa7   : > { %832 = vst [vmem:[%s5577_s10 + $0x880] sm:$0xff] %v831_v16  ;;  %v837_v19 = vld [vmem:[%s5572_s23 + $0x1118] sm:$0xff]  ;;  %834 = vst [vmem:[%s5577_s10 + $0x888] sm:$0xff] %v833_v17  ;;  %v839_v20 = vld [vmem:[%s5572_s23 + $0x1140] sm:$0xff] }
  0xa8   : > { %836 = vst [vmem:[%s5577_s10 + $0x890] sm:$0xff] %v835_v18  ;;  %838 = vst [vmem:[%s5577_s10 + $0x898] sm:$0xff] %v837_v19  ;;  %v841_v21 = vld [vmem:[%s5572_s23 + $0x1148] sm:$0xff]  ;;  %v843_v22 = vld [vmem:[%s5572_s23 + $0x1150] sm:$0xff] }
  0xa9   : > { %840 = vst [vmem:[%s5577_s10 + $0x8a0] sm:$0xff] %v839_v20  ;;  %842 = vst [vmem:[%s5577_s10 + $0x8a8] sm:$0xff] %v841_v21  ;;  %v845_v23 = vld [vmem:[%s5572_s23 + $0x1158] sm:$0xff]  ;;  %v847_v24 = vld [vmem:[%s5572_s23 + $0x1180] sm:$0xff] }
  0xaa   : > { %844 = vst [vmem:[%s5577_s10 + $0x8b0] sm:$0xff] %v843_v22  ;;  %v849_v25 = vld [vmem:[%s5572_s23 + $0x1188] sm:$0xff]  ;;  %846 = vst [vmem:[%s5577_s10 + $0x8b8] sm:$0xff] %v845_v23  ;;  %v851_v26 = vld [vmem:[%s5572_s23 + $0x1190] sm:$0xff] }
  0xab   : > { %848 = vst [vmem:[%s5577_s10 + $0x8c0] sm:$0xff] %v847_v24  ;;  %850 = vst [vmem:[%s5577_s10 + $0x8c8] sm:$0xff] %v849_v25  ;;  %v853_v27 = vld [vmem:[%s5572_s23 + $0x1198] sm:$0xff]  ;;  %v855_v28 = vld [vmem:[%s5572_s23 + $0x11c0] sm:$0xff] }
  0xac   : > { %852 = vst [vmem:[%s5577_s10 + $0x8d0] sm:$0xff] %v851_v26  ;;  %854 = vst [vmem:[%s5577_s10 + $0x8d8] sm:$0xff] %v853_v27  ;;  %v857_v29 = vld [vmem:[%s5572_s23 + $0x11c8] sm:$0xff]  ;;  %v859_v30 = vld [vmem:[%s5572_s23 + $0x11d0] sm:$0xff] }
  0xad   : > { %856 = vst [vmem:[%s5577_s10 + $0x8e0] sm:$0xff] %v855_v28  ;;  %v861_v31 = vld [vmem:[%s5572_s23 + $0x11d8] sm:$0xff]  ;;  %858 = vst [vmem:[%s5577_s10 + $0x8e8] sm:$0xff] %v857_v29  ;;  %v863_v32 = vld [vmem:[%s5572_s23 + $0x1200] sm:$0xff] }
  0xae   : > { %860 = vst [vmem:[%s5577_s10 + $0x8f0] sm:$0xff] %v859_v30  ;;  %862 = vst [vmem:[%s5577_s10 + $0x8f8] sm:$0xff] %v861_v31  ;;  %v865_v33 = vld [vmem:[%s5572_s23 + $0x1208] sm:$0xff]  ;;  %v867_v34 = vld [vmem:[%s5572_s23 + $0x1210] sm:$0xff] }
  0xaf   : > { %864 = vst [vmem:[%s5577_s10 + $0x900] sm:$0xff] %v863_v32  ;;  %866 = vst [vmem:[%s5577_s10 + $0x908] sm:$0xff] %v865_v33  ;;  %v869_v35 = vld [vmem:[%s5572_s23 + $0x1218] sm:$0xff]  ;;  %v871_v36 = vld [vmem:[%s5572_s23 + $0x1240] sm:$0xff] }
  0xb0   : > { %868 = vst [vmem:[%s5577_s10 + $0x910] sm:$0xff] %v867_v34  ;;  %v873_v37 = vld [vmem:[%s5572_s23 + $0x1248] sm:$0xff]  ;;  %870 = vst [vmem:[%s5577_s10 + $0x918] sm:$0xff] %v869_v35  ;;  %v875_v38 = vld [vmem:[%s5572_s23 + $0x1250] sm:$0xff] }
  0xb1   : > { %872 = vst [vmem:[%s5577_s10 + $0x920] sm:$0xff] %v871_v36  ;;  %874 = vst [vmem:[%s5577_s10 + $0x928] sm:$0xff] %v873_v37  ;;  %v877_v39 = vld [vmem:[%s5572_s23 + $0x1258] sm:$0xff]  ;;  %v879_v40 = vld [vmem:[%s5572_s23 + $0x1280] sm:$0xff] }
  0xb2   : > { %876 = vst [vmem:[%s5577_s10 + $0x930] sm:$0xff] %v875_v38  ;;  %878 = vst [vmem:[%s5577_s10 + $0x938] sm:$0xff] %v877_v39  ;;  %v881_v41 = vld [vmem:[%s5572_s23 + $0x1288] sm:$0xff]  ;;  %v883_v42 = vld [vmem:[%s5572_s23 + $0x1290] sm:$0xff] }
  0xb3   : > { %880 = vst [vmem:[%s5577_s10 + $0x940] sm:$0xff] %v879_v40  ;;  %v885_v43 = vld [vmem:[%s5572_s23 + $0x1298] sm:$0xff]  ;;  %882 = vst [vmem:[%s5577_s10 + $0x948] sm:$0xff] %v881_v41  ;;  %v887_v44 = vld [vmem:[%s5572_s23 + $0x12c0] sm:$0xff] }
  0xb4   : > { %884 = vst [vmem:[%s5577_s10 + $0x950] sm:$0xff] %v883_v42  ;;  %886 = vst [vmem:[%s5577_s10 + $0x958] sm:$0xff] %v885_v43  ;;  %v889_v45 = vld [vmem:[%s5572_s23 + $0x12c8] sm:$0xff]  ;;  %v891_v46 = vld [vmem:[%s5572_s23 + $0x12d0] sm:$0xff] }
  0xb5   : > { %888 = vst [vmem:[%s5577_s10 + $0x960] sm:$0xff] %v887_v44  ;;  %890 = vst [vmem:[%s5577_s10 + $0x968] sm:$0xff] %v889_v45  ;;  %v893_v47 = vld [vmem:[%s5572_s23 + $0x12d8] sm:$0xff]  ;;  %v895_v48 = vld [vmem:[%s5572_s23 + $0x1300] sm:$0xff] }
  0xb6   : > { %892 = vst [vmem:[%s5577_s10 + $0x970] sm:$0xff] %v891_v46  ;;  %v897_v49 = vld [vmem:[%s5572_s23 + $0x1308] sm:$0xff]  ;;  %894 = vst [vmem:[%s5577_s10 + $0x978] sm:$0xff] %v893_v47  ;;  %v899_v50 = vld [vmem:[%s5572_s23 + $0x1310] sm:$0xff] }
  0xb7   : > { %896 = vst [vmem:[%s5577_s10 + $0x980] sm:$0xff] %v895_v48  ;;  %898 = vst [vmem:[%s5577_s10 + $0x988] sm:$0xff] %v897_v49  ;;  %v901_v51 = vld [vmem:[%s5572_s23 + $0x1318] sm:$0xff]  ;;  %v903_v52 = vld [vmem:[%s5572_s23 + $0x1340] sm:$0xff] }
  0xb8   : > { %900 = vst [vmem:[%s5577_s10 + $0x990] sm:$0xff] %v899_v50  ;;  %902 = vst [vmem:[%s5577_s10 + $0x998] sm:$0xff] %v901_v51  ;;  %v905_v53 = vld [vmem:[%s5572_s23 + $0x1348] sm:$0xff]  ;;  %v907_v54 = vld [vmem:[%s5572_s23 + $0x1350] sm:$0xff] }
  0xb9   : > { %904 = vst [vmem:[%s5577_s10 + $0x9a0] sm:$0xff] %v903_v52  ;;  %v909_v55 = vld [vmem:[%s5572_s23 + $0x1358] sm:$0xff]  ;;  %906 = vst [vmem:[%s5577_s10 + $0x9a8] sm:$0xff] %v905_v53  ;;  %v911_v56 = vld [vmem:[%s5572_s23 + $0x1380] sm:$0xff] }
  0xba   : > { %908 = vst [vmem:[%s5577_s10 + $0x9b0] sm:$0xff] %v907_v54  ;;  %910 = vst [vmem:[%s5577_s10 + $0x9b8] sm:$0xff] %v909_v55  ;;  %v913_v57 = vld [vmem:[%s5572_s23 + $0x1388] sm:$0xff]  ;;  %v915_v58 = vld [vmem:[%s5572_s23 + $0x1390] sm:$0xff] }
  0xbb   : > { %912 = vst [vmem:[%s5577_s10 + $0x9c0] sm:$0xff] %v911_v56  ;;  %914 = vst [vmem:[%s5577_s10 + $0x9c8] sm:$0xff] %v913_v57  ;;  %v917_v59 = vld [vmem:[%s5572_s23 + $0x1398] sm:$0xff]  ;;  %v919_v60 = vld [vmem:[%s5572_s23 + $0x13c0] sm:$0xff] }
  0xbc   : > { %916 = vst [vmem:[%s5577_s10 + $0x9d0] sm:$0xff] %v915_v58  ;;  %v921_v61 = vld [vmem:[%s5572_s23 + $0x13c8] sm:$0xff]  ;;  %918 = vst [vmem:[%s5577_s10 + $0x9d8] sm:$0xff] %v917_v59  ;;  %v923_v62 = vld [vmem:[%s5572_s23 + $0x13d0] sm:$0xff] }
  0xbd   : > { %920 = vst [vmem:[%s5577_s10 + $0x9e0] sm:$0xff] %v919_v60  ;;  %922 = vst [vmem:[%s5577_s10 + $0x9e8] sm:$0xff] %v921_v61  ;;  %v925_v63 = vld [vmem:[%s5572_s23 + $0x13d8] sm:$0xff]  ;;  %v927_v0 = vld [vmem:[%s5572_s23 + $0x1400] sm:$0xff] }
  0xbe   : > { %924 = vst [vmem:[%s5577_s10 + $0x9f0] sm:$0xff] %v923_v62  ;;  %926 = vst [vmem:[%s5577_s10 + $0x9f8] sm:$0xff] %v925_v63  ;;  %v929_v1 = vld [vmem:[%s5572_s23 + $0x1408] sm:$0xff]  ;;  %v931_v2 = vld [vmem:[%s5572_s23 + $0x1410] sm:$0xff] }
  0xbf   : > { %928 = vst [vmem:[%s5577_s10 + $0xa00] sm:$0xff] %v927_v0  ;;  %v933_v3 = vld [vmem:[%s5572_s23 + $0x1418] sm:$0xff]  ;;  %930 = vst [vmem:[%s5577_s10 + $0xa08] sm:$0xff] %v929_v1  ;;  %v935_v4 = vld [vmem:[%s5572_s23 + $0x1440] sm:$0xff] }
  0xc0   : > { %932 = vst [vmem:[%s5577_s10 + $0xa10] sm:$0xff] %v931_v2  ;;  %934 = vst [vmem:[%s5577_s10 + $0xa18] sm:$0xff] %v933_v3  ;;  %v937_v5 = vld [vmem:[%s5572_s23 + $0x1448] sm:$0xff]  ;;  %v939_v6 = vld [vmem:[%s5572_s23 + $0x1450] sm:$0xff] }
  0xc1   : > { %936 = vst [vmem:[%s5577_s10 + $0xa20] sm:$0xff] %v935_v4  ;;  %938 = vst [vmem:[%s5577_s10 + $0xa28] sm:$0xff] %v937_v5  ;;  %v941_v7 = vld [vmem:[%s5572_s23 + $0x1458] sm:$0xff]  ;;  %v943_v8 = vld [vmem:[%s5572_s23 + $0x1480] sm:$0xff] }
  0xc2   : > { %940 = vst [vmem:[%s5577_s10 + $0xa30] sm:$0xff] %v939_v6  ;;  %v945_v9 = vld [vmem:[%s5572_s23 + $0x1488] sm:$0xff]  ;;  %942 = vst [vmem:[%s5577_s10 + $0xa38] sm:$0xff] %v941_v7  ;;  %v947_v10 = vld [vmem:[%s5572_s23 + $0x1490] sm:$0xff] }
  0xc3   : > { %944 = vst [vmem:[%s5577_s10 + $0xa40] sm:$0xff] %v943_v8  ;;  %946 = vst [vmem:[%s5577_s10 + $0xa48] sm:$0xff] %v945_v9  ;;  %v949_v11 = vld [vmem:[%s5572_s23 + $0x1498] sm:$0xff]  ;;  %v951_v12 = vld [vmem:[%s5572_s23 + $0x14c0] sm:$0xff] }
  0xc4   : > { %948 = vst [vmem:[%s5577_s10 + $0xa50] sm:$0xff] %v947_v10  ;;  %950 = vst [vmem:[%s5577_s10 + $0xa58] sm:$0xff] %v949_v11  ;;  %v953_v13 = vld [vmem:[%s5572_s23 + $0x14c8] sm:$0xff]  ;;  %v955_v14 = vld [vmem:[%s5572_s23 + $0x14d0] sm:$0xff] }
  0xc5   : > { %952 = vst [vmem:[%s5577_s10 + $0xa60] sm:$0xff] %v951_v12  ;;  %v957_v15 = vld [vmem:[%s5572_s23 + $0x14d8] sm:$0xff]  ;;  %954 = vst [vmem:[%s5577_s10 + $0xa68] sm:$0xff] %v953_v13  ;;  %v959_v16 = vld [vmem:[%s5572_s23 + $0x1500] sm:$0xff] }
  0xc6   : > { %956 = vst [vmem:[%s5577_s10 + $0xa70] sm:$0xff] %v955_v14  ;;  %958 = vst [vmem:[%s5577_s10 + $0xa78] sm:$0xff] %v957_v15  ;;  %v961_v17 = vld [vmem:[%s5572_s23 + $0x1508] sm:$0xff]  ;;  %v963_v18 = vld [vmem:[%s5572_s23 + $0x1510] sm:$0xff] }
  0xc7   : > { %960 = vst [vmem:[%s5577_s10 + $0xa80] sm:$0xff] %v959_v16  ;;  %962 = vst [vmem:[%s5577_s10 + $0xa88] sm:$0xff] %v961_v17  ;;  %v965_v19 = vld [vmem:[%s5572_s23 + $0x1518] sm:$0xff]  ;;  %v967_v20 = vld [vmem:[%s5572_s23 + $0x1540] sm:$0xff] }
  0xc8   : > { %964 = vst [vmem:[%s5577_s10 + $0xa90] sm:$0xff] %v963_v18  ;;  %v969_v21 = vld [vmem:[%s5572_s23 + $0x1548] sm:$0xff]  ;;  %966 = vst [vmem:[%s5577_s10 + $0xa98] sm:$0xff] %v965_v19  ;;  %v971_v22 = vld [vmem:[%s5572_s23 + $0x1550] sm:$0xff] }
  0xc9   : > { %968 = vst [vmem:[%s5577_s10 + $0xaa0] sm:$0xff] %v967_v20  ;;  %970 = vst [vmem:[%s5577_s10 + $0xaa8] sm:$0xff] %v969_v21  ;;  %v973_v23 = vld [vmem:[%s5572_s23 + $0x1558] sm:$0xff]  ;;  %v975_v24 = vld [vmem:[%s5572_s23 + $0x1580] sm:$0xff] }
  0xca   : > { %972 = vst [vmem:[%s5577_s10 + $0xab0] sm:$0xff] %v971_v22  ;;  %974 = vst [vmem:[%s5577_s10 + $0xab8] sm:$0xff] %v973_v23  ;;  %v977_v25 = vld [vmem:[%s5572_s23 + $0x1588] sm:$0xff]  ;;  %v979_v26 = vld [vmem:[%s5572_s23 + $0x1590] sm:$0xff] }
  0xcb   : > { %976 = vst [vmem:[%s5577_s10 + $0xac0] sm:$0xff] %v975_v24  ;;  %v981_v27 = vld [vmem:[%s5572_s23 + $0x1598] sm:$0xff]  ;;  %978 = vst [vmem:[%s5577_s10 + $0xac8] sm:$0xff] %v977_v25  ;;  %v983_v28 = vld [vmem:[%s5572_s23 + $0x15c0] sm:$0xff] }
  0xcc   : > { %980 = vst [vmem:[%s5577_s10 + $0xad0] sm:$0xff] %v979_v26  ;;  %982 = vst [vmem:[%s5577_s10 + $0xad8] sm:$0xff] %v981_v27  ;;  %v985_v29 = vld [vmem:[%s5572_s23 + $0x15c8] sm:$0xff]  ;;  %v987_v30 = vld [vmem:[%s5572_s23 + $0x15d0] sm:$0xff] }
  0xcd   : > { %984 = vst [vmem:[%s5577_s10 + $0xae0] sm:$0xff] %v983_v28  ;;  %986 = vst [vmem:[%s5577_s10 + $0xae8] sm:$0xff] %v985_v29  ;;  %v989_v31 = vld [vmem:[%s5572_s23 + $0x15d8] sm:$0xff]  ;;  %v991_v32 = vld [vmem:[%s5572_s23 + $0x1600] sm:$0xff] }
  0xce   : > { %988 = vst [vmem:[%s5577_s10 + $0xaf0] sm:$0xff] %v987_v30  ;;  %v993_v33 = vld [vmem:[%s5572_s23 + $0x1608] sm:$0xff]  ;;  %990 = vst [vmem:[%s5577_s10 + $0xaf8] sm:$0xff] %v989_v31  ;;  %v995_v34 = vld [vmem:[%s5572_s23 + $0x1610] sm:$0xff] }
  0xcf   : > { %992 = vst [vmem:[%s5577_s10 + $0xb00] sm:$0xff] %v991_v32  ;;  %994 = vst [vmem:[%s5577_s10 + $0xb08] sm:$0xff] %v993_v33  ;;  %v997_v35 = vld [vmem:[%s5572_s23 + $0x1618] sm:$0xff]  ;;  %v999_v36 = vld [vmem:[%s5572_s23 + $0x1640] sm:$0xff] }
  0xd0   : > { %996 = vst [vmem:[%s5577_s10 + $0xb10] sm:$0xff] %v995_v34  ;;  %998 = vst [vmem:[%s5577_s10 + $0xb18] sm:$0xff] %v997_v35  ;;  %v1001_v37 = vld [vmem:[%s5572_s23 + $0x1648] sm:$0xff]  ;;  %v1003_v38 = vld [vmem:[%s5572_s23 + $0x1650] sm:$0xff] }
  0xd1   : > { %1000 = vst [vmem:[%s5577_s10 + $0xb20] sm:$0xff] %v999_v36  ;;  %v1005_v39 = vld [vmem:[%s5572_s23 + $0x1658] sm:$0xff]  ;;  %1002 = vst [vmem:[%s5577_s10 + $0xb28] sm:$0xff] %v1001_v37  ;;  %v1007_v40 = vld [vmem:[%s5572_s23 + $0x1680] sm:$0xff] }
  0xd2   : > { %1004 = vst [vmem:[%s5577_s10 + $0xb30] sm:$0xff] %v1003_v38  ;;  %1006 = vst [vmem:[%s5577_s10 + $0xb38] sm:$0xff] %v1005_v39  ;;  %v1009_v41 = vld [vmem:[%s5572_s23 + $0x1688] sm:$0xff]  ;;  %v1011_v42 = vld [vmem:[%s5572_s23 + $0x1690] sm:$0xff] }
  0xd3   : > { %1008 = vst [vmem:[%s5577_s10 + $0xb40] sm:$0xff] %v1007_v40  ;;  %1010 = vst [vmem:[%s5577_s10 + $0xb48] sm:$0xff] %v1009_v41  ;;  %v1013_v43 = vld [vmem:[%s5572_s23 + $0x1698] sm:$0xff]  ;;  %v1015_v44 = vld [vmem:[%s5572_s23 + $0x16c0] sm:$0xff] }
  0xd4   : > { %1012 = vst [vmem:[%s5577_s10 + $0xb50] sm:$0xff] %v1011_v42  ;;  %v1017_v45 = vld [vmem:[%s5572_s23 + $0x16c8] sm:$0xff]  ;;  %1014 = vst [vmem:[%s5577_s10 + $0xb58] sm:$0xff] %v1013_v43  ;;  %v1019_v46 = vld [vmem:[%s5572_s23 + $0x16d0] sm:$0xff] }
  0xd5   : > { %1016 = vst [vmem:[%s5577_s10 + $0xb60] sm:$0xff] %v1015_v44  ;;  %1018 = vst [vmem:[%s5577_s10 + $0xb68] sm:$0xff] %v1017_v45  ;;  %v1021_v47 = vld [vmem:[%s5572_s23 + $0x16d8] sm:$0xff]  ;;  %v1023_v48 = vld [vmem:[%s5572_s23 + $0x1700] sm:$0xff] }
  0xd6   : > { %1020 = vst [vmem:[%s5577_s10 + $0xb70] sm:$0xff] %v1019_v46  ;;  %1022 = vst [vmem:[%s5577_s10 + $0xb78] sm:$0xff] %v1021_v47  ;;  %v1025_v49 = vld [vmem:[%s5572_s23 + $0x1708] sm:$0xff]  ;;  %v1027_v50 = vld [vmem:[%s5572_s23 + $0x1710] sm:$0xff] }
  0xd7   : > { %1024 = vst [vmem:[%s5577_s10 + $0xb80] sm:$0xff] %v1023_v48  ;;  %v1029_v51 = vld [vmem:[%s5572_s23 + $0x1718] sm:$0xff]  ;;  %1026 = vst [vmem:[%s5577_s10 + $0xb88] sm:$0xff] %v1025_v49  ;;  %v1031_v52 = vld [vmem:[%s5572_s23 + $0x1740] sm:$0xff] }
  0xd8   : > { %1028 = vst [vmem:[%s5577_s10 + $0xb90] sm:$0xff] %v1027_v50  ;;  %1030 = vst [vmem:[%s5577_s10 + $0xb98] sm:$0xff] %v1029_v51  ;;  %v1033_v53 = vld [vmem:[%s5572_s23 + $0x1748] sm:$0xff]  ;;  %v1035_v54 = vld [vmem:[%s5572_s23 + $0x1750] sm:$0xff] }
  0xd9   : > { %1032 = vst [vmem:[%s5577_s10 + $0xba0] sm:$0xff] %v1031_v52  ;;  %1034 = vst [vmem:[%s5577_s10 + $0xba8] sm:$0xff] %v1033_v53  ;;  %v1037_v55 = vld [vmem:[%s5572_s23 + $0x1758] sm:$0xff]  ;;  %v1039_v56 = vld [vmem:[%s5572_s23 + $0x1780] sm:$0xff] }
  0xda   : > { %1036 = vst [vmem:[%s5577_s10 + $0xbb0] sm:$0xff] %v1035_v54  ;;  %v1041_v57 = vld [vmem:[%s5572_s23 + $0x1788] sm:$0xff]  ;;  %1038 = vst [vmem:[%s5577_s10 + $0xbb8] sm:$0xff] %v1037_v55  ;;  %v1043_v58 = vld [vmem:[%s5572_s23 + $0x1790] sm:$0xff] }
  0xdb   : > { %1040 = vst [vmem:[%s5577_s10 + $0xbc0] sm:$0xff] %v1039_v56  ;;  %1042 = vst [vmem:[%s5577_s10 + $0xbc8] sm:$0xff] %v1041_v57  ;;  %v1045_v59 = vld [vmem:[%s5572_s23 + $0x1798] sm:$0xff]  ;;  %v1047_v60 = vld [vmem:[%s5572_s23 + $0x17c0] sm:$0xff] }
  0xdc   : > { %1044 = vst [vmem:[%s5577_s10 + $0xbd0] sm:$0xff] %v1043_v58  ;;  %1046 = vst [vmem:[%s5577_s10 + $0xbd8] sm:$0xff] %v1045_v59  ;;  %v1049_v61 = vld [vmem:[%s5572_s23 + $0x17c8] sm:$0xff]  ;;  %v1051_v62 = vld [vmem:[%s5572_s23 + $0x17d0] sm:$0xff] }
  0xdd   : > { %1048 = vst [vmem:[%s5577_s10 + $0xbe0] sm:$0xff] %v1047_v60  ;;  %v1053_v63 = vld [vmem:[%s5572_s23 + $0x17d8] sm:$0xff]  ;;  %1050 = vst [vmem:[%s5577_s10 + $0xbe8] sm:$0xff] %v1049_v61  ;;  %v1055_v0 = vld [vmem:[%s5572_s23 + $0x1800] sm:$0xff] }
  0xde   : > { %1052 = vst [vmem:[%s5577_s10 + $0xbf0] sm:$0xff] %v1051_v62  ;;  %1054 = vst [vmem:[%s5577_s10 + $0xbf8] sm:$0xff] %v1053_v63  ;;  %v1057_v1 = vld [vmem:[%s5572_s23 + $0x1808] sm:$0xff]  ;;  %v1059_v2 = vld [vmem:[%s5572_s23 + $0x1810] sm:$0xff] }
  0xdf   : > { %1056 = vst [vmem:[%s5577_s10 + $0xc00] sm:$0xff] %v1055_v0  ;;  %1058 = vst [vmem:[%s5577_s10 + $0xc08] sm:$0xff] %v1057_v1  ;;  %v1061_v3 = vld [vmem:[%s5572_s23 + $0x1818] sm:$0xff]  ;;  %v1063_v4 = vld [vmem:[%s5572_s23 + $0x1840] sm:$0xff] }
  0xe0   : > { %1060 = vst [vmem:[%s5577_s10 + $0xc10] sm:$0xff] %v1059_v2  ;;  %v1065_v5 = vld [vmem:[%s5572_s23 + $0x1848] sm:$0xff]  ;;  %1062 = vst [vmem:[%s5577_s10 + $0xc18] sm:$0xff] %v1061_v3  ;;  %v1067_v6 = vld [vmem:[%s5572_s23 + $0x1850] sm:$0xff] }
  0xe1   : > { %1064 = vst [vmem:[%s5577_s10 + $0xc20] sm:$0xff] %v1063_v4  ;;  %1066 = vst [vmem:[%s5577_s10 + $0xc28] sm:$0xff] %v1065_v5  ;;  %v1069_v7 = vld [vmem:[%s5572_s23 + $0x1858] sm:$0xff]  ;;  %v1071_v8 = vld [vmem:[%s5572_s23 + $0x1880] sm:$0xff] }
  0xe2   : > { %1068 = vst [vmem:[%s5577_s10 + $0xc30] sm:$0xff] %v1067_v6  ;;  %1070 = vst [vmem:[%s5577_s10 + $0xc38] sm:$0xff] %v1069_v7  ;;  %v1073_v9 = vld [vmem:[%s5572_s23 + $0x1888] sm:$0xff]  ;;  %v1075_v10 = vld [vmem:[%s5572_s23 + $0x1890] sm:$0xff] }
  0xe3   : > { %1072 = vst [vmem:[%s5577_s10 + $0xc40] sm:$0xff] %v1071_v8  ;;  %v1077_v11 = vld [vmem:[%s5572_s23 + $0x1898] sm:$0xff]  ;;  %1074 = vst [vmem:[%s5577_s10 + $0xc48] sm:$0xff] %v1073_v9  ;;  %v1079_v12 = vld [vmem:[%s5572_s23 + $0x18c0] sm:$0xff] }
  0xe4   : > { %1076 = vst [vmem:[%s5577_s10 + $0xc50] sm:$0xff] %v1075_v10  ;;  %1078 = vst [vmem:[%s5577_s10 + $0xc58] sm:$0xff] %v1077_v11  ;;  %v1081_v13 = vld [vmem:[%s5572_s23 + $0x18c8] sm:$0xff]  ;;  %v1083_v14 = vld [vmem:[%s5572_s23 + $0x18d0] sm:$0xff] }
  0xe5   : > { %1080 = vst [vmem:[%s5577_s10 + $0xc60] sm:$0xff] %v1079_v12  ;;  %1082 = vst [vmem:[%s5577_s10 + $0xc68] sm:$0xff] %v1081_v13  ;;  %v1085_v15 = vld [vmem:[%s5572_s23 + $0x18d8] sm:$0xff]  ;;  %v1087_v16 = vld [vmem:[%s5572_s23 + $0x1900] sm:$0xff] }
  0xe6   : > { %1084 = vst [vmem:[%s5577_s10 + $0xc70] sm:$0xff] %v1083_v14  ;;  %v1089_v17 = vld [vmem:[%s5572_s23 + $0x1908] sm:$0xff]  ;;  %1086 = vst [vmem:[%s5577_s10 + $0xc78] sm:$0xff] %v1085_v15  ;;  %v1091_v18 = vld [vmem:[%s5572_s23 + $0x1910] sm:$0xff] }
  0xe7   : > { %1088 = vst [vmem:[%s5577_s10 + $0xc80] sm:$0xff] %v1087_v16  ;;  %1090 = vst [vmem:[%s5577_s10 + $0xc88] sm:$0xff] %v1089_v17  ;;  %v1093_v19 = vld [vmem:[%s5572_s23 + $0x1918] sm:$0xff]  ;;  %v1095_v20 = vld [vmem:[%s5572_s23 + $0x1940] sm:$0xff] }
  0xe8   : > { %1092 = vst [vmem:[%s5577_s10 + $0xc90] sm:$0xff] %v1091_v18  ;;  %1094 = vst [vmem:[%s5577_s10 + $0xc98] sm:$0xff] %v1093_v19  ;;  %v1097_v21 = vld [vmem:[%s5572_s23 + $0x1948] sm:$0xff]  ;;  %v1099_v22 = vld [vmem:[%s5572_s23 + $0x1950] sm:$0xff] }
  0xe9   : > { %1096 = vst [vmem:[%s5577_s10 + $0xca0] sm:$0xff] %v1095_v20  ;;  %v1101_v23 = vld [vmem:[%s5572_s23 + $0x1958] sm:$0xff]  ;;  %1098 = vst [vmem:[%s5577_s10 + $0xca8] sm:$0xff] %v1097_v21  ;;  %v1103_v24 = vld [vmem:[%s5572_s23 + $0x1980] sm:$0xff] }
  0xea   : > { %1100 = vst [vmem:[%s5577_s10 + $0xcb0] sm:$0xff] %v1099_v22  ;;  %1102 = vst [vmem:[%s5577_s10 + $0xcb8] sm:$0xff] %v1101_v23  ;;  %v1105_v25 = vld [vmem:[%s5572_s23 + $0x1988] sm:$0xff]  ;;  %v1107_v26 = vld [vmem:[%s5572_s23 + $0x1990] sm:$0xff] }
  0xeb   : > { %1104 = vst [vmem:[%s5577_s10 + $0xcc0] sm:$0xff] %v1103_v24  ;;  %1106 = vst [vmem:[%s5577_s10 + $0xcc8] sm:$0xff] %v1105_v25  ;;  %v1109_v27 = vld [vmem:[%s5572_s23 + $0x1998] sm:$0xff]  ;;  %v1111_v28 = vld [vmem:[%s5572_s23 + $0x19c0] sm:$0xff] }
  0xec   : > { %1108 = vst [vmem:[%s5577_s10 + $0xcd0] sm:$0xff] %v1107_v26  ;;  %v1113_v29 = vld [vmem:[%s5572_s23 + $0x19c8] sm:$0xff]  ;;  %1110 = vst [vmem:[%s5577_s10 + $0xcd8] sm:$0xff] %v1109_v27  ;;  %v1115_v30 = vld [vmem:[%s5572_s23 + $0x19d0] sm:$0xff] }
  0xed   : > { %1112 = vst [vmem:[%s5577_s10 + $0xce0] sm:$0xff] %v1111_v28  ;;  %1114 = vst [vmem:[%s5577_s10 + $0xce8] sm:$0xff] %v1113_v29  ;;  %v1117_v31 = vld [vmem:[%s5572_s23 + $0x19d8] sm:$0xff]  ;;  %v1119_v32 = vld [vmem:[%s5572_s23 + $0x1a00] sm:$0xff] }
  0xee   : > { %1116 = vst [vmem:[%s5577_s10 + $0xcf0] sm:$0xff] %v1115_v30  ;;  %1118 = vst [vmem:[%s5577_s10 + $0xcf8] sm:$0xff] %v1117_v31  ;;  %v1121_v33 = vld [vmem:[%s5572_s23 + $0x1a08] sm:$0xff]  ;;  %v1123_v34 = vld [vmem:[%s5572_s23 + $0x1a10] sm:$0xff] }
  0xef   : > { %1120 = vst [vmem:[%s5577_s10 + $0xd00] sm:$0xff] %v1119_v32  ;;  %v1125_v35 = vld [vmem:[%s5572_s23 + $0x1a18] sm:$0xff]  ;;  %1122 = vst [vmem:[%s5577_s10 + $0xd08] sm:$0xff] %v1121_v33  ;;  %v1127_v36 = vld [vmem:[%s5572_s23 + $0x1a40] sm:$0xff] }
  0xf0   : > { %1124 = vst [vmem:[%s5577_s10 + $0xd10] sm:$0xff] %v1123_v34  ;;  %1126 = vst [vmem:[%s5577_s10 + $0xd18] sm:$0xff] %v1125_v35  ;;  %v1129_v37 = vld [vmem:[%s5572_s23 + $0x1a48] sm:$0xff]  ;;  %v1131_v38 = vld [vmem:[%s5572_s23 + $0x1a50] sm:$0xff] }
  0xf1   : > { %1128 = vst [vmem:[%s5577_s10 + $0xd20] sm:$0xff] %v1127_v36  ;;  %1130 = vst [vmem:[%s5577_s10 + $0xd28] sm:$0xff] %v1129_v37  ;;  %v1133_v39 = vld [vmem:[%s5572_s23 + $0x1a58] sm:$0xff]  ;;  %v1135_v40 = vld [vmem:[%s5572_s23 + $0x1a80] sm:$0xff] }
  0xf2   : > { %1132 = vst [vmem:[%s5577_s10 + $0xd30] sm:$0xff] %v1131_v38  ;;  %v1137_v41 = vld [vmem:[%s5572_s23 + $0x1a88] sm:$0xff]  ;;  %1134 = vst [vmem:[%s5577_s10 + $0xd38] sm:$0xff] %v1133_v39  ;;  %v1139_v42 = vld [vmem:[%s5572_s23 + $0x1a90] sm:$0xff] }
  0xf3   : > { %1136 = vst [vmem:[%s5577_s10 + $0xd40] sm:$0xff] %v1135_v40  ;;  %1138 = vst [vmem:[%s5577_s10 + $0xd48] sm:$0xff] %v1137_v41  ;;  %v1141_v43 = vld [vmem:[%s5572_s23 + $0x1a98] sm:$0xff]  ;;  %v1143_v44 = vld [vmem:[%s5572_s23 + $0x1ac0] sm:$0xff] }
  0xf4   : > { %1140 = vst [vmem:[%s5577_s10 + $0xd50] sm:$0xff] %v1139_v42  ;;  %1142 = vst [vmem:[%s5577_s10 + $0xd58] sm:$0xff] %v1141_v43  ;;  %v1145_v45 = vld [vmem:[%s5572_s23 + $0x1ac8] sm:$0xff]  ;;  %v1147_v46 = vld [vmem:[%s5572_s23 + $0x1ad0] sm:$0xff] }
  0xf5   : > { %1144 = vst [vmem:[%s5577_s10 + $0xd60] sm:$0xff] %v1143_v44  ;;  %v1149_v47 = vld [vmem:[%s5572_s23 + $0x1ad8] sm:$0xff]  ;;  %1146 = vst [vmem:[%s5577_s10 + $0xd68] sm:$0xff] %v1145_v45  ;;  %v1151_v48 = vld [vmem:[%s5572_s23 + $0x1b00] sm:$0xff] }
  0xf6   : > { %1148 = vst [vmem:[%s5577_s10 + $0xd70] sm:$0xff] %v1147_v46  ;;  %1150 = vst [vmem:[%s5577_s10 + $0xd78] sm:$0xff] %v1149_v47  ;;  %v1153_v49 = vld [vmem:[%s5572_s23 + $0x1b08] sm:$0xff]  ;;  %v1155_v50 = vld [vmem:[%s5572_s23 + $0x1b10] sm:$0xff] }
  0xf7   : > { %1152 = vst [vmem:[%s5577_s10 + $0xd80] sm:$0xff] %v1151_v48  ;;  %1154 = vst [vmem:[%s5577_s10 + $0xd88] sm:$0xff] %v1153_v49  ;;  %v1157_v51 = vld [vmem:[%s5572_s23 + $0x1b18] sm:$0xff]  ;;  %v1159_v52 = vld [vmem:[%s5572_s23 + $0x1b40] sm:$0xff] }
  0xf8   : > { %1156 = vst [vmem:[%s5577_s10 + $0xd90] sm:$0xff] %v1155_v50  ;;  %v1161_v53 = vld [vmem:[%s5572_s23 + $0x1b48] sm:$0xff]  ;;  %1158 = vst [vmem:[%s5577_s10 + $0xd98] sm:$0xff] %v1157_v51  ;;  %v1163_v54 = vld [vmem:[%s5572_s23 + $0x1b50] sm:$0xff] }
  0xf9   : > { %1160 = vst [vmem:[%s5577_s10 + $0xda0] sm:$0xff] %v1159_v52  ;;  %1162 = vst [vmem:[%s5577_s10 + $0xda8] sm:$0xff] %v1161_v53  ;;  %v1165_v55 = vld [vmem:[%s5572_s23 + $0x1b58] sm:$0xff]  ;;  %v1167_v56 = vld [vmem:[%s5572_s23 + $0x1b80] sm:$0xff] }
  0xfa   : > { %1164 = vst [vmem:[%s5577_s10 + $0xdb0] sm:$0xff] %v1163_v54  ;;  %1166 = vst [vmem:[%s5577_s10 + $0xdb8] sm:$0xff] %v1165_v55  ;;  %v1169_v57 = vld [vmem:[%s5572_s23 + $0x1b88] sm:$0xff]  ;;  %v1171_v58 = vld [vmem:[%s5572_s23 + $0x1b90] sm:$0xff] }
  0xfb   : > { %1168 = vst [vmem:[%s5577_s10 + $0xdc0] sm:$0xff] %v1167_v56  ;;  %v1173_v59 = vld [vmem:[%s5572_s23 + $0x1b98] sm:$0xff]  ;;  %1170 = vst [vmem:[%s5577_s10 + $0xdc8] sm:$0xff] %v1169_v57  ;;  %v1175_v60 = vld [vmem:[%s5572_s23 + $0x1bc0] sm:$0xff] }
  0xfc   : > { %1172 = vst [vmem:[%s5577_s10 + $0xdd0] sm:$0xff] %v1171_v58  ;;  %1174 = vst [vmem:[%s5577_s10 + $0xdd8] sm:$0xff] %v1173_v59  ;;  %v1177_v61 = vld [vmem:[%s5572_s23 + $0x1bc8] sm:$0xff]  ;;  %v1179_v62 = vld [vmem:[%s5572_s23 + $0x1bd0] sm:$0xff] }
  0xfd   : > { %1176 = vst [vmem:[%s5577_s10 + $0xde0] sm:$0xff] %v1175_v60  ;;  %1178 = vst [vmem:[%s5577_s10 + $0xde8] sm:$0xff] %v1177_v61  ;;  %v1181_v63 = vld [vmem:[%s5572_s23 + $0x1bd8] sm:$0xff]  ;;  %v1183_v0 = vld [vmem:[%s5572_s23 + $0x1c00] sm:$0xff] }
  0xfe   : > { %1180 = vst [vmem:[%s5577_s10 + $0xdf0] sm:$0xff] %v1179_v62  ;;  %v1185_v1 = vld [vmem:[%s5572_s23 + $0x1c08] sm:$0xff]  ;;  %1182 = vst [vmem:[%s5577_s10 + $0xdf8] sm:$0xff] %v1181_v63  ;;  %v1187_v2 = vld [vmem:[%s5572_s23 + $0x1c10] sm:$0xff] }
  0xff   : > { %1184 = vst [vmem:[%s5577_s10 + $0xe00] sm:$0xff] %v1183_v0  ;;  %1186 = vst [vmem:[%s5577_s10 + $0xe08] sm:$0xff] %v1185_v1  ;;  %v1189_v3 = vld [vmem:[%s5572_s23 + $0x1c18] sm:$0xff]  ;;  %v1191_v4 = vld [vmem:[%s5572_s23 + $0x1c40] sm:$0xff] }
 0x100   : > { %1188 = vst [vmem:[%s5577_s10 + $0xe10] sm:$0xff] %v1187_v2  ;;  %1190 = vst [vmem:[%s5577_s10 + $0xe18] sm:$0xff] %v1189_v3  ;;  %v1193_v5 = vld [vmem:[%s5572_s23 + $0x1c48] sm:$0xff]  ;;  %v1195_v6 = vld [vmem:[%s5572_s23 + $0x1c50] sm:$0xff] }
 0x101   : > { %1192 = vst [vmem:[%s5577_s10 + $0xe20] sm:$0xff] %v1191_v4  ;;  %v1197_v7 = vld [vmem:[%s5572_s23 + $0x1c58] sm:$0xff]  ;;  %1194 = vst [vmem:[%s5577_s10 + $0xe28] sm:$0xff] %v1193_v5  ;;  %v1199_v8 = vld [vmem:[%s5572_s23 + $0x1c80] sm:$0xff] }
 0x102   : > { %1196 = vst [vmem:[%s5577_s10 + $0xe30] sm:$0xff] %v1195_v6  ;;  %1198 = vst [vmem:[%s5577_s10 + $0xe38] sm:$0xff] %v1197_v7  ;;  %v1201_v9 = vld [vmem:[%s5572_s23 + $0x1c88] sm:$0xff]  ;;  %v1203_v10 = vld [vmem:[%s5572_s23 + $0x1c90] sm:$0xff] }
 0x103   : > { %1200 = vst [vmem:[%s5577_s10 + $0xe40] sm:$0xff] %v1199_v8  ;;  %1202 = vst [vmem:[%s5577_s10 + $0xe48] sm:$0xff] %v1201_v9  ;;  %v1205_v11 = vld [vmem:[%s5572_s23 + $0x1c98] sm:$0xff]  ;;  %v1207_v12 = vld [vmem:[%s5572_s23 + $0x1cc0] sm:$0xff] }
 0x104   : > { %1204 = vst [vmem:[%s5577_s10 + $0xe50] sm:$0xff] %v1203_v10  ;;  %v1209_v13 = vld [vmem:[%s5572_s23 + $0x1cc8] sm:$0xff]  ;;  %1206 = vst [vmem:[%s5577_s10 + $0xe58] sm:$0xff] %v1205_v11  ;;  %v1211_v14 = vld [vmem:[%s5572_s23 + $0x1cd0] sm:$0xff] }
 0x105   : > { %1208 = vst [vmem:[%s5577_s10 + $0xe60] sm:$0xff] %v1207_v12  ;;  %1210 = vst [vmem:[%s5577_s10 + $0xe68] sm:$0xff] %v1209_v13  ;;  %v1213_v15 = vld [vmem:[%s5572_s23 + $0x1cd8] sm:$0xff]  ;;  %v1215_v16 = vld [vmem:[%s5572_s23 + $0x1d00] sm:$0xff] }
 0x106   : > { %1212 = vst [vmem:[%s5577_s10 + $0xe70] sm:$0xff] %v1211_v14  ;;  %1214 = vst [vmem:[%s5577_s10 + $0xe78] sm:$0xff] %v1213_v15  ;;  %v1217_v17 = vld [vmem:[%s5572_s23 + $0x1d08] sm:$0xff]  ;;  %v1219_v18 = vld [vmem:[%s5572_s23 + $0x1d10] sm:$0xff] }
 0x107   : > { %1216 = vst [vmem:[%s5577_s10 + $0xe80] sm:$0xff] %v1215_v16  ;;  %v1221_v19 = vld [vmem:[%s5572_s23 + $0x1d18] sm:$0xff]  ;;  %1218 = vst [vmem:[%s5577_s10 + $0xe88] sm:$0xff] %v1217_v17  ;;  %v1223_v20 = vld [vmem:[%s5572_s23 + $0x1d40] sm:$0xff] }
 0x108   : > { %1220 = vst [vmem:[%s5577_s10 + $0xe90] sm:$0xff] %v1219_v18  ;;  %1222 = vst [vmem:[%s5577_s10 + $0xe98] sm:$0xff] %v1221_v19  ;;  %v1225_v21 = vld [vmem:[%s5572_s23 + $0x1d48] sm:$0xff]  ;;  %v1227_v22 = vld [vmem:[%s5572_s23 + $0x1d50] sm:$0xff] }
 0x109   : > { %1224 = vst [vmem:[%s5577_s10 + $0xea0] sm:$0xff] %v1223_v20  ;;  %1226 = vst [vmem:[%s5577_s10 + $0xea8] sm:$0xff] %v1225_v21  ;;  %v1229_v23 = vld [vmem:[%s5572_s23 + $0x1d58] sm:$0xff]  ;;  %v1231_v24 = vld [vmem:[%s5572_s23 + $0x1d80] sm:$0xff] }
 0x10a   : > { %1228 = vst [vmem:[%s5577_s10 + $0xeb0] sm:$0xff] %v1227_v22  ;;  %v1233_v25 = vld [vmem:[%s5572_s23 + $0x1d88] sm:$0xff]  ;;  %1230 = vst [vmem:[%s5577_s10 + $0xeb8] sm:$0xff] %v1229_v23  ;;  %v1235_v26 = vld [vmem:[%s5572_s23 + $0x1d90] sm:$0xff] }
 0x10b   : > { %1232 = vst [vmem:[%s5577_s10 + $0xec0] sm:$0xff] %v1231_v24  ;;  %1234 = vst [vmem:[%s5577_s10 + $0xec8] sm:$0xff] %v1233_v25  ;;  %v1237_v27 = vld [vmem:[%s5572_s23 + $0x1d98] sm:$0xff]  ;;  %v1239_v28 = vld [vmem:[%s5572_s23 + $0x1dc0] sm:$0xff] }
 0x10c   : > { %1236 = vst [vmem:[%s5577_s10 + $0xed0] sm:$0xff] %v1235_v26  ;;  %1238 = vst [vmem:[%s5577_s10 + $0xed8] sm:$0xff] %v1237_v27  ;;  %v1241_v29 = vld [vmem:[%s5572_s23 + $0x1dc8] sm:$0xff]  ;;  %v1243_v30 = vld [vmem:[%s5572_s23 + $0x1dd0] sm:$0xff] }
 0x10d   : > { %1240 = vst [vmem:[%s5577_s10 + $0xee0] sm:$0xff] %v1239_v28  ;;  %v1245_v31 = vld [vmem:[%s5572_s23 + $0x1dd8] sm:$0xff]  ;;  %1242 = vst [vmem:[%s5577_s10 + $0xee8] sm:$0xff] %v1241_v29  ;;  %v1247_v32 = vld [vmem:[%s5572_s23 + $0x1e00] sm:$0xff] }
 0x10e   : > { %1244 = vst [vmem:[%s5577_s10 + $0xef0] sm:$0xff] %v1243_v30  ;;  %1246 = vst [vmem:[%s5577_s10 + $0xef8] sm:$0xff] %v1245_v31  ;;  %v1249_v33 = vld [vmem:[%s5572_s23 + $0x1e08] sm:$0xff]  ;;  %v1251_v34 = vld [vmem:[%s5572_s23 + $0x1e10] sm:$0xff] }
 0x10f   : > { %1248 = vst [vmem:[%s5577_s10 + $0xf00] sm:$0xff] %v1247_v32  ;;  %1250 = vst [vmem:[%s5577_s10 + $0xf08] sm:$0xff] %v1249_v33  ;;  %v1253_v35 = vld [vmem:[%s5572_s23 + $0x1e18] sm:$0xff]  ;;  %v1255_v36 = vld [vmem:[%s5572_s23 + $0x1e40] sm:$0xff] }
 0x110   : > { %1252 = vst [vmem:[%s5577_s10 + $0xf10] sm:$0xff] %v1251_v34  ;;  %v1257_v37 = vld [vmem:[%s5572_s23 + $0x1e48] sm:$0xff]  ;;  %1254 = vst [vmem:[%s5577_s10 + $0xf18] sm:$0xff] %v1253_v35  ;;  %v1259_v38 = vld [vmem:[%s5572_s23 + $0x1e50] sm:$0xff] }
 0x111   : > { %1256 = vst [vmem:[%s5577_s10 + $0xf20] sm:$0xff] %v1255_v36  ;;  %1258 = vst [vmem:[%s5577_s10 + $0xf28] sm:$0xff] %v1257_v37  ;;  %v1261_v39 = vld [vmem:[%s5572_s23 + $0x1e58] sm:$0xff]  ;;  %v1263_v40 = vld [vmem:[%s5572_s23 + $0x1e80] sm:$0xff] }
 0x112   : > { %1260 = vst [vmem:[%s5577_s10 + $0xf30] sm:$0xff] %v1259_v38  ;;  %1262 = vst [vmem:[%s5577_s10 + $0xf38] sm:$0xff] %v1261_v39  ;;  %v1265_v41 = vld [vmem:[%s5572_s23 + $0x1e88] sm:$0xff]  ;;  %v1267_v42 = vld [vmem:[%s5572_s23 + $0x1e90] sm:$0xff] }
 0x113   : > { %1264 = vst [vmem:[%s5577_s10 + $0xf40] sm:$0xff] %v1263_v40  ;;  %v1269_v43 = vld [vmem:[%s5572_s23 + $0x1e98] sm:$0xff]  ;;  %1266 = vst [vmem:[%s5577_s10 + $0xf48] sm:$0xff] %v1265_v41  ;;  %v1271_v44 = vld [vmem:[%s5572_s23 + $0x1ec0] sm:$0xff] }
 0x114   : > { %1268 = vst [vmem:[%s5577_s10 + $0xf50] sm:$0xff] %v1267_v42  ;;  %1270 = vst [vmem:[%s5577_s10 + $0xf58] sm:$0xff] %v1269_v43  ;;  %v1273_v45 = vld [vmem:[%s5572_s23 + $0x1ec8] sm:$0xff]  ;;  %v1275_v46 = vld [vmem:[%s5572_s23 + $0x1ed0] sm:$0xff] }
 0x115   : > { %1272 = vst [vmem:[%s5577_s10 + $0xf60] sm:$0xff] %v1271_v44  ;;  %1274 = vst [vmem:[%s5577_s10 + $0xf68] sm:$0xff] %v1273_v45  ;;  %v1277_v47 = vld [vmem:[%s5572_s23 + $0x1ed8] sm:$0xff]  ;;  %v1279_v48 = vld [vmem:[%s5572_s23 + $0x1f00] sm:$0xff] }
 0x116   : > { %1276 = vst [vmem:[%s5577_s10 + $0xf70] sm:$0xff] %v1275_v46  ;;  %v1281_v49 = vld [vmem:[%s5572_s23 + $0x1f08] sm:$0xff]  ;;  %1278 = vst [vmem:[%s5577_s10 + $0xf78] sm:$0xff] %v1277_v47  ;;  %v1283_v50 = vld [vmem:[%s5572_s23 + $0x1f10] sm:$0xff] }
 0x117   : > { %1280 = vst [vmem:[%s5577_s10 + $0xf80] sm:$0xff] %v1279_v48  ;;  %1282 = vst [vmem:[%s5577_s10 + $0xf88] sm:$0xff] %v1281_v49  ;;  %v1285_v51 = vld [vmem:[%s5572_s23 + $0x1f18] sm:$0xff]  ;;  %v1287_v52 = vld [vmem:[%s5572_s23 + $0x1f40] sm:$0xff] }
 0x118   : > { %1284 = vst [vmem:[%s5577_s10 + $0xf90] sm:$0xff] %v1283_v50  ;;  %1286 = vst [vmem:[%s5577_s10 + $0xf98] sm:$0xff] %v1285_v51  ;;  %v1289_v53 = vld [vmem:[%s5572_s23 + $0x1f48] sm:$0xff]  ;;  %v1291_v54 = vld [vmem:[%s5572_s23 + $0x1f50] sm:$0xff] }
 0x119   : > { %1288 = vst [vmem:[%s5577_s10 + $0xfa0] sm:$0xff] %v1287_v52  ;;  %v1293_v55 = vld [vmem:[%s5572_s23 + $0x1f58] sm:$0xff]  ;;  %1290 = vst [vmem:[%s5577_s10 + $0xfa8] sm:$0xff] %v1289_v53  ;;  %v1295_v56 = vld [vmem:[%s5572_s23 + $0x1f80] sm:$0xff] }
 0x11a   : > { %1292 = vst [vmem:[%s5577_s10 + $0xfb0] sm:$0xff] %v1291_v54  ;;  %1294 = vst [vmem:[%s5577_s10 + $0xfb8] sm:$0xff] %v1293_v55  ;;  %v1297_v57 = vld [vmem:[%s5572_s23 + $0x1f88] sm:$0xff]  ;;  %v1299_v58 = vld [vmem:[%s5572_s23 + $0x1f90] sm:$0xff] }
 0x11b   : > { %1296 = vst [vmem:[%s5577_s10 + $0xfc0] sm:$0xff] %v1295_v56  ;;  %1298 = vst [vmem:[%s5577_s10 + $0xfc8] sm:$0xff] %v1297_v57  ;;  %v1301_v59 = vld [vmem:[%s5572_s23 + $0x1f98] sm:$0xff]  ;;  %v1303_v60 = vld [vmem:[%s5572_s23 + $0x1fc0] sm:$0xff] }
 0x11c   : > { %1300 = vst [vmem:[%s5577_s10 + $0xfd0] sm:$0xff] %v1299_v58  ;;  %v1305_v61 = vld [vmem:[%s5572_s23 + $0x1fc8] sm:$0xff]  ;;  %1302 = vst [vmem:[%s5577_s10 + $0xfd8] sm:$0xff] %v1301_v59  ;;  %v1307_v62 = vld [vmem:[%s5572_s23 + $0x1fd0] sm:$0xff] }
 0x11d   : > { %1304 = vst [vmem:[%s5577_s10 + $0xfe0] sm:$0xff] %v1303_v60  ;;  %1306 = vst [vmem:[%s5577_s10 + $0xfe8] sm:$0xff] %v1305_v61  ;;  %v1309_v63 = vld [vmem:[%s5572_s23 + $0x1fd8] sm:$0xff] }
 0x11e   : > { %1308 = vst [vmem:[%s5577_s10 + $0xff0] sm:$0xff] %v1307_v62  ;;  %1310 = vst [vmem:[%s5577_s10 + $0xff8] sm:$0xff] %v1309_v63 }
 0x11f PF: > { %p5257_p7 = scmp.ge.s32.totalorder %s5467_s30, 1  ;;  %p1356_p8 = scmp.lt.s32.totalorder %s5467_s30, 5 }
 0x121   : > { %p1357_p9 = pnand %p5257_p7, %p1356_p8 }
 0x122   : > { %s1363_s11 = sand.u32 (!%p1357_p9), 1, %s5443_s24   ;;  %s5259_s12 = sshll.u32 (!%p1357_p9), %s5451_s26, 5 }
 0x123   : > { %1360 = sbr.rel (%p1357_p9) target bundleno = 1865 (0x749), region = 67  ;;  %s5258_s13 = sshll.u32 (!%p1357_p9), %s1363_s11, 12 }
 0x124   : > { %p1419_p10 = scmp.lt.s32.totalorder (!%p1357_p9), %s5259_s12, 63  ;;  %s5260_s15 = sshll.u32 (!%p1357_p9), %s5455_s27, 2 }
 0x125   : > { %p1426_p11 = scmp.lt.s32.totalorder (!%p1357_p9), %s5260_s15, 7  ;;  %s5264_s16 = sshll.u32 (!%p1357_p9), %s5455_s27, 6 }
 0x126   : > { %s7675_s0 = sld [smem:[#allocation8_spill]] (!%p1357_p9)  ;;  %p1446_p12 = scmp.lt.s32.totalorder (!%p1357_p9), %s5264_s16, 127 }
 0x127   : > { %p1451_p13 = scmp.lt.s32.totalorder (!%p1357_p9), %s5455_s27, 1  ;;  %s6641_s11 = scalar_lea.vmem (!%p1357_p9), [#allocation3], %s5258_s13 }
 0x128   : > { %s7689_s12 = smov (!%p1419_p10, %s5259_s12), 63  ;;  %s7691_s15 = smov (!%p1426_p11, %s5260_s15), 7 }
 0x129   : > { %s7693_s16 = smov (!%p1446_p12, %s5264_s16), 127  ;;  %s1428_s21 = scalar_lea.vmem %s7658_s2, %s7691_s15 }
 0x12a   : > { %s1433_s10 = scalar_lea.vmem %s7659_s3, %s7691_s15  ;;  %s1443_s1 = scalar_lea.vmem %s7661_s5, %s7691_s15 }
 0x12b   : > { %s5265_s9 = sshll.u32 %s7693_s16, 3  ;;  %s7695_s27 = smov (!%p1451_p13, %s5455_s27), 1 }
 0x12c   : > { %s6609_s19 = scalar_lea.vmem %s7675_s0, %s7689_s12  ;;  %s1438_s12 = scalar_lea.vmem %s7660_s4, %s7691_s15 }
 0x12d   : > { %s6633_s28 = scalar_lea.vmem %s7662_s6, %s5265_s9  ;;  %s5266_s24 = sshll.u32 %s7695_s27, 1 }
 0x12e   : > { %s6639_s23 = scalar_lea.vmem %s7663_s7, %s5266_s24  ;;  %p5267_p0 = scmp.ne.s32.totalorder %s5451_s26, 0 }
 0x130   : > { %1458 = sbr.rel (%p5267_p0) target bundleno = 311 (0x137), region = 75 }
 0x135   : > { %v5469_v0 = vmov 0.0  }
 0x136   : > { %1459 = vst [vmem:[#allocation2] sm:$0xff] %v5469_v0 }
 0x137 PF: > { %v1473_v1 = vld [vmem:[%s6641_s11 + $0x68] sm:$0xff]  ;;  %v1472_v3 = vld [vmem:[%s6641_s11 + $0x60] sm:$0xff]  ;;  %v3009_v31 = vlaneseq  ;;  %v5470_v36 = vmov 1966171168   ;;  %v6661_v44 = vld [vmem:[%s6609_s19] sm:$0xff]  ;;  %p5268_p1 = scmp.ne.s32.totalorder %s5451_s26, 1 }
 0x138   : > { %v1505_v2 = vld [vmem:[%s6641_s11 + $0x168] sm:$0xff]  ;;  %v1997_v4 = vunpack.c.l.s8.bf16 %v1473_v1  ;;  %v2001_v5 = vunpack.c.h.s8.bf16 %v1473_v1  ;;  %v1504_v8 = vld [vmem:[%s6641_s11 + $0x160] sm:$0xff]  ;;  %v2000_v9 = vunpack.c.h.s8.bf16 %v1472_v3  ;;  %v1996_v13 = vunpack.c.l.s8.bf16 %v1472_v3 }
 0x139   : > { %v2061_v6 = vunpack.c.l.s8.bf16 %v1505_v2  ;;  %v2065_v7 = vunpack.c.h.s8.bf16 %v1505_v2  ;;  %v2064_v10 = vunpack.c.h.s8.bf16 %v1504_v8  ;;  %v1469_v11 = vld [vmem:[%s6641_s11 + $0x48] sm:$0xff]  ;;  %v2060_v14 = vunpack.c.l.s8.bf16 %v1504_v8  ;;  %v1468_v17 = vld [vmem:[%s6641_s11 + $0x40] sm:$0xff] }
 0x13a   : > { %v1501_v12 = vld [vmem:[%s6641_s11 + $0x148] sm:$0xff]  ;;  %3233 = vmatprep.subr.bf16.mxu0 %v2001_v5  ;;  %v1993_v15 = vunpack.c.h.s8.bf16 %v1469_v11  ;;  %v1500_v18 = vld [vmem:[%s6641_s11 + $0x140] sm:$0xff]  ;;  %v1992_v19 = vunpack.c.h.s8.bf16 %v1468_v17  ;;  %v1989_v21 = vunpack.c.l.s8.bf16 %v1469_v11  ;;  %v1988_v25 = vunpack.c.l.s8.bf16 %v1468_v17 }
 0x13b   : > { %3274 = vmatprep.subr.bf16.mxu1 %v2065_v7  ;;  %3234 = vmatpush1.bf16.msra.mxu0 %v2000_v9  ;;  %v2057_v16 = vunpack.c.h.s8.bf16 %v1501_v12  ;;  %v2056_v20 = vunpack.c.h.s8.bf16 %v1500_v18  ;;  %v2053_v22 = vunpack.c.l.s8.bf16 %v1501_v12  ;;  %v1465_v23 = vld [vmem:[%s6641_s11 + $0x28] sm:$0xff]  ;;  %v2052_v26 = vunpack.c.l.s8.bf16 %v1500_v18  ;;  %v1464_v29 = vld [vmem:[%s6641_s11 + $0x20] sm:$0xff] }
 0x13c   : > { %3275 = vmatpush1.bf16.msra.mxu1 %v2064_v10  ;;  %3235 = vmatprep.subr.bf16.mxu0 %v1997_v4  ;;  %v1497_v24 = vld [vmem:[%s6641_s11 + $0x128] sm:$0xff]  ;;  %v1985_v27 = vunpack.c.h.s8.bf16 %v1465_v23  ;;  %v1496_v30 = vld [vmem:[%s6641_s11 + $0x120] sm:$0xff]  ;;  %v1984_v32 = vunpack.c.h.s8.bf16 %v1464_v29  ;;  %v1981_v34 = vunpack.c.l.s8.bf16 %v1465_v23  ;;  %v3007_v37 = vunpack.c.l.s4 %v5470_v36 }
 0x13d   : > { %3276 = vmatprep.subr.bf16.mxu1 %v2061_v6  ;;  %v2049_v28 = vunpack.c.h.s8.bf16 %v1497_v24  ;;  %v2048_v33 = vunpack.c.h.s8.bf16 %v1496_v30  ;;  %v2045_v35 = vunpack.c.l.s8.bf16 %v1497_v24  ;;  %v6656_v38 = vshrl.u32 %v3009_v31, 7  ;;  %v1461_v39 = vld [vmem:[%s6641_s11 + $0x8] sm:$0xff]  ;;  %v1460_v47 = vld [vmem:[%s6641_s11] sm:$0xff] }
 0x13e   : > { %v1493_v40 = vld [vmem:[%s6641_s11 + $0x108] sm:$0xff]  ;;  %v3008_v41 = vunpack.c.0.s8 %v3007_v37  ;;  %v1980_v42 = vunpack.c.l.s8.bf16 %v1464_v29  ;;  %v2044_v43 = vunpack.c.l.s8.bf16 %v1496_v30  ;;  %v1977_v45 = vunpack.c.h.s8.bf16 %v1461_v39  ;;  %v1492_v48 = vld [vmem:[%s6641_s11 + $0x100] sm:$0xff] }
 0x13f   : > { %3236 = vmatpush1.bf16.msra.mxu0 %v1996_v13  ;;  %v2041_v46 = vunpack.c.h.s8.bf16 %v1493_v40  ;;  %v1976_v51 = vunpack.c.h.s8.bf16 %v1460_v47  ;;  %v2040_v52 = vunpack.c.h.s8.bf16 %v1492_v48  ;;  %v1973_v53 = vunpack.c.l.s8.bf16 %v1461_v39  ;;  %v1489_v56 = vld [vmem:[%s6641_s11 + $0xe8] sm:$0xff]  ;;  %v1488_v63 = vld [vmem:[%s6641_s11 + $0xe0] sm:$0xff] }
 0x140   : > { %3277 = vmatpush1.bf16.msra.mxu1 %v2060_v14  ;;  %3237 = vmatprep.subr.bf16.mxu0 %v1993_v15  ;;  %v6666_v49 = vsub.s32 %v3008_v41, %v6656_v38  ;;  %v2037_v54 = vunpack.c.l.s8.bf16 %v1493_v40  ;;  %v1521_v57 = vld [vmem:[%s6641_s11 + $0x1e8] sm:$0xff]  ;;  %v1972_v59 = vunpack.c.l.s8.bf16 %v1460_v47  ;;  %v2036_v60 = vunpack.c.l.s8.bf16 %v1492_v48  ;;  %v1520_v0 = vld [vmem:[%s6641_s11 + $0x1e0] sm:$0xff] }
 0x141   : > { %3278 = vmatprep.subr.bf16.mxu1 %v2057_v16  ;;  %v2033_v61 = vunpack.c.h.s8.bf16 %v1489_v56  ;;  %v2097_v62 = vunpack.c.h.s8.bf16 %v1521_v57  ;;  %v2032_v2 = vunpack.c.h.s8.bf16 %v1488_v63  ;;  %v2096_v3 = vunpack.c.h.s8.bf16 %v1520_v0  ;;  %v1485_v6 = vld [vmem:[%s6641_s11 + $0xc8] sm:$0xff]  ;;  %v1484_v12 = vld [vmem:[%s6641_s11 + $0xc0] sm:$0xff] }
 0x142   : > { %v6670_v50 = vrot.slane %v6661_v44, %v6666_v49  ;;  %v2029_v4 = vunpack.c.l.s8.bf16 %v1489_v56  ;;  %v2093_v5 = vunpack.c.l.s8.bf16 %v1521_v57  ;;  %v1517_v7 = vld [vmem:[%s6641_s11 + $0x1c8] sm:$0xff]  ;;  %v2028_v8 = vunpack.c.l.s8.bf16 %v1488_v63  ;;  %v1516_v13 = vld [vmem:[%s6641_s11 + $0x1c0] sm:$0xff] }
 0x143   : > { %3238 = vmatpush1.bf16.msra.mxu0 %v1992_v19  ;;  %v2092_v9 = vunpack.c.l.s8.bf16 %v1520_v0  ;;  %v2025_v10 = vunpack.c.h.s8.bf16 %v1485_v6  ;;  %v2089_v11 = vunpack.c.h.s8.bf16 %v1517_v7  ;;  %v2024_v14 = vunpack.c.h.s8.bf16 %v1484_v12  ;;  %v1481_v18 = vld [vmem:[%s6641_s11 + $0xa8] sm:$0xff]  ;;  %v1480_v24 = vld [vmem:[%s6641_s11 + $0xa0] sm:$0xff] }
 0x144   : > { %3279 = vmatpush1.bf16.msra.mxu1 %v2056_v20  ;;  %3239 = vmatprep.subr.bf16.mxu0 %v1989_v21  ;;  %v3020_v55 = vcombine.high %v6670_v50, %v6670_v50  ;;  %v2088_v15 = vunpack.c.h.s8.bf16 %v1516_v13  ;;  %v2021_v16 = vunpack.c.l.s8.bf16 %v1485_v6  ;;  %v2085_v17 = vunpack.c.l.s8.bf16 %v1517_v7  ;;  %v1513_v19 = vld [vmem:[%s6641_s11 + $0x1a8] sm:$0xff]  ;;  %v1476_v37 = vld [vmem:[%s6641_s11 + $0x80] sm:$0xff] }
 0x145   : > { %3280 = vmatprep.subr.bf16.mxu1 %v2053_v22  ;;  %v2020_v20 = vunpack.c.l.s8.bf16 %v1484_v12  ;;  %v2084_v21 = vunpack.c.l.s8.bf16 %v1516_v13  ;;  %v2017_v22 = vunpack.c.h.s8.bf16 %v1481_v18  ;;  %v2081_v23 = vunpack.c.h.s8.bf16 %v1513_v19  ;;  %v1477_v30 = vld [vmem:[%s6641_s11 + $0x88] sm:$0xff]  ;;  %v1508_v39 = vld [vmem:[%s6641_s11 + $0x180] sm:$0xff] }
 0x146   : > { %v6677_v58 = vrot.slane %v3020_v55, %v6666_v49  ;;  %v2077_v29 = vunpack.c.l.s8.bf16 %v1513_v19  ;;  %v1509_v31 = vld [vmem:[%s6641_s11 + $0x188] sm:$0xff]  ;;  %v2008_v41 = vunpack.c.h.s8.bf16 %v1476_v37  ;;  %v6710_v48 = vrot.slane %v6670_v50, %v6666_v49  ;;  %v1536_v55 = vld [vmem:[%s6641_s11 + $0x260] sm:$0xff] }
 0x147   : > { %3240 = vmatpush1.bf16.msra.mxu0 %v1988_v25  ;;  %v1512_v25 = vld [vmem:[%s6641_s11 + $0x1a0] sm:$0xff]  ;;  %v2073_v36 = vunpack.c.h.s8.bf16 %v1509_v31  ;;  %v2128_v50 = vunpack.c.h.s8.bf16 %v1536_v55  ;;  %v1533_v63 = vld [vmem:[%s6641_s11 + $0x248] sm:$0xff] }
 0x148   : > { %3281 = vmatpush1.bf16.msra.mxu1 %v2052_v26  ;;  %3241 = vmatprep.subr.bf16.mxu0 %v1985_v27  ;;  %v6683_v1 = vcombine.high %v6677_v58, %v6677_v58  ;;  %v2016_v26 = vunpack.c.h.s8.bf16 %v1480_v24  ;;  %v2080_v27 = vunpack.c.h.s8.bf16 %v1512_v25  ;;  %v1568_v56 = vld [vmem:[%s6641_s11 + $0x360] sm:$0xff]  ;;  %v1565_v0 = vld [vmem:[%s6641_s11 + $0x348] sm:$0xff] }
 0x149   : > { %3282 = vmatprep.subr.bf16.mxu1 %v2049_v28  ;;  %3265 = vmatprep.mubr.bf16.mxu0 %v6677_v58  ;;  %v2013_v28 = vunpack.c.l.s8.bf16 %v1481_v18  ;;  %v2185_v6 = vunpack.c.h.s8.bf16 %v1565_v0  ;;  %v1532_v7 = vld [vmem:[%s6641_s11 + $0x240] sm:$0xff]  ;;  %v2181_v12 = vunpack.c.l.s8.bf16 %v1565_v0  ;;  %v1529_v13 = vld [vmem:[%s6641_s11 + $0x228] sm:$0xff] }
 0x14a   : > { %3306 = vmatprep.mubr.bf16.mxu1 %v6683_v1  ;;  %v1528_v19 = vld [vmem:[%s6641_s11 + $0x220] sm:$0xff] }
 0x14b   : > { %3242 = vmatpush1.bf16.msra.mxu0 %v1984_v32  ;;  %v3005_v32 = vcombine.high %v6661_v44, %v6661_v44  ;;  %v2069_v44 = vunpack.c.l.s8.bf16 %v1509_v31  ;;  %v1524_v31 = vld [vmem:[%s6641_s11 + $0x200] sm:$0xff] }
 0x14c   : > { %3283 = vmatpush1.bf16.msra.mxu1 %v2048_v33  ;;  %3243 = vmatprep.subr.bf16.mxu0 %v1981_v34  ;;  %v2012_v33 = vunpack.c.l.s8.bf16 %v1480_v24  ;;  %v2076_v34 = vunpack.c.l.s8.bf16 %v1512_v25  ;;  %v1525_v25 = vld [vmem:[%s6641_s11 + $0x208] sm:$0xff] }
 0x14d   : > { %3284 = vmatprep.subr.bf16.mxu1 %v2045_v35  ;;  %v2009_v35 = vunpack.c.h.s8.bf16 %v1477_v30  ;;  %v6702_v40 = vrot.slane %v3005_v32, %v6666_v49  ;;  %v1556_v32 = vld [vmem:[%s6641_s11 + $0x300] sm:$0xff] }
 0x14f   : > { %3244 = vmatpush1.bf16.msra.mxu0 %v1980_v42  ;;  %v2072_v42 = vunpack.c.h.s8.bf16 %v1508_v39  ;;  %v3021_v47 = vcombine.high %v6702_v40, %v6702_v40 }
 0x150   : > { %3285 = vmatpush1.bf16.msra.mxu1 %v2044_v43  ;;  %3245 = vmatprep.subr.bf16.mxu0 %v1977_v45  ;;  %v2005_v43 = vunpack.c.l.s8.bf16 %v1477_v30  ;;  %v1537_v45 = vld [vmem:[%s6641_s11 + $0x268] sm:$0xff] }
 0x151   : > { %3286 = vmatprep.subr.bf16.mxu1 %v2041_v46  ;;  %v1569_v46 = vld [vmem:[%s6641_s11 + $0x368] sm:$0xff]  ;;  %v6715_v57 = vrot.slane %v3021_v47, %v6666_v49 }
 0x153   : > { %3246 = vmatpush1.bf16.msra.mxu0 %v1976_v51  ;;  %v2004_v51 = vunpack.c.l.s8.bf16 %v1476_v37  ;;  %v1553_v37 = vld [vmem:[%s6641_s11 + $0x2e8] sm:$0xff] }
 0x154   : > { %3287 = vmatpush1.bf16.msra.mxu1 %v2040_v52  ;;  %3247 = vmatprep.subr.bf16.mxu0 %v1973_v53  ;;  %v2068_v52 = vunpack.c.l.s8.bf16 %v1508_v39  ;;  %v2129_v53 = vunpack.c.h.s8.bf16 %v1537_v45  ;;  %v1585_v39 = vld [vmem:[%s6641_s11 + $0x3e8] sm:$0xff] }
 0x155   : > { %3288 = vmatprep.subr.bf16.mxu1 %v2037_v54  ;;  %v2193_v54 = vunpack.c.h.s8.bf16 %v1569_v46 }
 0x157   : > { %3248 = vmatpush1.bf16.msra.mxu0 %v1972_v59  ;;  %v6719_v59 = vcombine.high %v6710_v48, %v6710_v48 }
 0x158   : > { %3289 = vmatpush1.bf16.msra.mxu1 %v2036_v60  ;;  %3249 = vmatprep.subr.bf16.mxu0 %v2033_v61  ;;  %v2192_v60 = vunpack.c.h.s8.bf16 %v1568_v56  ;;  %v2125_v61 = vunpack.c.l.s8.bf16 %v1537_v45  ;;  %v1552_v45 = vld [vmem:[%s6641_s11 + $0x2e0] sm:$0xff] }
 0x159   : > { %3290 = vmatprep.subr.bf16.mxu1 %v2097_v62  ;;  %v2189_v62 = vunpack.c.l.s8.bf16 %v1569_v46  ;;  %v1584_v46 = vld [vmem:[%s6641_s11 + $0x3e0] sm:$0xff]  ;;  %v2160_v47 = vunpack.c.h.s8.bf16 %v1552_v45 }
 0x15b   : > { %3250 = vmatpush2.bf16.msra.mxu0 %v2032_v2  ;;  %v6725_v2 = vcombine.high %v6715_v57, %v6715_v57 }
 0x15c   : > { %3291 = vmatpush2.bf16.msra.mxu1 %v2096_v3  ;;  %3251 = vmatprep.subr.bf16.mxu0 %v2029_v4  ;;  %v2124_v3 = vunpack.c.l.s8.bf16 %v1536_v55  ;;  %v2188_v4 = vunpack.c.l.s8.bf16 %v1568_v56  ;;  %v1581_v55 = vld [vmem:[%s6641_s11 + $0x3c8] sm:$0xff]  ;;  %v2156_v56 = vunpack.c.l.s8.bf16 %v1552_v45 }
 0x15d   : > { %3292 = vmatprep.subr.bf16.mxu1 %v2093_v5  ;;  %v2121_v5 = vunpack.c.h.s8.bf16 %v1533_v63 }
 0x15f   : > { %3252 = vmatpush2.bf16.msra.mxu0 %v2028_v8  ;;  %v1564_v8 = vld [vmem:[%s6641_s11 + $0x340] sm:$0xff] }
 0x160   : > { %3293 = vmatpush2.bf16.msra.mxu1 %v2092_v9  ;;  %3253 = vmatprep.subr.bf16.mxu0 %v2025_v10  ;;  %v2120_v9 = vunpack.c.h.s8.bf16 %v1532_v7  ;;  %v2184_v10 = vunpack.c.h.s8.bf16 %v1564_v8 }
 0x161   : > { %3294 = vmatprep.subr.bf16.mxu1 %v2089_v11  ;;  %v2117_v11 = vunpack.c.l.s8.bf16 %v1533_v63  ;;  %v1580_v63 = vld [vmem:[%s6641_s11 + $0x3c0] sm:$0xff] }
 0x163   : > { %3254 = vmatpush2.bf16.msra.mxu0 %v2024_v14  ;;  %v1561_v14 = vld [vmem:[%s6641_s11 + $0x328] sm:$0xff] }
 0x164   : > { %3295 = vmatpush2.bf16.msra.mxu1 %v2088_v15  ;;  %3255 = vmatprep.subr.bf16.mxu0 %v2021_v16  ;;  %v2116_v15 = vunpack.c.l.s8.bf16 %v1532_v7  ;;  %v2180_v16 = vunpack.c.l.s8.bf16 %v1564_v8  ;;  %v2177_v18 = vunpack.c.h.s8.bf16 %v1561_v14  ;;  %v2173_v24 = vunpack.c.l.s8.bf16 %v1561_v14  ;;  %v1577_v7 = vld [vmem:[%s6641_s11 + $0x3a8] sm:$0xff] }
 0x165   : > { %3296 = vmatprep.subr.bf16.mxu1 %v2085_v17  ;;  %v2113_v17 = vunpack.c.h.s8.bf16 %v1529_v13 }
 0x167   : > { %3256 = vmatpush2.bf16.msra.mxu0 %v2020_v20  ;;  %v1560_v20 = vld [vmem:[%s6641_s11 + $0x320] sm:$0xff] }
 0x168   : > { %3297 = vmatpush2.bf16.msra.mxu1 %v2084_v21  ;;  %3257 = vmatprep.subr.bf16.mxu0 %v2017_v22  ;;  %v2112_v21 = vunpack.c.h.s8.bf16 %v1528_v19  ;;  %v2176_v22 = vunpack.c.h.s8.bf16 %v1560_v20 }
 0x169   : > { %3298 = vmatprep.subr.bf16.mxu1 %v2081_v23  ;;  %v2109_v23 = vunpack.c.l.s8.bf16 %v1529_v13  ;;  %v1576_v13 = vld [vmem:[%s6641_s11 + $0x3a0] sm:$0xff] }
 0x16b   : > { %3258 = vmatpush2.bf16.msra.mxu0 %v2016_v26  ;;  %v1557_v26 = vld [vmem:[%s6641_s11 + $0x308] sm:$0xff] }
 0x16c   : > { %3299 = vmatpush2.bf16.msra.mxu1 %v2080_v27  ;;  %3259 = vmatprep.subr.bf16.mxu0 %v2013_v28  ;;  %v2108_v27 = vunpack.c.l.s8.bf16 %v1528_v19  ;;  %v2172_v28 = vunpack.c.l.s8.bf16 %v1560_v20  ;;  %v2169_v30 = vunpack.c.h.s8.bf16 %v1557_v26  ;;  %v1573_v19 = vld [vmem:[%s6641_s11 + $0x388] sm:$0xff]  ;;  %v6756_v20 = vld [vmem:[%s6609_s19 + $0x8] sm:$0xff] }
 0x16d   : > { %3300 = vmatprep.subr.bf16.mxu1 %v2077_v29  ;;  %v2105_v29 = vunpack.c.h.s8.bf16 %v1525_v25 }
 0x16f   : > { %3260 = vmatpush2.bf16.msra.mxu0 %v2012_v33  ;;  %v2104_v33 = vunpack.c.h.s8.bf16 %v1524_v31 }
 0x170   : > { %3301 = vmatpush2.bf16.msra.mxu1 %v2076_v34  ;;  %3261 = vmatprep.subr.bf16.mxu0 %v2009_v35  ;;  %v2168_v34 = vunpack.c.h.s8.bf16 %v1556_v32  ;;  %v2101_v35 = vunpack.c.l.s8.bf16 %v1525_v25  ;;  %v1540_v25 = vld [vmem:[%s6641_s11 + $0x280] sm:$0xff] }
 0x171   : > { %3302 = vmatprep.subr.bf16.mxu1 %v2073_v36  ;;  %v2165_v36 = vunpack.c.l.s8.bf16 %v1557_v26  ;;  %v1572_v26 = vld [vmem:[%s6641_s11 + $0x380] sm:$0xff] }
 0x173   : > { %3262 = vmatpush2.bf16.msra.mxu0 %v2008_v41  ;;  %v2100_v41 = vunpack.c.l.s8.bf16 %v1524_v31  ;;  %v2197_v31 = vunpack.c.l.s8.bf16 %v1573_v19 }
 0x174   : > { %3303 = vmatpush2.bf16.msra.mxu1 %v2072_v42  ;;  %3263 = vmatprep.subr.bf16.mxu0 %v2005_v43  ;;  %v2164_v42 = vunpack.c.l.s8.bf16 %v1556_v32  ;;  %v2161_v43 = vunpack.c.h.s8.bf16 %v1553_v37  ;;  %v1601_v32 = vld [vmem:[%s6641_s11 + $0x468] sm:$0xff] }
 0x175   : > { %3304 = vmatprep.subr.bf16.mxu1 %v2069_v44  ;;  %v2225_v44 = vunpack.c.h.s8.bf16 %v1585_v39 }
 0x177   : > { %3264 = vmatpush2.bf16.msra.mxu0 %v2004_v51  ;;  %v2224_v51 = vunpack.c.h.s8.bf16 %v1584_v46 }
 0x178   : > { %3305 = vmatpush2.bf16.msra.mxu1 %v2068_v52  ;;  %3315 = vmatprep.subr.bf16.mxu0 %v2129_v53  ;;  %v2157_v52 = vunpack.c.l.s8.bf16 %v1553_v37  ;;  %v2221_v53 = vunpack.c.l.s8.bf16 %v1585_v39  ;;  %v2196_v37 = vunpack.c.l.s8.bf16 %v1572_v26  ;;  %v2257_v39 = vunpack.c.h.s8.bf16 %v1601_v32 }
 0x179   : > { %3356 = vmatprep.subr.bf16.mxu1 %v2193_v54  ;;  %v1549_v54 = vld [vmem:[%s6641_s11 + $0x2c8] sm:$0xff] }
 0x17a   : > { %3266 = vmatmul.mubr.bf16.vlgmr.msra.gmra.mxu0 %v6710_v48 }
 0x17b   : > { %3307 = vmatmul.mubr.bf16.vlgmr.msra.gmra.mxu1 %v6719_v59  ;;  %3316 = vmatpush1.bf16.msra.mxu0 %v2128_v50  ;;  %v2220_v50 = vunpack.c.l.s8.bf16 %v1584_v46 }
 0x17c   : > { %3357 = vmatpush1.bf16.msra.mxu1 %v2192_v60  ;;  %3317 = vmatprep.subr.bf16.mxu0 %v2125_v61  ;;  %v2153_v60 = vunpack.c.h.s8.bf16 %v1549_v54  ;;  %v2217_v61 = vunpack.c.h.s8.bf16 %v1581_v55 }
 0x17d   : > { %3358 = vmatprep.subr.bf16.mxu1 %v2189_v62  ;;  %3347 = vmatprep.mubr.bf16.mxu0 %v6715_v57  ;;  %v1548_v62 = vld [vmem:[%s6641_s11 + $0x2c0] sm:$0xff] }
 0x17e   : > { %3388 = vmatprep.mubr.bf16.mxu1 %v6725_v2  ;;  %v2152_v0 = vunpack.c.h.s8.bf16 %v1548_v62  ;;  %v2148_v8 = vunpack.c.l.s8.bf16 %v1548_v62  ;;  %v1628_v62 = vld [vmem:[%s6641_s11 + $0x540] sm:$0xff] }
 0x17f   : > { %3318 = vmatpush1.bf16.msra.mxu0 %v2124_v3  ;;  %v2216_v3 = vunpack.c.h.s8.bf16 %v1580_v63 }
 0x180   : > { %3359 = vmatpush1.bf16.msra.mxu1 %v2188_v4  ;;  %3319 = vmatprep.subr.bf16.mxu0 %v2121_v5  ;;  %v2149_v4 = vunpack.c.l.s8.bf16 %v1549_v54  ;;  %v2213_v5 = vunpack.c.l.s8.bf16 %v1581_v55 }
 0x181   : > { %3360 = vmatprep.subr.bf16.mxu1 %v2185_v6  ;;  %v1545_v6 = vld [vmem:[%s6641_s11 + $0x2a8] sm:$0xff] }
 0x183   : > { %3320 = vmatpush1.bf16.msra.mxu0 %v2120_v9  ;;  %v2212_v9 = vunpack.c.l.s8.bf16 %v1580_v63 }
 0x184   : > { %3361 = vmatpush1.bf16.msra.mxu1 %v2184_v10  ;;  %3321 = vmatprep.subr.bf16.mxu0 %v2117_v11  ;;  %v2145_v10 = vunpack.c.h.s8.bf16 %v1545_v6  ;;  %v2209_v11 = vunpack.c.h.s8.bf16 %v1577_v7 }
 0x185   : > { %3362 = vmatprep.subr.bf16.mxu1 %v2181_v12  ;;  %v1544_v12 = vld [vmem:[%s6641_s11 + $0x2a0] sm:$0xff] }
 0x186   : > { %v2144_v14 = vunpack.c.h.s8.bf16 %v1544_v12 }
 0x187   : > { %3322 = vmatpush1.bf16.msra.mxu0 %v2116_v15  ;;  %v2208_v15 = vunpack.c.h.s8.bf16 %v1576_v13 }
 0x188   : > { %3363 = vmatpush1.bf16.msra.mxu1 %v2180_v16  ;;  %3323 = vmatprep.subr.bf16.mxu0 %v2113_v17  ;;  %v2141_v16 = vunpack.c.l.s8.bf16 %v1545_v6  ;;  %v2205_v17 = vunpack.c.l.s8.bf16 %v1577_v7  ;;  %v1625_v6 = vld [vmem:[%s6641_s11 + $0x528] sm:$0xff] }
 0x189   : > { %3364 = vmatprep.subr.bf16.mxu1 %v2177_v18  ;;  %v1541_v18 = vld [vmem:[%s6641_s11 + $0x288] sm:$0xff] }
 0x18b   : > { %3324 = vmatpush1.bf16.msra.mxu0 %v2112_v21  ;;  %v2140_v21 = vunpack.c.l.s8.bf16 %v1544_v12  ;;  %v1624_v12 = vld [vmem:[%s6641_s11 + $0x520] sm:$0xff] }
 0x18c   : > { %3365 = vmatpush1.bf16.msra.mxu1 %v2176_v22  ;;  %3325 = vmatprep.subr.bf16.mxu0 %v2109_v23  ;;  %v2204_v22 = vunpack.c.l.s8.bf16 %v1576_v13  ;;  %v2137_v23 = vunpack.c.h.s8.bf16 %v1541_v18 }
 0x18d   : > { %3366 = vmatprep.subr.bf16.mxu1 %v2173_v24  ;;  %v2201_v24 = vunpack.c.h.s8.bf16 %v1573_v19 }
 0x18f   : > { %3326 = vmatpush1.bf16.msra.mxu0 %v2108_v27  ;;  %v6762_v27 = vrot.slane %v6756_v20, %v6666_v49 }
 0x190   : > { %3367 = vmatpush1.bf16.msra.mxu1 %v2172_v28  ;;  %3327 = vmatprep.subr.bf16.mxu0 %v2105_v29  ;;  %v2136_v28 = vunpack.c.h.s8.bf16 %v1540_v25  ;;  %v2200_v29 = vunpack.c.h.s8.bf16 %v1572_v26 }
 0x191   : > { %3368 = vmatprep.subr.bf16.mxu1 %v2169_v30  ;;  %v2133_v30 = vunpack.c.l.s8.bf16 %v1541_v18  ;;  %v1621_v18 = vld [vmem:[%s6641_s11 + $0x508] sm:$0xff] }
 0x193   : > { %3328 = vmatpush1.bf16.msra.mxu0 %v2104_v33  ;;  %v1633_v33 = vld [vmem:[%s6641_s11 + $0x568] sm:$0xff] }
 0x194   : > { %3369 = vmatpush1.bf16.msra.mxu1 %v2168_v34  ;;  %3329 = vmatprep.subr.bf16.mxu0 %v2101_v35  ;;  %v3069_v34 = vcombine.high %v6762_v27, %v6762_v27  ;;  %v6770_v35 = vrot.slane %v6702_v40, %v6666_v49 }
 0x195   : > { %3370 = vmatprep.subr.bf16.mxu1 %v2165_v36  ;;  %v2132_v36 = vunpack.c.l.s8.bf16 %v1540_v25  ;;  %v1620_v25 = vld [vmem:[%s6641_s11 + $0x500] sm:$0xff] }
 0x196   : > { %v6779_v45 = vcombine.high %v6770_v35, %v6770_v35 }
 0x197   : > { %3330 = vmatpush1.bf16.msra.mxu0 %v2100_v41  ;;  %v2321_v41 = vunpack.c.h.s8.bf16 %v1633_v33 }
 0x198   : > { %3371 = vmatpush1.bf16.msra.mxu1 %v2164_v42  ;;  %3331 = vmatprep.subr.bf16.mxu0 %v2161_v43  ;;  %v1600_v42 = vld [vmem:[%s6641_s11 + $0x460] sm:$0xff] }
 0x199   : > { %3372 = vmatprep.subr.bf16.mxu1 %v2225_v44  ;;  %v1632_v43 = vld [vmem:[%s6641_s11 + $0x560] sm:$0xff]  ;;  %v6775_v44 = vrot.slane %v3069_v34, %v6666_v49  ;;  %v2256_v40 = vunpack.c.h.s8.bf16 %v1600_v42  ;;  %v2252_v55 = vunpack.c.l.s8.bf16 %v1600_v42  ;;  %v2292_v34 = vunpack.c.l.s8.bf16 %v1620_v25 }
 0x19a   : > { %v2320_v46 = vunpack.c.h.s8.bf16 %v1632_v43 }
 0x19b   : > { %3332 = vmatpush2.bf16.msra.mxu0 %v2160_v47  ;;  %v2253_v47 = vunpack.c.l.s8.bf16 %v1601_v32  ;;  %v6785_v54 = vcombine.high %v6775_v44, %v6775_v44  ;;  %v1649_v32 = vld [vmem:[%s6641_s11 + $0x5e8] sm:$0xff] }
 0x19c   : > { %3373 = vmatpush2.bf16.msra.mxu1 %v2224_v51  ;;  %3333 = vmatprep.subr.bf16.mxu0 %v2157_v52  ;;  %v2317_v51 = vunpack.c.l.s8.bf16 %v1633_v33  ;;  %v1597_v52 = vld [vmem:[%s6641_s11 + $0x448] sm:$0xff] }
 0x19d   : > { %3374 = vmatprep.subr.bf16.mxu1 %v2221_v53  ;;  %v1629_v53 = vld [vmem:[%s6641_s11 + $0x548] sm:$0xff] }
 0x19f   : > { %3334 = vmatpush2.bf16.msra.mxu0 %v2156_v56  ;;  %v2316_v56 = vunpack.c.l.s8.bf16 %v1632_v43 }
 0x1a0   : > { %3375 = vmatpush2.bf16.msra.mxu1 %v2220_v50  ;;  %3335 = vmatprep.subr.bf16.mxu0 %v2153_v60  ;;  %v2249_v50 = vunpack.c.h.s8.bf16 %v1597_v52  ;;  %v2313_v60 = vunpack.c.h.s8.bf16 %v1629_v53 }
 0x1a1   : > { %3376 = vmatprep.subr.bf16.mxu1 %v2217_v61  ;;  %v1596_v61 = vld [vmem:[%s6641_s11 + $0x440] sm:$0xff] }
 0x1a2   : > { %v2248_v63 = vunpack.c.h.s8.bf16 %v1596_v61  ;;  %v2244_v7 = vunpack.c.l.s8.bf16 %v1596_v61 }
 0x1a3   : > { %3336 = vmatpush2.bf16.msra.mxu0 %v2152_v0  ;;  %v2312_v0 = vunpack.c.h.s8.bf16 %v1628_v62 }
 0x1a4   : > { %3377 = vmatpush2.bf16.msra.mxu1 %v2216_v3  ;;  %3337 = vmatprep.subr.bf16.mxu0 %v2149_v4  ;;  %v2245_v3 = vunpack.c.l.s8.bf16 %v1597_v52  ;;  %v2309_v4 = vunpack.c.l.s8.bf16 %v1629_v53 }
 0x1a5   : > { %3378 = vmatprep.subr.bf16.mxu1 %v2213_v5  ;;  %v1593_v5 = vld [vmem:[%s6641_s11 + $0x428] sm:$0xff] }
 0x1a7   : > { %3338 = vmatpush2.bf16.msra.mxu0 %v2148_v8  ;;  %v2308_v8 = vunpack.c.l.s8.bf16 %v1628_v62 }
 0x1a8   : > { %3379 = vmatpush2.bf16.msra.mxu1 %v2212_v9  ;;  %3339 = vmatprep.subr.bf16.mxu0 %v2145_v10  ;;  %v2241_v9 = vunpack.c.h.s8.bf16 %v1593_v5  ;;  %v2305_v10 = vunpack.c.h.s8.bf16 %v1625_v6 }
 0x1a9   : > { %3380 = vmatprep.subr.bf16.mxu1 %v2209_v11  ;;  %v1592_v11 = vld [vmem:[%s6641_s11 + $0x420] sm:$0xff] }
 0x1aa   : > { %v2240_v13 = vunpack.c.h.s8.bf16 %v1592_v11  ;;  %v2236_v19 = vunpack.c.l.s8.bf16 %v1592_v11 }
 0x1ab   : > { %3340 = vmatpush2.bf16.msra.mxu0 %v2144_v14  ;;  %v2304_v14 = vunpack.c.h.s8.bf16 %v1624_v12 }
 0x1ac   : > { %3381 = vmatpush2.bf16.msra.mxu1 %v2208_v15  ;;  %3341 = vmatprep.subr.bf16.mxu0 %v2141_v16  ;;  %v2237_v15 = vunpack.c.l.s8.bf16 %v1593_v5  ;;  %v2301_v16 = vunpack.c.l.s8.bf16 %v1625_v6 }
 0x1ad   : > { %3382 = vmatprep.subr.bf16.mxu1 %v2205_v17  ;;  %v1589_v17 = vld [vmem:[%s6641_s11 + $0x408] sm:$0xff] }
 0x1af   : > { %3342 = vmatpush2.bf16.msra.mxu0 %v2140_v21  ;;  %v2300_v21 = vunpack.c.l.s8.bf16 %v1624_v12 }
 0x1b0   : > { %3383 = vmatpush2.bf16.msra.mxu1 %v2204_v22  ;;  %3343 = vmatprep.subr.bf16.mxu0 %v2137_v23  ;;  %v2233_v22 = vunpack.c.h.s8.bf16 %v1589_v17  ;;  %v2297_v23 = vunpack.c.h.s8.bf16 %v1621_v18 }
 0x1b1   : > { %3384 = vmatprep.subr.bf16.mxu1 %v2201_v24  ;;  %v1588_v24 = vld [vmem:[%s6641_s11 + $0x400] sm:$0xff] }
 0x1b2   : > { %v2232_v26 = vunpack.c.h.s8.bf16 %v1588_v24  ;;  %v2228_v33 = vunpack.c.l.s8.bf16 %v1588_v24  ;;  %v1636_v24 = vld [vmem:[%s6641_s11 + $0x580] sm:$0xff] }
 0x1b3   : > { %3344 = vmatpush2.bf16.msra.mxu0 %v2136_v28  ;;  %v2296_v28 = vunpack.c.h.s8.bf16 %v1620_v25 }
 0x1b4   : > { %3385 = vmatpush2.bf16.msra.mxu1 %v2200_v29  ;;  %3345 = vmatprep.subr.bf16.mxu0 %v2133_v30  ;;  %v2229_v29 = vunpack.c.l.s8.bf16 %v1589_v17  ;;  %v2293_v30 = vunpack.c.l.s8.bf16 %v1621_v18  ;;  %v3054_v17 = vcombine.high %v6756_v20, %v6756_v20 }
 0x1b5   : > { %3386 = vmatprep.subr.bf16.mxu1 %v2197_v31  ;;  %v1617_v31 = vld [vmem:[%s6641_s11 + $0x4e8] sm:$0xff] }
 0x1b6   : > { %v6820_v25 = vrot.slane %v3054_v17, %v6666_v49 }
 0x1b7   : > { %3346 = vmatpush2.bf16.msra.mxu0 %v2132_v36  ;;  %v2289_v36 = vunpack.c.h.s8.bf16 %v1617_v31 }
 0x1b8   : > { %3387 = vmatpush2.bf16.msra.mxu1 %v2196_v37  ;;  %3397 = vmatprep.subr.bf16.mxu0 %v2257_v39  ;;  %v2353_v37 = vunpack.c.h.s8.bf16 %v1649_v32  ;;  %v1616_v39 = vld [vmem:[%s6641_s11 + $0x4e0] sm:$0xff] }
 0x1b9   : > { %3438 = vmatprep.subr.bf16.mxu1 %v2321_v41  ;;  %v1648_v41 = vld [vmem:[%s6641_s11 + $0x5e0] sm:$0xff]  ;;  %v2288_v42 = vunpack.c.h.s8.bf16 %v1616_v39  ;;  %v2284_v52 = vunpack.c.l.s8.bf16 %v1616_v39 }
 0x1ba   : > { %3348 = vmatmul.mubr.bf16.vlgmr.msra.gmra.mxu0 %v6770_v35  ;;  %v2352_v43 = vunpack.c.h.s8.bf16 %v1648_v41  ;;  %v2348_v53 = vunpack.c.l.s8.bf16 %v1648_v41  ;;  %v1664_v41 = vld [vmem:[%s6641_s11 + $0x660] sm:$0xff] }
 0x1bb   : > { %3389 = vmatmul.mubr.bf16.vlgmr.msra.gmra.mxu1 %v6779_v45  ;;  %3398 = vmatpush1.bf16.msra.mxu0 %v2256_v40  ;;  %v2285_v40 = vunpack.c.l.s8.bf16 %v1617_v31  ;;  %v1697_v31 = vld [vmem:[%s6641_s11 + $0x768] sm:$0xff] }
 0x1bc   : > { %3439 = vmatpush1.bf16.msra.mxu1 %v2320_v46  ;;  %3399 = vmatprep.subr.bf16.mxu0 %v2253_v47  ;;  %v2349_v46 = vunpack.c.l.s8.bf16 %v1649_v32  ;;  %v1613_v47 = vld [vmem:[%s6641_s11 + $0x4c8] sm:$0xff]  ;;  %v3070_v32 = vcombine.high %v6820_v25, %v6820_v25  ;;  %v2449_v39 = vunpack.c.h.s8.bf16 %v1697_v31 }
 0x1bd   : > { %3440 = vmatprep.subr.bf16.mxu1 %v2317_v51  ;;  %3429 = vmatprep.mubr.bf16.mxu0 %v6775_v44  ;;  %v1645_v51 = vld [vmem:[%s6641_s11 + $0x5c8] sm:$0xff] }
 0x1be   : > { %3470 = vmatprep.mubr.bf16.mxu1 %v6785_v54 }
 0x1bf   : > { %3400 = vmatpush1.bf16.msra.mxu0 %v2252_v55  ;;  %v2281_v55 = vunpack.c.h.s8.bf16 %v1613_v47 }
 0x1c0   : > { %3441 = vmatpush1.bf16.msra.mxu1 %v2316_v56  ;;  %3401 = vmatprep.subr.bf16.mxu0 %v2249_v50  ;;  %v2345_v56 = vunpack.c.h.s8.bf16 %v1645_v51  ;;  %v1612_v50 = vld [vmem:[%s6641_s11 + $0x4c0] sm:$0xff] }
 0x1c1   : > { %3442 = vmatprep.subr.bf16.mxu1 %v2313_v60  ;;  %v1644_v60 = vld [vmem:[%s6641_s11 + $0x5c0] sm:$0xff]  ;;  %v2280_v61 = vunpack.c.h.s8.bf16 %v1612_v50  ;;  %v2276_v5 = vunpack.c.l.s8.bf16 %v1612_v50 }
 0x1c2   : > { %v2344_v62 = vunpack.c.h.s8.bf16 %v1644_v60  ;;  %v2340_v6 = vunpack.c.l.s8.bf16 %v1644_v60 }
 0x1c3   : > { %3402 = vmatpush1.bf16.msra.mxu0 %v2248_v63  ;;  %v2277_v63 = vunpack.c.l.s8.bf16 %v1613_v47 }
 0x1c4   : > { %3443 = vmatpush1.bf16.msra.mxu1 %v2312_v0  ;;  %3403 = vmatprep.subr.bf16.mxu0 %v2245_v3  ;;  %v2341_v0 = vunpack.c.l.s8.bf16 %v1645_v51  ;;  %v1609_v3 = vld [vmem:[%s6641_s11 + $0x4a8] sm:$0xff]  ;;  %v2445_v51 = vunpack.c.l.s8.bf16 %v1697_v31 }
 0x1c5   : > { %3444 = vmatprep.subr.bf16.mxu1 %v2309_v4  ;;  %v1641_v4 = vld [vmem:[%s6641_s11 + $0x5a8] sm:$0xff] }
 0x1c7   : > { %3404 = vmatpush1.bf16.msra.mxu0 %v2244_v7  ;;  %v2273_v7 = vunpack.c.h.s8.bf16 %v1609_v3 }
 0x1c8   : > { %3445 = vmatpush1.bf16.msra.mxu1 %v2308_v8  ;;  %3405 = vmatprep.subr.bf16.mxu0 %v2241_v9  ;;  %v2337_v8 = vunpack.c.h.s8.bf16 %v1641_v4  ;;  %v1608_v9 = vld [vmem:[%s6641_s11 + $0x4a0] sm:$0xff] }
 0x1c9   : > { %3446 = vmatprep.subr.bf16.mxu1 %v2305_v10  ;;  %v1640_v10 = vld [vmem:[%s6641_s11 + $0x5a0] sm:$0xff]  ;;  %v2272_v11 = vunpack.c.h.s8.bf16 %v1608_v9  ;;  %v2268_v18 = vunpack.c.l.s8.bf16 %v1608_v9 }
 0x1ca   : > { %v2336_v12 = vunpack.c.h.s8.bf16 %v1640_v10 }
 0x1cb   : > { %3406 = vmatpush1.bf16.msra.mxu0 %v2240_v13  ;;  %v2269_v13 = vunpack.c.l.s8.bf16 %v1609_v3 }
 0x1cc   : > { %3447 = vmatpush1.bf16.msra.mxu1 %v2304_v14  ;;  %3407 = vmatprep.subr.bf16.mxu0 %v2237_v15  ;;  %v2333_v14 = vunpack.c.l.s8.bf16 %v1641_v4  ;;  %v1605_v15 = vld [vmem:[%s6641_s11 + $0x488] sm:$0xff] }
 0x1cd   : > { %3448 = vmatprep.subr.bf16.mxu1 %v2301_v16  ;;  %v1637_v16 = vld [vmem:[%s6641_s11 + $0x588] sm:$0xff]  ;;  %v2261_v20 = vunpack.c.l.s8.bf16 %v1605_v15 }
 0x1cf   : > { %3408 = vmatpush1.bf16.msra.mxu0 %v2236_v19  ;;  %v2332_v19 = vunpack.c.l.s8.bf16 %v1640_v10 }
 0x1d0   : > { %3449 = vmatpush1.bf16.msra.mxu1 %v2300_v21  ;;  %3409 = vmatprep.subr.bf16.mxu0 %v2233_v22  ;;  %v2265_v21 = vunpack.c.h.s8.bf16 %v1605_v15  ;;  %v2329_v22 = vunpack.c.h.s8.bf16 %v1637_v16 }
 0x1d1   : > { %3450 = vmatprep.subr.bf16.mxu1 %v2297_v23  ;;  %v1604_v23 = vld [vmem:[%s6641_s11 + $0x480] sm:$0xff] }
 0x1d3   : > { %3410 = vmatpush1.bf16.msra.mxu0 %v2232_v26  ;;  %v2264_v26 = vunpack.c.h.s8.bf16 %v1604_v23 }
 0x1d4   : > { %3451 = vmatpush1.bf16.msra.mxu1 %v2296_v28  ;;  %3411 = vmatprep.subr.bf16.mxu0 %v2229_v29  ;;  %v2328_v28 = vunpack.c.h.s8.bf16 %v1636_v24  ;;  %v2325_v29 = vunpack.c.l.s8.bf16 %v1637_v16 }
 0x1d5   : > { %3452 = vmatprep.subr.bf16.mxu1 %v2293_v30  ;;  %v1665_v30 = vld [vmem:[%s6641_s11 + $0x668] sm:$0xff] }
 0x1d6   : > { %v2381_v47 = vunpack.c.l.s8.bf16 %v1665_v30 }
 0x1d7   : > { %3412 = vmatpush1.bf16.msra.mxu0 %v2228_v33  ;;  %v6828_v33 = vrot.slane %v6762_v27, %v6666_v49  ;;  %v2384_v27 = vunpack.c.h.s8.bf16 %v1664_v41 }
 0x1d8   : > { %3453 = vmatpush1.bf16.msra.mxu1 %v2292_v34  ;;  %3413 = vmatprep.subr.bf16.mxu0 %v2289_v36  ;;  %v2260_v34 = vunpack.c.l.s8.bf16 %v1604_v23  ;;  %v2324_v36 = vunpack.c.l.s8.bf16 %v1636_v24 }
 0x1d9   : > { %3454 = vmatprep.subr.bf16.mxu1 %v2353_v37  ;;  %v2385_v37 = vunpack.c.h.s8.bf16 %v1665_v30 }
 0x1db   : > { %3414 = vmatpush2.bf16.msra.mxu0 %v2288_v42  ;;  %v1696_v42 = vld [vmem:[%s6641_s11 + $0x760] sm:$0xff] }
 0x1dc   : > { %3455 = vmatpush2.bf16.msra.mxu1 %v2352_v43  ;;  %3415 = vmatprep.subr.bf16.mxu0 %v2285_v40  ;;  %v6833_v43 = vrot.slane %v3070_v32, %v6666_v49  ;;  %v6837_v40 = vcombine.high %v6828_v33, %v6828_v33  ;;  %v2444_v50 = vunpack.c.l.s8.bf16 %v1696_v42  ;;  %v1681_v32 = vld [vmem:[%s6641_s11 + $0x6e8] sm:$0xff] }
 0x1dd   : > { %3456 = vmatprep.subr.bf16.mxu1 %v2349_v46  ;;  %v2448_v46 = vunpack.c.h.s8.bf16 %v1696_v42  ;;  %v1680_v42 = vld [vmem:[%s6641_s11 + $0x6e0] sm:$0xff] }
 0x1df   : > { %3416 = vmatpush2.bf16.msra.mxu0 %v2284_v52  ;;  %v1661_v52 = vld [vmem:[%s6641_s11 + $0x648] sm:$0xff] }
 0x1e0   : > { %3457 = vmatpush2.bf16.msra.mxu1 %v2348_v53  ;;  %3417 = vmatprep.subr.bf16.mxu0 %v2281_v55  ;;  %v1693_v53 = vld [vmem:[%s6641_s11 + $0x748] sm:$0xff]  ;;  %v6843_v55 = vcombine.high %v6833_v43, %v6833_v43  ;;  %v2377_v60 = vunpack.c.h.s8.bf16 %v1661_v52  ;;  %v2373_v4 = vunpack.c.l.s8.bf16 %v1661_v52 }
 0x1e1   : > { %3458 = vmatprep.subr.bf16.mxu1 %v2345_v56  ;;  %v2380_v56 = vunpack.c.l.s8.bf16 %v1664_v41 }
 0x1e3   : > { %3418 = vmatpush2.bf16.msra.mxu0 %v2280_v61  ;;  %v2441_v61 = vunpack.c.h.s8.bf16 %v1693_v53 }
 0x1e4   : > { %3459 = vmatpush2.bf16.msra.mxu1 %v2344_v62  ;;  %3419 = vmatprep.subr.bf16.mxu0 %v2277_v63  ;;  %v1660_v62 = vld [vmem:[%s6641_s11 + $0x640] sm:$0xff] }
 0x1e5   : > { %3460 = vmatprep.subr.bf16.mxu1 %v2341_v0  ;;  %v1692_v63 = vld [vmem:[%s6641_s11 + $0x740] sm:$0xff]  ;;  %v2376_v0 = vunpack.c.h.s8.bf16 %v1660_v62 }
 0x1e6   : > { %v2440_v3 = vunpack.c.h.s8.bf16 %v1692_v63  ;;  %v2436_v9 = vunpack.c.l.s8.bf16 %v1692_v63  ;;  %v1676_v63 = vld [vmem:[%s6641_s11 + $0x6c0] sm:$0xff] }
 0x1e7   : > { %3420 = vmatpush2.bf16.msra.mxu0 %v2276_v5  ;;  %v2437_v5 = vunpack.c.l.s8.bf16 %v1693_v53  ;;  %v1677_v53 = vld [vmem:[%s6641_s11 + $0x6c8] sm:$0xff] }
 0x1e8   : > { %3461 = vmatpush2.bf16.msra.mxu1 %v2340_v6  ;;  %3421 = vmatprep.subr.bf16.mxu0 %v2273_v7  ;;  %v1657_v6 = vld [vmem:[%s6641_s11 + $0x628] sm:$0xff] }
 0x1e9   : > { %3462 = vmatprep.subr.bf16.mxu1 %v2337_v8  ;;  %v1689_v7 = vld [vmem:[%s6641_s11 + $0x728] sm:$0xff]  ;;  %v2372_v8 = vunpack.c.l.s8.bf16 %v1660_v62  ;;  %v2369_v10 = vunpack.c.h.s8.bf16 %v1657_v6  ;;  %v2365_v16 = vunpack.c.l.s8.bf16 %v1657_v6 }
 0x1ea   : > { %v2429_v17 = vunpack.c.l.s8.bf16 %v1689_v7 }
 0x1eb   : > { %3422 = vmatpush2.bf16.msra.mxu0 %v2272_v11  ;;  %v2433_v11 = vunpack.c.h.s8.bf16 %v1689_v7  ;;  %v1673_v7 = vld [vmem:[%s6641_s11 + $0x6a8] sm:$0xff] }
 0x1ec   : > { %3463 = vmatpush2.bf16.msra.mxu1 %v2336_v12  ;;  %3423 = vmatprep.subr.bf16.mxu0 %v2269_v13  ;;  %v1656_v12 = vld [vmem:[%s6641_s11 + $0x620] sm:$0xff] }
 0x1ed   : > { %3464 = vmatprep.subr.bf16.mxu1 %v2333_v14  ;;  %v1688_v13 = vld [vmem:[%s6641_s11 + $0x720] sm:$0xff]  ;;  %v2368_v14 = vunpack.c.h.s8.bf16 %v1656_v12 }
 0x1ee   : > { %v2432_v15 = vunpack.c.h.s8.bf16 %v1688_v13 }
 0x1ef   : > { %3424 = vmatpush2.bf16.msra.mxu0 %v2268_v18  ;;  %v1653_v18 = vld [vmem:[%s6641_s11 + $0x608] sm:$0xff] }
 0x1f0   : > { %3465 = vmatpush2.bf16.msra.mxu1 %v2332_v19  ;;  %3425 = vmatprep.subr.bf16.mxu0 %v2265_v21  ;;  %v1685_v19 = vld [vmem:[%s6641_s11 + $0x708] sm:$0xff]  ;;  %v2364_v21 = vunpack.c.l.s8.bf16 %v1656_v12  ;;  %v2361_v23 = vunpack.c.h.s8.bf16 %v1653_v18  ;;  %v2357_v30 = vunpack.c.l.s8.bf16 %v1653_v18 }
 0x1f1   : > { %3466 = vmatprep.subr.bf16.mxu1 %v2329_v22  ;;  %v2428_v22 = vunpack.c.l.s8.bf16 %v1688_v13  ;;  %v2425_v24 = vunpack.c.h.s8.bf16 %v1685_v19  ;;  %v2421_v31 = vunpack.c.l.s8.bf16 %v1685_v19  ;;  %v1672_v13 = vld [vmem:[%s6641_s11 + $0x6a0] sm:$0xff]  ;;  %v1669_v19 = vld [vmem:[%s6641_s11 + $0x688] sm:$0xff] }
 0x1f3   : > { %3426 = vmatpush2.bf16.msra.mxu0 %v2264_v26  ;;  %v1652_v26 = vld [vmem:[%s6641_s11 + $0x600] sm:$0xff] }
 0x1f4   : > { %3467 = vmatpush2.bf16.msra.mxu1 %v2328_v28  ;;  %3427 = vmatprep.subr.bf16.mxu0 %v2261_v20  ;;  %v1684_v28 = vld [vmem:[%s6641_s11 + $0x700] sm:$0xff]  ;;  %v2360_v20 = vunpack.c.h.s8.bf16 %v1652_v26 }
 0x1f5   : > { %3468 = vmatprep.subr.bf16.mxu1 %v2325_v29  ;;  %v2424_v29 = vunpack.c.h.s8.bf16 %v1684_v28 }
 0x1f7   : > { %3428 = vmatpush2.bf16.msra.mxu0 %v2260_v34  ;;  %v1713_v34 = vld [vmem:[%s6641_s11 + $0x7e8] sm:$0xff] }
 0x1f8   : > { %3469 = vmatpush2.bf16.msra.mxu1 %v2324_v36  ;;  %3479 = vmatprep.subr.bf16.mxu0 %v2385_v37  ;;  %v2356_v36 = vunpack.c.l.s8.bf16 %v1652_v26  ;;  %v2420_v37 = vunpack.c.l.s8.bf16 %v1684_v28  ;;  %v2481_v41 = vunpack.c.h.s8.bf16 %v1713_v34  ;;  %v2477_v52 = vunpack.c.l.s8.bf16 %v1713_v34 }
 0x1f9   : > { %3520 = vmatprep.subr.bf16.mxu1 %v2449_v39  ;;  %v2417_v39 = vunpack.c.h.s8.bf16 %v1681_v32  ;;  %v2393_v26 = vunpack.c.h.s8.bf16 %v1669_v19  ;;  %v2389_v34 = vunpack.c.l.s8.bf16 %v1669_v19 }
 0x1fa   : > { %3430 = vmatmul.mubr.bf16.vlgmr.msra.gmra.mxu0 %v6828_v33 }
 0x1fb   : > { %3471 = vmatmul.mubr.bf16.vlgmr.msra.gmra.mxu1 %v6837_v40  ;;  %3480 = vmatpush1.bf16.msra.mxu0 %v2384_v27  ;;  %v1712_v27 = vld [vmem:[%s6641_s11 + $0x7e0] sm:$0xff] }
 0x1fc   : > { %3521 = vmatpush1.bf16.msra.mxu1 %v2448_v46  ;;  %3481 = vmatprep.subr.bf16.mxu0 %v2381_v47  ;;  %v2416_v46 = vunpack.c.h.s8.bf16 %v1680_v42  ;;  %v2480_v47 = vunpack.c.h.s8.bf16 %v1712_v27 }
 0x1fd   : > { %3522 = vmatprep.subr.bf16.mxu1 %v2445_v51  ;;  %3511 = vmatprep.mubr.bf16.mxu0 %v6833_v43  ;;  %v2413_v51 = vunpack.c.l.s8.bf16 %v1681_v32 }
 0x1fe   : > { %3552 = vmatprep.mubr.bf16.mxu1 %v6843_v55 }
 0x1ff   : > { %3482 = vmatpush1.bf16.msra.mxu0 %v2380_v56  ;;  %v1709_v56 = vld [vmem:[%s6641_s11 + $0x7c8] sm:$0xff] }
 0x200   : > { %3523 = vmatpush1.bf16.msra.mxu1 %v2444_v50  ;;  %3483 = vmatprep.subr.bf16.mxu0 %v2377_v60  ;;  %v2412_v50 = vunpack.c.l.s8.bf16 %v1680_v42  ;;  %v2476_v60 = vunpack.c.l.s8.bf16 %v1712_v27  ;;  %v2473_v62 = vunpack.c.h.s8.bf16 %v1709_v56  ;;  %v2469_v6 = vunpack.c.l.s8.bf16 %v1709_v56 }
 0x201   : > { %3524 = vmatprep.subr.bf16.mxu1 %v2441_v61  ;;  %v2409_v61 = vunpack.c.h.s8.bf16 %v1677_v53  ;;  %v6888_v42 = vrot.slane %v6820_v25, %v6666_v49 }
 0x203   : > { %3484 = vmatpush1.bf16.msra.mxu0 %v2376_v0  ;;  %v1708_v0 = vld [vmem:[%s6641_s11 + $0x7c0] sm:$0xff] }
 0x204   : > { %3525 = vmatpush1.bf16.msra.mxu1 %v2440_v3  ;;  %3485 = vmatprep.subr.bf16.mxu0 %v2373_v4  ;;  %v2408_v3 = vunpack.c.h.s8.bf16 %v1676_v63  ;;  %v2472_v4 = vunpack.c.h.s8.bf16 %v1708_v0 }
 0x205   : > { %3526 = vmatprep.subr.bf16.mxu1 %v2437_v5  ;;  %v2405_v5 = vunpack.c.l.s8.bf16 %v1677_v53  ;;  %v1760_v53 = vld [vmem:[%s6641_s11 + $0x960] sm:$0xff] }
 0x207   : > { %3486 = vmatpush1.bf16.msra.mxu0 %v2372_v8  ;;  %v1705_v8 = vld [vmem:[%s6641_s11 + $0x7a8] sm:$0xff] }
 0x208   : > { %3527 = vmatpush1.bf16.msra.mxu1 %v2436_v9  ;;  %3487 = vmatprep.subr.bf16.mxu0 %v2369_v10  ;;  %v2404_v9 = vunpack.c.l.s8.bf16 %v1676_v63  ;;  %v2468_v10 = vunpack.c.l.s8.bf16 %v1708_v0  ;;  %v2465_v12 = vunpack.c.h.s8.bf16 %v1705_v8  ;;  %v2461_v18 = vunpack.c.l.s8.bf16 %v1705_v8  ;;  %v1725_v63 = vld [vmem:[%s6641_s11 + $0x848] sm:$0xff] }
 0x209   : > { %3528 = vmatprep.subr.bf16.mxu1 %v2433_v11  ;;  %v2401_v11 = vunpack.c.h.s8.bf16 %v1673_v7  ;;  %v1757_v0 = vld [vmem:[%s6641_s11 + $0x948] sm:$0xff]  ;;  %v2572_v8 = vunpack.c.l.s8.bf16 %v1760_v53 }
 0x20b   : > { %3488 = vmatpush1.bf16.msra.mxu0 %v2368_v14  ;;  %v1704_v14 = vld [vmem:[%s6641_s11 + $0x7a0] sm:$0xff] }
 0x20c   : > { %3529 = vmatpush1.bf16.msra.mxu1 %v2432_v15  ;;  %3489 = vmatprep.subr.bf16.mxu0 %v2365_v16  ;;  %v2400_v15 = vunpack.c.h.s8.bf16 %v1672_v13  ;;  %v2464_v16 = vunpack.c.h.s8.bf16 %v1704_v14 }
 0x20d   : > { %3530 = vmatprep.subr.bf16.mxu1 %v2429_v17  ;;  %v2397_v17 = vunpack.c.l.s8.bf16 %v1673_v7 }
 0x20f   : > { %3490 = vmatpush1.bf16.msra.mxu0 %v2364_v21  ;;  %v1701_v21 = vld [vmem:[%s6641_s11 + $0x788] sm:$0xff] }
 0x210   : > { %3531 = vmatpush1.bf16.msra.mxu1 %v2428_v22  ;;  %3491 = vmatprep.subr.bf16.mxu0 %v2361_v23  ;;  %v6874_v22 = vld [vmem:[%s6609_s19 + $0x10] sm:$0xff]  ;;  %v2396_v23 = vunpack.c.l.s8.bf16 %v1672_v13  ;;  %v2457_v28 = vunpack.c.h.s8.bf16 %v1701_v21  ;;  %v1724_v13 = vld [vmem:[%s6641_s11 + $0x840] sm:$0xff] }
 0x211   : > { %3532 = vmatprep.subr.bf16.mxu1 %v2425_v24  ;;  %v2460_v24 = vunpack.c.l.s8.bf16 %v1704_v14  ;;  %v1756_v14 = vld [vmem:[%s6641_s11 + $0x940] sm:$0xff] }
 0x212   : > { %v2568_v19 = vunpack.c.h.s8.bf16 %v1756_v14 }
 0x213   : > { %3492 = vmatpush1.bf16.msra.mxu0 %v2360_v20  ;;  %v1668_v20 = vld [vmem:[%s6641_s11 + $0x680] sm:$0xff] }
 0x214   : > { %3533 = vmatpush1.bf16.msra.mxu1 %v2424_v29  ;;  %3493 = vmatprep.subr.bf16.mxu0 %v2357_v30  ;;  %v1700_v29 = vld [vmem:[%s6641_s11 + $0x780] sm:$0xff]  ;;  %v6880_v30 = vrot.slane %v6874_v22, %v6666_v49  ;;  %v2388_v27 = vunpack.c.l.s8.bf16 %v1668_v20 }
 0x215   : > { %3534 = vmatprep.subr.bf16.mxu1 %v2421_v31  ;;  %v2392_v31 = vunpack.c.h.s8.bf16 %v1668_v20  ;;  %v2456_v32 = vunpack.c.h.s8.bf16 %v1700_v29  ;;  %v1753_v20 = vld [vmem:[%s6641_s11 + $0x928] sm:$0xff] }
 0x217   : > { %3494 = vmatpush1.bf16.msra.mxu0 %v2356_v36  ;;  %v2453_v36 = vunpack.c.l.s8.bf16 %v1701_v21 }
 0x218   : > { %3535 = vmatpush1.bf16.msra.mxu1 %v2420_v37  ;;  %3495 = vmatprep.subr.bf16.mxu0 %v2417_v39  ;;  %v1729_v37 = vld [vmem:[%s6641_s11 + $0x868] sm:$0xff] }
 0x219   : > { %3536 = vmatprep.subr.bf16.mxu1 %v2481_v41  ;;  %v1761_v39 = vld [vmem:[%s6641_s11 + $0x968] sm:$0xff]  ;;  %v3118_v41 = vcombine.high %v6880_v30, %v6880_v30 }
 0x21b   : > { %3496 = vmatpush2.bf16.msra.mxu0 %v2416_v46  ;;  %v2452_v46 = vunpack.c.l.s8.bf16 %v1700_v29  ;;  %v6893_v56 = vrot.slane %v3118_v41, %v6666_v49  ;;  %v2500_v29 = vunpack.c.l.s8.bf16 %v1724_v13 }
 0x21c   : > { %3537 = vmatpush2.bf16.msra.mxu1 %v2480_v47  ;;  %3497 = vmatprep.subr.bf16.mxu0 %v2413_v51  ;;  %v2513_v47 = vunpack.c.h.s8.bf16 %v1729_v37  ;;  %v2577_v51 = vunpack.c.h.s8.bf16 %v1761_v39 }
 0x21d   : > { %3538 = vmatprep.subr.bf16.mxu1 %v2477_v52  ;;  %v1728_v52 = vld [vmem:[%s6641_s11 + $0x860] sm:$0xff] }
 0x21e   : > { %v2512_v25 = vunpack.c.h.s8.bf16 %v1728_v52  ;;  %v2508_v7 = vunpack.c.l.s8.bf16 %v1728_v52 }
 0x21f   : > { %3498 = vmatpush2.bf16.msra.mxu0 %v2412_v50  ;;  %v6897_v50 = vcombine.high %v6888_v42, %v6888_v42 }
 0x220   : > { %3539 = vmatpush2.bf16.msra.mxu1 %v2476_v60  ;;  %3499 = vmatprep.subr.bf16.mxu0 %v2409_v61  ;;  %v2576_v60 = vunpack.c.h.s8.bf16 %v1760_v53  ;;  %v2509_v61 = vunpack.c.l.s8.bf16 %v1729_v37  ;;  %v1752_v37 = vld [vmem:[%s6641_s11 + $0x920] sm:$0xff] }
 0x221   : > { %3540 = vmatprep.subr.bf16.mxu1 %v2473_v62  ;;  %v2573_v62 = vunpack.c.l.s8.bf16 %v1761_v39  ;;  %v2560_v41 = vunpack.c.h.s8.bf16 %v1752_v37  ;;  %v2556_v53 = vunpack.c.l.s8.bf16 %v1752_v37 }
 0x223   : > { %3500 = vmatpush2.bf16.msra.mxu0 %v2408_v3  ;;  %v6903_v3 = vcombine.high %v6893_v56, %v6893_v56 }
 0x224   : > { %3541 = vmatpush2.bf16.msra.mxu1 %v2472_v4  ;;  %3501 = vmatprep.subr.bf16.mxu0 %v2405_v5 }
 0x225   : > { %3542 = vmatprep.subr.bf16.mxu1 %v2469_v6 }
 0x227   : > { %3502 = vmatpush2.bf16.msra.mxu0 %v2404_v9 }
 0x228   : > { %3543 = vmatpush2.bf16.msra.mxu1 %v2468_v10  ;;  %3503 = vmatprep.subr.bf16.mxu0 %v2401_v11  ;;  %v2505_v11 = vunpack.c.h.s8.bf16 %v1725_v63 }
 0x229   : > { %3544 = vmatprep.subr.bf16.mxu1 %v2465_v12  ;;  %v2569_v12 = vunpack.c.h.s8.bf16 %v1757_v0 }
 0x22b   : > { %3504 = vmatpush2.bf16.msra.mxu0 %v2400_v15 }
 0x22c   : > { %3545 = vmatpush2.bf16.msra.mxu1 %v2464_v16  ;;  %3505 = vmatprep.subr.bf16.mxu0 %v2397_v17 }
 0x22d   : > { %3546 = vmatprep.subr.bf16.mxu1 %v2461_v18  ;;  %v2504_v18 = vunpack.c.h.s8.bf16 %v1724_v13  ;;  %v1744_v13 = vld [vmem:[%s6641_s11 + $0x8e0] sm:$0xff] }
 0x22f   : > { %3506 = vmatpush2.bf16.msra.mxu0 %v2396_v23 }
 0x230   : > { %3547 = vmatpush2.bf16.msra.mxu1 %v2460_v24  ;;  %3507 = vmatprep.subr.bf16.mxu0 %v2393_v26  ;;  %v2501_v24 = vunpack.c.l.s8.bf16 %v1725_v63  ;;  %v2565_v26 = vunpack.c.l.s8.bf16 %v1757_v0 }
 0x231   : > { %3548 = vmatprep.subr.bf16.mxu1 %v2457_v28  ;;  %v1721_v28 = vld [vmem:[%s6641_s11 + $0x828] sm:$0xff] }
 0x233   : > { %3508 = vmatpush2.bf16.msra.mxu0 %v2392_v31  ;;  %v2564_v31 = vunpack.c.l.s8.bf16 %v1756_v14  ;;  %v1776_v14 = vld [vmem:[%s6641_s11 + $0x9e0] sm:$0xff] }
 0x234   : > { %3549 = vmatpush2.bf16.msra.mxu1 %v2456_v32  ;;  %3509 = vmatprep.subr.bf16.mxu0 %v2389_v34  ;;  %v2497_v32 = vunpack.c.h.s8.bf16 %v1721_v28  ;;  %v2561_v34 = vunpack.c.h.s8.bf16 %v1753_v20 }
 0x235   : > { %3550 = vmatprep.subr.bf16.mxu1 %v2453_v36  ;;  %v1720_v36 = vld [vmem:[%s6641_s11 + $0x820] sm:$0xff] }
 0x236   : > { %v2496_v39 = vunpack.c.h.s8.bf16 %v1720_v36  ;;  %v2492_v52 = vunpack.c.l.s8.bf16 %v1720_v36 }
 0x237   : > { %3510 = vmatpush2.bf16.msra.mxu0 %v2388_v27  ;;  %v2493_v27 = vunpack.c.l.s8.bf16 %v1721_v28 }
 0x238   : > { %3551 = vmatpush2.bf16.msra.mxu1 %v2452_v46  ;;  %3561 = vmatprep.subr.bf16.mxu0 %v2513_v47  ;;  %v2557_v46 = vunpack.c.l.s8.bf16 %v1753_v20  ;;  %v1717_v47 = vld [vmem:[%s6641_s11 + $0x808] sm:$0xff] }
 0x239   : > { %3602 = vmatprep.subr.bf16.mxu1 %v2577_v51  ;;  %v1749_v51 = vld [vmem:[%s6641_s11 + $0x908] sm:$0xff] }
 0x23a   : > { %v3267_v4 = vpop.f32.mrf.mxu0  ;;  %3512 = vmatmul.mubr.bf16.vlgmr.msra.gmra.mxu0 %v6888_v42 }
 0x23b   : > { %v3308_v5 = vpop.f32.mrf.mxu1  ;;  %3553 = vmatmul.mubr.bf16.vlgmr.msra.gmra.mxu1 %v6897_v50  ;;  %3562 = vmatpush1.bf16.msra.mxu0 %v2512_v25  ;;  %v2489_v25 = vunpack.c.h.s8.bf16 %v1717_v47 }
 0x23c   : > { %v6907_v6 = vadd.f32 %v3308_v5, %v3267_v4  ;;  %3603 = vmatpush1.bf16.msra.mxu1 %v2576_v60  ;;  %v3269_v9 = vpop.f32.mrf.mxu0  ;;  %3563 = vmatprep.subr.bf16.mxu0 %v2509_v61  ;;  %v2553_v60 = vunpack.c.h.s8.bf16 %v1749_v51  ;;  %v1716_v61 = vld [vmem:[%s6641_s11 + $0x800] sm:$0xff]  ;;  %v2485_v4 = vunpack.c.l.s8.bf16 %v1717_v47  ;;  %v2549_v5 = vunpack.c.l.s8.bf16 %v1749_v51 }
 0x23d   : > { %v3310_v10 = vpop.f32.mrf.mxu1  ;;  %3604 = vmatprep.subr.bf16.mxu1 %v2573_v62  ;;  %3593 = vmatprep.mubr.bf16.mxu0 %v6893_v56  ;;  %v1748_v62 = vld [vmem:[%s6641_s11 + $0x900] sm:$0xff]  ;;  %v2488_v63 = vunpack.c.h.s8.bf16 %v1716_v61 }
 0x23e   : > { %v6911_v15 = vadd.f32 %v3310_v10, %v3269_v9  ;;  %3634 = vmatprep.mubr.bf16.mxu1 %v6903_v3  ;;  %v3271_v16 = vpop.f32.mrf.mxu0  ;;  %v2552_v0 = vunpack.c.h.s8.bf16 %v1748_v62  ;;  %v2484_v9 = vunpack.c.l.s8.bf16 %v1716_v61  ;;  %v2548_v10 = vunpack.c.l.s8.bf16 %v1748_v62 }
 0x23f   : > { %v3312_v17 = vpop.f32.mrf.mxu1  ;;  %3564 = vmatpush1.bf16.msra.mxu0 %v2508_v7  ;;  %v1745_v7 = vld [vmem:[%s6641_s11 + $0x8e8] sm:$0xff]  ;;  %v2544_v16 = vunpack.c.h.s8.bf16 %v1744_v13 }
 0x240   : > { %3605 = vmatpush1.bf16.msra.mxu1 %v2572_v8  ;;  %v3272_v21 = vpop.f32.mrf.mxu0  ;;  %3565 = vmatprep.subr.bf16.mxu0 %v2505_v11  ;;  %v1777_v8 = vld [vmem:[%s6641_s11 + $0x9e8] sm:$0xff]  ;;  %v2545_v11 = vunpack.c.h.s8.bf16 %v1745_v7  ;;  %v2608_v17 = vunpack.c.h.s8.bf16 %v1776_v14 }
 0x241   : > { %v3313_v23 = vpop.f32.mrf.mxu1  ;;  %3606 = vmatprep.subr.bf16.mxu1 %v2569_v12  ;;  %v2609_v12 = vunpack.c.h.s8.bf16 %v1777_v8  ;;  %v1741_v21 = vld [vmem:[%s6641_s11 + $0x8c8] sm:$0xff] }
 0x242   : > { %v1773_v23 = vld [vmem:[%s6641_s11 + $0x9c8] sm:$0xff]  ;;  %v2537_v28 = vunpack.c.h.s8.bf16 %v1741_v21  ;;  %v2533_v36 = vunpack.c.l.s8.bf16 %v1741_v21  ;;  %v6950_v21 = vrot.slane %v6880_v30, %v6666_v49 }
 0x243   : > { %3566 = vmatpush1.bf16.msra.mxu0 %v2504_v18  ;;  %v2541_v18 = vunpack.c.l.s8.bf16 %v1745_v7  ;;  %v2601_v20 = vunpack.c.h.s8.bf16 %v1773_v23  ;;  %v2597_v37 = vunpack.c.l.s8.bf16 %v1773_v23 }
 0x244   : > { %3607 = vmatpush1.bf16.msra.mxu1 %v2568_v19  ;;  %3567 = vmatprep.subr.bf16.mxu0 %v2501_v24  ;;  %v2605_v19 = vunpack.c.l.s8.bf16 %v1777_v8  ;;  %v2540_v24 = vunpack.c.l.s8.bf16 %v1744_v13 }
 0x245   : > { %3608 = vmatprep.subr.bf16.mxu1 %v2565_v26  ;;  %v2604_v26 = vunpack.c.l.s8.bf16 %v1776_v14 }
 0x247   : > { %3568 = vmatpush1.bf16.msra.mxu0 %v2500_v29  ;;  %v1740_v29 = vld [vmem:[%s6641_s11 + $0x8c0] sm:$0xff] }
 0x248   : > { %3609 = vmatpush1.bf16.msra.mxu1 %v2564_v31  ;;  %3569 = vmatprep.subr.bf16.mxu0 %v2497_v32  ;;  %v1772_v31 = vld [vmem:[%s6641_s11 + $0x9c0] sm:$0xff]  ;;  %v2536_v32 = vunpack.c.h.s8.bf16 %v1740_v29 }
 0x249   : > { %3610 = vmatprep.subr.bf16.mxu1 %v2561_v34  ;;  %v2600_v34 = vunpack.c.h.s8.bf16 %v1772_v31 }
 0x24b   : > { %3570 = vmatpush1.bf16.msra.mxu0 %v2496_v39  ;;  %v1737_v39 = vld [vmem:[%s6641_s11 + $0x8a8] sm:$0xff] }
 0x24c   : > { %3611 = vmatpush1.bf16.msra.mxu1 %v2560_v41  ;;  %3571 = vmatprep.subr.bf16.mxu0 %v2493_v27  ;;  %v1769_v41 = vld [vmem:[%s6641_s11 + $0x9a8] sm:$0xff]  ;;  %v2532_v27 = vunpack.c.l.s8.bf16 %v1740_v29  ;;  %v2529_v47 = vunpack.c.h.s8.bf16 %v1737_v39  ;;  %v2525_v61 = vunpack.c.l.s8.bf16 %v1737_v39  ;;  %v1824_v29 = vld [vmem:[%s6641_s11 + $0xb60] sm:$0xff] }
 0x24d   : > { %3612 = vmatprep.subr.bf16.mxu1 %v2557_v46  ;;  %v2596_v46 = vunpack.c.l.s8.bf16 %v1772_v31  ;;  %v2593_v51 = vunpack.c.h.s8.bf16 %v1769_v41  ;;  %v2589_v62 = vunpack.c.l.s8.bf16 %v1769_v41  ;;  %v1789_v39 = vld [vmem:[%s6641_s11 + $0xa48] sm:$0xff] }
 0x24e   : > { %v1821_v41 = vld [vmem:[%s6641_s11 + $0xb48] sm:$0xff] }
 0x24f   : > { %3572 = vmatpush1.bf16.msra.mxu0 %v2492_v52  ;;  %v1736_v52 = vld [vmem:[%s6641_s11 + $0x8a0] sm:$0xff] }
 0x250   : > { %3613 = vmatpush1.bf16.msra.mxu1 %v2556_v53  ;;  %3573 = vmatprep.subr.bf16.mxu0 %v2489_v25  ;;  %v1768_v53 = vld [vmem:[%s6641_s11 + $0x9a0] sm:$0xff]  ;;  %v2528_v25 = vunpack.c.h.s8.bf16 %v1736_v52 }
 0x251   : > { %3614 = vmatprep.subr.bf16.mxu1 %v2553_v60  ;;  %v2592_v60 = vunpack.c.h.s8.bf16 %v1768_v53  ;;  %v2588_v7 = vunpack.c.l.s8.bf16 %v1768_v53  ;;  %v2700_v53 = vunpack.c.l.s8.bf16 %v1824_v29 }
 0x253   : > { %3574 = vmatpush1.bf16.msra.mxu0 %v2488_v63  ;;  %v1733_v63 = vld [vmem:[%s6641_s11 + $0x888] sm:$0xff] }
 0x254   : > { %3615 = vmatpush1.bf16.msra.mxu1 %v2552_v0  ;;  %3575 = vmatprep.subr.bf16.mxu0 %v2485_v4  ;;  %v1765_v0 = vld [vmem:[%s6641_s11 + $0x988] sm:$0xff]  ;;  %v3103_v4 = vcombine.high %v6874_v22, %v6874_v22  ;;  %v2521_v8 = vunpack.c.h.s8.bf16 %v1733_v63  ;;  %v2517_v22 = vunpack.c.l.s8.bf16 %v1733_v63  ;;  %v1788_v63 = vld [vmem:[%s6641_s11 + $0xa40] sm:$0xff] }
 0x255   : > { %3616 = vmatprep.subr.bf16.mxu1 %v2549_v5  ;;  %v2524_v5 = vunpack.c.l.s8.bf16 %v1736_v52 }
 0x257   : > { %3576 = vmatpush1.bf16.msra.mxu0 %v2484_v9  ;;  %v2585_v9 = vunpack.c.h.s8.bf16 %v1765_v0 }
 0x258   : > { %3617 = vmatpush1.bf16.msra.mxu1 %v2548_v10  ;;  %3577 = vmatprep.subr.bf16.mxu0 %v2545_v11  ;;  %v1732_v10 = vld [vmem:[%s6641_s11 + $0x880] sm:$0xff] }
 0x259   : > { %3618 = vmatprep.subr.bf16.mxu1 %v2609_v12  ;;  %v1764_v11 = vld [vmem:[%s6641_s11 + $0x980] sm:$0xff]  ;;  %v6942_v12 = vrot.slane %v3103_v4, %v6666_v49  ;;  %v2520_v13 = vunpack.c.h.s8.bf16 %v1732_v10  ;;  %v2516_v23 = vunpack.c.l.s8.bf16 %v1732_v10 }
 0x25a   : > { %v2584_v14 = vunpack.c.h.s8.bf16 %v1764_v11 }
 0x25b   : > { %3578 = vmatpush2.bf16.msra.mxu0 %v2544_v16  ;;  %v2581_v16 = vunpack.c.l.s8.bf16 %v1765_v0  ;;  %v1820_v0 = vld [vmem:[%s6641_s11 + $0xb40] sm:$0xff] }
 0x25c   : > { %3619 = vmatpush2.bf16.msra.mxu1 %v2608_v17  ;;  %3579 = vmatprep.subr.bf16.mxu0 %v2541_v18  ;;  %v1793_v17 = vld [vmem:[%s6641_s11 + $0xa68] sm:$0xff]  ;;  %v2696_v10 = vunpack.c.h.s8.bf16 %v1820_v0 }
 0x25d   : > { %3620 = vmatprep.subr.bf16.mxu1 %v2605_v19  ;;  %v1825_v18 = vld [vmem:[%s6641_s11 + $0xb68] sm:$0xff]  ;;  %v3119_v19 = vcombine.high %v6942_v12, %v6942_v12 }
 0x25f   : > { %3580 = vmatpush2.bf16.msra.mxu0 %v2540_v24  ;;  %v2580_v24 = vunpack.c.l.s8.bf16 %v1764_v11  ;;  %v6955_v31 = vrot.slane %v3119_v19, %v6666_v49 }
 0x260   : > { %3621 = vmatpush2.bf16.msra.mxu1 %v2604_v26  ;;  %3581 = vmatprep.subr.bf16.mxu0 %v2537_v28  ;;  %v2641_v26 = vunpack.c.h.s8.bf16 %v1793_v17  ;;  %v2705_v28 = vunpack.c.h.s8.bf16 %v1825_v18 }
 0x261   : > { %3622 = vmatprep.subr.bf16.mxu1 %v2601_v20  ;;  %v1792_v20 = vld [vmem:[%s6641_s11 + $0xa60] sm:$0xff] }
 0x262   : > { %v2640_v30 = vunpack.c.h.s8.bf16 %v1792_v20  ;;  %v2636_v52 = vunpack.c.l.s8.bf16 %v1792_v20 }
 0x263   : > { %3582 = vmatpush2.bf16.msra.mxu0 %v2536_v32  ;;  %v6959_v32 = vcombine.high %v6950_v21, %v6950_v21 }
 0x264   : > { %3623 = vmatpush2.bf16.msra.mxu1 %v2600_v34  ;;  %3583 = vmatprep.subr.bf16.mxu0 %v2533_v36  ;;  %v2704_v34 = vunpack.c.h.s8.bf16 %v1824_v29  ;;  %v2637_v36 = vunpack.c.l.s8.bf16 %v1793_v17  ;;  %v2628_v17 = vunpack.c.l.s8.bf16 %v1788_v63 }
 0x265   : > { %3624 = vmatprep.subr.bf16.mxu1 %v2597_v37  ;;  %v2701_v37 = vunpack.c.l.s8.bf16 %v1825_v18  ;;  %v2692_v18 = vunpack.c.l.s8.bf16 %v1820_v0 }
 0x267   : > { %3584 = vmatpush2.bf16.msra.mxu0 %v2532_v27  ;;  %v6965_v27 = vcombine.high %v6955_v31, %v6955_v31 }
 0x268   : > { %3625 = vmatpush2.bf16.msra.mxu1 %v2596_v46  ;;  %3585 = vmatprep.subr.bf16.mxu0 %v2529_v47 }
 0x269   : > { %3626 = vmatprep.subr.bf16.mxu1 %v2593_v51 }
 0x26b   : > { %3586 = vmatpush2.bf16.msra.mxu0 %v2528_v25 }
 0x26c   : > { %3627 = vmatpush2.bf16.msra.mxu1 %v2592_v60  ;;  %3587 = vmatprep.subr.bf16.mxu0 %v2525_v61  ;;  %v2633_v61 = vunpack.c.h.s8.bf16 %v1789_v39 }
 0x26d   : > { %3628 = vmatprep.subr.bf16.mxu1 %v2589_v62  ;;  %v2697_v62 = vunpack.c.h.s8.bf16 %v1821_v41 }
 0x26f   : > { %3588 = vmatpush2.bf16.msra.mxu0 %v2524_v5 }
 0x270   : > { %3629 = vmatpush2.bf16.msra.mxu1 %v2588_v7  ;;  %3589 = vmatprep.subr.bf16.mxu0 %v2521_v8 }
 0x271   : > { %3630 = vmatprep.subr.bf16.mxu1 %v2585_v9  ;;  %v2632_v9 = vunpack.c.h.s8.bf16 %v1788_v63 }
 0x273   : > { %3590 = vmatpush2.bf16.msra.mxu0 %v2520_v13 }
 0x274   : > { %3631 = vmatpush2.bf16.msra.mxu1 %v2584_v14  ;;  %3591 = vmatprep.subr.bf16.mxu0 %v2517_v22  ;;  %v2693_v14 = vunpack.c.l.s8.bf16 %v1821_v41  ;;  %v1785_v22 = vld [vmem:[%s6641_s11 + $0xa28] sm:$0xff] }
 0x275   : > { %3632 = vmatprep.subr.bf16.mxu1 %v2581_v16  ;;  %v1817_v16 = vld [vmem:[%s6641_s11 + $0xb28] sm:$0xff]  ;;  %v2625_v19 = vunpack.c.h.s8.bf16 %v1785_v22  ;;  %v2621_v29 = vunpack.c.l.s8.bf16 %v1785_v22 }
 0x276   : > { %v1837_v22 = vld [vmem:[%s6641_s11 + $0xbc8] sm:$0xff] }
 0x277   : > { %3592 = vmatpush2.bf16.msra.mxu0 %v2516_v23  ;;  %v2689_v23 = vunpack.c.h.s8.bf16 %v1817_v16 }
 0x278   : > { %3633 = vmatpush2.bf16.msra.mxu1 %v2580_v24  ;;  %3643 = vmatprep.subr.bf16.mxu0 %v2641_v26  ;;  %v1784_v24 = vld [vmem:[%s6641_s11 + $0xa20] sm:$0xff] }
 0x279   : > { %3684 = vmatprep.subr.bf16.mxu1 %v2705_v28  ;;  %v1816_v26 = vld [vmem:[%s6641_s11 + $0xb20] sm:$0xff]  ;;  %v2624_v28 = vunpack.c.h.s8.bf16 %v1784_v24 }
 0x27a   : > { %v3349_v46 = vpop.f32.mrf.mxu0  ;;  %3594 = vmatmul.mubr.bf16.vlgmr.msra.gmra.mxu0 %v6950_v21  ;;  %v2688_v20 = vunpack.c.h.s8.bf16 %v1816_v26 }
 0x27b   : > { %v3390_v47 = vpop.f32.mrf.mxu1  ;;  %3635 = vmatmul.mubr.bf16.vlgmr.msra.gmra.mxu1 %v6959_v32  ;;  %v3350_v51 = vadd.f32 %v3349_v46, %v6907_v6  ;;  %3644 = vmatpush1.bf16.msra.mxu0 %v2640_v30  ;;  %v2685_v30 = vunpack.c.l.s8.bf16 %v1817_v16 }
 0x27c   : > { %3685 = vmatpush1.bf16.msra.mxu1 %v2704_v34  ;;  %v3351_v25 = vpop.f32.mrf.mxu0  ;;  %3645 = vmatprep.subr.bf16.mxu0 %v2637_v36  ;;  %v1781_v34 = vld [vmem:[%s6641_s11 + $0xa08] sm:$0xff] }
 0x27d   : > { %v3392_v60 = vpop.f32.mrf.mxu1  ;;  %3686 = vmatprep.subr.bf16.mxu1 %v2701_v37  ;;  %v6972_v4 = vadd.f32 %v3390_v47, %v3350_v51  ;;  %v3352_v5 = vadd.f32 %v3351_v25, %v6911_v15  ;;  %3675 = vmatprep.mubr.bf16.mxu0 %v6955_v31  ;;  %v2629_v15 = vunpack.c.l.s8.bf16 %v1789_v39  ;;  %v1813_v36 = vld [vmem:[%s6641_s11 + $0xb08] sm:$0xff]  ;;  %v2620_v37 = vunpack.c.l.s8.bf16 %v1784_v24  ;;  %v1780_v47 = vld [vmem:[%s6641_s11 + $0xa00] sm:$0xff] }
 0x27e   : > { %3716 = vmatprep.mubr.bf16.mxu1 %v6965_v27  ;;  %v3353_v6 = vpop.f32.mrf.mxu0  ;;  %v2684_v39 = vunpack.c.l.s8.bf16 %v1816_v26  ;;  %v2617_v41 = vunpack.c.h.s8.bf16 %v1781_v34  ;;  %v2681_v46 = vunpack.c.h.s8.bf16 %v1813_v36  ;;  %v1812_v51 = vld [vmem:[%s6641_s11 + $0xb00] sm:$0xff]  ;;  %v2613_v25 = vunpack.c.l.s8.bf16 %v1781_v34  ;;  %v1833_v34 = vld [vmem:[%s6641_s11 + $0xba8] sm:$0xff] }
 0x27f   : > { %v3394_v7 = vpop.f32.mrf.mxu1  ;;  %v6977_v8 = vadd.f32 %v3392_v60, %v3352_v5  ;;  %3646 = vmatpush1.bf16.msra.mxu0 %v2636_v52  ;;  %v2616_v52 = vunpack.c.h.s8.bf16 %v1780_v47  ;;  %v2677_v60 = vunpack.c.l.s8.bf16 %v1813_v36  ;;  %v2612_v63 = vunpack.c.l.s8.bf16 %v1780_v47  ;;  %v1836_v24 = vld [vmem:[%s6641_s11 + $0xbc0] sm:$0xff] }
 0x280   : > { %3687 = vmatpush1.bf16.msra.mxu1 %v2700_v53  ;;  %v3354_v11 = vpop.f32.mrf.mxu0  ;;  %3647 = vmatprep.subr.bf16.mxu0 %v2633_v61  ;;  %v2680_v53 = vunpack.c.h.s8.bf16 %v1812_v51  ;;  %v1809_v61 = vld [vmem:[%s6641_s11 + $0xae8] sm:$0xff]  ;;  %v2676_v0 = vunpack.c.l.s8.bf16 %v1812_v51  ;;  %v1808_v7 = vld [vmem:[%s6641_s11 + $0xae0] sm:$0xff] }
 0x281   : > { %v3395_v13 = vpop.f32.mrf.mxu1  ;;  %3688 = vmatprep.subr.bf16.mxu1 %v2697_v62  ;;  %v1841_v62 = vld [vmem:[%s6641_s11 + $0xbe8] sm:$0xff]  ;;  %v2673_v5 = vunpack.c.h.s8.bf16 %v1809_v61  ;;  %v2668_v16 = vunpack.c.l.s8.bf16 %v1808_v7  ;;  %v1832_v47 = vld [vmem:[%s6641_s11 + $0xba0] sm:$0xff] }
 0x282   : > { %v2737_v6 = vunpack.c.h.s8.bf16 %v1841_v62  ;;  %v2669_v13 = vunpack.c.l.s8.bf16 %v1809_v61  ;;  %v1829_v61 = vld [vmem:[%s6641_s11 + $0xb88] sm:$0xff] }
 0x283   : > { %3648 = vmatpush1.bf16.msra.mxu0 %v2632_v9  ;;  %v1840_v9 = vld [vmem:[%s6641_s11 + $0xbe0] sm:$0xff] }
 0x284   : > { %3689 = vmatpush1.bf16.msra.mxu1 %v2696_v10  ;;  %3649 = vmatprep.subr.bf16.mxu0 %v2629_v15  ;;  %v2672_v10 = vunpack.c.h.s8.bf16 %v1808_v7  ;;  %v2736_v11 = vunpack.c.h.s8.bf16 %v1840_v9  ;;  %v2733_v15 = vunpack.c.l.s8.bf16 %v1841_v62  ;;  %v7002_v62 = vld [vmem:[%s6609_s19 + $0x18] sm:$0xff]  ;;  %v1796_v7 = vld [vmem:[%s6641_s11 + $0xa80] sm:$0xff] }
 0x285   : > { %3690 = vmatprep.subr.bf16.mxu1 %v2693_v14  ;;  %v1805_v14 = vld [vmem:[%s6641_s11 + $0xac8] sm:$0xff] }
 0x287   : > { %3650 = vmatpush1.bf16.msra.mxu0 %v2628_v17  ;;  %v2732_v17 = vunpack.c.l.s8.bf16 %v1840_v9  ;;  %v1828_v9 = vld [vmem:[%s6641_s11 + $0xb80] sm:$0xff] }
 0x288   : > { %3691 = vmatpush1.bf16.msra.mxu1 %v2692_v18  ;;  %3651 = vmatprep.subr.bf16.mxu0 %v2625_v19  ;;  %v2665_v18 = vunpack.c.h.s8.bf16 %v1805_v14  ;;  %v2729_v19 = vunpack.c.h.s8.bf16 %v1837_v22 }
 0x289   : > { %3692 = vmatprep.subr.bf16.mxu1 %v2689_v23  ;;  %v1804_v23 = vld [vmem:[%s6641_s11 + $0xac0] sm:$0xff] }
 0x28a   : > { %v2664_v26 = vunpack.c.h.s8.bf16 %v1804_v23  ;;  %v2660_v36 = vunpack.c.l.s8.bf16 %v1804_v23  ;;  %v2708_v23 = vunpack.c.l.s8.bf16 %v1828_v9 }
 0x28b   : > { %3652 = vmatpush1.bf16.msra.mxu0 %v2624_v28  ;;  %v2728_v28 = vunpack.c.h.s8.bf16 %v1836_v24 }
 0x28c   : > { %3693 = vmatpush1.bf16.msra.mxu1 %v2688_v20  ;;  %3653 = vmatprep.subr.bf16.mxu0 %v2621_v29  ;;  %v2661_v20 = vunpack.c.l.s8.bf16 %v1805_v14  ;;  %v2725_v29 = vunpack.c.l.s8.bf16 %v1837_v22  ;;  %v2709_v14 = vunpack.c.l.s8.bf16 %v1829_v61  ;;  %v1857_v22 = vld [vmem:[%s6641_s11 + $0xc68] sm:$0xff] }
 0x28d   : > { %3694 = vmatprep.subr.bf16.mxu1 %v2685_v30  ;;  %v1801_v30 = vld [vmem:[%s6641_s11 + $0xaa8] sm:$0xff] }
 0x28f   : > { %3654 = vmatpush1.bf16.msra.mxu0 %v2620_v37  ;;  %v2724_v37 = vunpack.c.l.s8.bf16 %v1836_v24  ;;  %v2769_v24 = vunpack.c.h.s8.bf16 %v1857_v22 }
 0x290   : > { %3695 = vmatpush1.bf16.msra.mxu1 %v2684_v39  ;;  %3655 = vmatprep.subr.bf16.mxu0 %v2617_v41  ;;  %v2657_v39 = vunpack.c.h.s8.bf16 %v1801_v30  ;;  %v2721_v41 = vunpack.c.h.s8.bf16 %v1833_v34 }
 0x291   : > { %3696 = vmatprep.subr.bf16.mxu1 %v2681_v46  ;;  %v1800_v46 = vld [vmem:[%s6641_s11 + $0xaa0] sm:$0xff] }
 0x292   : > { %v2656_v51 = vunpack.c.h.s8.bf16 %v1800_v46 }
 0x293   : > { %3656 = vmatpush1.bf16.msra.mxu0 %v2616_v52  ;;  %v2720_v52 = vunpack.c.h.s8.bf16 %v1832_v47 }
 0x294   : > { %3697 = vmatpush1.bf16.msra.mxu1 %v2680_v53  ;;  %3657 = vmatprep.subr.bf16.mxu0 %v2613_v25  ;;  %v2653_v53 = vunpack.c.l.s8.bf16 %v1801_v30  ;;  %v2717_v25 = vunpack.c.l.s8.bf16 %v1833_v34 }
 0x295   : > { %3698 = vmatprep.subr.bf16.mxu1 %v2677_v60  ;;  %v1797_v60 = vld [vmem:[%s6641_s11 + $0xa88] sm:$0xff] }
 0x297   : > { %3658 = vmatpush1.bf16.msra.mxu0 %v2612_v63  ;;  %v2652_v63 = vunpack.c.l.s8.bf16 %v1800_v46 }
 0x298   : > { %3699 = vmatpush1.bf16.msra.mxu1 %v2676_v0  ;;  %3659 = vmatprep.subr.bf16.mxu0 %v2673_v5  ;;  %v2716_v0 = vunpack.c.l.s8.bf16 %v1832_v47  ;;  %v2649_v5 = vunpack.c.h.s8.bf16 %v1797_v60 }
 0x299   : > { %3700 = vmatprep.subr.bf16.mxu1 %v2737_v6  ;;  %v2713_v6 = vunpack.c.h.s8.bf16 %v1829_v61 }
 0x29b   : > { %3660 = vmatpush2.bf16.msra.mxu0 %v2672_v10  ;;  %v7008_v10 = vrot.slane %v7002_v62, %v6666_v49 }
 0x29c   : > { %3701 = vmatpush2.bf16.msra.mxu1 %v2736_v11  ;;  %3661 = vmatprep.subr.bf16.mxu0 %v2669_v13  ;;  %v2648_v11 = vunpack.c.h.s8.bf16 %v1796_v7  ;;  %v2712_v13 = vunpack.c.h.s8.bf16 %v1828_v9 }
 0x29d   : > { %3702 = vmatprep.subr.bf16.mxu1 %v2733_v15  ;;  %v2645_v15 = vunpack.c.l.s8.bf16 %v1797_v60 }
 0x29f   : > { %3662 = vmatpush2.bf16.msra.mxu0 %v2668_v16  ;;  %v1889_v16 = vld [vmem:[%s6641_s11 + $0xd68] sm:$0xff] }
 0x2a0   : > { %3703 = vmatpush2.bf16.msra.mxu1 %v2732_v17  ;;  %3663 = vmatprep.subr.bf16.mxu0 %v2665_v18  ;;  %v3167_v17 = vcombine.high %v7008_v10, %v7008_v10  ;;  %v7016_v18 = vrot.slane %v6942_v12, %v6666_v49 }
 0x2a1   : > { %3704 = vmatprep.subr.bf16.mxu1 %v2729_v19  ;;  %v2644_v19 = vunpack.c.l.s8.bf16 %v1796_v7 }
 0x2a2   : > { %v7025_v30 = vcombine.high %v7016_v18, %v7016_v18 }
 0x2a3   : > { %3664 = vmatpush2.bf16.msra.mxu0 %v2664_v26  ;;  %v2833_v26 = vunpack.c.h.s8.bf16 %v1889_v16 }
 0x2a4   : > { %3705 = vmatpush2.bf16.msra.mxu1 %v2728_v28  ;;  %3665 = vmatprep.subr.bf16.mxu0 %v2661_v20  ;;  %v1856_v28 = vld [vmem:[%s6641_s11 + $0xc60] sm:$0xff] }
 0x2a5   : > { %3706 = vmatprep.subr.bf16.mxu1 %v2725_v29  ;;  %v1888_v20 = vld [vmem:[%s6641_s11 + $0xd60] sm:$0xff]  ;;  %v7021_v29 = vrot.slane %v3167_v17, %v6666_v49  ;;  %v2768_v12 = vunpack.c.h.s8.bf16 %v1856_v28 }
 0x2a6   : > { %v2832_v34 = vunpack.c.h.s8.bf16 %v1888_v20 }
 0x2a7   : > { %3666 = vmatpush2.bf16.msra.mxu0 %v2660_v36  ;;  %v2765_v36 = vunpack.c.l.s8.bf16 %v1857_v22  ;;  %v7031_v46 = vcombine.high %v7021_v29, %v7021_v29 }
 0x2a8   : > { %3707 = vmatpush2.bf16.msra.mxu1 %v2724_v37  ;;  %3667 = vmatprep.subr.bf16.mxu0 %v2657_v39  ;;  %v2829_v37 = vunpack.c.l.s8.bf16 %v1889_v16  ;;  %v1853_v39 = vld [vmem:[%s6641_s11 + $0xc48] sm:$0xff] }
 0x2a9   : > { %3708 = vmatprep.subr.bf16.mxu1 %v2721_v41  ;;  %v1885_v41 = vld [vmem:[%s6641_s11 + $0xd48] sm:$0xff] }
 0x2aa   : > { %v2821_v17 = vunpack.c.l.s8.bf16 %v1885_v41 }
 0x2ab   : > { %3668 = vmatpush2.bf16.msra.mxu0 %v2656_v51 }
 0x2ac   : > { %3709 = vmatpush2.bf16.msra.mxu1 %v2720_v52  ;;  %3669 = vmatprep.subr.bf16.mxu0 %v2653_v53  ;;  %v2764_v53 = vunpack.c.l.s8.bf16 %v1856_v28 }
 0x2ad   : > { %3710 = vmatprep.subr.bf16.mxu1 %v2717_v25  ;;  %v2828_v25 = vunpack.c.l.s8.bf16 %v1888_v20 }
 0x2af   : > { %3670 = vmatpush2.bf16.msra.mxu0 %v2652_v63  ;;  %v2761_v63 = vunpack.c.h.s8.bf16 %v1853_v39 }
 0x2b0   : > { %3711 = vmatpush2.bf16.msra.mxu1 %v2716_v0  ;;  %3671 = vmatprep.subr.bf16.mxu0 %v2649_v5  ;;  %v2825_v0 = vunpack.c.h.s8.bf16 %v1885_v41  ;;  %v1852_v5 = vld [vmem:[%s6641_s11 + $0xc40] sm:$0xff] }
 0x2b1   : > { %3712 = vmatprep.subr.bf16.mxu1 %v2713_v6  ;;  %v1884_v6 = vld [vmem:[%s6641_s11 + $0xd40] sm:$0xff] }
 0x2b3   : > { %3672 = vmatpush2.bf16.msra.mxu0 %v2648_v11 }
 0x2b4   : > { %3713 = vmatpush2.bf16.msra.mxu1 %v2712_v13  ;;  %3673 = vmatprep.subr.bf16.mxu0 %v2645_v15  ;;  %v2760_v15 = vunpack.c.h.s8.bf16 %v1852_v5 }
 0x2b5   : > { %3714 = vmatprep.subr.bf16.mxu1 %v2709_v14  ;;  %v2824_v14 = vunpack.c.h.s8.bf16 %v1884_v6 }
 0x2b7   : > { %3674 = vmatpush2.bf16.msra.mxu0 %v2644_v19  ;;  %v1849_v19 = vld [vmem:[%s6641_s11 + $0xc28] sm:$0xff] }
 0x2b8   : > { %3715 = vmatpush2.bf16.msra.mxu1 %v2708_v23  ;;  %3725 = vmatprep.subr.bf16.mxu0 %v2769_v24  ;;  %v1881_v23 = vld [vmem:[%s6641_s11 + $0xd28] sm:$0xff]  ;;  %v2756_v24 = vunpack.c.l.s8.bf16 %v1852_v5  ;;  %v2753_v28 = vunpack.c.h.s8.bf16 %v1849_v19 }
 0x2b9   : > { %3766 = vmatprep.subr.bf16.mxu1 %v2833_v26  ;;  %v2820_v26 = vunpack.c.l.s8.bf16 %v1884_v6  ;;  %v2817_v20 = vunpack.c.h.s8.bf16 %v1881_v23  ;;  %v2813_v41 = vunpack.c.l.s8.bf16 %v1881_v23 }
 0x2ba   : > { %v3431_v47 = vpop.f32.mrf.mxu0  ;;  %3676 = vmatmul.mubr.bf16.vlgmr.msra.gmra.mxu0 %v7016_v18 }
 0x2bb   : > { %v3472_v51 = vpop.f32.mrf.mxu1  ;;  %3717 = vmatmul.mubr.bf16.vlgmr.msra.gmra.mxu1 %v7025_v30  ;;  %v3432_v52 = vadd.f32 %v3431_v47, %v6972_v4  ;;  %3726 = vmatpush1.bf16.msra.mxu0 %v2768_v12  ;;  %v1848_v12 = vld [vmem:[%s6641_s11 + $0xc20] sm:$0xff]  ;;  %v1845_v47 = vld [vmem:[%s6641_s11 + $0xc08] sm:$0xff] }
 0x2bc   : > { %3767 = vmatpush1.bf16.msra.mxu1 %v2832_v34  ;;  %v3433_v60 = vpop.f32.mrf.mxu0  ;;  %3727 = vmatprep.subr.bf16.mxu0 %v2765_v36  ;;  %v1880_v34 = vld [vmem:[%s6641_s11 + $0xd20] sm:$0xff]  ;;  %v2752_v36 = vunpack.c.h.s8.bf16 %v1848_v12  ;;  %v2741_v6 = vunpack.c.l.s8.bf16 %v1845_v47 }
 0x2bd   : > { %v3474_v61 = vpop.f32.mrf.mxu1  ;;  %3768 = vmatprep.subr.bf16.mxu1 %v2829_v37  ;;  %v7038_v7 = vadd.f32 %v3472_v51, %v3432_v52  ;;  %v3434_v9 = vadd.f32 %v3433_v60, %v6977_v8  ;;  %3757 = vmatprep.mubr.bf16.mxu0 %v7021_v29  ;;  %v2757_v8 = vunpack.c.l.s8.bf16 %v1853_v39  ;;  %v2816_v37 = vunpack.c.h.s8.bf16 %v1880_v34  ;;  %v1877_v51 = vld [vmem:[%s6641_s11 + $0xd08] sm:$0xff] }
 0x2be   : > { %3798 = vmatprep.mubr.bf16.mxu1 %v7031_v46  ;;  %v3435_v4 = vpop.f32.mrf.mxu0  ;;  %v2749_v39 = vunpack.c.l.s8.bf16 %v1849_v19  ;;  %v2748_v52 = vunpack.c.l.s8.bf16 %v1848_v12  ;;  %v2809_v60 = vunpack.c.h.s8.bf16 %v1877_v51 }
 0x2bf   : > { %v3476_v11 = vpop.f32.mrf.mxu1  ;;  %v7043_v13 = vadd.f32 %v3474_v61, %v3434_v9  ;;  %3728 = vmatpush1.bf16.msra.mxu0 %v2764_v53  ;;  %v2812_v53 = vunpack.c.l.s8.bf16 %v1880_v34  ;;  %v1844_v61 = vld [vmem:[%s6641_s11 + $0xc00] sm:$0xff]  ;;  %v2805_v9 = vunpack.c.l.s8.bf16 %v1877_v51  ;;  %v1873_v4 = vld [vmem:[%s6641_s11 + $0xce8] sm:$0xff] }
 0x2c0   : > { %3769 = vmatpush1.bf16.msra.mxu1 %v2828_v25  ;;  %v3436_v22 = vpop.f32.mrf.mxu0  ;;  %3729 = vmatprep.subr.bf16.mxu0 %v2761_v63  ;;  %v2745_v25 = vunpack.c.h.s8.bf16 %v1845_v47  ;;  %v1876_v63 = vld [vmem:[%s6641_s11 + $0xd00] sm:$0xff]  ;;  %v1905_v11 = vld [vmem:[%s6641_s11 + $0xde8] sm:$0xff] }
 0x2c1   : > { %v3477_v16 = vpop.f32.mrf.mxu1  ;;  %3770 = vmatprep.subr.bf16.mxu1 %v2825_v0  ;;  %v2744_v0 = vunpack.c.h.s8.bf16 %v1844_v61  ;;  %v2808_v5 = vunpack.c.h.s8.bf16 %v1876_v63  ;;  %v2801_v22 = vunpack.c.h.s8.bf16 %v1873_v4 }
 0x2c2   : > { %v2865_v16 = vunpack.c.h.s8.bf16 %v1905_v11 }
 0x2c3   : > { %3730 = vmatpush1.bf16.msra.mxu0 %v2760_v15  ;;  %v2740_v15 = vunpack.c.l.s8.bf16 %v1844_v61 }
 0x2c4   : > { %3771 = vmatpush1.bf16.msra.mxu1 %v2824_v14  ;;  %3731 = vmatprep.subr.bf16.mxu0 %v2757_v8  ;;  %v2804_v14 = vunpack.c.l.s8.bf16 %v1876_v63  ;;  %v1872_v8 = vld [vmem:[%s6641_s11 + $0xce0] sm:$0xff] }
 0x2c5   : > { %3772 = vmatprep.subr.bf16.mxu1 %v2821_v17  ;;  %v1904_v17 = vld [vmem:[%s6641_s11 + $0xde0] sm:$0xff]  ;;  %v2800_v19 = vunpack.c.h.s8.bf16 %v1872_v8  ;;  %v2796_v12 = vunpack.c.l.s8.bf16 %v1872_v8  ;;  %v3152_v8 = vcombine.high %v7002_v62, %v7002_v62 }
 0x2c6   : > { %v2864_v23 = vunpack.c.h.s8.bf16 %v1904_v17  ;;  %v2860_v34 = vunpack.c.l.s8.bf16 %v1904_v17 }
 0x2c7   : > { %3732 = vmatpush1.bf16.msra.mxu0 %v2756_v24  ;;  %v2797_v24 = vunpack.c.l.s8.bf16 %v1873_v4 }
 0x2c8   : > { %3773 = vmatpush1.bf16.msra.mxu1 %v2820_v26  ;;  %3733 = vmatprep.subr.bf16.mxu0 %v2753_v28  ;;  %v2861_v26 = vunpack.c.l.s8.bf16 %v1905_v11  ;;  %v1869_v28 = vld [vmem:[%s6641_s11 + $0xcc8] sm:$0xff] }
 0x2c9   : > { %3774 = vmatprep.subr.bf16.mxu1 %v2817_v20  ;;  %v1901_v20 = vld [vmem:[%s6641_s11 + $0xdc8] sm:$0xff] }
 0x2cb   : > { %3734 = vmatpush1.bf16.msra.mxu0 %v2752_v36  ;;  %v2793_v36 = vunpack.c.h.s8.bf16 %v1869_v28 }
 0x2cc   : > { %3775 = vmatpush1.bf16.msra.mxu1 %v2816_v37  ;;  %3735 = vmatprep.subr.bf16.mxu0 %v2749_v39  ;;  %v2857_v37 = vunpack.c.h.s8.bf16 %v1901_v20  ;;  %v1868_v39 = vld [vmem:[%s6641_s11 + $0xcc0] sm:$0xff] }
 0x2cd   : > { %3776 = vmatprep.subr.bf16.mxu1 %v2813_v41  ;;  %v1900_v41 = vld [vmem:[%s6641_s11 + $0xdc0] sm:$0xff]  ;;  %v2792_v47 = vunpack.c.h.s8.bf16 %v1868_v39  ;;  %v2788_v61 = vunpack.c.l.s8.bf16 %v1868_v39  ;;  %v1953_v39 = vld [vmem:[%s6641_s11 + $0xf68] sm:$0xff] }
 0x2ce   : > { %v2856_v51 = vunpack.c.h.s8.bf16 %v1900_v41  ;;  %v2852_v63 = vunpack.c.l.s8.bf16 %v1900_v41 }
 0x2cf   : > { %3736 = vmatpush1.bf16.msra.mxu0 %v2748_v52  ;;  %v2789_v52 = vunpack.c.l.s8.bf16 %v1869_v28  ;;  %v1892_v28 = vld [vmem:[%s6641_s11 + $0xd80] sm:$0xff] }
 0x2d0   : > { %3777 = vmatpush1.bf16.msra.mxu1 %v2812_v53  ;;  %3737 = vmatprep.subr.bf16.mxu0 %v2745_v25  ;;  %v2853_v53 = vunpack.c.l.s8.bf16 %v1901_v20  ;;  %v1865_v25 = vld [vmem:[%s6641_s11 + $0xca8] sm:$0xff]  ;;  %v7072_v20 = vrot.slane %v3152_v8, %v6666_v49 }
 0x2d1   : > { %3778 = vmatprep.subr.bf16.mxu1 %v2809_v60  ;;  %v1897_v60 = vld [vmem:[%s6641_s11 + $0xda8] sm:$0xff] }
 0x2d2   : > { %v3168_v41 = vcombine.high %v7072_v20, %v7072_v20 }
 0x2d3   : > { %3738 = vmatpush1.bf16.msra.mxu0 %v2744_v0  ;;  %v2785_v0 = vunpack.c.h.s8.bf16 %v1865_v25 }
 0x2d4   : > { %3779 = vmatpush1.bf16.msra.mxu1 %v2808_v5  ;;  %3739 = vmatprep.subr.bf16.mxu0 %v2741_v6  ;;  %v2849_v5 = vunpack.c.h.s8.bf16 %v1897_v60  ;;  %v1864_v6 = vld [vmem:[%s6641_s11 + $0xca0] sm:$0xff] }
 0x2d5   : > { %3780 = vmatprep.subr.bf16.mxu1 %v2805_v9  ;;  %v1896_v9 = vld [vmem:[%s6641_s11 + $0xda0] sm:$0xff]  ;;  %v2784_v4 = vunpack.c.h.s8.bf16 %v1864_v6  ;;  %v2780_v17 = vunpack.c.l.s8.bf16 %v1864_v6 }
 0x2d6   : > { %v2848_v11 = vunpack.c.h.s8.bf16 %v1896_v9 }
 0x2d7   : > { %3740 = vmatpush1.bf16.msra.mxu0 %v2740_v15  ;;  %v2781_v15 = vunpack.c.l.s8.bf16 %v1865_v25  ;;  %v2961_v25 = vunpack.c.h.s8.bf16 %v1953_v39 }
 0x2d8   : > { %3781 = vmatpush1.bf16.msra.mxu1 %v2804_v14  ;;  %3741 = vmatprep.subr.bf16.mxu0 %v2801_v22  ;;  %v2845_v14 = vunpack.c.l.s8.bf16 %v1897_v60  ;;  %v1861_v22 = vld [vmem:[%s6641_s11 + $0xc88] sm:$0xff]  ;;  %v1920_v60 = vld [vmem:[%s6641_s11 + $0xe60] sm:$0xff] }
 0x2d9   : > { %3782 = vmatprep.subr.bf16.mxu1 %v2865_v16  ;;  %v1893_v16 = vld [vmem:[%s6641_s11 + $0xd88] sm:$0xff]  ;;  %v2773_v62 = vunpack.c.l.s8.bf16 %v1861_v22  ;;  %v2892_v8 = vunpack.c.l.s8.bf16 %v1920_v60 }
 0x2db   : > { %3742 = vmatpush2.bf16.msra.mxu0 %v2800_v19  ;;  %v2844_v19 = vunpack.c.l.s8.bf16 %v1896_v9  ;;  %v2957_v9 = vunpack.c.l.s8.bf16 %v1953_v39 }
 0x2dc   : > { %3783 = vmatpush2.bf16.msra.mxu1 %v2864_v23  ;;  %3743 = vmatprep.subr.bf16.mxu0 %v2797_v24  ;;  %v2777_v23 = vunpack.c.h.s8.bf16 %v1861_v22  ;;  %v2841_v24 = vunpack.c.h.s8.bf16 %v1893_v16 }
 0x2dd   : > { %3784 = vmatprep.subr.bf16.mxu1 %v2861_v26  ;;  %v1860_v26 = vld [vmem:[%s6641_s11 + $0xc80] sm:$0xff] }
 0x2df   : > { %3744 = vmatpush2.bf16.msra.mxu0 %v2796_v12  ;;  %v2776_v12 = vunpack.c.h.s8.bf16 %v1860_v26 }
 0x2e0   : > { %3785 = vmatpush2.bf16.msra.mxu1 %v2860_v34  ;;  %3745 = vmatprep.subr.bf16.mxu0 %v2793_v36  ;;  %v2840_v34 = vunpack.c.h.s8.bf16 %v1892_v28  ;;  %v2837_v36 = vunpack.c.l.s8.bf16 %v1893_v16 }
 0x2e1   : > { %3786 = vmatprep.subr.bf16.mxu1 %v2857_v37  ;;  %v1921_v37 = vld [vmem:[%s6641_s11 + $0xe68] sm:$0xff] }
 0x2e2   : > { %v2893_v6 = vunpack.c.l.s8.bf16 %v1921_v37 }
 0x2e3   : > { %3746 = vmatpush2.bf16.msra.mxu0 %v2792_v47  ;;  %v7080_v47 = vrot.slane %v7008_v10, %v6666_v49  ;;  %v2896_v10 = vunpack.c.h.s8.bf16 %v1920_v60  ;;  %v1945_v60 = vld [vmem:[%s6641_s11 + $0xf28] sm:$0xff] }
 0x2e4   : > { %3787 = vmatpush2.bf16.msra.mxu1 %v2856_v51  ;;  %3747 = vmatprep.subr.bf16.mxu0 %v2789_v52  ;;  %v2772_v51 = vunpack.c.l.s8.bf16 %v1860_v26  ;;  %v2836_v52 = vunpack.c.l.s8.bf16 %v1892_v28  ;;  %v1916_v28 = vld [vmem:[%s6641_s11 + $0xe40] sm:$0xff] }
 0x2e5   : > { %3788 = vmatprep.subr.bf16.mxu1 %v2853_v53  ;;  %v2897_v53 = vunpack.c.h.s8.bf16 %v1921_v37  ;;  %v2888_v39 = vunpack.c.h.s8.bf16 %v1916_v28 }
 0x2e7   : > { %3748 = vmatpush2.bf16.msra.mxu0 %v2788_v61  ;;  %v1952_v61 = vld [vmem:[%s6641_s11 + $0xf60] sm:$0xff] }
 0x2e8   : > { %3789 = vmatpush2.bf16.msra.mxu1 %v2852_v63  ;;  %3749 = vmatprep.subr.bf16.mxu0 %v2785_v0  ;;  %v7085_v63 = vrot.slane %v3168_v41, %v6666_v49  ;;  %v7089_v0 = vcombine.high %v7080_v47, %v7080_v47 }
 0x2e9   : > { %3790 = vmatprep.subr.bf16.mxu1 %v2849_v5  ;;  %v2960_v5 = vunpack.c.h.s8.bf16 %v1952_v61 }
 0x2eb   : > { %3750 = vmatpush2.bf16.msra.mxu0 %v2784_v4  ;;  %v1917_v4 = vld [vmem:[%s6641_s11 + $0xe48] sm:$0xff] }
 0x2ec   : > { %3791 = vmatpush2.bf16.msra.mxu1 %v2848_v11  ;;  %3751 = vmatprep.subr.bf16.mxu0 %v2781_v15  ;;  %v1949_v11 = vld [vmem:[%s6641_s11 + $0xf48] sm:$0xff]  ;;  %v7095_v15 = vcombine.high %v7085_v63, %v7085_v63 }
 0x2ed   : > { %3792 = vmatprep.subr.bf16.mxu1 %v2845_v14  ;;  %v2953_v26 = vunpack.c.h.s8.bf16 %v1949_v11 }
 0x2ef   : > { %3752 = vmatpush2.bf16.msra.mxu0 %v2780_v17  ;;  %v2956_v17 = vunpack.c.l.s8.bf16 %v1952_v61  ;;  %v2884_v61 = vunpack.c.l.s8.bf16 %v1916_v28  ;;  %v1908_v28 = vld [vmem:[%s6641_s11 + $0xe00] sm:$0xff] }
 0x2f0   : > { %3793 = vmatpush2.bf16.msra.mxu1 %v2844_v19  ;;  %3753 = vmatprep.subr.bf16.mxu0 %v2777_v23 }
 0x2f1   : > { %3794 = vmatprep.subr.bf16.mxu1 %v2841_v24  ;;  %v2889_v24 = vunpack.c.h.s8.bf16 %v1917_v4 }
 0x2f3   : > { %3754 = vmatpush2.bf16.msra.mxu0 %v2776_v12  ;;  %v1948_v12 = vld [vmem:[%s6641_s11 + $0xf40] sm:$0xff] }
 0x2f4   : > { %3795 = vmatpush2.bf16.msra.mxu1 %v2840_v34  ;;  %3755 = vmatprep.subr.bf16.mxu0 %v2773_v62  ;;  %v2952_v41 = vunpack.c.h.s8.bf16 %v1948_v12 }
 0x2f5   : > { %3796 = vmatprep.subr.bf16.mxu1 %v2837_v36 }
 0x2f7   : > { %3756 = vmatpush2.bf16.msra.mxu0 %v2772_v51 }
 0x2f8   : > { %3797 = vmatpush2.bf16.msra.mxu1 %v2836_v52  ;;  %3807 = vmatprep.subr.bf16.mxu0 %v2897_v53  ;;  %v2949_v53 = vunpack.c.l.s8.bf16 %v1949_v11 }
 0x2f9   : > { %3848 = vmatprep.subr.bf16.mxu1 %v2961_v25  ;;  %v1913_v25 = vld [vmem:[%s6641_s11 + $0xe28] sm:$0xff] }
 0x2fa   : > { %v3513_v14 = vpop.f32.mrf.mxu0  ;;  %3758 = vmatmul.mubr.bf16.vlgmr.msra.gmra.mxu0 %v7080_v47  ;;  %v2877_v11 = vunpack.c.l.s8.bf16 %v1913_v25 }
 0x2fb   : > { %v3554_v22 = vpop.f32.mrf.mxu1  ;;  %3799 = vmatmul.mubr.bf16.vlgmr.msra.gmra.mxu1 %v7089_v0  ;;  %v3514_v16 = vadd.f32 %v3513_v14, %v7038_v7  ;;  %3808 = vmatpush1.bf16.msra.mxu0 %v2896_v10  ;;  %v2948_v10 = vunpack.c.l.s8.bf16 %v1948_v12  ;;  %v1944_v14 = vld [vmem:[%s6641_s11 + $0xf20] sm:$0xff] }
 0x2fc   : > { %3849 = vmatpush1.bf16.msra.mxu1 %v2960_v5  ;;  %v3515_v19 = vpop.f32.mrf.mxu0  ;;  %3809 = vmatprep.subr.bf16.mxu0 %v2893_v6  ;;  %v2881_v5 = vunpack.c.h.s8.bf16 %v1913_v25  ;;  %v2945_v6 = vunpack.c.h.s8.bf16 %v1945_v60  ;;  %v1940_v12 = vld [vmem:[%s6641_s11 + $0xf00] sm:$0xff] }
 0x2fd   : > { %v3556_v23 = vpop.f32.mrf.mxu1  ;;  %3850 = vmatprep.subr.bf16.mxu1 %v2957_v9  ;;  %v7102_v34 = vadd.f32 %v3554_v22, %v3514_v16  ;;  %v3516_v62 = vadd.f32 %v3515_v19, %v7043_v13  ;;  %3839 = vmatprep.mubr.bf16.mxu0 %v7085_v63  ;;  %v2885_v13 = vunpack.c.l.s8.bf16 %v1917_v4  ;;  %v1912_v9 = vld [vmem:[%s6641_s11 + $0xe20] sm:$0xff]  ;;  %v2944_v4 = vunpack.c.h.s8.bf16 %v1944_v14 }
 0x2fe   : > { %3880 = vmatprep.mubr.bf16.mxu1 %v7095_v15  ;;  %v3517_v7 = vpop.f32.mrf.mxu0  ;;  %v2880_v22 = vunpack.c.h.s8.bf16 %v1912_v9  ;;  %v2941_v16 = vunpack.c.l.s8.bf16 %v1945_v60  ;;  %v2876_v19 = vunpack.c.l.s8.bf16 %v1912_v9  ;;  %v1936_v60 = vld [vmem:[%s6641_s11 + $0xee0] sm:$0xff] }
 0x2ff   : > { %v3558_v36 = vpop.f32.mrf.mxu1  ;;  %v7107_v37 = vadd.f32 %v3556_v23, %v3516_v62  ;;  %3810 = vmatpush1.bf16.msra.mxu0 %v2892_v8  ;;  %v1909_v8 = vld [vmem:[%s6641_s11 + $0xe08] sm:$0xff]  ;;  %v2940_v23 = vunpack.c.l.s8.bf16 %v1944_v14  ;;  %v2872_v62 = vunpack.c.h.s8.bf16 %v1908_v28  ;;  %v2936_v7 = vunpack.c.h.s8.bf16 %v1940_v12 }
 0x300   : > { %3851 = vmatpush1.bf16.msra.mxu1 %v2956_v17  ;;  %v3518_v51 = vpop.f32.mrf.mxu0  ;;  %3811 = vmatprep.subr.bf16.mxu0 %v2889_v24  ;;  %v1941_v17 = vld [vmem:[%s6641_s11 + $0xf08] sm:$0xff]  ;;  %v2873_v24 = vunpack.c.h.s8.bf16 %v1909_v8  ;;  %v2869_v36 = vunpack.c.l.s8.bf16 %v1909_v8 }
 0x301   : > { %v3559_v52 = vpop.f32.mrf.mxu1  ;;  %3852 = vmatprep.subr.bf16.mxu1 %v2953_v26  ;;  %v2937_v26 = vunpack.c.h.s8.bf16 %v1941_v17  ;;  %v1969_v51 = vld [vmem:[%s6641_s11 + $0xfe8] sm:$0xff] }
 0x302   : > { %v2868_v52 = vunpack.c.l.s8.bf16 %v1908_v28  ;;  %v2993_v25 = vunpack.c.h.s8.bf16 %v1969_v51  ;;  %v2989_v9 = vunpack.c.l.s8.bf16 %v1969_v51  ;;  %v1933_v14 = vld [vmem:[%s6641_s11 + $0xec8] sm:$0xff]  ;;  %v1928_v51 = vld [vmem:[%s6641_s11 + $0xea0] sm:$0xff] }
 0x303   : > { %3812 = vmatpush1.bf16.msra.mxu0 %v2888_v39  ;;  %v2933_v39 = vunpack.c.l.s8.bf16 %v1941_v17  ;;  %v1932_v17 = vld [vmem:[%s6641_s11 + $0xec0] sm:$0xff] }
 0x304   : > { %3853 = vmatpush1.bf16.msra.mxu1 %v2952_v41  ;;  %3813 = vmatprep.subr.bf16.mxu0 %v2885_v13  ;;  %v1937_v41 = vld [vmem:[%s6641_s11 + $0xee8] sm:$0xff]  ;;  %v2932_v13 = vunpack.c.l.s8.bf16 %v1940_v12 }
 0x305   : > { %3854 = vmatprep.subr.bf16.mxu1 %v2949_v53  ;;  %v2929_v53 = vunpack.c.h.s8.bf16 %v1937_v41  ;;  %v1929_v12 = vld [vmem:[%s6641_s11 + $0xea8] sm:$0xff] }
 0x307   : > { %3814 = vmatpush1.bf16.msra.mxu0 %v2884_v61  ;;  %v1968_v61 = vld [vmem:[%s6641_s11 + $0xfe0] sm:$0xff] }
 0x308   : > { %3855 = vmatpush1.bf16.msra.mxu1 %v2948_v10  ;;  %3815 = vmatprep.subr.bf16.mxu0 %v2881_v5  ;;  %v2928_v10 = vunpack.c.h.s8.bf16 %v1936_v60  ;;  %v2992_v5 = vunpack.c.h.s8.bf16 %v1968_v61 }
 0x309   : > { %3856 = vmatprep.subr.bf16.mxu1 %v2945_v6  ;;  %v2925_v6 = vunpack.c.l.s8.bf16 %v1937_v41 }
 0x30b   : > { %3816 = vmatpush1.bf16.msra.mxu0 %v2880_v22  ;;  %v1965_v22 = vld [vmem:[%s6641_s11 + $0xfc8] sm:$0xff] }
 0x30c   : > { %3857 = vmatpush1.bf16.msra.mxu1 %v2944_v4  ;;  %3817 = vmatprep.subr.bf16.mxu0 %v2877_v11  ;;  %v2924_v4 = vunpack.c.l.s8.bf16 %v1936_v60  ;;  %v2988_v11 = vunpack.c.l.s8.bf16 %v1968_v61  ;;  %v2985_v8 = vunpack.c.h.s8.bf16 %v1965_v22  ;;  %v2981_v28 = vunpack.c.l.s8.bf16 %v1965_v22  ;;  %v1925_v61 = vld [vmem:[%s6641_s11 + $0xe88] sm:$0xff]  ;;  %v1924_v22 = vld [vmem:[%s6641_s11 + $0xe80] sm:$0xff] }
 0x30d   : > { %3858 = vmatprep.subr.bf16.mxu1 %v2941_v16  ;;  %v2921_v16 = vunpack.c.h.s8.bf16 %v1933_v14 }
 0x30f   : > { %3818 = vmatpush1.bf16.msra.mxu0 %v2876_v19  ;;  %v1964_v19 = vld [vmem:[%s6641_s11 + $0xfc0] sm:$0xff] }
 0x310   : > { %3859 = vmatpush1.bf16.msra.mxu1 %v2940_v23  ;;  %3819 = vmatprep.subr.bf16.mxu0 %v2873_v24  ;;  %v2920_v23 = vunpack.c.h.s8.bf16 %v1932_v17  ;;  %v2984_v24 = vunpack.c.h.s8.bf16 %v1964_v19 }
 0x311   : > { %3860 = vmatprep.subr.bf16.mxu1 %v2937_v26  ;;  %v2917_v26 = vunpack.c.l.s8.bf16 %v1933_v14 }
 0x313   : > { %3820 = vmatpush1.bf16.msra.mxu0 %v2872_v62  ;;  %v1961_v62 = vld [vmem:[%s6641_s11 + $0xfa8] sm:$0xff] }
 0x314   : > { %3861 = vmatpush1.bf16.msra.mxu1 %v2936_v7  ;;  %3821 = vmatprep.subr.bf16.mxu0 %v2869_v36  ;;  %v2916_v7 = vunpack.c.l.s8.bf16 %v1932_v17  ;;  %v2980_v36 = vunpack.c.l.s8.bf16 %v1964_v19  ;;  %v2977_v41 = vunpack.c.h.s8.bf16 %v1961_v62  ;;  %v2973_v60 = vunpack.c.l.s8.bf16 %v1961_v62  ;;  %v1475_v19 = vld [vmem:[%s6641_s11 + $0x78] sm:$0xff] }
 0x315   : > { %3862 = vmatprep.subr.bf16.mxu1 %v2933_v39  ;;  %v2913_v39 = vunpack.c.h.s8.bf16 %v1929_v12 }
 0x317   : > { %3822 = vmatpush1.bf16.msra.mxu0 %v2868_v52  ;;  %v1960_v52 = vld [vmem:[%s6641_s11 + $0xfa0] sm:$0xff] }
 0x318   : > { %3863 = vmatpush1.bf16.msra.mxu1 %v2932_v13  ;;  %3823 = vmatprep.subr.bf16.mxu0 %v2929_v53  ;;  %v2912_v13 = vunpack.c.h.s8.bf16 %v1928_v51  ;;  %v2976_v53 = vunpack.c.h.s8.bf16 %v1960_v52 }
 0x319   : > { %3864 = vmatprep.subr.bf16.mxu1 %v2993_v25  ;;  %v2909_v25 = vunpack.c.l.s8.bf16 %v1929_v12  ;;  %v2003_v12 = vunpack.c.h.s8.bf16 %v1475_v19 }
 0x31b   : > { %3824 = vmatpush2.bf16.msra.mxu0 %v2928_v10  ;;  %v1957_v10 = vld [vmem:[%s6641_s11 + $0xf88] sm:$0xff] }
 0x31c   : > { %3865 = vmatpush2.bf16.msra.mxu1 %v2992_v5  ;;  %3825 = vmatprep.subr.bf16.mxu0 %v2925_v6  ;;  %v2908_v5 = vunpack.c.l.s8.bf16 %v1928_v51  ;;  %v2972_v6 = vunpack.c.l.s8.bf16 %v1960_v52  ;;  %v2969_v14 = vunpack.c.h.s8.bf16 %v1957_v10  ;;  %v2965_v17 = vunpack.c.l.s8.bf16 %v1957_v10  ;;  %v1471_v52 = vld [vmem:[%s6641_s11 + $0x58] sm:$0xff] }
 0x31d   : > { %3866 = vmatprep.subr.bf16.mxu1 %v2989_v9  ;;  %v2905_v9 = vunpack.c.h.s8.bf16 %v1925_v61 }
 0x31f   : > { %3826 = vmatpush2.bf16.msra.mxu0 %v2924_v4  ;;  %v1956_v4 = vld [vmem:[%s6641_s11 + $0xf80] sm:$0xff] }
 0x320   : > { %3867 = vmatpush2.bf16.msra.mxu1 %v2988_v11  ;;  %3827 = vmatprep.subr.bf16.mxu0 %v2921_v16  ;;  %v2904_v11 = vunpack.c.h.s8.bf16 %v1924_v22  ;;  %v2968_v16 = vunpack.c.h.s8.bf16 %v1956_v4 }
 0x321   : > { %3868 = vmatprep.subr.bf16.mxu1 %v2985_v8  ;;  %v2901_v8 = vunpack.c.l.s8.bf16 %v1925_v61 }
 0x323   : > { %3828 = vmatpush2.bf16.msra.mxu0 %v2920_v23  ;;  %v1507_v23 = vld [vmem:[%s6641_s11 + $0x178] sm:$0xff] }
 0x324   : > { %3869 = vmatpush2.bf16.msra.mxu1 %v2984_v24  ;;  %3829 = vmatprep.subr.bf16.mxu0 %v2917_v26  ;;  %v7137_v24 = vrot.slane %v7072_v20, %v6666_v49  ;;  %v2900_v26 = vunpack.c.l.s8.bf16 %v1924_v22  ;;  %v2067_v62 = vunpack.c.h.s8.bf16 %v1507_v23  ;;  %v2063_v51 = vunpack.c.l.s8.bf16 %v1507_v23  ;;  %v1470_v22 = vld [vmem:[%s6641_s11 + $0x50] sm:$0xff] }
 0x325   : > { %3870 = vmatprep.subr.bf16.mxu1 %v2981_v28  ;;  %v2964_v28 = vunpack.c.l.s8.bf16 %v1956_v4  ;;  %v1502_v4 = vld [vmem:[%s6641_s11 + $0x150] sm:$0xff] }
 0x326   : > { %v2058_v23 = vunpack.c.h.s8.bf16 %v1502_v4 }
 0x327   : > { %3830 = vmatpush2.bf16.msra.mxu0 %v2916_v7  ;;  %v1474_v7 = vld [vmem:[%s6641_s11 + $0x70] sm:$0xff] }
 0x328   : > { %3871 = vmatpush2.bf16.msra.mxu1 %v2980_v36  ;;  %3831 = vmatprep.subr.bf16.mxu0 %v2913_v39  ;;  %v1506_v36 = vld [vmem:[%s6641_s11 + $0x170] sm:$0xff]  ;;  %v7143_v39 = vcombine.high %v7137_v24, %v7137_v24  ;;  %v2002_v49 = vunpack.c.h.s8.bf16 %v1474_v7  ;;  %v1998_v61 = vunpack.c.l.s8.bf16 %v1474_v7  ;;  %v2054_v7 = vunpack.c.l.s8.bf16 %v1502_v4 }
 0x329   : > { %3872 = vmatprep.subr.bf16.mxu1 %v2977_v41  ;;  %v2066_v20 = vunpack.c.h.s8.bf16 %v1506_v36  ;;  %v1999_v41 = vunpack.c.l.s8.bf16 %v1475_v19  ;;  %v2062_v10 = vunpack.c.l.s8.bf16 %v1506_v36  ;;  %v1994_v19 = vunpack.c.h.s8.bf16 %v1470_v22 }
 0x32b   : > { %3832 = vmatpush2.bf16.msra.mxu0 %v2912_v13  ;;  %v1503_v13 = vld [vmem:[%s6641_s11 + $0x158] sm:$0xff] }
 0x32c   : > { %3873 = vmatpush2.bf16.msra.mxu1 %v2976_v53  ;;  %3833 = vmatprep.subr.bf16.mxu0 %v2909_v25 }
 0x32d   : > { %3874 = vmatprep.subr.bf16.mxu1 %v2973_v60 }
 0x32f   : > { %3834 = vmatpush2.bf16.msra.mxu0 %v2908_v5 }
 0x330   : > { %3875 = vmatpush2.bf16.msra.mxu1 %v2972_v6  ;;  %3835 = vmatprep.subr.bf16.mxu0 %v2905_v9  ;;  %v1995_v9 = vunpack.c.h.s8.bf16 %v1471_v52 }
 0x331   : > { %3876 = vmatprep.subr.bf16.mxu1 %v2969_v14  ;;  %v2059_v14 = vunpack.c.h.s8.bf16 %v1503_v13 }
 0x333   : > { %3836 = vmatpush2.bf16.msra.mxu0 %v2904_v11 }
 0x334   : > { %3877 = vmatpush2.bf16.msra.mxu1 %v2968_v16  ;;  %3837 = vmatprep.subr.bf16.mxu0 %v2901_v8 }
 0x335   : > { %3878 = vmatprep.subr.bf16.mxu1 %v2965_v17 }
 0x337   : > { %3838 = vmatpush2.bf16.msra.mxu0 %v2900_v26 }
 0x338   : > { %3879 = vmatpush2.bf16.msra.mxu1 %v2964_v28  ;;  %3889 = vmatprep.subr.bf16.mxu0 %v2003_v12  ;;  %v2055_v12 = vunpack.c.l.s8.bf16 %v1503_v13 }
 0x339   : > { %3930 = vmatprep.subr.bf16.mxu1 %v2067_v62  ;;  %v1499_v62 = vld [vmem:[%s6641_s11 + $0x138] sm:$0xff] }
 0x33a   : > { %v3595_v53 = vpop.f32.mrf.mxu0  ;;  %3840 = vmatmul.mubr.bf16.vlgmr.msra.gmra.mxu0 %v7137_v24 }
 0x33b   : > { %v3636_v25 = vpop.f32.mrf.mxu1  ;;  %3881 = vmatmul.mubr.bf16.vlgmr.msra.gmra.mxu1 %v7143_v39  ;;  %v3596_v60 = vadd.f32 %v3595_v53, %v7102_v34  ;;  %3890 = vmatpush1.bf16.msra.mxu0 %v2002_v49  ;;  %v2051_v49 = vunpack.c.h.s8.bf16 %v1499_v62  ;;  %v2047_v53 = vunpack.c.l.s8.bf16 %v1499_v62 }
 0x33c   : > { %3931 = vmatpush1.bf16.msra.mxu1 %v2066_v20  ;;  %v3597_v5 = vpop.f32.mrf.mxu0  ;;  %3891 = vmatprep.subr.bf16.mxu0 %v1999_v41  ;;  %v1466_v20 = vld [vmem:[%s6641_s11 + $0x30] sm:$0xff] }
 0x33d   : > { %v3638_v6 = vpop.f32.mrf.mxu1  ;;  %3932 = vmatprep.subr.bf16.mxu1 %v2063_v51  ;;  %v7152_v11 = vadd.f32 %v3636_v25, %v3596_v60  ;;  %v3598_v16 = vadd.f32 %v3597_v5, %v7107_v37  ;;  %3921 = vmatprep.mubr.bf16.mxu0 %v6677_v58  ;;  %v1991_v37 = vunpack.c.l.s8.bf16 %v1471_v52  ;;  %v1467_v58 = vld [vmem:[%s6641_s11 + $0x38] sm:$0xff]  ;;  %v1498_v41 = vld [vmem:[%s6641_s11 + $0x130] sm:$0xff]  ;;  %v1986_v51 = vunpack.c.h.s8.bf16 %v1466_v20 }
 0x33e   : > { %3962 = vmatprep.mubr.bf16.mxu1 %v6683_v1  ;;  %v3599_v34 = vpop.f32.mrf.mxu0  ;;  %v1990_v1 = vunpack.c.l.s8.bf16 %v1470_v22  ;;  %v1987_v36 = vunpack.c.h.s8.bf16 %v1467_v58  ;;  %v2050_v52 = vunpack.c.h.s8.bf16 %v1498_v41  ;;  %v1983_v13 = vunpack.c.l.s8.bf16 %v1467_v58  ;;  %v1463_v25 = vld [vmem:[%s6641_s11 + $0x18] sm:$0xff]  ;;  %v1522_v58 = vld [vmem:[%s6641_s11 + $0x1f0] sm:$0xff] }
 0x33f   : > { %v3640_v8 = vpop.f32.mrf.mxu1  ;;  %v7157_v17 = vadd.f32 %v3638_v6, %v3598_v16  ;;  %3892 = vmatpush1.bf16.msra.mxu0 %v1998_v61  ;;  %v1495_v60 = vld [vmem:[%s6641_s11 + $0x118] sm:$0xff]  ;;  %v1982_v61 = vunpack.c.l.s8.bf16 %v1466_v20  ;;  %v1979_v5 = vunpack.c.h.s8.bf16 %v1463_v25  ;;  %v1975_v16 = vunpack.c.l.s8.bf16 %v1463_v25  ;;  %v1518_v25 = vld [vmem:[%s6641_s11 + $0x1d0] sm:$0xff] }
 0x340   : > { %3933 = vmatpush1.bf16.msra.mxu1 %v2062_v10  ;;  %v3600_v26 = vpop.f32.mrf.mxu0  ;;  %3893 = vmatprep.subr.bf16.mxu0 %v1995_v9  ;;  %v2046_v10 = vunpack.c.l.s8.bf16 %v1498_v41  ;;  %v2043_v6 = vunpack.c.h.s8.bf16 %v1495_v60  ;;  %v1462_v9 = vld [vmem:[%s6641_s11 + $0x10] sm:$0xff]  ;;  %v2039_v34 = vunpack.c.l.s8.bf16 %v1495_v60  ;;  %v1491_v8 = vld [vmem:[%s6641_s11 + $0xf8] sm:$0xff] }
 0x341   : > { %v3641_v28 = vpop.f32.mrf.mxu1  ;;  %3934 = vmatprep.subr.bf16.mxu1 %v2059_v14  ;;  %v1494_v14 = vld [vmem:[%s6641_s11 + $0x110] sm:$0xff]  ;;  %v1978_v22 = vunpack.c.h.s8.bf16 %v1462_v9  ;;  %v1519_v20 = vld [vmem:[%s6641_s11 + $0x1d8] sm:$0xff] }
 0x342   : > { %v2042_v4 = vunpack.c.h.s8.bf16 %v1494_v14  ;;  %v2038_v26 = vunpack.c.l.s8.bf16 %v1494_v14  ;;  %v2035_v28 = vunpack.c.h.s8.bf16 %v1491_v8 }
 0x343   : > { %3894 = vmatpush1.bf16.msra.mxu0 %v1994_v19  ;;  %v1523_v19 = vld [vmem:[%s6641_s11 + $0x1f8] sm:$0xff] }
 0x344   : > { %3935 = vmatpush1.bf16.msra.mxu1 %v2058_v23  ;;  %3895 = vmatprep.subr.bf16.mxu0 %v1991_v37  ;;  %v1974_v23 = vunpack.c.l.s8.bf16 %v1462_v9  ;;  %v2099_v37 = vunpack.c.h.s8.bf16 %v1523_v19  ;;  %v1515_v9 = vld [vmem:[%s6641_s11 + $0x1b8] sm:$0xff] }
 0x345   : > { %3936 = vmatprep.subr.bf16.mxu1 %v2055_v12  ;;  %v1490_v12 = vld [vmem:[%s6641_s11 + $0xf0] sm:$0xff] }
 0x346   : > { %v2034_v62 = vunpack.c.h.s8.bf16 %v1490_v12  ;;  %v2030_v41 = vunpack.c.l.s8.bf16 %v1490_v12  ;;  %v1511_v12 = vld [vmem:[%s6641_s11 + $0x198] sm:$0xff] }
 0x347   : > { %3896 = vmatpush1.bf16.msra.mxu0 %v1990_v1  ;;  %v2098_v1 = vunpack.c.h.s8.bf16 %v1522_v58 }
 0x348   : > { %3937 = vmatpush1.bf16.msra.mxu1 %v2054_v7  ;;  %3897 = vmatprep.subr.bf16.mxu0 %v1987_v36  ;;  %v2031_v7 = vunpack.c.l.s8.bf16 %v1491_v8  ;;  %v2095_v36 = vunpack.c.l.s8.bf16 %v1523_v19  ;;  %v1514_v8 = vld [vmem:[%s6641_s11 + $0x1b0] sm:$0xff] }
 0x349   : > { %3938 = vmatprep.subr.bf16.mxu1 %v2051_v49  ;;  %v1487_v49 = vld [vmem:[%s6641_s11 + $0xd8] sm:$0xff] }
 0x34b   : > { %3898 = vmatpush1.bf16.msra.mxu0 %v1986_v51  ;;  %v2094_v51 = vunpack.c.l.s8.bf16 %v1522_v58 }
 0x34c   : > { %3939 = vmatpush1.bf16.msra.mxu1 %v2050_v52  ;;  %3899 = vmatprep.subr.bf16.mxu0 %v1983_v13  ;;  %v2027_v52 = vunpack.c.h.s8.bf16 %v1487_v49  ;;  %v2091_v13 = vunpack.c.h.s8.bf16 %v1519_v20 }
 0x34d   : > { %3940 = vmatprep.subr.bf16.mxu1 %v2047_v53  ;;  %v1486_v53 = vld [vmem:[%s6641_s11 + $0xd0] sm:$0xff] }
 0x34e   : > { %v2026_v60 = vunpack.c.h.s8.bf16 %v1486_v53  ;;  %v2022_v14 = vunpack.c.l.s8.bf16 %v1486_v53  ;;  %v1571_v53 = vld [vmem:[%s6641_s11 + $0x378] sm:$0xff] }
 0x34f   : > { %3900 = vmatpush1.bf16.msra.mxu0 %v1982_v61  ;;  %v2090_v61 = vunpack.c.h.s8.bf16 %v1518_v25 }
 0x350   : > { %3941 = vmatpush1.bf16.msra.mxu1 %v2046_v10  ;;  %3901 = vmatprep.subr.bf16.mxu0 %v1979_v5  ;;  %v2023_v10 = vunpack.c.l.s8.bf16 %v1487_v49  ;;  %v2087_v5 = vunpack.c.l.s8.bf16 %v1519_v20  ;;  %v1510_v49 = vld [vmem:[%s6641_s11 + $0x190] sm:$0xff] }
 0x351   : > { %3942 = vmatprep.subr.bf16.mxu1 %v2043_v6  ;;  %v1483_v6 = vld [vmem:[%s6641_s11 + $0xb8] sm:$0xff] }
 0x353   : > { %3902 = vmatpush1.bf16.msra.mxu0 %v1978_v22  ;;  %v2086_v22 = vunpack.c.l.s8.bf16 %v1518_v25 }
 0x354   : > { %3943 = vmatpush1.bf16.msra.mxu1 %v2042_v4  ;;  %3903 = vmatprep.subr.bf16.mxu0 %v1975_v16  ;;  %v2019_v4 = vunpack.c.h.s8.bf16 %v1483_v6  ;;  %v2083_v16 = vunpack.c.h.s8.bf16 %v1515_v9 }
 0x355   : > { %3944 = vmatprep.subr.bf16.mxu1 %v2039_v34  ;;  %v1482_v34 = vld [vmem:[%s6641_s11 + $0xb0] sm:$0xff] }
 0x356   : > { %v2018_v19 = vunpack.c.h.s8.bf16 %v1482_v34  ;;  %v2014_v58 = vunpack.c.l.s8.bf16 %v1482_v34  ;;  %v1567_v34 = vld [vmem:[%s6641_s11 + $0x358] sm:$0xff] }
 0x357   : > { %3904 = vmatpush1.bf16.msra.mxu0 %v1974_v23  ;;  %v2082_v23 = vunpack.c.h.s8.bf16 %v1514_v8 }
 0x358   : > { %3945 = vmatpush1.bf16.msra.mxu1 %v2038_v26  ;;  %3905 = vmatprep.subr.bf16.mxu0 %v2035_v28  ;;  %v2015_v26 = vunpack.c.l.s8.bf16 %v1483_v6  ;;  %v2079_v28 = vunpack.c.l.s8.bf16 %v1515_v9  ;;  %v1570_v6 = vld [vmem:[%s6641_s11 + $0x370] sm:$0xff] }
 0x359   : > { %3946 = vmatprep.subr.bf16.mxu1 %v2099_v37  ;;  %v1479_v37 = vld [vmem:[%s6641_s11 + $0x98] sm:$0xff] }
 0x35b   : > { %3906 = vmatpush2.bf16.msra.mxu0 %v2034_v62  ;;  %v2078_v62 = vunpack.c.l.s8.bf16 %v1514_v8 }
 0x35c   : > { %3947 = vmatpush2.bf16.msra.mxu1 %v2098_v1  ;;  %3907 = vmatprep.subr.bf16.mxu0 %v2031_v7  ;;  %v2011_v1 = vunpack.c.h.s8.bf16 %v1479_v37  ;;  %v2075_v7 = vunpack.c.h.s8.bf16 %v1511_v12 }
 0x35d   : > { %3948 = vmatprep.subr.bf16.mxu1 %v2095_v36  ;;  %v1478_v36 = vld [vmem:[%s6641_s11 + $0x90] sm:$0xff] }
 0x35e   : > { %v2010_v20 = vunpack.c.h.s8.bf16 %v1478_v36  ;;  %v2006_v25 = vunpack.c.l.s8.bf16 %v1478_v36 }
 0x35f   : > { %3908 = vmatpush2.bf16.msra.mxu0 %v2030_v41  ;;  %v2074_v41 = vunpack.c.h.s8.bf16 %v1510_v49 }
 0x360   : > { %3949 = vmatpush2.bf16.msra.mxu1 %v2094_v51  ;;  %3909 = vmatprep.subr.bf16.mxu0 %v2027_v52  ;;  %v2007_v51 = vunpack.c.l.s8.bf16 %v1479_v37  ;;  %v2071_v52 = vunpack.c.l.s8.bf16 %v1511_v12 }
 0x361   : > { %3950 = vmatprep.subr.bf16.mxu1 %v2091_v13  ;;  %v1539_v13 = vld [vmem:[%s6641_s11 + $0x278] sm:$0xff] }
 0x363   : > { %3910 = vmatpush2.bf16.msra.mxu0 %v2026_v60  ;;  %v2070_v60 = vunpack.c.l.s8.bf16 %v1510_v49 }
 0x364   : > { %3951 = vmatpush2.bf16.msra.mxu1 %v2090_v61  ;;  %3911 = vmatprep.subr.bf16.mxu0 %v2023_v10  ;;  %v2131_v61 = vunpack.c.h.s8.bf16 %v1539_v13  ;;  %v2195_v10 = vunpack.c.h.s8.bf16 %v1571_v53 }
 0x365   : > { %3952 = vmatprep.subr.bf16.mxu1 %v2087_v5  ;;  %v1538_v5 = vld [vmem:[%s6641_s11 + $0x270] sm:$0xff] }
 0x366   : > { %v2130_v9 = vunpack.c.h.s8.bf16 %v1538_v5 }
 0x367   : > { %3912 = vmatpush2.bf16.msra.mxu0 %v2022_v14  ;;  %v2194_v14 = vunpack.c.h.s8.bf16 %v1570_v6 }
 0x368   : > { %3953 = vmatpush2.bf16.msra.mxu1 %v2086_v22  ;;  %3913 = vmatprep.subr.bf16.mxu0 %v2019_v4  ;;  %v2127_v22 = vunpack.c.l.s8.bf16 %v1539_v13  ;;  %v2191_v4 = vunpack.c.l.s8.bf16 %v1571_v53  ;;  %v2183_v13 = vunpack.c.l.s8.bf16 %v1567_v34  ;;  %v1563_v53 = vld [vmem:[%s6641_s11 + $0x338] sm:$0xff] }
 0x369   : > { %3954 = vmatprep.subr.bf16.mxu1 %v2083_v16  ;;  %v1535_v16 = vld [vmem:[%s6641_s11 + $0x258] sm:$0xff] }
 0x36b   : > { %3914 = vmatpush2.bf16.msra.mxu0 %v2018_v19 }
 0x36c   : > { %3955 = vmatpush2.bf16.msra.mxu1 %v2082_v23  ;;  %3915 = vmatprep.subr.bf16.mxu0 %v2015_v26  ;;  %v2126_v26 = vunpack.c.l.s8.bf16 %v1538_v5  ;;  %v1562_v5 = vld [vmem:[%s6641_s11 + $0x330] sm:$0xff] }
 0x36d   : > { %3956 = vmatprep.subr.bf16.mxu1 %v2079_v28  ;;  %v2190_v28 = vunpack.c.l.s8.bf16 %v1570_v6 }
 0x36f   : > { %3916 = vmatpush2.bf16.msra.mxu0 %v2014_v58  ;;  %v2123_v58 = vunpack.c.h.s8.bf16 %v1535_v16 }
 0x370   : > { %3957 = vmatpush2.bf16.msra.mxu1 %v2078_v62  ;;  %3917 = vmatprep.subr.bf16.mxu0 %v2011_v1  ;;  %v2187_v62 = vunpack.c.h.s8.bf16 %v1567_v34  ;;  %v1534_v1 = vld [vmem:[%s6641_s11 + $0x250] sm:$0xff] }
 0x371   : > { %3958 = vmatprep.subr.bf16.mxu1 %v2075_v7  ;;  %v1566_v7 = vld [vmem:[%s6641_s11 + $0x350] sm:$0xff] }
 0x373   : > { %3918 = vmatpush2.bf16.msra.mxu0 %v2010_v20  ;;  %v2122_v20 = vunpack.c.h.s8.bf16 %v1534_v1 }
 0x374   : > { %3959 = vmatpush2.bf16.msra.mxu1 %v2074_v41  ;;  %3919 = vmatprep.subr.bf16.mxu0 %v2007_v51  ;;  %v2186_v41 = vunpack.c.h.s8.bf16 %v1566_v7 }
 0x375   : > { %3960 = vmatprep.subr.bf16.mxu1 %v2071_v52 }
 0x377   : > { %3920 = vmatpush2.bf16.msra.mxu0 %v2006_v25  ;;  %v2182_v25 = vunpack.c.l.s8.bf16 %v1566_v7  ;;  %v1587_v7 = vld [vmem:[%s6641_s11 + $0x3f8] sm:$0xff] }
 0x378   : > { %3961 = vmatpush2.bf16.msra.mxu1 %v2070_v60  ;;  %3971 = vmatprep.subr.bf16.mxu0 %v2131_v61  ;;  %v2179_v61 = vunpack.c.h.s8.bf16 %v1563_v53 }
 0x379   : > { %4012 = vmatprep.subr.bf16.mxu1 %v2195_v10  ;;  %v1530_v10 = vld [vmem:[%s6641_s11 + $0x230] sm:$0xff] }
 0x37a   : > { %v3677_v8 = vpop.f32.mrf.mxu0  ;;  %3922 = vmatmul.mubr.bf16.vlgmr.msra.gmra.mxu0 %v6710_v48  ;;  %v2114_v6 = vunpack.c.h.s8.bf16 %v1530_v10  ;;  %v2110_v34 = vunpack.c.l.s8.bf16 %v1530_v10 }
 0x37b   : > { %v3718_v19 = vpop.f32.mrf.mxu1  ;;  %3963 = vmatmul.mubr.bf16.vlgmr.msra.gmra.mxu1 %v6719_v59  ;;  %v3678_v23 = vadd.f32 %v3677_v8, %v7152_v11  ;;  %3972 = vmatpush1.bf16.msra.mxu0 %v2130_v9  ;;  %v2178_v9 = vunpack.c.h.s8.bf16 %v1562_v5  ;;  %v2174_v8 = vunpack.c.l.s8.bf16 %v1562_v5  ;;  %v1550_v5 = vld [vmem:[%s6641_s11 + $0x2d0] sm:$0xff] }
 0x37c   : > { %4013 = vmatpush1.bf16.msra.mxu1 %v2194_v14  ;;  %v3679_v37 = vpop.f32.mrf.mxu0  ;;  %3973 = vmatprep.subr.bf16.mxu0 %v2127_v22  ;;  %v2175_v22 = vunpack.c.l.s8.bf16 %v1563_v53  ;;  %v1551_v53 = vld [vmem:[%s6641_s11 + $0x2d8] sm:$0xff] }
 0x37d   : > { %v3720_v12 = vpop.f32.mrf.mxu1  ;;  %4014 = vmatprep.subr.bf16.mxu1 %v2191_v4  ;;  %v7194_v36 = vadd.f32 %v3718_v19, %v3678_v23  ;;  %v3680_v48 = vadd.f32 %v3679_v37, %v7157_v17  ;;  %4003 = vmatprep.mubr.bf16.mxu0 %v6715_v57  ;;  %v2119_v17 = vunpack.c.l.s8.bf16 %v1535_v16  ;;  %v1531_v57 = vld [vmem:[%s6641_s11 + $0x238] sm:$0xff] }
 0x37e   : > { %4044 = vmatprep.mubr.bf16.mxu1 %v6725_v2  ;;  %v3681_v59 = vpop.f32.mrf.mxu0  ;;  %v2118_v2 = vunpack.c.l.s8.bf16 %v1534_v1  ;;  %v2115_v60 = vunpack.c.h.s8.bf16 %v1531_v57  ;;  %v2111_v14 = vunpack.c.l.s8.bf16 %v1531_v57  ;;  %v1527_v4 = vld [vmem:[%s6641_s11 + $0x218] sm:$0xff]  ;;  %v2223_v57 = vunpack.c.l.s8.bf16 %v1587_v7 }
 0x37f   : > { %v3722_v11 = vpop.f32.mrf.mxu1  ;;  %v7199_v49 = vadd.f32 %v3720_v12, %v3680_v48  ;;  %3974 = vmatpush1.bf16.msra.mxu0 %v2126_v26  ;;  %v1559_v16 = vld [vmem:[%s6641_s11 + $0x318] sm:$0xff]  ;;  %v2107_v19 = vunpack.c.h.s8.bf16 %v1527_v4  ;;  %v1526_v26 = vld [vmem:[%s6641_s11 + $0x210] sm:$0xff] }
 0x380   : > { %4015 = vmatpush1.bf16.msra.mxu1 %v2190_v28  ;;  %v3682_v51 = vpop.f32.mrf.mxu0  ;;  %3975 = vmatprep.subr.bf16.mxu0 %v2123_v58  ;;  %v2171_v23 = vunpack.c.h.s8.bf16 %v1559_v16  ;;  %v1558_v28 = vld [vmem:[%s6641_s11 + $0x310] sm:$0xff]  ;;  %v2106_v37 = vunpack.c.h.s8.bf16 %v1526_v26  ;;  %v2103_v58 = vunpack.c.l.s8.bf16 %v1527_v4  ;;  %v1555_v1 = vld [vmem:[%s6641_s11 + $0x2f8] sm:$0xff]  ;;  %v2102_v48 = vunpack.c.l.s8.bf16 %v1526_v26 }
 0x381   : > { %v3723_v52 = vpop.f32.mrf.mxu1  ;;  %4016 = vmatprep.subr.bf16.mxu1 %v2187_v62  ;;  %v2170_v12 = vunpack.c.h.s8.bf16 %v1558_v28  ;;  %v2167_v62 = vunpack.c.l.s8.bf16 %v1559_v16  ;;  %v2166_v59 = vunpack.c.l.s8.bf16 %v1558_v28  ;;  %v2163_v11 = vunpack.c.h.s8.bf16 %v1555_v1  ;;  %v1586_v51 = vld [vmem:[%s6641_s11 + $0x3f0] sm:$0xff]  ;;  %v1547_v16 = vld [vmem:[%s6641_s11 + $0x2b8] sm:$0xff] }
 0x382   : > { %v1546_v28 = vld [vmem:[%s6641_s11 + $0x2b0] sm:$0xff] }
 0x383   : > { %3976 = vmatpush1.bf16.msra.mxu0 %v2122_v20  ;;  %v2227_v20 = vunpack.c.h.s8.bf16 %v1587_v7  ;;  %v1543_v7 = vld [vmem:[%s6641_s11 + $0x298] sm:$0xff] }
 0x384   : > { %4017 = vmatpush1.bf16.msra.mxu1 %v2186_v41  ;;  %3977 = vmatprep.subr.bf16.mxu0 %v2119_v17  ;;  %v1554_v41 = vld [vmem:[%s6641_s11 + $0x2f0] sm:$0xff]  ;;  %v2226_v17 = vunpack.c.h.s8.bf16 %v1586_v51 }
 0x385   : > { %4018 = vmatprep.subr.bf16.mxu1 %v2183_v13  ;;  %v2162_v52 = vunpack.c.h.s8.bf16 %v1554_v41  ;;  %v2159_v13 = vunpack.c.l.s8.bf16 %v1555_v1 }
 0x387   : > { %3978 = vmatpush1.bf16.msra.mxu0 %v2118_v2  ;;  %v1583_v2 = vld [vmem:[%s6641_s11 + $0x3d8] sm:$0xff] }
 0x388   : > { %4019 = vmatpush1.bf16.msra.mxu1 %v2182_v25  ;;  %3979 = vmatprep.subr.bf16.mxu0 %v2115_v60  ;;  %v2158_v25 = vunpack.c.l.s8.bf16 %v1554_v41  ;;  %v2222_v60 = vunpack.c.l.s8.bf16 %v1586_v51  ;;  %v2219_v10 = vunpack.c.h.s8.bf16 %v1583_v2  ;;  %v2215_v4 = vunpack.c.l.s8.bf16 %v1583_v2  ;;  %v1542_v51 = vld [vmem:[%s6641_s11 + $0x290] sm:$0xff]  ;;  %v1603_v2 = vld [vmem:[%s6641_s11 + $0x478] sm:$0xff] }
 0x389   : > { %4020 = vmatprep.subr.bf16.mxu1 %v2179_v61  ;;  %v2155_v61 = vunpack.c.h.s8.bf16 %v1551_v53 }
 0x38b   : > { %3980 = vmatpush1.bf16.msra.mxu0 %v2114_v6  ;;  %v1582_v6 = vld [vmem:[%s6641_s11 + $0x3d0] sm:$0xff] }
 0x38c   : > { %4021 = vmatpush1.bf16.msra.mxu1 %v2178_v9  ;;  %3981 = vmatprep.subr.bf16.mxu0 %v2111_v14  ;;  %v2154_v9 = vunpack.c.h.s8.bf16 %v1550_v5  ;;  %v2218_v14 = vunpack.c.h.s8.bf16 %v1582_v6 }
 0x38d   : > { %4022 = vmatprep.subr.bf16.mxu1 %v2175_v22  ;;  %v2151_v22 = vunpack.c.l.s8.bf16 %v1551_v53 }
 0x38f   : > { %3982 = vmatpush1.bf16.msra.mxu0 %v2110_v34  ;;  %v1579_v34 = vld [vmem:[%s6641_s11 + $0x3b8] sm:$0xff] }
 0x390   : > { %4023 = vmatpush1.bf16.msra.mxu1 %v2174_v8  ;;  %3983 = vmatprep.subr.bf16.mxu0 %v2107_v19  ;;  %v2150_v8 = vunpack.c.l.s8.bf16 %v1550_v5  ;;  %v2214_v19 = vunpack.c.l.s8.bf16 %v1582_v6  ;;  %v2211_v26 = vunpack.c.h.s8.bf16 %v1579_v34  ;;  %v2207_v1 = vunpack.c.l.s8.bf16 %v1579_v34  ;;  %v1602_v6 = vld [vmem:[%s6641_s11 + $0x470] sm:$0xff]  ;;  %v1599_v34 = vld [vmem:[%s6641_s11 + $0x458] sm:$0xff] }
 0x391   : > { %4024 = vmatprep.subr.bf16.mxu1 %v2171_v23  ;;  %v2147_v23 = vunpack.c.h.s8.bf16 %v1547_v16 }
 0x393   : > { %3984 = vmatpush1.bf16.msra.mxu0 %v2106_v37  ;;  %v1578_v37 = vld [vmem:[%s6641_s11 + $0x3b0] sm:$0xff] }
 0x394   : > { %4025 = vmatpush1.bf16.msra.mxu1 %v2170_v12  ;;  %3985 = vmatprep.subr.bf16.mxu0 %v2103_v58  ;;  %v2146_v12 = vunpack.c.h.s8.bf16 %v1546_v28  ;;  %v2210_v58 = vunpack.c.h.s8.bf16 %v1578_v37 }
 0x395   : > { %4026 = vmatprep.subr.bf16.mxu1 %v2167_v62  ;;  %v2143_v62 = vunpack.c.l.s8.bf16 %v1547_v16 }
 0x397   : > { %3986 = vmatpush1.bf16.msra.mxu0 %v2102_v48  ;;  %v1575_v48 = vld [vmem:[%s6641_s11 + $0x398] sm:$0xff] }
 0x398   : > { %4027 = vmatpush1.bf16.msra.mxu1 %v2166_v59  ;;  %3987 = vmatprep.subr.bf16.mxu0 %v2163_v11  ;;  %v2142_v59 = vunpack.c.l.s8.bf16 %v1546_v28  ;;  %v2206_v11 = vunpack.c.l.s8.bf16 %v1578_v37  ;;  %v2203_v41 = vunpack.c.h.s8.bf16 %v1575_v48  ;;  %v2199_v53 = vunpack.c.l.s8.bf16 %v1575_v48  ;;  %v1630_v48 = vld [vmem:[%s6641_s11 + $0x550] sm:$0xff] }
 0x399   : > { %4028 = vmatprep.subr.bf16.mxu1 %v2227_v20  ;;  %v2139_v20 = vunpack.c.h.s8.bf16 %v1543_v7  ;;  %v2254_v28 = vunpack.c.l.s8.bf16 %v1602_v6 }
 0x39b   : > { %3988 = vmatpush2.bf16.msra.mxu0 %v2162_v52  ;;  %v1574_v52 = vld [vmem:[%s6641_s11 + $0x390] sm:$0xff] }
 0x39c   : > { %4029 = vmatpush2.bf16.msra.mxu1 %v2226_v17  ;;  %3989 = vmatprep.subr.bf16.mxu0 %v2159_v13  ;;  %v2138_v17 = vunpack.c.h.s8.bf16 %v1542_v51  ;;  %v2202_v13 = vunpack.c.h.s8.bf16 %v1574_v52 }
 0x39d   : > { %4030 = vmatprep.subr.bf16.mxu1 %v2223_v57  ;;  %v2135_v57 = vunpack.c.l.s8.bf16 %v1543_v7  ;;  %v1598_v7 = vld [vmem:[%s6641_s11 + $0x450] sm:$0xff] }
 0x39f   : > { %3990 = vmatpush2.bf16.msra.mxu0 %v2158_v25  ;;  %v1635_v25 = vld [vmem:[%s6641_s11 + $0x578] sm:$0xff] }
 0x3a0   : > { %4031 = vmatpush2.bf16.msra.mxu1 %v2222_v60  ;;  %3991 = vmatprep.subr.bf16.mxu0 %v2155_v61  ;;  %v2134_v60 = vunpack.c.l.s8.bf16 %v1542_v51  ;;  %v2198_v61 = vunpack.c.l.s8.bf16 %v1574_v52  ;;  %v2323_v5 = vunpack.c.h.s8.bf16 %v1635_v25  ;;  %v2319_v16 = vunpack.c.l.s8.bf16 %v1635_v25  ;;  %v1594_v25 = vld [vmem:[%s6641_s11 + $0x430] sm:$0xff] }
 0x3a1   : > { %4032 = vmatprep.subr.bf16.mxu1 %v2219_v10  ;;  %v2259_v10 = vunpack.c.h.s8.bf16 %v1603_v2 }
 0x3a3   : > { %3992 = vmatpush2.bf16.msra.mxu0 %v2154_v9  ;;  %v1634_v9 = vld [vmem:[%s6641_s11 + $0x570] sm:$0xff] }
 0x3a4   : > { %4033 = vmatpush2.bf16.msra.mxu1 %v2218_v14  ;;  %3993 = vmatprep.subr.bf16.mxu0 %v2151_v22  ;;  %v2258_v14 = vunpack.c.h.s8.bf16 %v1602_v6  ;;  %v2322_v22 = vunpack.c.h.s8.bf16 %v1634_v9  ;;  %v2318_v37 = vunpack.c.l.s8.bf16 %v1634_v9  ;;  %v1591_v9 = vld [vmem:[%s6641_s11 + $0x418] sm:$0xff] }
 0x3a5   : > { %4034 = vmatprep.subr.bf16.mxu1 %v2215_v4  ;;  %v2255_v4 = vunpack.c.l.s8.bf16 %v1603_v2 }
 0x3a7   : > { %3994 = vmatpush2.bf16.msra.mxu0 %v2150_v8  ;;  %v1631_v8 = vld [vmem:[%s6641_s11 + $0x558] sm:$0xff] }
 0x3a8   : > { %4035 = vmatpush2.bf16.msra.mxu1 %v2214_v19  ;;  %3995 = vmatprep.subr.bf16.mxu0 %v2147_v23 }
 0x3a9   : > { %4036 = vmatprep.subr.bf16.mxu1 %v2211_v26 }
 0x3ab   : > { %3996 = vmatpush2.bf16.msra.mxu0 %v2146_v12 }
 0x3ac   : > { %4037 = vmatpush2.bf16.msra.mxu1 %v2210_v58  ;;  %3997 = vmatprep.subr.bf16.mxu0 %v2143_v62  ;;  %v2251_v62 = vunpack.c.h.s8.bf16 %v1599_v34 }
 0x3ad   : > { %4038 = vmatprep.subr.bf16.mxu1 %v2207_v1  ;;  %v2315_v1 = vunpack.c.h.s8.bf16 %v1631_v8 }
 0x3af   : > { %3998 = vmatpush2.bf16.msra.mxu0 %v2142_v59 }
 0x3b0   : > { %4039 = vmatpush2.bf16.msra.mxu1 %v2206_v11  ;;  %3999 = vmatprep.subr.bf16.mxu0 %v2139_v20  ;;  %v2250_v20 = vunpack.c.h.s8.bf16 %v1598_v7 }
 0x3b1   : > { %4040 = vmatprep.subr.bf16.mxu1 %v2203_v41  ;;  %v2314_v41 = vunpack.c.h.s8.bf16 %v1630_v48 }
 0x3b3   : > { %4000 = vmatpush2.bf16.msra.mxu0 %v2138_v17  ;;  %v2311_v17 = vunpack.c.l.s8.bf16 %v1631_v8  ;;  %v1590_v8 = vld [vmem:[%s6641_s11 + $0x410] sm:$0xff] }
 0x3b4   : > { %4041 = vmatpush2.bf16.msra.mxu1 %v2202_v13  ;;  %4001 = vmatprep.subr.bf16.mxu0 %v2135_v57  ;;  %v1627_v13 = vld [vmem:[%s6641_s11 + $0x538] sm:$0xff]  ;;  %v2310_v57 = vunpack.c.l.s8.bf16 %v1630_v48 }
 0x3b5   : > { %4042 = vmatprep.subr.bf16.mxu1 %v2199_v53  ;;  %v2307_v2 = vunpack.c.h.s8.bf16 %v1627_v13  ;;  %v2303_v6 = vunpack.c.l.s8.bf16 %v1627_v13 }
 0x3b7   : > { %4002 = vmatpush2.bf16.msra.mxu0 %v2134_v60  ;;  %v1626_v60 = vld [vmem:[%s6641_s11 + $0x530] sm:$0xff] }
 0x3b8   : > { %4043 = vmatpush2.bf16.msra.mxu1 %v2198_v61  ;;  %4053 = vmatprep.subr.bf16.mxu0 %v2259_v10  ;;  %v2242_v61 = vunpack.c.h.s8.bf16 %v1594_v25  ;;  %v2306_v10 = vunpack.c.h.s8.bf16 %v1626_v60 }
 0x3b9   : > { %4094 = vmatprep.subr.bf16.mxu1 %v2323_v5 }
 0x3ba   : > { %v3759_v19 = vpop.f32.mrf.mxu0  ;;  %4004 = vmatmul.mubr.bf16.vlgmr.msra.gmra.mxu0 %v6770_v35 }
 0x3bb   : > { %v3800_v23 = vpop.f32.mrf.mxu1  ;;  %4045 = vmatmul.mubr.bf16.vlgmr.msra.gmra.mxu1 %v6779_v45  ;;  %v3760_v26 = vadd.f32 %v3759_v19, %v7194_v36  ;;  %4054 = vmatpush1.bf16.msra.mxu0 %v2258_v14  ;;  %v1623_v14 = vld [vmem:[%s6641_s11 + $0x518] sm:$0xff]  ;;  %v1622_v19 = vld [vmem:[%s6641_s11 + $0x510] sm:$0xff] }
 0x3bc   : > { %4095 = vmatpush1.bf16.msra.mxu1 %v2322_v22  ;;  %v3761_v12 = vpop.f32.mrf.mxu0  ;;  %4055 = vmatprep.subr.bf16.mxu0 %v2255_v4  ;;  %v2238_v22 = vunpack.c.l.s8.bf16 %v1594_v25  ;;  %v2302_v4 = vunpack.c.l.s8.bf16 %v1626_v60 }
 0x3bd   : > { %v3802_v58 = vpop.f32.mrf.mxu1  ;;  %4096 = vmatprep.subr.bf16.mxu1 %v2319_v16  ;;  %v7236_v59 = vadd.f32 %v3800_v23, %v3760_v26  ;;  %v3762_v35 = vadd.f32 %v3761_v12, %v7199_v49  ;;  %4085 = vmatprep.mubr.bf16.mxu0 %v6775_v44  ;;  %v2247_v49 = vunpack.c.l.s8.bf16 %v1599_v34  ;;  %v1595_v44 = vld [vmem:[%s6641_s11 + $0x438] sm:$0xff]  ;;  %v2235_v16 = vunpack.c.h.s8.bf16 %v1591_v9 }
 0x3be   : > { %4126 = vmatprep.mubr.bf16.mxu1 %v6785_v54  ;;  %v3763_v45 = vpop.f32.mrf.mxu0  ;;  %v2246_v54 = vunpack.c.l.s8.bf16 %v1598_v7  ;;  %v2243_v53 = vunpack.c.h.s8.bf16 %v1595_v44  ;;  %v2239_v5 = vunpack.c.l.s8.bf16 %v1595_v44  ;;  %v2299_v34 = vunpack.c.h.s8.bf16 %v1623_v14  ;;  %v1619_v12 = vld [vmem:[%s6641_s11 + $0x4f8] sm:$0xff] }
 0x3bf   : > { %v3804_v36 = vpop.f32.mrf.mxu1  ;;  %v7241_v11 = vadd.f32 %v3802_v58, %v3762_v35  ;;  %4056 = vmatpush1.bf16.msra.mxu0 %v2254_v28  ;;  %v2234_v23 = vunpack.c.h.s8.bf16 %v1590_v8  ;;  %v2298_v26 = vunpack.c.h.s8.bf16 %v1622_v19  ;;  %v2231_v28 = vunpack.c.l.s8.bf16 %v1591_v9  ;;  %v1651_v58 = vld [vmem:[%s6641_s11 + $0x5f8] sm:$0xff]  ;;  %v1618_v35 = vld [vmem:[%s6641_s11 + $0x4f0] sm:$0xff] }
 0x3c0   : > { %4097 = vmatpush1.bf16.msra.mxu1 %v2318_v37  ;;  %v3764_v51 = vpop.f32.mrf.mxu0  ;;  %4057 = vmatprep.subr.bf16.mxu0 %v2251_v62  ;;  %v2295_v37 = vunpack.c.l.s8.bf16 %v1623_v14  ;;  %v2230_v62 = vunpack.c.l.s8.bf16 %v1590_v8  ;;  %v2291_v7 = vunpack.c.h.s8.bf16 %v1619_v12  ;;  %v2355_v48 = vunpack.c.h.s8.bf16 %v1651_v58  ;;  %v1650_v45 = vld [vmem:[%s6641_s11 + $0x5f0] sm:$0xff] }
 0x3c1   : > { %v3805_v52 = vpop.f32.mrf.mxu1  ;;  %4098 = vmatprep.subr.bf16.mxu1 %v2315_v1  ;;  %v2294_v1 = vunpack.c.l.s8.bf16 %v1622_v19  ;;  %v2290_v36 = vunpack.c.h.s8.bf16 %v1618_v35  ;;  %v2351_v51 = vunpack.c.l.s8.bf16 %v1651_v58  ;;  %v2350_v44 = vunpack.c.l.s8.bf16 %v1650_v45 }
 0x3c2   : > { %v1615_v52 = vld [vmem:[%s6641_s11 + $0x4d8] sm:$0xff] }
 0x3c3   : > { %4058 = vmatpush1.bf16.msra.mxu0 %v2250_v20  ;;  %v2354_v20 = vunpack.c.h.s8.bf16 %v1650_v45  ;;  %v2283_v13 = vunpack.c.h.s8.bf16 %v1615_v52  ;;  %v2279_v60 = vunpack.c.l.s8.bf16 %v1615_v52 }
 0x3c4   : > { %4099 = vmatpush1.bf16.msra.mxu1 %v2314_v41  ;;  %4059 = vmatprep.subr.bf16.mxu0 %v2247_v49  ;;  %v2287_v41 = vunpack.c.l.s8.bf16 %v1619_v12  ;;  %v1647_v49 = vld [vmem:[%s6641_s11 + $0x5d8] sm:$0xff] }
 0x3c5   : > { %4100 = vmatprep.subr.bf16.mxu1 %v2311_v17  ;;  %v2286_v17 = vunpack.c.l.s8.bf16 %v1618_v35 }
 0x3c7   : > { %4060 = vmatpush1.bf16.msra.mxu0 %v2246_v54  ;;  %v2347_v54 = vunpack.c.h.s8.bf16 %v1647_v49 }
 0x3c8   : > { %4101 = vmatpush1.bf16.msra.mxu1 %v2310_v57  ;;  %4061 = vmatprep.subr.bf16.mxu0 %v2243_v53  ;;  %v1614_v57 = vld [vmem:[%s6641_s11 + $0x4d0] sm:$0xff] }
 0x3c9   : > { %4102 = vmatprep.subr.bf16.mxu1 %v2307_v2  ;;  %v1646_v53 = vld [vmem:[%s6641_s11 + $0x5d0] sm:$0xff]  ;;  %v2282_v2 = vunpack.c.h.s8.bf16 %v1614_v57 }
 0x3ca   : > { %v2346_v25 = vunpack.c.h.s8.bf16 %v1646_v53  ;;  %v2342_v9 = vunpack.c.l.s8.bf16 %v1646_v53 }
 0x3cb   : > { %4062 = vmatpush1.bf16.msra.mxu0 %v2242_v61  ;;  %v2343_v61 = vunpack.c.l.s8.bf16 %v1647_v49 }
 0x3cc   : > { %4103 = vmatpush1.bf16.msra.mxu1 %v2306_v10  ;;  %4063 = vmatprep.subr.bf16.mxu0 %v2239_v5  ;;  %v1611_v10 = vld [vmem:[%s6641_s11 + $0x4b8] sm:$0xff] }
 0x3cd   : > { %4104 = vmatprep.subr.bf16.mxu1 %v2303_v6  ;;  %v1643_v5 = vld [vmem:[%s6641_s11 + $0x5b8] sm:$0xff]  ;;  %v2278_v6 = vunpack.c.l.s8.bf16 %v1614_v57  ;;  %v2275_v14 = vunpack.c.h.s8.bf16 %v1611_v10  ;;  %v2271_v19 = vunpack.c.l.s8.bf16 %v1611_v10 }
 0x3cf   : > { %4064 = vmatpush1.bf16.msra.mxu0 %v2238_v22  ;;  %v2339_v22 = vunpack.c.h.s8.bf16 %v1643_v5 }
 0x3d0   : > { %4105 = vmatpush1.bf16.msra.mxu1 %v2302_v4  ;;  %4065 = vmatprep.subr.bf16.mxu0 %v2235_v16  ;;  %v1610_v4 = vld [vmem:[%s6641_s11 + $0x4b0] sm:$0xff] }
 0x3d1   : > { %4106 = vmatprep.subr.bf16.mxu1 %v2299_v34  ;;  %v1642_v16 = vld [vmem:[%s6641_s11 + $0x5b0] sm:$0xff]  ;;  %v2274_v34 = vunpack.c.h.s8.bf16 %v1610_v4 }
 0x3d2   : > { %v2338_v8 = vunpack.c.h.s8.bf16 %v1642_v16  ;;  %v2334_v12 = vunpack.c.l.s8.bf16 %v1642_v16 }
 0x3d3   : > { %4066 = vmatpush1.bf16.msra.mxu0 %v2234_v23  ;;  %v2335_v23 = vunpack.c.l.s8.bf16 %v1643_v5 }
 0x3d4   : > { %4107 = vmatpush1.bf16.msra.mxu1 %v2298_v26  ;;  %4067 = vmatprep.subr.bf16.mxu0 %v2231_v28  ;;  %v1607_v26 = vld [vmem:[%s6641_s11 + $0x498] sm:$0xff] }
 0x3d5   : > { %4108 = vmatprep.subr.bf16.mxu1 %v2295_v37  ;;  %v1639_v28 = vld [vmem:[%s6641_s11 + $0x598] sm:$0xff]  ;;  %v2270_v37 = vunpack.c.l.s8.bf16 %v1610_v4  ;;  %v2267_v58 = vunpack.c.h.s8.bf16 %v1607_v26  ;;  %v2263_v45 = vunpack.c.l.s8.bf16 %v1607_v26 }
 0x3d7   : > { %4068 = vmatpush1.bf16.msra.mxu0 %v2230_v62  ;;  %v2331_v62 = vunpack.c.h.s8.bf16 %v1639_v28 }
 0x3d8   : > { %4109 = vmatpush1.bf16.msra.mxu1 %v2294_v1  ;;  %4069 = vmatprep.subr.bf16.mxu0 %v2291_v7  ;;  %v1606_v1 = vld [vmem:[%s6641_s11 + $0x490] sm:$0xff] }
 0x3d9   : > { %4110 = vmatprep.subr.bf16.mxu1 %v2355_v48  ;;  %v1638_v7 = vld [vmem:[%s6641_s11 + $0x590] sm:$0xff]  ;;  %v2266_v48 = vunpack.c.h.s8.bf16 %v1606_v1 }
 0x3da   : > { %v2330_v35 = vunpack.c.h.s8.bf16 %v1638_v7  ;;  %v2326_v52 = vunpack.c.l.s8.bf16 %v1638_v7 }
 0x3db   : > { %4070 = vmatpush2.bf16.msra.mxu0 %v2290_v36  ;;  %v2327_v36 = vunpack.c.l.s8.bf16 %v1639_v28 }
 0x3dc   : > { %4111 = vmatpush2.bf16.msra.mxu1 %v2354_v20  ;;  %4071 = vmatprep.subr.bf16.mxu0 %v2287_v41  ;;  %v1667_v20 = vld [vmem:[%s6641_s11 + $0x678] sm:$0xff] }
 0x3dd   : > { %4112 = vmatprep.subr.bf16.mxu1 %v2351_v51  ;;  %v1699_v41 = vld [vmem:[%s6641_s11 + $0x778] sm:$0xff]  ;;  %v2262_v51 = vunpack.c.l.s8.bf16 %v1606_v1  ;;  %v2387_v49 = vunpack.c.h.s8.bf16 %v1667_v20  ;;  %v2383_v53 = vunpack.c.l.s8.bf16 %v1667_v20 }
 0x3df   : > { %4072 = vmatpush2.bf16.msra.mxu0 %v2286_v17  ;;  %v2451_v17 = vunpack.c.h.s8.bf16 %v1699_v41 }
 0x3e0   : > { %4113 = vmatpush2.bf16.msra.mxu1 %v2350_v44  ;;  %4073 = vmatprep.subr.bf16.mxu0 %v2283_v13  ;;  %v1666_v44 = vld [vmem:[%s6641_s11 + $0x670] sm:$0xff] }
 0x3e1   : > { %4114 = vmatprep.subr.bf16.mxu1 %v2347_v54  ;;  %v1698_v13 = vld [vmem:[%s6641_s11 + $0x770] sm:$0xff]  ;;  %v2386_v54 = vunpack.c.h.s8.bf16 %v1666_v44 }
 0x3e2   : > { %v2450_v57 = vunpack.c.h.s8.bf16 %v1698_v13 }
 0x3e3   : > { %4074 = vmatpush2.bf16.msra.mxu0 %v2282_v2  ;;  %v2447_v2 = vunpack.c.l.s8.bf16 %v1699_v41 }
 0x3e4   : > { %4115 = vmatpush2.bf16.msra.mxu1 %v2346_v25  ;;  %4075 = vmatprep.subr.bf16.mxu0 %v2279_v60  ;;  %v1663_v25 = vld [vmem:[%s6641_s11 + $0x658] sm:$0xff] }
 0x3e5   : > { %4116 = vmatprep.subr.bf16.mxu1 %v2343_v61  ;;  %v1695_v60 = vld [vmem:[%s6641_s11 + $0x758] sm:$0xff]  ;;  %v2379_v4 = vunpack.c.h.s8.bf16 %v1663_v25 }
 0x3e6   : > { %v2443_v16 = vunpack.c.h.s8.bf16 %v1695_v60 }
 0x3e7   : > { %4076 = vmatpush2.bf16.msra.mxu0 %v2278_v6  ;;  %v2382_v6 = vunpack.c.l.s8.bf16 %v1666_v44 }
 0x3e8   : > { %4117 = vmatpush2.bf16.msra.mxu1 %v2342_v9  ;;  %4077 = vmatprep.subr.bf16.mxu0 %v2275_v14  ;;  %v2446_v9 = vunpack.c.l.s8.bf16 %v1698_v13 }
 0x3e9   : > { %4118 = vmatprep.subr.bf16.mxu1 %v2339_v22 }
 0x3eb   : > { %4078 = vmatpush2.bf16.msra.mxu0 %v2274_v34  ;;  %v1662_v34 = vld [vmem:[%s6641_s11 + $0x650] sm:$0xff] }
 0x3ec   : > { %4119 = vmatpush2.bf16.msra.mxu1 %v2338_v8  ;;  %4079 = vmatprep.subr.bf16.mxu0 %v2271_v19  ;;  %v1694_v8 = vld [vmem:[%s6641_s11 + $0x750] sm:$0xff]  ;;  %v2378_v26 = vunpack.c.h.s8.bf16 %v1662_v34  ;;  %v2374_v1 = vunpack.c.l.s8.bf16 %v1662_v34 }
 0x3ed   : > { %4120 = vmatprep.subr.bf16.mxu1 %v2335_v23  ;;  %v2442_v28 = vunpack.c.h.s8.bf16 %v1694_v8  ;;  %v2438_v7 = vunpack.c.l.s8.bf16 %v1694_v8  ;;  %v1714_v34 = vld [vmem:[%s6641_s11 + $0x7f0] sm:$0xff] }
 0x3ef   : > { %4080 = vmatpush2.bf16.msra.mxu0 %v2270_v37 }
 0x3f0   : > { %4121 = vmatpush2.bf16.msra.mxu1 %v2334_v12  ;;  %4081 = vmatprep.subr.bf16.mxu0 %v2267_v58  ;;  %v1659_v58 = vld [vmem:[%s6641_s11 + $0x638] sm:$0xff] }
 0x3f1   : > { %4122 = vmatprep.subr.bf16.mxu1 %v2331_v62  ;;  %v1691_v62 = vld [vmem:[%s6641_s11 + $0x738] sm:$0xff] }
 0x3f3   : > { %4082 = vmatpush2.bf16.msra.mxu0 %v2266_v48  ;;  %v2371_v48 = vunpack.c.h.s8.bf16 %v1659_v58 }
 0x3f4   : > { %4123 = vmatpush2.bf16.msra.mxu1 %v2330_v35  ;;  %4083 = vmatprep.subr.bf16.mxu0 %v2263_v45  ;;  %v2435_v35 = vunpack.c.h.s8.bf16 %v1691_v62  ;;  %v1658_v45 = vld [vmem:[%s6641_s11 + $0x630] sm:$0xff] }
 0x3f5   : > { %4124 = vmatprep.subr.bf16.mxu1 %v2327_v36  ;;  %v1690_v36 = vld [vmem:[%s6641_s11 + $0x730] sm:$0xff]  ;;  %v2370_v20 = vunpack.c.h.s8.bf16 %v1658_v45  ;;  %v2366_v44 = vunpack.c.l.s8.bf16 %v1658_v45  ;;  %v1675_v45 = vld [vmem:[%s6641_s11 + $0x6b8] sm:$0xff] }
 0x3f6   : > { %v2434_v41 = vunpack.c.h.s8.bf16 %v1690_v36  ;;  %v2430_v13 = vunpack.c.l.s8.bf16 %v1690_v36  ;;  %v1707_v36 = vld [vmem:[%s6641_s11 + $0x7b8] sm:$0xff] }
 0x3f7   : > { %4084 = vmatpush2.bf16.msra.mxu0 %v2262_v51  ;;  %v2367_v51 = vunpack.c.l.s8.bf16 %v1659_v58  ;;  %v1678_v58 = vld [vmem:[%s6641_s11 + $0x6d0] sm:$0xff] }
 0x3f8   : > { %4125 = vmatpush2.bf16.msra.mxu1 %v2326_v52  ;;  %4135 = vmatprep.subr.bf16.mxu0 %v2387_v49  ;;  %v2431_v52 = vunpack.c.l.s8.bf16 %v1691_v62  ;;  %v1655_v49 = vld [vmem:[%s6641_s11 + $0x618] sm:$0xff]  ;;  %v1710_v62 = vld [vmem:[%s6641_s11 + $0x7d0] sm:$0xff] }
 0x3f9   : > { %4176 = vmatprep.subr.bf16.mxu1 %v2451_v17  ;;  %v1687_v17 = vld [vmem:[%s6641_s11 + $0x718] sm:$0xff] }
 0x3fa   : > { %v3841_v61 = vpop.f32.mrf.mxu0  ;;  %4086 = vmatmul.mubr.bf16.vlgmr.msra.gmra.mxu0 %v6828_v33 }
 0x3fb   : > { %v3882_v10 = vpop.f32.mrf.mxu1  ;;  %4127 = vmatmul.mubr.bf16.vlgmr.msra.gmra.mxu1 %v6837_v40  ;;  %v3842_v5 = vadd.f32 %v3841_v61, %v7236_v59  ;;  %4136 = vmatpush1.bf16.msra.mxu0 %v2386_v54  ;;  %v2363_v54 = vunpack.c.h.s8.bf16 %v1655_v49  ;;  %v2359_v61 = vunpack.c.l.s8.bf16 %v1655_v49  ;;  %v1674_v49 = vld [vmem:[%s6641_s11 + $0x6b0] sm:$0xff] }
 0x3fc   : > { %4177 = vmatpush1.bf16.msra.mxu1 %v2450_v57  ;;  %v3843_v14 = vpop.f32.mrf.mxu0  ;;  %4137 = vmatprep.subr.bf16.mxu0 %v2383_v53  ;;  %v2427_v57 = vunpack.c.h.s8.bf16 %v1687_v17  ;;  %v1654_v53 = vld [vmem:[%s6641_s11 + $0x610] sm:$0xff] }
 0x3fd   : > { %v3884_v22 = vpop.f32.mrf.mxu1  ;;  %4178 = vmatprep.subr.bf16.mxu1 %v2447_v2  ;;  %v7278_v19 = vadd.f32 %v3882_v10, %v3842_v5  ;;  %v3844_v33 = vadd.f32 %v3843_v14, %v7241_v11  ;;  %4167 = vmatprep.mubr.bf16.mxu0 %v6833_v43  ;;  %v2375_v11 = vunpack.c.l.s8.bf16 %v1663_v25  ;;  %v2439_v43 = vunpack.c.l.s8.bf16 %v1695_v60  ;;  %v1686_v2 = vld [vmem:[%s6641_s11 + $0x710] sm:$0xff]  ;;  %v1683_v5 = vld [vmem:[%s6641_s11 + $0x6f8] sm:$0xff] }
 0x3fe   : > { %4208 = vmatprep.mubr.bf16.mxu1 %v6843_v55  ;;  %v3845_v40 = vpop.f32.mrf.mxu0  ;;  %v2362_v25 = vunpack.c.h.s8.bf16 %v1654_v53  ;;  %v2426_v60 = vunpack.c.h.s8.bf16 %v1686_v2  ;;  %v2423_v10 = vunpack.c.l.s8.bf16 %v1687_v17  ;;  %v2422_v14 = vunpack.c.l.s8.bf16 %v1686_v2  ;;  %v1706_v17 = vld [vmem:[%s6641_s11 + $0x7b0] sm:$0xff]  ;;  %v1703_v2 = vld [vmem:[%s6641_s11 + $0x798] sm:$0xff] }
 0x3ff   : > { %v3886_v59 = vpop.f32.mrf.mxu1  ;;  %v7283_v23 = vadd.f32 %v3884_v22, %v3844_v33  ;;  %4138 = vmatpush1.bf16.msra.mxu0 %v2382_v6  ;;  %v1715_v6 = vld [vmem:[%s6641_s11 + $0x7f8] sm:$0xff]  ;;  %v2419_v22 = vunpack.c.h.s8.bf16 %v1683_v5  ;;  %v2482_v33 = vunpack.c.h.s8.bf16 %v1714_v34  ;;  %v2415_v40 = vunpack.c.l.s8.bf16 %v1683_v5  ;;  %v1670_v5 = vld [vmem:[%s6641_s11 + $0x690] sm:$0xff] }
 0x400   : > { %4179 = vmatpush1.bf16.msra.mxu1 %v2446_v9  ;;  %v3846_v37 = vpop.f32.mrf.mxu0  ;;  %4139 = vmatprep.subr.bf16.mxu0 %v2379_v4  ;;  %v2358_v9 = vunpack.c.l.s8.bf16 %v1654_v53  ;;  %v2483_v4 = vunpack.c.h.s8.bf16 %v1715_v6  ;;  %v2479_v59 = vunpack.c.l.s8.bf16 %v1715_v6  ;;  %v1671_v53 = vld [vmem:[%s6641_s11 + $0x698] sm:$0xff]  ;;  %v1702_v6 = vld [vmem:[%s6641_s11 + $0x790] sm:$0xff] }
 0x401   : > { %v3887_v12 = vpop.f32.mrf.mxu1  ;;  %4180 = vmatprep.subr.bf16.mxu1 %v2443_v16  ;;  %v4549_v55 = vcombine.low %v7278_v19, %v7283_v23  ;;  %v1682_v16 = vld [vmem:[%s6641_s11 + $0x6f0] sm:$0xff] }
 0x402   : > { %v2418_v8 = vunpack.c.h.s8.bf16 %v1682_v16  ;;  %v2414_v37 = vunpack.c.l.s8.bf16 %v1682_v16  ;;  %v2478_v12 = vunpack.c.l.s8.bf16 %v1714_v34  ;;  %v1731_v16 = vld [vmem:[%s6641_s11 + $0x878] sm:$0xff] }
 0x403   : > { %4140 = vmatpush1.bf16.msra.mxu0 %v2378_v26  ;;  %v1679_v26 = vld [vmem:[%s6641_s11 + $0x6d8] sm:$0xff] }
 0x404   : > { %4181 = vmatpush1.bf16.msra.mxu1 %v2442_v28  ;;  %4141 = vmatprep.subr.bf16.mxu0 %v2375_v11  ;;  %v1711_v28 = vld [vmem:[%s6641_s11 + $0x7d8] sm:$0xff]  ;;  %v2411_v11 = vunpack.c.h.s8.bf16 %v1679_v26 }
 0x405   : > { %4182 = vmatprep.subr.bf16.mxu1 %v2439_v43  ;;  %v2475_v43 = vunpack.c.h.s8.bf16 %v1711_v28  ;;  %v1763_v34 = vld [vmem:[%s6641_s11 + $0x978] sm:$0xff] }
 0x407   : > { %4142 = vmatpush1.bf16.msra.mxu0 %v2374_v1  ;;  %v2410_v1 = vunpack.c.h.s8.bf16 %v1678_v58 }
 0x408   : > { %4183 = vmatpush1.bf16.msra.mxu1 %v2438_v7  ;;  %4143 = vmatprep.subr.bf16.mxu0 %v2371_v48  ;;  %v2474_v7 = vunpack.c.h.s8.bf16 %v1710_v62  ;;  %v2407_v48 = vunpack.c.l.s8.bf16 %v1679_v26  ;;  %v1730_v26 = vld [vmem:[%s6641_s11 + $0x870] sm:$0xff] }
 0x409   : > { %4184 = vmatprep.subr.bf16.mxu1 %v2435_v35  ;;  %v2471_v35 = vunpack.c.l.s8.bf16 %v1711_v28  ;;  %v1762_v28 = vld [vmem:[%s6641_s11 + $0x970] sm:$0xff] }
 0x40b   : > { %4144 = vmatpush1.bf16.msra.mxu0 %v2370_v20  ;;  %v2406_v20 = vunpack.c.l.s8.bf16 %v1678_v58  ;;  %v1727_v58 = vld [vmem:[%s6641_s11 + $0x858] sm:$0xff] }
 0x40c   : > { %4185 = vmatpush1.bf16.msra.mxu1 %v2434_v41  ;;  %4145 = vmatprep.subr.bf16.mxu0 %v2367_v51  ;;  %v2470_v41 = vunpack.c.l.s8.bf16 %v1710_v62  ;;  %v2403_v51 = vunpack.c.h.s8.bf16 %v1675_v45  ;;  %v1759_v62 = vld [vmem:[%s6641_s11 + $0x958] sm:$0xff] }
 0x40d   : > { %4186 = vmatprep.subr.bf16.mxu1 %v2431_v52  ;;  %v2467_v52 = vunpack.c.h.s8.bf16 %v1707_v36 }
 0x40f   : > { %4146 = vmatpush1.bf16.msra.mxu0 %v2366_v44  ;;  %v2402_v44 = vunpack.c.h.s8.bf16 %v1674_v49 }
 0x410   : > { %4187 = vmatpush1.bf16.msra.mxu1 %v2430_v13  ;;  %4147 = vmatprep.subr.bf16.mxu0 %v2363_v54  ;;  %v2466_v13 = vunpack.c.h.s8.bf16 %v1706_v17  ;;  %v2399_v54 = vunpack.c.l.s8.bf16 %v1675_v45  ;;  %v2574_v45 = vunpack.c.l.s8.bf16 %v1762_v28 }
 0x411   : > { %4188 = vmatprep.subr.bf16.mxu1 %v2427_v57  ;;  %v2463_v57 = vunpack.c.l.s8.bf16 %v1707_v36 }
 0x413   : > { %4148 = vmatpush1.bf16.msra.mxu0 %v2362_v25  ;;  %v2398_v25 = vunpack.c.l.s8.bf16 %v1674_v49  ;;  %v1758_v49 = vld [vmem:[%s6641_s11 + $0x950] sm:$0xff] }
 0x414   : > { %4189 = vmatpush1.bf16.msra.mxu1 %v2426_v60  ;;  %4149 = vmatprep.subr.bf16.mxu0 %v2359_v61  ;;  %v2462_v60 = vunpack.c.l.s8.bf16 %v1706_v17  ;;  %v2395_v61 = vunpack.c.h.s8.bf16 %v1671_v53 }
 0x415   : > { %4190 = vmatprep.subr.bf16.mxu1 %v2423_v10  ;;  %v2459_v10 = vunpack.c.h.s8.bf16 %v1703_v2 }
 0x417   : > { %4150 = vmatpush1.bf16.msra.mxu0 %v2358_v9  ;;  %v2394_v9 = vunpack.c.h.s8.bf16 %v1670_v5 }
 0x418   : > { %4191 = vmatpush1.bf16.msra.mxu1 %v2422_v14  ;;  %4151 = vmatprep.subr.bf16.mxu0 %v2419_v22  ;;  %v2458_v14 = vunpack.c.h.s8.bf16 %v1702_v6  ;;  %v2391_v22 = vunpack.c.l.s8.bf16 %v1671_v53  ;;  %v2503_v53 = vunpack.c.l.s8.bf16 %v1727_v58 }
 0x419   : > { %4192 = vmatprep.subr.bf16.mxu1 %v2483_v4  ;;  %v2455_v4 = vunpack.c.l.s8.bf16 %v1703_v2  ;;  %v2567_v2 = vunpack.c.l.s8.bf16 %v1759_v62 }
 0x41b   : > { %4152 = vmatpush2.bf16.msra.mxu0 %v2418_v8  ;;  %v2390_v8 = vunpack.c.l.s8.bf16 %v1670_v5  ;;  %v1722_v5 = vld [vmem:[%s6641_s11 + $0x830] sm:$0xff] }
 0x41c   : > { %4193 = vmatpush2.bf16.msra.mxu1 %v2482_v33  ;;  %4153 = vmatprep.subr.bf16.mxu0 %v2415_v40  ;;  %v2454_v33 = vunpack.c.l.s8.bf16 %v1702_v6  ;;  %v2515_v40 = vunpack.c.h.s8.bf16 %v1731_v16  ;;  %v1754_v6 = vld [vmem:[%s6641_s11 + $0x930] sm:$0xff] }
 0x41d   : > { %4194 = vmatprep.subr.bf16.mxu1 %v2479_v59  ;;  %v2579_v59 = vunpack.c.h.s8.bf16 %v1763_v34 }
 0x41f   : > { %4154 = vmatpush2.bf16.msra.mxu0 %v2414_v37  ;;  %v2514_v37 = vunpack.c.h.s8.bf16 %v1730_v26 }
 0x420   : > { %4195 = vmatpush2.bf16.msra.mxu1 %v2478_v12  ;;  %4155 = vmatprep.subr.bf16.mxu0 %v2411_v11  ;;  %v2578_v12 = vunpack.c.h.s8.bf16 %v1762_v28  ;;  %v2511_v11 = vunpack.c.l.s8.bf16 %v1731_v16  ;;  %v1719_v16 = vld [vmem:[%s6641_s11 + $0x818] sm:$0xff]  ;;  %v1750_v28 = vld [vmem:[%s6641_s11 + $0x910] sm:$0xff] }
 0x421   : > { %4196 = vmatprep.subr.bf16.mxu1 %v2475_v43  ;;  %v2575_v43 = vunpack.c.l.s8.bf16 %v1763_v34  ;;  %v1751_v34 = vld [vmem:[%s6641_s11 + $0x918] sm:$0xff] }
 0x423   : > { %4156 = vmatpush2.bf16.msra.mxu0 %v2410_v1 }
 0x424   : > { %4197 = vmatpush2.bf16.msra.mxu1 %v2474_v7  ;;  %4157 = vmatprep.subr.bf16.mxu0 %v2407_v48 }
 0x425   : > { %4198 = vmatprep.subr.bf16.mxu1 %v2471_v35  ;;  %v2510_v35 = vunpack.c.l.s8.bf16 %v1730_v26  ;;  %v1718_v26 = vld [vmem:[%s6641_s11 + $0x810] sm:$0xff] }
 0x427   : > { %4158 = vmatpush2.bf16.msra.mxu0 %v2406_v20 }
 0x428   : > { %4199 = vmatpush2.bf16.msra.mxu1 %v2470_v41  ;;  %4159 = vmatprep.subr.bf16.mxu0 %v2403_v51  ;;  %v2507_v41 = vunpack.c.h.s8.bf16 %v1727_v58  ;;  %v2571_v51 = vunpack.c.h.s8.bf16 %v1759_v62  ;;  %v1747_v58 = vld [vmem:[%s6641_s11 + $0x8f8] sm:$0xff] }
 0x429   : > { %4200 = vmatprep.subr.bf16.mxu1 %v2467_v52  ;;  %v1726_v52 = vld [vmem:[%s6641_s11 + $0x850] sm:$0xff]  ;;  %v1779_v62 = vld [vmem:[%s6641_s11 + $0x9f8] sm:$0xff] }
 0x42b   : > { %4160 = vmatpush2.bf16.msra.mxu0 %v2402_v44  ;;  %v2506_v44 = vunpack.c.h.s8.bf16 %v1726_v52 }
 0x42c   : > { %4201 = vmatpush2.bf16.msra.mxu1 %v2466_v13  ;;  %4161 = vmatprep.subr.bf16.mxu0 %v2399_v54  ;;  %v2570_v13 = vunpack.c.h.s8.bf16 %v1758_v49 }
 0x42d   : > { %4202 = vmatprep.subr.bf16.mxu1 %v2463_v57 }
 0x42f   : > { %4162 = vmatpush2.bf16.msra.mxu0 %v2398_v25  ;;  %v1723_v25 = vld [vmem:[%s6641_s11 + $0x838] sm:$0xff] }
 0x430   : > { %4203 = vmatpush2.bf16.msra.mxu1 %v2462_v60  ;;  %4163 = vmatprep.subr.bf16.mxu0 %v2395_v61  ;;  %v1755_v60 = vld [vmem:[%s6641_s11 + $0x938] sm:$0xff]  ;;  %v2499_v61 = vunpack.c.h.s8.bf16 %v1723_v25 }
 0x431   : > { %4204 = vmatprep.subr.bf16.mxu1 %v2459_v10  ;;  %v2563_v10 = vunpack.c.h.s8.bf16 %v1755_v60 }
 0x433   : > { %4164 = vmatpush2.bf16.msra.mxu0 %v2394_v9  ;;  %v2498_v9 = vunpack.c.h.s8.bf16 %v1722_v5 }
 0x434   : > { %4205 = vmatpush2.bf16.msra.mxu1 %v2458_v14  ;;  %4165 = vmatprep.subr.bf16.mxu0 %v2391_v22  ;;  %v2562_v14 = vunpack.c.h.s8.bf16 %v1754_v6  ;;  %v2495_v22 = vunpack.c.l.s8.bf16 %v1723_v25 }
 0x435   : > { %4206 = vmatprep.subr.bf16.mxu1 %v2455_v4  ;;  %v2559_v4 = vunpack.c.l.s8.bf16 %v1755_v60 }
 0x437   : > { %4166 = vmatpush2.bf16.msra.mxu0 %v2390_v8  ;;  %v2494_v8 = vunpack.c.l.s8.bf16 %v1722_v5 }
 0x438   : > { %4207 = vmatpush2.bf16.msra.mxu1 %v2454_v33  ;;  %4217 = vmatprep.subr.bf16.mxu0 %v2515_v40  ;;  %v2558_v33 = vunpack.c.l.s8.bf16 %v1754_v6  ;;  %v2491_v40 = vunpack.c.h.s8.bf16 %v1719_v16 }
 0x439   : > { %4258 = vmatprep.subr.bf16.mxu1 %v2579_v59  ;;  %v2555_v59 = vunpack.c.h.s8.bf16 %v1751_v34 }
 0x43a   : > { %v3923_v1 = vpop.f32.mrf.mxu0  ;;  %4168 = vmatmul.mubr.bf16.vlgmr.msra.gmra.mxu0 %v6888_v42 }
 0x43b   : > { %v3964_v7 = vpop.f32.mrf.mxu1  ;;  %4209 = vmatmul.mubr.bf16.vlgmr.msra.gmra.mxu1 %v6897_v50  ;;  %4218 = vmatpush1.bf16.msra.mxu0 %v2514_v37  ;;  %v2490_v37 = vunpack.c.h.s8.bf16 %v1718_v26 }
 0x43c   : > { %v7319_v48 = vadd.f32 %v3964_v7, %v3923_v1  ;;  %4259 = vmatpush1.bf16.msra.mxu1 %v2578_v12  ;;  %v3925_v36 = vpop.f32.mrf.mxu0  ;;  %4219 = vmatprep.subr.bf16.mxu0 %v2511_v11  ;;  %v2554_v12 = vunpack.c.h.s8.bf16 %v1750_v28  ;;  %v2487_v11 = vunpack.c.l.s8.bf16 %v1719_v16  ;;  %v2486_v1 = vunpack.c.l.s8.bf16 %v1718_v26 }
 0x43d   : > { %v3966_v20 = vpop.f32.mrf.mxu1  ;;  %4260 = vmatprep.subr.bf16.mxu1 %v2575_v43  ;;  %4249 = vmatprep.mubr.bf16.mxu0 %v6893_v56  ;;  %v2502_v56 = vunpack.c.l.s8.bf16 %v1726_v52  ;;  %v2551_v43 = vunpack.c.l.s8.bf16 %v1751_v34  ;;  %v2550_v7 = vunpack.c.l.s8.bf16 %v1750_v28  ;;  %v2543_v52 = vunpack.c.l.s8.bf16 %v1747_v58 }
 0x43e   : > { %v7323_v17 = vadd.f32 %v3966_v20, %v3925_v36  ;;  %4290 = vmatprep.mubr.bf16.mxu1 %v6903_v3  ;;  %v3927_v42 = vpop.f32.mrf.mxu0  ;;  %v2566_v3 = vunpack.c.l.s8.bf16 %v1758_v49  ;;  %v1746_v36 = vld [vmem:[%s6641_s11 + $0x8f0] sm:$0xff]  ;;  %v2607_v49 = vunpack.c.l.s8.bf16 %v1779_v62 }
 0x43f   : > { %v3968_v50 = vpop.f32.mrf.mxu1  ;;  %4220 = vmatpush1.bf16.msra.mxu0 %v2510_v35  ;;  %v2547_v35 = vunpack.c.h.s8.bf16 %v1747_v58  ;;  %v1778_v20 = vld [vmem:[%s6641_s11 + $0x9f0] sm:$0xff]  ;;  %v1743_v42 = vld [vmem:[%s6641_s11 + $0x8d8] sm:$0xff] }
 0x440   : > { %4261 = vmatpush1.bf16.msra.mxu1 %v2574_v45  ;;  %v3928_v54 = vpop.f32.mrf.mxu0  ;;  %4221 = vmatprep.subr.bf16.mxu0 %v2507_v41  ;;  %v2611_v45 = vunpack.c.h.s8.bf16 %v1779_v62  ;;  %v2546_v41 = vunpack.c.h.s8.bf16 %v1746_v36  ;;  %v1775_v50 = vld [vmem:[%s6641_s11 + $0x9d8] sm:$0xff] }
 0x441   : > { %v3969_v57 = vpop.f32.mrf.mxu1  ;;  %4262 = vmatprep.subr.bf16.mxu1 %v2571_v51  ;;  %v2610_v51 = vunpack.c.h.s8.bf16 %v1778_v20  ;;  %v2539_v54 = vunpack.c.h.s8.bf16 %v1743_v42 }
 0x442   : > { %v2603_v57 = vunpack.c.h.s8.bf16 %v1775_v50 }
 0x443   : > { %4222 = vmatpush1.bf16.msra.mxu0 %v2506_v44  ;;  %v2542_v44 = vunpack.c.l.s8.bf16 %v1746_v36 }
 0x444   : > { %4263 = vmatpush1.bf16.msra.mxu1 %v2570_v13  ;;  %4223 = vmatprep.subr.bf16.mxu0 %v2503_v53  ;;  %v2606_v13 = vunpack.c.l.s8.bf16 %v1778_v20  ;;  %v1742_v53 = vld [vmem:[%s6641_s11 + $0x8d0] sm:$0xff] }
 0x445   : > { %4264 = vmatprep.subr.bf16.mxu1 %v2567_v2  ;;  %v1774_v2 = vld [vmem:[%s6641_s11 + $0x9d0] sm:$0xff]  ;;  %v2538_v25 = vunpack.c.h.s8.bf16 %v1742_v53  ;;  %v2534_v5 = vunpack.c.l.s8.bf16 %v1742_v53 }
 0x446   : > { %v2602_v60 = vunpack.c.h.s8.bf16 %v1774_v2  ;;  %v2598_v6 = vunpack.c.l.s8.bf16 %v1774_v2 }
 0x447   : > { %4224 = vmatpush1.bf16.msra.mxu0 %v2502_v56  ;;  %v2535_v56 = vunpack.c.l.s8.bf16 %v1743_v42 }
 0x448   : > { %4265 = vmatpush1.bf16.msra.mxu1 %v2566_v3  ;;  %4225 = vmatprep.subr.bf16.mxu0 %v2499_v61  ;;  %v2599_v3 = vunpack.c.l.s8.bf16 %v1775_v50  ;;  %v1739_v61 = vld [vmem:[%s6641_s11 + $0x8b8] sm:$0xff] }
 0x449   : > { %4266 = vmatprep.subr.bf16.mxu1 %v2563_v10  ;;  %v1771_v10 = vld [vmem:[%s6641_s11 + $0x9b8] sm:$0xff] }
 0x44b   : > { %4226 = vmatpush1.bf16.msra.mxu0 %v2498_v9  ;;  %v2531_v9 = vunpack.c.h.s8.bf16 %v1739_v61 }
 0x44c   : > { %4267 = vmatpush1.bf16.msra.mxu1 %v2562_v14  ;;  %4227 = vmatprep.subr.bf16.mxu0 %v2495_v22  ;;  %v2595_v14 = vunpack.c.h.s8.bf16 %v1771_v10  ;;  %v1738_v22 = vld [vmem:[%s6641_s11 + $0x8b0] sm:$0xff] }
 0x44d   : > { %4268 = vmatprep.subr.bf16.mxu1 %v2559_v4  ;;  %v1770_v4 = vld [vmem:[%s6641_s11 + $0x9b0] sm:$0xff]  ;;  %v2530_v16 = vunpack.c.h.s8.bf16 %v1738_v22  ;;  %v2526_v26 = vunpack.c.l.s8.bf16 %v1738_v22 }
 0x44e   : > { %v2594_v34 = vunpack.c.h.s8.bf16 %v1770_v4  ;;  %v2590_v28 = vunpack.c.l.s8.bf16 %v1770_v4 }
 0x44f   : > { %4228 = vmatpush1.bf16.msra.mxu0 %v2494_v8  ;;  %v2527_v8 = vunpack.c.l.s8.bf16 %v1739_v61 }
 0x450   : > { %4269 = vmatpush1.bf16.msra.mxu1 %v2558_v33  ;;  %4229 = vmatprep.subr.bf16.mxu0 %v2491_v40  ;;  %v2591_v33 = vunpack.c.l.s8.bf16 %v1771_v10  ;;  %v1735_v40 = vld [vmem:[%s6641_s11 + $0x898] sm:$0xff] }
 0x451   : > { %4270 = vmatprep.subr.bf16.mxu1 %v2555_v59  ;;  %v1767_v59 = vld [vmem:[%s6641_s11 + $0x998] sm:$0xff] }
 0x453   : > { %4230 = vmatpush1.bf16.msra.mxu0 %v2490_v37  ;;  %v2523_v37 = vunpack.c.h.s8.bf16 %v1735_v40 }
 0x454   : > { %4271 = vmatpush1.bf16.msra.mxu1 %v2554_v12  ;;  %4231 = vmatprep.subr.bf16.mxu0 %v2487_v11  ;;  %v2587_v12 = vunpack.c.h.s8.bf16 %v1767_v59  ;;  %v1734_v11 = vld [vmem:[%s6641_s11 + $0x890] sm:$0xff] }
 0x455   : > { %4272 = vmatprep.subr.bf16.mxu1 %v2551_v43  ;;  %v1766_v43 = vld [vmem:[%s6641_s11 + $0x990] sm:$0xff]  ;;  %v2522_v58 = vunpack.c.h.s8.bf16 %v1734_v11  ;;  %v2518_v36 = vunpack.c.l.s8.bf16 %v1734_v11 }
 0x456   : > { %v2586_v62 = vunpack.c.h.s8.bf16 %v1766_v43  ;;  %v2582_v20 = vunpack.c.l.s8.bf16 %v1766_v43 }
 0x457   : > { %4232 = vmatpush1.bf16.msra.mxu0 %v2486_v1  ;;  %v2519_v1 = vunpack.c.l.s8.bf16 %v1735_v40  ;;  %v1819_v40 = vld [vmem:[%s6641_s11 + $0xb38] sm:$0xff] }
 0x458   : > { %4273 = vmatpush1.bf16.msra.mxu1 %v2550_v7  ;;  %4233 = vmatprep.subr.bf16.mxu0 %v2547_v35  ;;  %v2583_v7 = vunpack.c.l.s8.bf16 %v1767_v59  ;;  %v1795_v35 = vld [vmem:[%s6641_s11 + $0xa78] sm:$0xff] }
 0x459   : > { %4274 = vmatprep.subr.bf16.mxu1 %v2611_v45  ;;  %v1827_v45 = vld [vmem:[%s6641_s11 + $0xb78] sm:$0xff] }
 0x45b   : > { %4234 = vmatpush2.bf16.msra.mxu0 %v2546_v41  ;;  %v2643_v41 = vunpack.c.h.s8.bf16 %v1795_v35 }
 0x45c   : > { %4275 = vmatpush2.bf16.msra.mxu1 %v2610_v51  ;;  %4235 = vmatprep.subr.bf16.mxu0 %v2543_v52  ;;  %v2707_v51 = vunpack.c.h.s8.bf16 %v1827_v45  ;;  %v1794_v52 = vld [vmem:[%s6641_s11 + $0xa70] sm:$0xff] }
 0x45d   : > { %4276 = vmatprep.subr.bf16.mxu1 %v2607_v49  ;;  %v1826_v49 = vld [vmem:[%s6641_s11 + $0xb70] sm:$0xff]  ;;  %v2642_v42 = vunpack.c.h.s8.bf16 %v1794_v52 }
 0x45e   : > { %v2706_v50 = vunpack.c.h.s8.bf16 %v1826_v49 }
 0x45f   : > { %4236 = vmatpush2.bf16.msra.mxu0 %v2542_v44  ;;  %v2639_v44 = vunpack.c.l.s8.bf16 %v1795_v35 }
 0x460   : > { %4277 = vmatpush2.bf16.msra.mxu1 %v2606_v13  ;;  %4237 = vmatprep.subr.bf16.mxu0 %v2539_v54  ;;  %v2703_v13 = vunpack.c.l.s8.bf16 %v1827_v45  ;;  %v1791_v54 = vld [vmem:[%s6641_s11 + $0xa58] sm:$0xff] }
 0x461   : > { %4278 = vmatprep.subr.bf16.mxu1 %v2603_v57  ;;  %v1823_v57 = vld [vmem:[%s6641_s11 + $0xb58] sm:$0xff]  ;;  %v2635_v10 = vunpack.c.h.s8.bf16 %v1791_v54 }
 0x463   : > { %4238 = vmatpush2.bf16.msra.mxu0 %v2538_v25 }
 0x464   : > { %4279 = vmatpush2.bf16.msra.mxu1 %v2602_v60  ;;  %4239 = vmatprep.subr.bf16.mxu0 %v2535_v56  ;;  %v2638_v60 = vunpack.c.l.s8.bf16 %v1794_v52  ;;  %v2702_v56 = vunpack.c.l.s8.bf16 %v1826_v49 }
 0x465   : > { %4280 = vmatprep.subr.bf16.mxu1 %v2599_v3 }
 0x467   : > { %4240 = vmatpush2.bf16.msra.mxu0 %v2534_v5  ;;  %v2699_v5 = vunpack.c.h.s8.bf16 %v1823_v57 }
 0x468   : > { %4281 = vmatpush2.bf16.msra.mxu1 %v2598_v6  ;;  %4241 = vmatprep.subr.bf16.mxu0 %v2531_v9  ;;  %v1790_v6 = vld [vmem:[%s6641_s11 + $0xa50] sm:$0xff] }
 0x469   : > { %4282 = vmatprep.subr.bf16.mxu1 %v2595_v14  ;;  %v1822_v9 = vld [vmem:[%s6641_s11 + $0xb50] sm:$0xff]  ;;  %v2634_v4 = vunpack.c.h.s8.bf16 %v1790_v6 }
 0x46a   : > { %v2694_v59 = vunpack.c.l.s8.bf16 %v1822_v9 }
 0x46b   : > { %4242 = vmatpush2.bf16.msra.mxu0 %v2530_v16  ;;  %v2698_v16 = vunpack.c.h.s8.bf16 %v1822_v9 }
 0x46c   : > { %4283 = vmatpush2.bf16.msra.mxu1 %v2594_v34  ;;  %4243 = vmatprep.subr.bf16.mxu0 %v2527_v8 }
 0x46d   : > { %4284 = vmatprep.subr.bf16.mxu1 %v2591_v33  ;;  %v2695_v33 = vunpack.c.l.s8.bf16 %v1823_v57 }
 0x46f   : > { %4244 = vmatpush2.bf16.msra.mxu0 %v2526_v26 }
 0x470   : > { %4285 = vmatpush2.bf16.msra.mxu1 %v2590_v28  ;;  %4245 = vmatprep.subr.bf16.mxu0 %v2523_v37  ;;  %v2691_v28 = vunpack.c.h.s8.bf16 %v1819_v40  ;;  %v1786_v37 = vld [vmem:[%s6641_s11 + $0xa30] sm:$0xff] }
 0x471   : > { %4286 = vmatprep.subr.bf16.mxu1 %v2587_v12  ;;  %v1818_v12 = vld [vmem:[%s6641_s11 + $0xb30] sm:$0xff]  ;;  %v2626_v11 = vunpack.c.h.s8.bf16 %v1786_v37  ;;  %v2622_v35 = vunpack.c.l.s8.bf16 %v1786_v37 }
 0x472   : > { %v2690_v43 = vunpack.c.h.s8.bf16 %v1818_v12  ;;  %v2686_v45 = vunpack.c.l.s8.bf16 %v1818_v12  ;;  %v1802_v37 = vld [vmem:[%s6641_s11 + $0xab0] sm:$0xff] }
 0x473   : > { %4246 = vmatpush2.bf16.msra.mxu0 %v2522_v58  ;;  %v1834_v12 = vld [vmem:[%s6641_s11 + $0xbb0] sm:$0xff] }
 0x474   : > { %4287 = vmatpush2.bf16.msra.mxu1 %v2586_v62  ;;  %4247 = vmatprep.subr.bf16.mxu0 %v2519_v1  ;;  %v2687_v62 = vunpack.c.l.s8.bf16 %v1819_v40  ;;  %v1783_v1 = vld [vmem:[%s6641_s11 + $0xa18] sm:$0xff] }
 0x475   : > { %4288 = vmatprep.subr.bf16.mxu1 %v2583_v7  ;;  %v1815_v7 = vld [vmem:[%s6641_s11 + $0xb18] sm:$0xff] }
 0x476   : > { %v1835_v40 = vld [vmem:[%s6641_s11 + $0xbb8] sm:$0xff] }
 0x477   : > { %4248 = vmatpush2.bf16.msra.mxu0 %v2518_v36  ;;  %v2619_v36 = vunpack.c.h.s8.bf16 %v1783_v1 }
 0x478   : > { %4289 = vmatpush2.bf16.msra.mxu1 %v2582_v20  ;;  %4299 = vmatprep.subr.bf16.mxu0 %v2643_v41  ;;  %v2683_v20 = vunpack.c.h.s8.bf16 %v1815_v7  ;;  %v1782_v41 = vld [vmem:[%s6641_s11 + $0xa10] sm:$0xff] }
 0x479   : > { %4340 = vmatprep.subr.bf16.mxu1 %v2707_v51  ;;  %v1814_v51 = vld [vmem:[%s6641_s11 + $0xb10] sm:$0xff]  ;;  %v2618_v52 = vunpack.c.h.s8.bf16 %v1782_v41 }
 0x47a   : > { %v4005_v53 = vpop.f32.mrf.mxu0  ;;  %4250 = vmatmul.mubr.bf16.vlgmr.msra.gmra.mxu0 %v6950_v21  ;;  %v2682_v49 = vunpack.c.h.s8.bf16 %v1814_v51  ;;  %v2678_v57 = vunpack.c.l.s8.bf16 %v1814_v51  ;;  %v1830_v51 = vld [vmem:[%s6641_s11 + $0xb90] sm:$0xff] }
 0x47b   : > { %v4046_v2 = vpop.f32.mrf.mxu1  ;;  %4291 = vmatmul.mubr.bf16.vlgmr.msra.gmra.mxu1 %v6959_v32  ;;  %v4006_v25 = vadd.f32 %v4005_v53, %v7319_v48  ;;  %4300 = vmatpush1.bf16.msra.mxu0 %v2642_v42  ;;  %v2615_v42 = vunpack.c.l.s8.bf16 %v1783_v1  ;;  %v1799_v1 = vld [vmem:[%s6641_s11 + $0xa98] sm:$0xff] }
 0x47c   : > { %4341 = vmatpush1.bf16.msra.mxu1 %v2706_v50  ;;  %v4007_v3 = vpop.f32.mrf.mxu0  ;;  %4301 = vmatprep.subr.bf16.mxu0 %v2639_v44  ;;  %v2679_v50 = vunpack.c.l.s8.bf16 %v1815_v7  ;;  %v1811_v44 = vld [vmem:[%s6641_s11 + $0xaf8] sm:$0xff] }
 0x47d   : > { %v4048_v61 = vpop.f32.mrf.mxu1  ;;  %4342 = vmatprep.subr.bf16.mxu1 %v2703_v13  ;;  %v7362_v14 = vadd.f32 %v4046_v2, %v4006_v25  ;;  %v4008_v21 = vadd.f32 %v4007_v3, %v7323_v17  ;;  %4331 = vmatprep.mubr.bf16.mxu0 %v6955_v31  ;;  %v2631_v17 = vunpack.c.l.s8.bf16 %v1791_v54  ;;  %v1787_v31 = vld [vmem:[%s6641_s11 + $0xa38] sm:$0xff]  ;;  %v2614_v54 = vunpack.c.l.s8.bf16 %v1782_v41  ;;  %v1810_v25 = vld [vmem:[%s6641_s11 + $0xaf0] sm:$0xff] }
 0x47e   : > { %4372 = vmatprep.mubr.bf16.mxu1 %v6965_v27  ;;  %v4009_v32 = vpop.f32.mrf.mxu0  ;;  %v2630_v27 = vunpack.c.l.s8.bf16 %v1790_v6  ;;  %v2627_v26 = vunpack.c.h.s8.bf16 %v1787_v31  ;;  %v2623_v58 = vunpack.c.l.s8.bf16 %v1787_v31  ;;  %v1843_v13 = vld [vmem:[%s6641_s11 + $0xbf8] sm:$0xff]  ;;  %v2675_v53 = vunpack.c.h.s8.bf16 %v1811_v44  ;;  %v1798_v41 = vld [vmem:[%s6641_s11 + $0xa90] sm:$0xff] }
 0x47f   : > { %v4050_v48 = vpop.f32.mrf.mxu1  ;;  %v7367_v22 = vadd.f32 %v4048_v61, %v4008_v21  ;;  %4302 = vmatpush1.bf16.msra.mxu0 %v2638_v60  ;;  %v2739_v2 = vunpack.c.h.s8.bf16 %v1843_v13  ;;  %v1842_v60 = vld [vmem:[%s6641_s11 + $0xbf0] sm:$0xff]  ;;  %v2671_v61 = vunpack.c.l.s8.bf16 %v1811_v44  ;;  %v1839_v6 = vld [vmem:[%s6641_s11 + $0xbd8] sm:$0xff]  ;;  %v2670_v9 = vunpack.c.l.s8.bf16 %v1810_v25 }
 0x480   : > { %4343 = vmatpush1.bf16.msra.mxu1 %v2702_v56  ;;  %v4010_v34 = vpop.f32.mrf.mxu0  ;;  %4303 = vmatprep.subr.bf16.mxu0 %v2635_v10  ;;  %v2674_v56 = vunpack.c.h.s8.bf16 %v1810_v25  ;;  %v2738_v3 = vunpack.c.h.s8.bf16 %v1842_v60  ;;  %v2735_v10 = vunpack.c.l.s8.bf16 %v1843_v13  ;;  %v2734_v21 = vunpack.c.l.s8.bf16 %v1842_v60  ;;  %v1803_v31 = vld [vmem:[%s6641_s11 + $0xab8] sm:$0xff]  ;;  %v1858_v25 = vld [vmem:[%s6641_s11 + $0xc70] sm:$0xff] }
 0x481   : > { %v4051_v8 = vpop.f32.mrf.mxu1  ;;  %4344 = vmatprep.subr.bf16.mxu1 %v2699_v5  ;;  %v1807_v5 = vld [vmem:[%s6641_s11 + $0xad8] sm:$0xff]  ;;  %v2731_v48 = vunpack.c.h.s8.bf16 %v1839_v6  ;;  %v1890_v60 = vld [vmem:[%s6641_s11 + $0xd70] sm:$0xff] }
 0x482   : > { %v2667_v32 = vunpack.c.h.s8.bf16 %v1807_v5  ;;  %v1831_v7 = vld [vmem:[%s6641_s11 + $0xb98] sm:$0xff] }
 0x483   : > { %4304 = vmatpush1.bf16.msra.mxu0 %v2634_v4  ;;  %v1806_v4 = vld [vmem:[%s6641_s11 + $0xad0] sm:$0xff]  ;;  %v1859_v44 = vld [vmem:[%s6641_s11 + $0xc78] sm:$0xff] }
 0x484   : > { %4345 = vmatpush1.bf16.msra.mxu1 %v2698_v16  ;;  %4305 = vmatprep.subr.bf16.mxu0 %v2631_v17  ;;  %v1838_v16 = vld [vmem:[%s6641_s11 + $0xbd0] sm:$0xff]  ;;  %v2666_v34 = vunpack.c.h.s8.bf16 %v1806_v4  ;;  %v2663_v17 = vunpack.c.l.s8.bf16 %v1807_v5  ;;  %v1891_v13 = vld [vmem:[%s6641_s11 + $0xd78] sm:$0xff] }
 0x485   : > { %4346 = vmatprep.subr.bf16.mxu1 %v2695_v33  ;;  %v2730_v8 = vunpack.c.h.s8.bf16 %v1838_v16  ;;  %v2727_v33 = vunpack.c.l.s8.bf16 %v1839_v6  ;;  %v1855_v5 = vld [vmem:[%s6641_s11 + $0xc58] sm:$0xff] }
 0x486   : > { %v1887_v6 = vld [vmem:[%s6641_s11 + $0xd58] sm:$0xff] }
 0x487   : > { %4306 = vmatpush1.bf16.msra.mxu0 %v2630_v27  ;;  %v2662_v27 = vunpack.c.l.s8.bf16 %v1806_v4  ;;  %v2830_v4 = vunpack.c.l.s8.bf16 %v1890_v60 }
 0x488   : > { %4347 = vmatpush1.bf16.msra.mxu1 %v2694_v59  ;;  %4307 = vmatprep.subr.bf16.mxu0 %v2627_v26  ;;  %v2726_v59 = vunpack.c.l.s8.bf16 %v1838_v16  ;;  %v2659_v26 = vunpack.c.h.s8.bf16 %v1803_v31 }
 0x489   : > { %4348 = vmatprep.subr.bf16.mxu1 %v2691_v28  ;;  %v2723_v28 = vunpack.c.h.s8.bf16 %v1835_v40 }
 0x48b   : > { %4308 = vmatpush1.bf16.msra.mxu0 %v2626_v11  ;;  %v2658_v11 = vunpack.c.h.s8.bf16 %v1802_v37 }
 0x48c   : > { %4349 = vmatpush1.bf16.msra.mxu1 %v2690_v43  ;;  %4309 = vmatprep.subr.bf16.mxu0 %v2623_v58  ;;  %v2722_v43 = vunpack.c.h.s8.bf16 %v1834_v12  ;;  %v2655_v58 = vunpack.c.l.s8.bf16 %v1803_v31  ;;  %v1886_v31 = vld [vmem:[%s6641_s11 + $0xd50] sm:$0xff] }
 0x48d   : > { %4350 = vmatprep.subr.bf16.mxu1 %v2687_v62  ;;  %v2719_v62 = vunpack.c.l.s8.bf16 %v1835_v40 }
 0x48f   : > { %4310 = vmatpush1.bf16.msra.mxu0 %v2622_v35  ;;  %v2654_v35 = vunpack.c.l.s8.bf16 %v1802_v37 }
 0x490   : > { %4351 = vmatpush1.bf16.msra.mxu1 %v2686_v45  ;;  %4311 = vmatprep.subr.bf16.mxu0 %v2619_v36  ;;  %v2718_v45 = vunpack.c.l.s8.bf16 %v1834_v12  ;;  %v2651_v36 = vunpack.c.h.s8.bf16 %v1799_v1  ;;  %v2823_v12 = vunpack.c.l.s8.bf16 %v1887_v6 }
 0x491   : > { %4352 = vmatprep.subr.bf16.mxu1 %v2683_v20  ;;  %v2715_v20 = vunpack.c.h.s8.bf16 %v1831_v7 }
 0x493   : > { %4312 = vmatpush1.bf16.msra.mxu0 %v2618_v52  ;;  %v2650_v52 = vunpack.c.h.s8.bf16 %v1798_v41 }
 0x494   : > { %4353 = vmatpush1.bf16.msra.mxu1 %v2682_v49  ;;  %4313 = vmatprep.subr.bf16.mxu0 %v2615_v42  ;;  %v2714_v49 = vunpack.c.h.s8.bf16 %v1830_v51  ;;  %v2647_v42 = vunpack.c.l.s8.bf16 %v1799_v1  ;;  %v1850_v1 = vld [vmem:[%s6641_s11 + $0xc30] sm:$0xff] }
 0x495   : > { %4354 = vmatprep.subr.bf16.mxu1 %v2679_v50  ;;  %v2711_v50 = vunpack.c.l.s8.bf16 %v1831_v7  ;;  %v1882_v7 = vld [vmem:[%s6641_s11 + $0xd30] sm:$0xff] }
 0x497   : > { %4314 = vmatpush1.bf16.msra.mxu0 %v2614_v54  ;;  %v2646_v54 = vunpack.c.l.s8.bf16 %v1798_v41  ;;  %v1847_v41 = vld [vmem:[%s6641_s11 + $0xc18] sm:$0xff] }
 0x498   : > { %4355 = vmatpush1.bf16.msra.mxu1 %v2678_v57  ;;  %4315 = vmatprep.subr.bf16.mxu0 %v2675_v53  ;;  %v2710_v57 = vunpack.c.l.s8.bf16 %v1830_v51  ;;  %v2771_v53 = vunpack.c.h.s8.bf16 %v1859_v44  ;;  %v1879_v51 = vld [vmem:[%s6641_s11 + $0xd18] sm:$0xff] }
 0x499   : > { %4356 = vmatprep.subr.bf16.mxu1 %v2739_v2  ;;  %v2835_v2 = vunpack.c.h.s8.bf16 %v1891_v13 }
 0x49b   : > { %4316 = vmatpush2.bf16.msra.mxu0 %v2674_v56  ;;  %v2770_v56 = vunpack.c.h.s8.bf16 %v1858_v25 }
 0x49c   : > { %4357 = vmatpush2.bf16.msra.mxu1 %v2738_v3  ;;  %4317 = vmatprep.subr.bf16.mxu0 %v2671_v61  ;;  %v2834_v3 = vunpack.c.h.s8.bf16 %v1890_v60  ;;  %v2767_v61 = vunpack.c.l.s8.bf16 %v1859_v44  ;;  %v1846_v44 = vld [vmem:[%s6641_s11 + $0xc10] sm:$0xff]  ;;  %v1907_v60 = vld [vmem:[%s6641_s11 + $0xdf8] sm:$0xff] }
 0x49d   : > { %4358 = vmatprep.subr.bf16.mxu1 %v2735_v10  ;;  %v2831_v10 = vunpack.c.l.s8.bf16 %v1891_v13  ;;  %v1878_v13 = vld [vmem:[%s6641_s11 + $0xd10] sm:$0xff] }
 0x49f   : > { %4318 = vmatpush2.bf16.msra.mxu0 %v2670_v9 }
 0x4a0   : > { %4359 = vmatpush2.bf16.msra.mxu1 %v2734_v21  ;;  %4319 = vmatprep.subr.bf16.mxu0 %v2667_v32 }
 0x4a1   : > { %4360 = vmatprep.subr.bf16.mxu1 %v2731_v48  ;;  %v2766_v48 = vunpack.c.l.s8.bf16 %v1858_v25  ;;  %v1875_v25 = vld [vmem:[%s6641_s11 + $0xcf8] sm:$0xff] }
 0x4a3   : > { %4320 = vmatpush2.bf16.msra.mxu0 %v2666_v34 }
 0x4a4   : > { %4361 = vmatpush2.bf16.msra.mxu1 %v2730_v8  ;;  %4321 = vmatprep.subr.bf16.mxu0 %v2663_v17  ;;  %v2763_v8 = vunpack.c.h.s8.bf16 %v1855_v5  ;;  %v2827_v17 = vunpack.c.h.s8.bf16 %v1887_v6  ;;  %v1906_v6 = vld [vmem:[%s6641_s11 + $0xdf0] sm:$0xff] }
 0x4a5   : > { %4362 = vmatprep.subr.bf16.mxu1 %v2727_v33  ;;  %v1854_v33 = vld [vmem:[%s6641_s11 + $0xc50] sm:$0xff] }
 0x4a7   : > { %4322 = vmatpush2.bf16.msra.mxu0 %v2662_v27 }
 0x4a8   : > { %4363 = vmatpush2.bf16.msra.mxu1 %v2726_v59  ;;  %4323 = vmatprep.subr.bf16.mxu0 %v2659_v26  ;;  %v2762_v59 = vunpack.c.h.s8.bf16 %v1854_v33  ;;  %v2826_v26 = vunpack.c.h.s8.bf16 %v1886_v31 }
 0x4a9   : > { %4364 = vmatprep.subr.bf16.mxu1 %v2723_v28 }
 0x4ab   : > { %4324 = vmatpush2.bf16.msra.mxu0 %v2658_v11  ;;  %v1883_v11 = vld [vmem:[%s6641_s11 + $0xd38] sm:$0xff] }
 0x4ac   : > { %4365 = vmatpush2.bf16.msra.mxu1 %v2722_v43  ;;  %4325 = vmatprep.subr.bf16.mxu0 %v2655_v58  ;;  %v2822_v43 = vunpack.c.l.s8.bf16 %v1886_v31  ;;  %v1870_v31 = vld [vmem:[%s6641_s11 + $0xcd0] sm:$0xff] }
 0x4ad   : > { %4366 = vmatprep.subr.bf16.mxu1 %v2719_v62  ;;  %v2819_v62 = vunpack.c.h.s8.bf16 %v1883_v11 }
 0x4af   : > { %4326 = vmatpush2.bf16.msra.mxu0 %v2654_v35  ;;  %v2754_v35 = vunpack.c.h.s8.bf16 %v1850_v1 }
 0x4b0   : > { %4367 = vmatpush2.bf16.msra.mxu1 %v2718_v45  ;;  %4327 = vmatprep.subr.bf16.mxu0 %v2651_v36  ;;  %v2818_v45 = vunpack.c.h.s8.bf16 %v1882_v7 }
 0x4b1   : > { %4368 = vmatprep.subr.bf16.mxu1 %v2715_v20  ;;  %v2815_v20 = vunpack.c.l.s8.bf16 %v1883_v11 }
 0x4b3   : > { %4328 = vmatpush2.bf16.msra.mxu0 %v2650_v52  ;;  %v2750_v52 = vunpack.c.l.s8.bf16 %v1850_v1 }
 0x4b4   : > { %4369 = vmatpush2.bf16.msra.mxu1 %v2714_v49  ;;  %4329 = vmatprep.subr.bf16.mxu0 %v2647_v42  ;;  %v2814_v49 = vunpack.c.l.s8.bf16 %v1882_v7  ;;  %v2747_v42 = vunpack.c.h.s8.bf16 %v1847_v41 }
 0x4b5   : > { %4370 = vmatprep.subr.bf16.mxu1 %v2711_v50  ;;  %v2811_v50 = vunpack.c.h.s8.bf16 %v1879_v51 }
 0x4b7   : > { %4330 = vmatpush2.bf16.msra.mxu0 %v2646_v54  ;;  %v2746_v54 = vunpack.c.h.s8.bf16 %v1846_v44 }
 0x4b8   : > { %4371 = vmatpush2.bf16.msra.mxu1 %v2710_v57  ;;  %4381 = vmatprep.subr.bf16.mxu0 %v2771_v53  ;;  %v2810_v57 = vunpack.c.h.s8.bf16 %v1878_v13  ;;  %v2743_v53 = vunpack.c.l.s8.bf16 %v1847_v41 }
 0x4b9   : > { %4422 = vmatprep.subr.bf16.mxu1 %v2835_v2  ;;  %v2807_v2 = vunpack.c.l.s8.bf16 %v1879_v51 }
 0x4ba   : > { %v4087_v9 = vpop.f32.mrf.mxu0  ;;  %4332 = vmatmul.mubr.bf16.vlgmr.msra.gmra.mxu0 %v7016_v18 }
 0x4bb   : > { %v4128_v21 = vpop.f32.mrf.mxu1  ;;  %4373 = vmatmul.mubr.bf16.vlgmr.msra.gmra.mxu1 %v7025_v30  ;;  %v4088_v32 = vadd.f32 %v4087_v9, %v7362_v14  ;;  %4382 = vmatpush1.bf16.msra.mxu0 %v2770_v56  ;;  %v2742_v56 = vunpack.c.l.s8.bf16 %v1846_v44 }
 0x4bc   : > { %4423 = vmatpush1.bf16.msra.mxu1 %v2834_v3  ;;  %v4089_v16 = vpop.f32.mrf.mxu0  ;;  %4383 = vmatprep.subr.bf16.mxu0 %v2767_v61  ;;  %v2806_v3 = vunpack.c.l.s8.bf16 %v1878_v13  ;;  %v2803_v61 = vunpack.c.h.s8.bf16 %v1875_v25 }
 0x4bd   : > { %v4130_v34 = vpop.f32.mrf.mxu1  ;;  %4424 = vmatprep.subr.bf16.mxu1 %v2831_v10  ;;  %v7404_v40 = vadd.f32 %v4128_v21, %v4088_v32  ;;  %v4090_v18 = vadd.f32 %v4089_v16, %v7367_v22  ;;  %4413 = vmatprep.mubr.bf16.mxu0 %v7021_v29  ;;  %v2759_v22 = vunpack.c.l.s8.bf16 %v1855_v5  ;;  %v1851_v29 = vld [vmem:[%s6641_s11 + $0xc38] sm:$0xff]  ;;  %v2867_v10 = vunpack.c.h.s8.bf16 %v1907_v60  ;;  %v1874_v5 = vld [vmem:[%s6641_s11 + $0xcf0] sm:$0xff] }
 0x4be   : > { %4454 = vmatprep.mubr.bf16.mxu1 %v7031_v46  ;;  %v4091_v30 = vpop.f32.mrf.mxu0  ;;  %v2758_v46 = vunpack.c.l.s8.bf16 %v1854_v33  ;;  %v2755_v58 = vunpack.c.h.s8.bf16 %v1851_v29  ;;  %v2751_v36 = vunpack.c.l.s8.bf16 %v1851_v29  ;;  %v2802_v9 = vunpack.c.h.s8.bf16 %v1874_v5  ;;  %v1903_v16 = vld [vmem:[%s6641_s11 + $0xdd8] sm:$0xff] }
 0x4bf   : > { %v4132_v14 = vpop.f32.mrf.mxu1  ;;  %v7409_v27 = vadd.f32 %v4130_v34, %v4090_v18  ;;  %4384 = vmatpush1.bf16.msra.mxu0 %v2766_v48  ;;  %v2866_v21 = vunpack.c.h.s8.bf16 %v1906_v6  ;;  %v2799_v32 = vunpack.c.l.s8.bf16 %v1875_v25  ;;  %v2863_v48 = vunpack.c.l.s8.bf16 %v1907_v60  ;;  %v1902_v18 = vld [vmem:[%s6641_s11 + $0xdd0] sm:$0xff] }
 0x4c0   : > { %4425 = vmatpush1.bf16.msra.mxu1 %v2830_v4  ;;  %v4092_v28 = vpop.f32.mrf.mxu0  ;;  %4385 = vmatprep.subr.bf16.mxu0 %v2763_v8  ;;  %v1871_v4 = vld [vmem:[%s6641_s11 + $0xcd8] sm:$0xff]  ;;  %v2798_v34 = vunpack.c.l.s8.bf16 %v1874_v5  ;;  %v2862_v8 = vunpack.c.l.s8.bf16 %v1906_v6  ;;  %v2859_v33 = vunpack.c.h.s8.bf16 %v1903_v16  ;;  %v2794_v30 = vunpack.c.h.s8.bf16 %v1870_v31 }
 0x4c1   : > { %v4133_v37 = vpop.f32.mrf.mxu1  ;;  %4426 = vmatprep.subr.bf16.mxu1 %v2827_v17  ;;  %v2795_v17 = vunpack.c.h.s8.bf16 %v1871_v4  ;;  %v2858_v14 = vunpack.c.h.s8.bf16 %v1902_v18  ;;  %v1867_v28 = vld [vmem:[%s6641_s11 + $0xcb8] sm:$0xff] }
 0x4c2   : > { %v1899_v37 = vld [vmem:[%s6641_s11 + $0xdb8] sm:$0xff]  ;;  %v2787_v29 = vunpack.c.h.s8.bf16 %v1867_v28  ;;  %v2783_v1 = vunpack.c.l.s8.bf16 %v1867_v28 }
 0x4c3   : > { %4386 = vmatpush1.bf16.msra.mxu0 %v2762_v59  ;;  %v2791_v59 = vunpack.c.l.s8.bf16 %v1871_v4  ;;  %v2851_v11 = vunpack.c.h.s8.bf16 %v1899_v37  ;;  %v2847_v7 = vunpack.c.l.s8.bf16 %v1899_v37 }
 0x4c4   : > { %4427 = vmatpush1.bf16.msra.mxu1 %v2826_v26  ;;  %4387 = vmatprep.subr.bf16.mxu0 %v2759_v22  ;;  %v2855_v26 = vunpack.c.l.s8.bf16 %v1903_v16  ;;  %v2790_v22 = vunpack.c.l.s8.bf16 %v1870_v31 }
 0x4c5   : > { %4428 = vmatprep.subr.bf16.mxu1 %v2823_v12  ;;  %v2854_v12 = vunpack.c.l.s8.bf16 %v1902_v18  ;;  %v1918_v18 = vld [vmem:[%s6641_s11 + $0xe50] sm:$0xff] }
 0x4c7   : > { %4388 = vmatpush1.bf16.msra.mxu0 %v2758_v46  ;;  %v1866_v46 = vld [vmem:[%s6641_s11 + $0xcb0] sm:$0xff] }
 0x4c8   : > { %4429 = vmatpush1.bf16.msra.mxu1 %v2822_v43  ;;  %4389 = vmatprep.subr.bf16.mxu0 %v2755_v58  ;;  %v1898_v43 = vld [vmem:[%s6641_s11 + $0xdb0] sm:$0xff]  ;;  %v2786_v58 = vunpack.c.h.s8.bf16 %v1866_v46 }
 0x4c9   : > { %4430 = vmatprep.subr.bf16.mxu1 %v2819_v62  ;;  %v2850_v62 = vunpack.c.h.s8.bf16 %v1898_v43 }
 0x4cb   : > { %4390 = vmatpush1.bf16.msra.mxu0 %v2754_v35  ;;  %v1863_v35 = vld [vmem:[%s6641_s11 + $0xc98] sm:$0xff] }
 0x4cc   : > { %4431 = vmatpush1.bf16.msra.mxu1 %v2818_v45  ;;  %4391 = vmatprep.subr.bf16.mxu0 %v2751_v36  ;;  %v1895_v45 = vld [vmem:[%s6641_s11 + $0xd98] sm:$0xff]  ;;  %v2782_v36 = vunpack.c.l.s8.bf16 %v1866_v46  ;;  %v2779_v41 = vunpack.c.h.s8.bf16 %v1863_v35  ;;  %v2775_v44 = vunpack.c.l.s8.bf16 %v1863_v35 }
 0x4cd   : > { %4432 = vmatprep.subr.bf16.mxu1 %v2815_v20  ;;  %v2846_v20 = vunpack.c.l.s8.bf16 %v1898_v43  ;;  %v2843_v51 = vunpack.c.h.s8.bf16 %v1895_v45  ;;  %v2839_v13 = vunpack.c.l.s8.bf16 %v1895_v45 }
 0x4cf   : > { %4392 = vmatpush1.bf16.msra.mxu0 %v2750_v52  ;;  %v1862_v52 = vld [vmem:[%s6641_s11 + $0xc90] sm:$0xff] }
 0x4d0   : > { %4433 = vmatpush1.bf16.msra.mxu1 %v2814_v49  ;;  %4393 = vmatprep.subr.bf16.mxu0 %v2747_v42  ;;  %v1894_v49 = vld [vmem:[%s6641_s11 + $0xd90] sm:$0xff]  ;;  %v2778_v42 = vunpack.c.h.s8.bf16 %v1862_v52 }
 0x4d1   : > { %4434 = vmatprep.subr.bf16.mxu1 %v2811_v50  ;;  %v2842_v50 = vunpack.c.h.s8.bf16 %v1894_v49 }
 0x4d3   : > { %4394 = vmatpush1.bf16.msra.mxu0 %v2746_v54  ;;  %v1923_v54 = vld [vmem:[%s6641_s11 + $0xe78] sm:$0xff] }
 0x4d4   : > { %4435 = vmatpush1.bf16.msra.mxu1 %v2810_v57  ;;  %4395 = vmatprep.subr.bf16.mxu0 %v2743_v53  ;;  %v1955_v57 = vld [vmem:[%s6641_s11 + $0xf78] sm:$0xff]  ;;  %v2774_v53 = vunpack.c.l.s8.bf16 %v1862_v52  ;;  %v2899_v25 = vunpack.c.h.s8.bf16 %v1923_v54  ;;  %v2895_v5 = vunpack.c.l.s8.bf16 %v1923_v54 }
 0x4d5   : > { %4436 = vmatprep.subr.bf16.mxu1 %v2807_v2  ;;  %v2838_v2 = vunpack.c.l.s8.bf16 %v1894_v49  ;;  %v2963_v60 = vunpack.c.h.s8.bf16 %v1955_v57  ;;  %v2959_v6 = vunpack.c.l.s8.bf16 %v1955_v57 }
 0x4d7   : > { %4396 = vmatpush1.bf16.msra.mxu0 %v2742_v56  ;;  %v1922_v56 = vld [vmem:[%s6641_s11 + $0xe70] sm:$0xff] }
 0x4d8   : > { %4437 = vmatpush1.bf16.msra.mxu1 %v2806_v3  ;;  %4397 = vmatprep.subr.bf16.mxu0 %v2803_v61  ;;  %v1954_v3 = vld [vmem:[%s6641_s11 + $0xf70] sm:$0xff]  ;;  %v2898_v61 = vunpack.c.h.s8.bf16 %v1922_v56  ;;  %v2894_v16 = vunpack.c.l.s8.bf16 %v1922_v56 }
 0x4d9   : > { %4438 = vmatprep.subr.bf16.mxu1 %v2867_v10  ;;  %v2962_v10 = vunpack.c.h.s8.bf16 %v1954_v3 }
 0x4db   : > { %4398 = vmatpush2.bf16.msra.mxu0 %v2802_v9  ;;  %v1919_v9 = vld [vmem:[%s6641_s11 + $0xe58] sm:$0xff] }
 0x4dc   : > { %4439 = vmatpush2.bf16.msra.mxu1 %v2866_v21  ;;  %4399 = vmatprep.subr.bf16.mxu0 %v2799_v32  ;;  %v1951_v21 = vld [vmem:[%s6641_s11 + $0xf58] sm:$0xff] }
 0x4dd   : > { %4440 = vmatprep.subr.bf16.mxu1 %v2863_v48  ;;  %v2955_v31 = vunpack.c.h.s8.bf16 %v1951_v21 }
 0x4df   : > { %4400 = vmatpush2.bf16.msra.mxu0 %v2798_v34  ;;  %v2958_v34 = vunpack.c.l.s8.bf16 %v1954_v3 }
 0x4e0   : > { %4441 = vmatpush2.bf16.msra.mxu1 %v2862_v8  ;;  %4401 = vmatprep.subr.bf16.mxu0 %v2795_v17 }
 0x4e1   : > { %4442 = vmatprep.subr.bf16.mxu1 %v2859_v33  ;;  %v2891_v33 = vunpack.c.h.s8.bf16 %v1919_v9 }
 0x4e3   : > { %4402 = vmatpush2.bf16.msra.mxu0 %v2794_v30  ;;  %v1950_v30 = vld [vmem:[%s6641_s11 + $0xf50] sm:$0xff] }
 0x4e4   : > { %4443 = vmatpush2.bf16.msra.mxu1 %v2858_v14  ;;  %4403 = vmatprep.subr.bf16.mxu0 %v2791_v59  ;;  %v2954_v28 = vunpack.c.h.s8.bf16 %v1950_v30 }
 0x4e5   : > { %4444 = vmatprep.subr.bf16.mxu1 %v2855_v26  ;;  %v2890_v26 = vunpack.c.h.s8.bf16 %v1918_v18 }
 0x4e7   : > { %4404 = vmatpush2.bf16.msra.mxu0 %v2790_v22 }
 0x4e8   : > { %4445 = vmatpush2.bf16.msra.mxu1 %v2854_v12  ;;  %4405 = vmatprep.subr.bf16.mxu0 %v2787_v29  ;;  %v2951_v12 = vunpack.c.l.s8.bf16 %v1951_v21  ;;  %v1947_v29 = vld [vmem:[%s6641_s11 + $0xf38] sm:$0xff] }
 0x4e9   : > { %4446 = vmatprep.subr.bf16.mxu1 %v2851_v11  ;;  %v2950_v11 = vunpack.c.l.s8.bf16 %v1950_v30  ;;  %v2947_v43 = vunpack.c.h.s8.bf16 %v1947_v29  ;;  %v2943_v45 = vunpack.c.l.s8.bf16 %v1947_v29 }
 0x4eb   : > { %4406 = vmatpush2.bf16.msra.mxu0 %v2786_v58  ;;  %v1914_v58 = vld [vmem:[%s6641_s11 + $0xe30] sm:$0xff] }
 0x4ec   : > { %4447 = vmatpush2.bf16.msra.mxu1 %v2850_v62  ;;  %4407 = vmatprep.subr.bf16.mxu0 %v2783_v1  ;;  %v1946_v62 = vld [vmem:[%s6641_s11 + $0xf30] sm:$0xff]  ;;  %v2882_v1 = vunpack.c.h.s8.bf16 %v1914_v58 }
 0x4ed   : > { %4448 = vmatprep.subr.bf16.mxu1 %v2847_v7  ;;  %v2946_v7 = vunpack.c.h.s8.bf16 %v1946_v62 }
 0x4ef   : > { %4408 = vmatpush2.bf16.msra.mxu0 %v2782_v36  ;;  %v1911_v36 = vld [vmem:[%s6641_s11 + $0xe18] sm:$0xff] }
 0x4f0   : > { %4449 = vmatpush2.bf16.msra.mxu1 %v2846_v20  ;;  %4409 = vmatprep.subr.bf16.mxu0 %v2779_v41  ;;  %v1943_v20 = vld [vmem:[%s6641_s11 + $0xf18] sm:$0xff]  ;;  %v2878_v41 = vunpack.c.l.s8.bf16 %v1914_v58  ;;  %v2875_v52 = vunpack.c.h.s8.bf16 %v1911_v36  ;;  %v2871_v54 = vunpack.c.l.s8.bf16 %v1911_v36 }
 0x4f1   : > { %4450 = vmatprep.subr.bf16.mxu1 %v2843_v51  ;;  %v2942_v51 = vunpack.c.l.s8.bf16 %v1946_v62  ;;  %v2939_v49 = vunpack.c.h.s8.bf16 %v1943_v20  ;;  %v2935_v57 = vunpack.c.l.s8.bf16 %v1943_v20 }
 0x4f3   : > { %4410 = vmatpush2.bf16.msra.mxu0 %v2778_v42  ;;  %v1910_v42 = vld [vmem:[%s6641_s11 + $0xe10] sm:$0xff] }
 0x4f4   : > { %4451 = vmatpush2.bf16.msra.mxu1 %v2842_v50  ;;  %4411 = vmatprep.subr.bf16.mxu0 %v2775_v44  ;;  %v1942_v50 = vld [vmem:[%s6641_s11 + $0xf10] sm:$0xff]  ;;  %v2874_v44 = vunpack.c.h.s8.bf16 %v1910_v42 }
 0x4f5   : > { %4452 = vmatprep.subr.bf16.mxu1 %v2839_v13  ;;  %v2938_v13 = vunpack.c.h.s8.bf16 %v1942_v50 }
 0x4f7   : > { %4412 = vmatpush2.bf16.msra.mxu0 %v2774_v53  ;;  %v1939_v53 = vld [vmem:[%s6641_s11 + $0xef8] sm:$0xff] }
 0x4f8   : > { %4453 = vmatpush2.bf16.msra.mxu1 %v2838_v2  ;;  %4463 = vmatprep.subr.bf16.mxu0 %v2899_v25  ;;  %v1971_v2 = vld [vmem:[%s6641_s11 + $0xff8] sm:$0xff]  ;;  %v2870_v25 = vunpack.c.l.s8.bf16 %v1910_v42  ;;  %v2931_v56 = vunpack.c.h.s8.bf16 %v1939_v53 }
 0x4f9   : > { %4504 = vmatprep.subr.bf16.mxu1 %v2963_v60  ;;  %v2934_v60 = vunpack.c.l.s8.bf16 %v1942_v50  ;;  %v2995_v3 = vunpack.c.h.s8.bf16 %v1971_v2  ;;  %v2991_v21 = vunpack.c.l.s8.bf16 %v1971_v2 }
 0x4fa   : > { %v4169_v32 = vpop.f32.mrf.mxu0  ;;  %4414 = vmatmul.mubr.bf16.vlgmr.msra.gmra.mxu0 %v7080_v47 }
 0x4fb   : > { %v4210_v48 = vpop.f32.mrf.mxu1  ;;  %4455 = vmatmul.mubr.bf16.vlgmr.msra.gmra.mxu1 %v7089_v0  ;;  %v4170_v4 = vadd.f32 %v4169_v32, %v7404_v40  ;;  %4464 = vmatpush1.bf16.msra.mxu0 %v2898_v61  ;;  %v1938_v61 = vld [vmem:[%s6641_s11 + $0xef0] sm:$0xff]  ;;  %v1935_v32 = vld [vmem:[%s6641_s11 + $0xed8] sm:$0xff] }
 0x4fc   : > { %4505 = vmatpush1.bf16.msra.mxu1 %v2962_v10  ;;  %v4171_v8 = vpop.f32.mrf.mxu0  ;;  %4465 = vmatprep.subr.bf16.mxu0 %v2895_v5  ;;  %v1970_v10 = vld [vmem:[%s6641_s11 + $0xff0] sm:$0xff]  ;;  %v2930_v5 = vunpack.c.h.s8.bf16 %v1938_v61  ;;  %v2919_v30 = vunpack.c.l.s8.bf16 %v1935_v32 }
 0x4fd   : > { %v4212_v17 = vpop.f32.mrf.mxu1  ;;  %4506 = vmatprep.subr.bf16.mxu1 %v2959_v6  ;;  %v7446_v14 = vadd.f32 %v4210_v48, %v4170_v4  ;;  %v4172_v47 = vadd.f32 %v4171_v8, %v7409_v27  ;;  %4495 = vmatprep.mubr.bf16.mxu0 %v7085_v63  ;;  %v2887_v27 = vunpack.c.l.s8.bf16 %v1919_v9  ;;  %v1915_v63 = vld [vmem:[%s6641_s11 + $0xe38] sm:$0xff]  ;;  %v2994_v6 = vunpack.c.h.s8.bf16 %v1970_v10 }
 0x4fe   : > { %4536 = vmatprep.mubr.bf16.mxu1 %v7095_v15  ;;  %v4173_v0 = vpop.f32.mrf.mxu0  ;;  %v2886_v15 = vunpack.c.l.s8.bf16 %v1918_v18  ;;  %v2883_v46 = vunpack.c.h.s8.bf16 %v1915_v63  ;;  %v2879_v35 = vunpack.c.l.s8.bf16 %v1915_v63  ;;  %v2927_v9 = vunpack.c.l.s8.bf16 %v1939_v53  ;;  %v1967_v48 = vld [vmem:[%s6641_s11 + $0xfd8] sm:$0xff] }
 0x4ff   : > { %v4214_v40 = vpop.f32.mrf.mxu1  ;;  %v7451_v59 = vadd.f32 %v4212_v17, %v4172_v47  ;;  %4466 = vmatpush1.bf16.msra.mxu0 %v2894_v16  ;;  %v2926_v4 = vunpack.c.l.s8.bf16 %v1938_v61  ;;  %v2990_v16 = vunpack.c.l.s8.bf16 %v1970_v10  ;;  %v2987_v8 = vunpack.c.h.s8.bf16 %v1967_v48  ;;  %v1934_v17 = vld [vmem:[%s6641_s11 + $0xed0] sm:$0xff]  ;;  %v1931_v0 = vld [vmem:[%s6641_s11 + $0xeb8] sm:$0xff] }
 0x500   : > { %4507 = vmatpush1.bf16.msra.mxu1 %v2958_v34  ;;  %v4174_v37 = vpop.f32.mrf.mxu0  ;;  %4467 = vmatprep.subr.bf16.mxu0 %v2891_v33  ;;  %v2923_v34 = vunpack.c.h.s8.bf16 %v1935_v32  ;;  %v1966_v33 = vld [vmem:[%s6641_s11 + $0xfd0] sm:$0xff]  ;;  %v2983_v47 = vunpack.c.l.s8.bf16 %v1967_v48  ;;  %v1963_v40 = vld [vmem:[%s6641_s11 + $0xfb8] sm:$0xff] }
 0x501   : > { %v4215_v22 = vpop.f32.mrf.mxu1  ;;  %4508 = vmatprep.subr.bf16.mxu1 %v2955_v31  ;;  %v2922_v31 = vunpack.c.h.s8.bf16 %v1934_v17  ;;  %v2986_v18 = vunpack.c.h.s8.bf16 %v1966_v33  ;;  %v2915_v37 = vunpack.c.h.s8.bf16 %v1931_v0 }
 0x502   : > { %v2979_v22 = vunpack.c.h.s8.bf16 %v1963_v40 }
 0x503   : > { %4468 = vmatpush1.bf16.msra.mxu0 %v2890_v26  ;;  %v2918_v26 = vunpack.c.l.s8.bf16 %v1934_v17 }
 0x504   : > { %4509 = vmatpush1.bf16.msra.mxu1 %v2954_v28  ;;  %4469 = vmatprep.subr.bf16.mxu0 %v2887_v27  ;;  %v2982_v28 = vunpack.c.l.s8.bf16 %v1966_v33  ;;  %v1930_v27 = vld [vmem:[%s6641_s11 + $0xeb0] sm:$0xff] }
 0x505   : > { %4510 = vmatprep.subr.bf16.mxu1 %v2951_v12  ;;  %v1962_v12 = vld [vmem:[%s6641_s11 + $0xfb0] sm:$0xff]  ;;  %v2914_v63 = vunpack.c.h.s8.bf16 %v1930_v27  ;;  %v2910_v58 = vunpack.c.l.s8.bf16 %v1930_v27 }
 0x506   : > { %v2978_v29 = vunpack.c.h.s8.bf16 %v1962_v12  ;;  %v2974_v62 = vunpack.c.l.s8.bf16 %v1962_v12 }
 0x507   : > { %4470 = vmatpush1.bf16.msra.mxu0 %v2886_v15  ;;  %v2911_v15 = vunpack.c.l.s8.bf16 %v1931_v0  ;;  %v5471_v0 = vmov 1983009808  }
 0x508   : > { %4511 = vmatpush1.bf16.msra.mxu1 %v2950_v11  ;;  %4471 = vmatprep.subr.bf16.mxu0 %v2883_v46  ;;  %v2975_v11 = vunpack.c.l.s8.bf16 %v1963_v40  ;;  %v1927_v46 = vld [vmem:[%s6641_s11 + $0xe98] sm:$0xff]  ;;  %v4552_v40 = vunpack.c.l.s4 %v5471_v0 }
 0x509   : > { %4512 = vmatprep.subr.bf16.mxu1 %v2947_v43  ;;  %v1959_v43 = vld [vmem:[%s6641_s11 + $0xf98] sm:$0xff] }
 0x50b   : > { %4472 = vmatpush1.bf16.msra.mxu0 %v2882_v1  ;;  %v2907_v1 = vunpack.c.h.s8.bf16 %v1927_v46 }
 0x50c   : > { %4513 = vmatpush1.bf16.msra.mxu1 %v2946_v7  ;;  %4473 = vmatprep.subr.bf16.mxu0 %v2879_v35  ;;  %v2971_v7 = vunpack.c.h.s8.bf16 %v1959_v43  ;;  %v1926_v35 = vld [vmem:[%s6641_s11 + $0xe90] sm:$0xff] }
 0x50d   : > { %4514 = vmatprep.subr.bf16.mxu1 %v2943_v45  ;;  %v1958_v45 = vld [vmem:[%s6641_s11 + $0xf90] sm:$0xff]  ;;  %v2906_v36 = vunpack.c.h.s8.bf16 %v1926_v35 }
 0x50e   : > { %v2970_v20 = vunpack.c.h.s8.bf16 %v1958_v45 }
 0x50f   : > { %4474 = vmatpush1.bf16.msra.mxu0 %v2878_v41  ;;  %v2903_v41 = vunpack.c.l.s8.bf16 %v1927_v46 }
 0x510   : > { %4515 = vmatpush1.bf16.msra.mxu1 %v2942_v51  ;;  %4475 = vmatprep.subr.bf16.mxu0 %v2875_v52  ;;  %v2967_v51 = vunpack.c.l.s8.bf16 %v1959_v43  ;;  %v2902_v52 = vunpack.c.l.s8.bf16 %v1926_v35 }
 0x511   : > { %4516 = vmatprep.subr.bf16.mxu1 %v2939_v49  ;;  %v2966_v49 = vunpack.c.l.s8.bf16 %v1958_v45 }
 0x513   : > { %4476 = vmatpush1.bf16.msra.mxu0 %v2874_v44 }
 0x514   : > { %4517 = vmatpush1.bf16.msra.mxu1 %v2938_v13  ;;  %4477 = vmatprep.subr.bf16.mxu0 %v2871_v54 }
 0x515   : > { %4518 = vmatprep.subr.bf16.mxu1 %v2935_v57 }
 0x517   : > { %4478 = vmatpush1.bf16.msra.mxu0 %v2870_v25 }
 0x518   : > { %4519 = vmatpush1.bf16.msra.mxu1 %v2934_v60  ;;  %4479 = vmatprep.subr.bf16.mxu0 %v2931_v56 }
 0x519   : > { %4520 = vmatprep.subr.bf16.mxu1 %v2995_v3 }
 0x51b   : > { %4480 = vmatpush2.bf16.msra.mxu0 %v2930_v5 }
 0x51c   : > { %4521 = vmatpush2.bf16.msra.mxu1 %v2994_v6  ;;  %4481 = vmatprep.subr.bf16.mxu0 %v2927_v9 }
 0x51d   : > { %4522 = vmatprep.subr.bf16.mxu1 %v2991_v21 }
 0x51f   : > { %4482 = vmatpush2.bf16.msra.mxu0 %v2926_v4 }
 0x520   : > { %4523 = vmatpush2.bf16.msra.mxu1 %v2990_v16  ;;  %4483 = vmatprep.subr.bf16.mxu0 %v2923_v34 }
 0x521   : > { %4524 = vmatprep.subr.bf16.mxu1 %v2987_v8 }
 0x523   : > { %4484 = vmatpush2.bf16.msra.mxu0 %v2922_v31 }
 0x524   : > { %4525 = vmatpush2.bf16.msra.mxu1 %v2986_v18  ;;  %4485 = vmatprep.subr.bf16.mxu0 %v2919_v30 }
 0x525   : > { %4526 = vmatprep.subr.bf16.mxu1 %v2983_v47 }
 0x527   : > { %4486 = vmatpush2.bf16.msra.mxu0 %v2918_v26 }
 0x528   : > { %4527 = vmatpush2.bf16.msra.mxu1 %v2982_v28  ;;  %4487 = vmatprep.subr.bf16.mxu0 %v2915_v37 }
 0x529   : > { %4528 = vmatprep.subr.bf16.mxu1 %v2979_v22  ;;  %v4553_v22 = vunpack.c.0.s8 %v4552_v40 }
 0x52b   : > { %4488 = vmatpush2.bf16.msra.mxu0 %v2914_v63  ;;  %v7482_v43 = vsub.s32 %v4553_v22, %v6656_v38 }
 0x52c   : > { %4529 = vmatpush2.bf16.msra.mxu1 %v2978_v29  ;;  %4489 = vmatprep.subr.bf16.mxu0 %v2911_v15 }
 0x52d   : > { %4530 = vmatprep.subr.bf16.mxu1 %v2975_v11  ;;  %v4557_v45 = vrot.slane %v4549_v55, %v7482_v43 }
 0x52f   : > { %4490 = vmatpush2.bf16.msra.mxu0 %v2910_v58 }
 0x530   : > { %4531 = vmatpush2.bf16.msra.mxu1 %v2974_v62  ;;  %4491 = vmatprep.subr.bf16.mxu0 %v2907_v1 }
 0x531   : > { %4532 = vmatprep.subr.bf16.mxu1 %v2971_v7 }
 0x533   : > { %4492 = vmatpush2.bf16.msra.mxu0 %v2906_v36 }
 0x534   : > { %4533 = vmatpush2.bf16.msra.mxu1 %v2970_v20  ;;  %4493 = vmatprep.subr.bf16.mxu0 %v2903_v41  ;;  %v2996_v20 = vld [vmem:[#allocation2] sm:$0xff] }
 0x535   : > { %4534 = vmatprep.subr.bf16.mxu1 %v2967_v51 }
 0x537   : > { %4494 = vmatpush2.bf16.msra.mxu0 %v2902_v52 }
 0x538   : > { %4535 = vmatpush2.bf16.msra.mxu1 %v2966_v49 }
 0x53a   : > { %v4251_v42 = vpop.f32.mrf.mxu0  ;;  %4496 = vmatmul.mubr.bf16.vlgmr.msra.gmra.mxu0 %v7137_v24 }
 0x53b   : > { %v4292_v50 = vpop.f32.mrf.mxu1  ;;  %4537 = vmatmul.mubr.bf16.vlgmr.msra.gmra.mxu1 %v7143_v39  ;;  %v4252_v44 = vadd.f32 %v4251_v42, %v7446_v14 }
 0x53c   : > { %v4253_v13 = vpop.f32.mrf.mxu0 }
 0x53d   : > { %v4294_v54 = vpop.f32.mrf.mxu1  ;;  %v4293_v57 = vadd.f32 %v4292_v50, %v4252_v44  ;;  %v4254_v53 = vadd.f32 %v4253_v13, %v7451_v59 }
 0x53e   : > { %v4255_v2 = vpop.f32.mrf.mxu0 }
 0x53f   : > { %v4296_v25 = vpop.f32.mrf.mxu1  ;;  %v4295_v60 = vadd.f32 %v4294_v54, %v4254_v53 }
 0x540   : > { %v4256_v56 = vpop.f32.mrf.mxu0 }
 0x541   : > { %v4297_v3 = vpop.f32.mrf.mxu1 }
 0x57a   : > { %v4333_v61 = vpop.f32.mrf.mxu0 }
 0x57b   : > { %v4374_v10 = vpop.f32.mrf.mxu1  ;;  %v4334_v5 = vadd.f32 %v4333_v61, %v4293_v57 }
 0x57c   : > { %v4335_v6 = vpop.f32.mrf.mxu0 }
 0x57d   : > { %v4376_v9 = vpop.f32.mrf.mxu1  ;;  %v4375_v24 = vadd.f32 %v4374_v10, %v4334_v5  ;;  %v4336_v21 = vadd.f32 %v4335_v6, %v4295_v60 }
 0x57e   : > { %v4337_v39 = vpop.f32.mrf.mxu0 }
 0x57f   : > { %v4378_v32 = vpop.f32.mrf.mxu1  ;;  %v4377_v14 = vadd.f32 %v4376_v9, %v4336_v21 }
 0x580   : > { %v4338_v48 = vpop.f32.mrf.mxu0 }
 0x581   : > { %v4379_v4 = vpop.f32.mrf.mxu1 }
 0x5ba   : > { %v4415_v16 = vpop.f32.mrf.mxu0 }
 0x5bb   : > { %v4456_v34 = vpop.f32.mrf.mxu1  ;;  %v4416_v59 = vadd.f32 %v4415_v16, %v4375_v24 }
 0x5bc   : > { %v4417_v8 = vpop.f32.mrf.mxu0 }
 0x5bd   : > { %v4458_v17 = vpop.f32.mrf.mxu1  ;;  %v4457_v33 = vadd.f32 %v4456_v34, %v4416_v59  ;;  %v4418_v26 = vadd.f32 %v4417_v8, %v4377_v14 }
 0x5be   : > { %v4419_v31 = vpop.f32.mrf.mxu0 }
 0x5bf   : > { %v4460_v18 = vpop.f32.mrf.mxu1  ;;  %v4459_v27 = vadd.f32 %v4458_v17, %v4418_v26 }
 0x5c0   : > { %v4420_v30 = vpop.f32.mrf.mxu0 }
 0x5c1   : > { %v4461_v47 = vpop.f32.mrf.mxu1 }
 0x5fa   : > { %v4497_v28 = vpop.f32.mrf.mxu0 }
 0x5fb   : > { %v4538_v37 = vpop.f32.mrf.mxu1  ;;  %v4498_v12 = vadd.f32 %v4497_v28, %v4457_v33 }
 0x5fc   : > { %v4499_v63 = vpop.f32.mrf.mxu0 }
 0x5fd   : > { %v4540_v29 = vpop.f32.mrf.mxu1  ;;  %v4500_v15 = vadd.f32 %v4499_v63, %v4459_v27  ;;  %v4539_v58 = vadd.f32 %v4538_v37, %v4498_v12 }
 0x5fe   : > { %v4501_v11 = vpop.f32.mrf.mxu0 }
 0x5ff   : > { %v4542_v46 = vpop.f32.mrf.mxu1  ;;  %v4541_v62 = vadd.f32 %v4540_v29, %v4500_v15 }
 0x600   : > { %v4502_v1 = vpop.f32.mrf.mxu0 }
 0x601   : > { %v4543_v7 = vpop.f32.mrf.mxu1  ;;  %v4550_v35 = vcombine.low %v4539_v58, %v4541_v62 }
 0x603   : > { %v4564_v36 = vrot.slane %v4550_v35, %v7482_v43 }
 0x605   : > { %v4565_v41 = vcombine.low %v4557_v45, %v4564_v36  ;;  %4572 = sbr.rel (%p5268_p1) target bundleno = 1865 (0x749), region = 79 }
 0x607   : > { %v4567_v51 = vadd.f32 %v4565_v41, %v2996_v20 }
 0x609   : > { %4568 = vst [vmem:[#allocation2] sm:$0xff] %v4567_v51 }
 0x60a   : > { %v4921_v19 = vld [vmem:[%s6633_s28 + $0xf8] sm:$0xff]  ;;  %v4920_v55 = vld [vmem:[%s6633_s28 + $0xf0] sm:$0xff]  ;;  %v4919_v50 = vld [vmem:[%s6633_s28 + $0xe8] sm:$0xff]  ;;  %v7530_v0 = vsub.s32 0, %v6656_v38  ;;  %v7533_v40 = vsub.s32 1, %v6656_v38  ;;  %v7536_v26 = vsub.s32 2, %v6656_v38 }
 0x60b   : > { %v4905_v23 = vld [vmem:[%s6633_s28 + $0x78] sm:$0xff]  ;;  %5272 = vmatprep.subr.mxu0 %v4921_v19  ;;  %v4904_v49 = vld [vmem:[%s6633_s28 + $0x70] sm:$0xff]  ;;  %v4903_v13 = vld [vmem:[%s6633_s28 + $0x68] sm:$0xff]  ;;  %v7541_v22 = vsub.s32 3, %v6656_v38  ;;  %vm4670_vm0 = vcmask 1041408   ;;  %vm5116_vm2 = vcmask 1024  }
 0x60c   : > { %v4953_v52 = vld [vmem:[%s6633_s28 + $0x1f8] sm:$0xff]  ;;  %5273 = vmatpush3.msra.mxu0 %v4905_v23  ;;  %v4952_v44 = vld [vmem:[%s6633_s28 + $0x1f0] sm:$0xff]  ;;  %v4951_v57 = vld [vmem:[%s6633_s28 + $0x1e8] sm:$0xff] }
 0x60d   : > { %v4937_v42 = vld [vmem:[%s6633_s28 + $0x178] sm:$0xff]  ;;  %5307 = vmatprep.subr.mxu1 %v4953_v52  ;;  %5274 = vmatprep.subr.mxu0 %v4920_v55  ;;  %v4936_v54 = vld [vmem:[%s6633_s28 + $0x170] sm:$0xff]  ;;  %v4918_v53 = vld [vmem:[%s6633_s28 + $0xe0] sm:$0xff] }
 0x60e   : > { %5308 = vmatpush3.msra.mxu1 %v4937_v42  ;;  %5275 = vmatpush3.msra.mxu0 %v4904_v49  ;;  %v4935_v2 = vld [vmem:[%s6633_s28 + $0x168] sm:$0xff]  ;;  %v4902_v25 = vld [vmem:[%s6633_s28 + $0x60] sm:$0xff]  ;;  %v4917_v56 = vld [vmem:[%s6633_s28 + $0xd8] sm:$0xff] }
 0x60f   : > { %5309 = vmatprep.subr.mxu1 %v4952_v44  ;;  %5276 = vmatprep.subr.mxu0 %v4919_v50  ;;  %v4950_v60 = vld [vmem:[%s6633_s28 + $0x1e0] sm:$0xff]  ;;  %v4901_v61 = vld [vmem:[%s6633_s28 + $0x58] sm:$0xff]  ;;  %v4916_v5 = vld [vmem:[%s6633_s28 + $0xd0] sm:$0xff] }
 0x610   : > { %5310 = vmatpush3.msra.mxu1 %v4936_v54  ;;  %5277 = vmatpush3.msra.mxu0 %v4903_v13  ;;  %v4934_v3 = vld [vmem:[%s6633_s28 + $0x160] sm:$0xff]  ;;  %v4949_v10 = vld [vmem:[%s6633_s28 + $0x1d8] sm:$0xff]  ;;  %v4900_v9 = vld [vmem:[%s6633_s28 + $0x50] sm:$0xff] }
 0x611   : > { %5311 = vmatprep.subr.mxu1 %v4951_v57  ;;  %5278 = vmatprep.subr.mxu0 %v4918_v53  ;;  %v4933_v6 = vld [vmem:[%s6633_s28 + $0x158] sm:$0xff]  ;;  %v4948_v24 = vld [vmem:[%s6633_s28 + $0x1d0] sm:$0xff]  ;;  %v4915_v21 = vld [vmem:[%s6633_s28 + $0xc8] sm:$0xff] }
 0x612   : > { %5312 = vmatpush3.msra.mxu1 %v4935_v2  ;;  %5279 = vmatpush3.msra.mxu0 %v4902_v25  ;;  %v4932_v39 = vld [vmem:[%s6633_s28 + $0x150] sm:$0xff]  ;;  %v4899_v32 = vld [vmem:[%s6633_s28 + $0x48] sm:$0xff]  ;;  %v4914_v48 = vld [vmem:[%s6633_s28 + $0xc0] sm:$0xff] }
 0x613   : > { %5313 = vmatprep.subr.mxu1 %v4950_v60  ;;  %5280 = vmatprep.subr.mxu0 %v4917_v56  ;;  %v4947_v14 = vld [vmem:[%s6633_s28 + $0x1c8] sm:$0xff]  ;;  %v4898_v16 = vld [vmem:[%s6633_s28 + $0x40] sm:$0xff]  ;;  %v4913_v59 = vld [vmem:[%s6633_s28 + $0xb8] sm:$0xff] }
 0x614   : > { %5314 = vmatpush3.msra.mxu1 %v4934_v3  ;;  %5281 = vmatpush3.msra.mxu0 %v4901_v61  ;;  %v4931_v4 = vld [vmem:[%s6633_s28 + $0x148] sm:$0xff]  ;;  %v4946_v34 = vld [vmem:[%s6633_s28 + $0x1c0] sm:$0xff]  ;;  %v4897_v17 = vld [vmem:[%s6633_s28 + $0x38] sm:$0xff] }
 0x615   : > { %5315 = vmatprep.subr.mxu1 %v4949_v10  ;;  %5282 = vmatprep.subr.mxu0 %v4916_v5  ;;  %v4930_v8 = vld [vmem:[%s6633_s28 + $0x140] sm:$0xff]  ;;  %v4945_v33 = vld [vmem:[%s6633_s28 + $0x1b8] sm:$0xff]  ;;  %v4912_v31 = vld [vmem:[%s6633_s28 + $0xb0] sm:$0xff] }
 0x616   : > { %5316 = vmatpush3.msra.mxu1 %v4933_v6  ;;  %5283 = vmatpush3.msra.mxu0 %v4900_v9  ;;  %v4929_v18 = vld [vmem:[%s6633_s28 + $0x138] sm:$0xff]  ;;  %v4896_v30 = vld [vmem:[%s6633_s28 + $0x30] sm:$0xff]  ;;  %v4911_v28 = vld [vmem:[%s6633_s28 + $0xa8] sm:$0xff] }
 0x617   : > { %5317 = vmatprep.subr.mxu1 %v4948_v24  ;;  %5284 = vmatprep.subr.mxu0 %v4915_v21  ;;  %v4944_v47 = vld [vmem:[%s6633_s28 + $0x1b0] sm:$0xff]  ;;  %v4895_v27 = vld [vmem:[%s6633_s28 + $0x28] sm:$0xff]  ;;  %v4910_v12 = vld [vmem:[%s6633_s28 + $0xa0] sm:$0xff] }
 0x618   : > { %5318 = vmatpush3.msra.mxu1 %v4932_v39  ;;  %5285 = vmatpush3.msra.mxu0 %v4899_v32  ;;  %v4928_v37 = vld [vmem:[%s6633_s28 + $0x130] sm:$0xff]  ;;  %v4943_v63 = vld [vmem:[%s6633_s28 + $0x1a8] sm:$0xff]  ;;  %v4894_v29 = vld [vmem:[%s6633_s28 + $0x20] sm:$0xff] }
 0x619   : > { %5319 = vmatprep.subr.mxu1 %v4947_v14  ;;  %5286 = vmatprep.subr.mxu0 %v4914_v48  ;;  %v4927_v15 = vld [vmem:[%s6633_s28 + $0x128] sm:$0xff]  ;;  %v4574_v11 = vld [vmem:[%s1428_s21] sm:$0xf]  ;;  %v4909_v35 = vld [vmem:[%s6633_s28 + $0x98] sm:$0xff] }
 0x61a   : > { %5320 = vmatpush3.msra.mxu1 %v4931_v4  ;;  %5287 = vmatpush3.msra.mxu0 %v4898_v16  ;;  %v4942_v38 = vld [vmem:[%s6633_s28 + $0x1a0] sm:$0xff]  ;;  %v4579_v46 = vrot.slane %v4574_v11, %v7530_v0  ;;  %v4583_v58 = vrot.slane %v4574_v11, %v7533_v40  ;;  %v4587_v62 = vrot.slane %v4574_v11, %v7536_v26  ;;  %v4893_v51 = vld [vmem:[%s6633_s28 + $0x18] sm:$0xff]  ;;  %v4908_v49 = vld [vmem:[%s6633_s28 + $0x90] sm:$0xff] }
 0x61b   : > { %5321 = vmatprep.subr.mxu1 %v4946_v34  ;;  %5288 = vmatprep.subr.mxu0 %v4913_v59  ;;  %v4611_v1 = vld [vmem:[%s1433_s10] sm:$0xf]  ;;  %v4591_v36 = vrot.slane %v4574_v11, %v7541_v22  ;;  %v4941_v19 = vld [vmem:[%s6633_s28 + $0x198] sm:$0xff]  ;;  %v4892_v54 = vld [vmem:[%s6633_s28 + $0x10] sm:$0xff] }
 0x61c   : > { %5322 = vmatpush3.msra.mxu1 %v4930_v8  ;;  %5289 = vmatpush3.msra.mxu0 %v4897_v17  ;;  %v4813_v7 = vld [vmem:[%s1438_s12] sm:$0xf]  ;;  %v4616_v20 = vrot.slane %v4611_v1, %v7530_v0  ;;  %v4620_v41 = vrot.slane %v4611_v1, %v7533_v40  ;;  %v4592_v23 = vcombine.low %v4579_v46, %v4583_v58  ;;  %v4925_v42 = vld [vmem:[%s6633_s28 + $0x118] sm:$0xff]  ;;  %v4940_v57 = vld [vmem:[%s6633_s28 + $0x190] sm:$0xff] }
 0x61d   : > { %5323 = vmatprep.subr.mxu1 %v4945_v33  ;;  %5290 = vmatprep.subr.mxu0 %v4912_v31  ;;  %v4926_v45 = vld [vmem:[%s6633_s28 + $0x120] sm:$0xff]  ;;  %v4624_v55 = vrot.slane %v4611_v1, %v7536_v26  ;;  %v4628_v52 = vrot.slane %v4611_v1, %v7541_v22  ;;  %v4593_v50 = vcombine.low %v4587_v62, %v4591_v36  ;;  %v4907_v56 = vld [vmem:[%s6633_s28 + $0x88] sm:$0xff]  ;;  %v4924_v3 = vld [vmem:[%s6633_s28 + $0x110] sm:$0xff] }
 0x61e   : > { %5324 = vmatpush3.msra.mxu1 %v4929_v18  ;;  %5291 = vmatpush3.msra.mxu0 %v4896_v30  ;;  %v4629_v44 = vcombine.low %v4616_v20, %v4620_v41  ;;  %v4818_v13 = vrot.slane %v4813_v7, %v7530_v0  ;;  %v4600_v53 = vrot.slane %v4592_v23, %v7482_v43  ;;  %v4850_v60 = vld [vmem:[%s1443_s1] sm:$0xf]  ;;  %v4891_v6 = vld [vmem:[%s6633_s28 + $0x8] sm:$0xff] }
 0x61f   : > { %5325 = vmatprep.subr.mxu1 %v4944_v47  ;;  %5292 = vmatprep.subr.mxu0 %v4911_v28  ;;  %v4630_v2 = vcombine.low %v4624_v55, %v4628_v52  ;;  %v4822_v25 = vrot.slane %v4813_v7, %v7533_v40  ;;  %v4607_v61 = vrot.slane %v4593_v50, %v7482_v43  ;;  %v4939_v9 = vld [vmem:[%s6633_s28 + $0x188] sm:$0xff]  ;;  %v4573_v24 = vld [vmem:[#allocation2] sm:$0xff] }
 0x620   : > { %5326 = vmatpush3.msra.mxu1 %v4928_v37  ;;  %5293 = vmatpush3.msra.mxu0 %v4895_v27  ;;  %v4637_v10 = vrot.slane %v4629_v44, %v7482_v43  ;;  %v4826_v5 = vrot.slane %v4813_v7, %v7536_v26  ;;  %v4830_v39 = vrot.slane %v4813_v7, %v7541_v22  ;;  %v4906_v14 = vld [vmem:[%s6633_s28 + $0x80] sm:$0xff]  ;;  %v4923_v34 = vld [vmem:[%s6633_s28 + $0x108] sm:$0xff] }
 0x621   : > { %5327 = vmatprep.subr.mxu1 %v4943_v63  ;;  %5294 = vmatprep.subr.mxu0 %v4910_v12  ;;  %v4644_v21 = vrot.slane %v4630_v2, %v7482_v43  ;;  %v4831_v32 = vcombine.low %v4818_v13, %v4822_v25  ;;  %v4608_v48 = vcombine.low %v4600_v53, %v4607_v61  ;;  %v4890_v59 = vld [vmem:[%s6633_s28] sm:$0xff] }
 0x622   : > { %5328 = vmatpush3.msra.mxu1 %v4927_v15  ;;  %5295 = vmatpush3.msra.mxu0 %v4894_v29  ;;  %v4855_v4 = vrot.slane %v4850_v60, %v7530_v0  ;;  %v4859_v16 = vrot.slane %v4850_v60, %v7533_v40  ;;  %v4832_v17 = vcombine.low %v4826_v5, %v4830_v39  ;;  %v4938_v31 = vld [vmem:[%s6633_s28 + $0x180] sm:$0xff] }
 0x623   : > { %5329 = vmatprep.subr.mxu1 %v4942_v38  ;;  %5296 = vmatprep.subr.mxu0 %v4909_v35  ;;  %v4645_v8 = vcombine.low %v4637_v10, %v4644_v21  ;;  %v4839_v33 = vrot.slane %v4831_v32, %v7482_v43  ;;  %v4610_v18 = vmul.f32 %v4608_v48, %v4573_v24  ;;  %v4922_v28 = vld [vmem:[%s6633_s28 + $0x100] sm:$0xff] }
 0x624   : > { %5330 = vmatpush3.msra.mxu1 %v4926_v45  ;;  %5297 = vmatpush3.msra.mxu0 %v4893_v51  ;;  %v4863_v30 = vrot.slane %v4850_v60, %v7536_v26  ;;  %v4867_v47 = vrot.slane %v4850_v60, %v7541_v22  ;;  %v4846_v0 = vrot.slane %v4832_v17, %v7482_v43 }
 0x625   : > { %5331 = vmatprep.subr.mxu1 %v4941_v19  ;;  %5298 = vmatprep.subr.mxu0 %v4908_v49  ;;  %v4868_v40 = vcombine.low %v4855_v4, %v4859_v16  ;;  %v4647_v37 = vadd.f32 %v4645_v8, %v4610_v18 }
 0x626   : > { %5332 = vmatpush3.msra.mxu1 %v4925_v42  ;;  %5299 = vmatpush3.msra.mxu0 %v4892_v54  ;;  %v4869_v27 = vcombine.low %v4863_v30, %v4867_v47  ;;  %v7608_v12 = vcombine.low %v4839_v33, %v4846_v0 }
 0x627   : > { %5333 = vmatprep.subr.mxu1 %v4940_v57  ;;  %5300 = vmatprep.subr.mxu0 %v4907_v56  ;;  %v4876_v63 = vrot.slane %v4868_v40, %v7482_v43  ;;  %v4649_v29 = vcombine.high %v4647_v37, %v4647_v37  ;;  %v4656_v26 = vrot.slane %v4647_v37, %v7482_v43 }
 0x628   : > { %5334 = vmatpush3.msra.mxu1 %v4924_v3  ;;  %5301 = vmatpush3.msra.mxu0 %v4891_v6  ;;  %v4883_v22 = vrot.slane %v4869_v27, %v7482_v43 }
 0x629   : > { %5335 = vmatprep.subr.mxu1 %v4939_v9  ;;  %5302 = vmatprep.subr.mxu0 %v4906_v14  ;;  %v4663_v15 = vrot.slane %v4649_v29, %v7482_v43  ;;  %v4664_v11 = vcombine.high %v4656_v26, %v4656_v26  ;;  %v4671_v38 = vsel %vm4670_vm0, %v4656_v26, 0.0 }
 0x62a   : > { %5336 = vmatpush3.msra.mxu1 %v4923_v34  ;;  %5303 = vmatpush3.msra.mxu0 %v4890_v59  ;;  %v7615_v46 = vcombine.low %v4876_v63, %v4883_v22  ;;  %v4672_v58 = vrot.slane %v4671_v38, 4 }
 0x62b   : > { %5337 = vmatprep.subr.mxu1 %v4938_v31  ;;  %v4665_v62 = vcombine.high %v4663_v15, %v4663_v15  ;;  %v4678_v1 = vsel %vm4670_vm0, %v4664_v11, 0.0  ;;  %v4685_v7 = vsel %vm4670_vm0, %v4663_v15, 0.0 }
 0x62c   : > { %5338 = vmatpush3.msra.mxu1 %v4922_v28  ;;  %v4673_v35 = vadd.f32 %v4672_v58, %v4671_v38  ;;  %v4679_v45 = vrot.slane %v4678_v1, 4  ;;  %v4686_v36 = vrot.slane %v4685_v7, 4 }
 0x62d   : > { %v4692_v20 = vsel %vm4670_vm0, %v4665_v62, 0.0 }
 0x62e   : > { %v4674_v41 = vrot.slane %v4673_v35, 2  ;;  %v4680_v51 = vadd.f32 %v4679_v45, %v4678_v1  ;;  %v4687_v19 = vadd.f32 %v4686_v36, %v4685_v7  ;;  %v4693_v23 = vrot.slane %v4692_v20, 4 }
 0x630   : > { %v4675_v55 = vadd.f32 %v4674_v41, %v4673_v35  ;;  %v4681_v52 = vrot.slane %v4680_v51, 2  ;;  %v4688_v49 = vrot.slane %v4687_v19, 2  ;;  %v4694_v42 = vadd.f32 %v4693_v23, %v4692_v20 }
 0x632   : > { %v4676_v50 = vrot.slane %v4675_v55, 1  ;;  %v4682_v44 = vadd.f32 %v4681_v52, %v4680_v51  ;;  %v4689_v13 = vadd.f32 %v4688_v49, %v4687_v19  ;;  %v4695_v54 = vrot.slane %v4694_v42, 2 }
 0x634   : > { %v4677_v57 = vadd.f32 %v4676_v50, %v4675_v55  ;;  %v4683_v53 = vrot.slane %v4682_v44, 1  ;;  %v4690_v2 = vrot.slane %v4689_v13, 1  ;;  %v4696_v25 = vadd.f32 %v4695_v54, %v4694_v42 }
 0x636   : > { %v4684_v60 = vadd.f32 %v4683_v53, %v4682_v44  ;;  %v4691_v56 = vadd.f32 %v4690_v2, %v4689_v13  ;;  %v4697_v3 = vrot.slane %v4696_v25, 1  ;;  %v4700_v61 = vmul.f32 0.5, %v4677_v57 }
 0x638   : > { %v4698_v10 = vadd.f32 %v4697_v3, %v4696_v25  ;;  %v4701_v5 = vmul.f32 0.5, %v4684_v60  ;;  %v4702_v6 = vmul.f32 0.5, %v4691_v56 }
 0x63a   : > { %v4703_v9 = vmul.f32 0.5, %v4698_v10  ;;  %v4708_v24 = vcombine.low %v4700_v61, %v4701_v5 }
 0x63c   : > { %v4709_v21 = vcombine.low %v4702_v6, %v4703_v9  ;;  %v4716_v39 = vrot.slane %v4708_v24, %v7482_v43 }
 0x63e   : > { %v4723_v32 = vrot.slane %v4709_v21, %v7482_v43 }
 0x640   : > { %v4724_v14 = vcombine.low %v4716_v39, %v4723_v32 }
 0x642   : > { %v4726_v48 = vsub.f32 %v4647_v37, %v4724_v14 }
 0x644   : > { %v4727_v4 = vmul.f32 %v4726_v48, %v4726_v48 }
 0x646   : > { %v4729_v16 = vcombine.high %v4727_v4, %v4727_v4  ;;  %v4736_v34 = vrot.slane %v4727_v4, %v7482_v43 }
 0x648   : > { %v4743_v59 = vrot.slane %v4729_v16, %v7482_v43  ;;  %v4744_v8 = vcombine.high %v4736_v34, %v4736_v34  ;;  %v4750_v17 = vsel %vm4670_vm0, %v4736_v34, 0.0 }
 0x649   : > { %v4751_v33 = vrot.slane %v4750_v17, 4 }
 0x64a   : > { %v4745_v31 = vcombine.high %v4743_v59, %v4743_v59  ;;  %v4757_v18 = vsel %vm4670_vm0, %v4744_v8, 0.0  ;;  %v4764_v30 = vsel %vm4670_vm0, %v4743_v59, 0.0 }
 0x64b   : > { %v4752_v47 = vadd.f32 %v4751_v33, %v4750_v17  ;;  %v4758_v28 = vrot.slane %v4757_v18, 4  ;;  %v4765_v0 = vrot.slane %v4764_v30, 4 }
 0x64c   : > { %v4771_v40 = vsel %vm4670_vm0, %v4745_v31, 0.0 }
 0x64d   : > { %v4753_v37 = vrot.slane %v4752_v47, 2  ;;  %v4759_v27 = vadd.f32 %v4758_v28, %v4757_v18  ;;  %v4766_v63 = vadd.f32 %v4765_v0, %v4764_v30  ;;  %v4772_v29 = vrot.slane %v4771_v40, 4 }
 0x64f   : > { %v4754_v26 = vadd.f32 %v4753_v37, %v4752_v47  ;;  %v4760_v22 = vrot.slane %v4759_v27, 2  ;;  %v4767_v15 = vrot.slane %v4766_v63, 2  ;;  %v4773_v11 = vadd.f32 %v4772_v29, %v4771_v40 }
 0x651   : > { %v4755_v38 = vrot.slane %v4754_v26, 1  ;;  %v4761_v58 = vadd.f32 %v4760_v22, %v4759_v27  ;;  %v4768_v62 = vadd.f32 %v4767_v15, %v4766_v63  ;;  %v4774_v1 = vrot.slane %v4773_v11, 2 }
 0x653   : > { %v4756_v7 = vadd.f32 %v4755_v38, %v4754_v26  ;;  %v4762_v35 = vrot.slane %v4761_v58, 1  ;;  %v4769_v45 = vrot.slane %v4768_v62, 1  ;;  %v4775_v36 = vadd.f32 %v4774_v1, %v4773_v11 }
 0x655   : > { %v4763_v20 = vadd.f32 %v4762_v35, %v4761_v58  ;;  %v4770_v41 = vadd.f32 %v4769_v45, %v4768_v62  ;;  %v4776_v51 = vrot.slane %v4775_v36, 1  ;;  %v4778_v19 = vmul.f32 0.5, %v4756_v7 }
 0x657   : > { %v4777_v23 = vadd.f32 %v4776_v51, %v4775_v36  ;;  %v4779_v55 = vmul.f32 0.5, %v4763_v20  ;;  %v4780_v52 = vmul.f32 0.5, %v4770_v41  ;;  %v4782_v49 = vadd.f32 1e-05, %v4778_v19 }
 0x659   : > { %v4781_v42 = vmul.f32 0.5, %v4777_v23  ;;  %v4783_v50 = vadd.f32 1e-05, %v4779_v55  ;;  %v4784_v44 = vadd.f32 1e-05, %v4780_v52  ;;  %5405 = vrsqrt.f32 %v4782_v49 }
 0x65b   : > { %v4785_v13 = vadd.f32 1e-05, %v4781_v42  ;;  %5407 = vrsqrt.f32 %v4783_v50 }
 0x65c   : > { %5409 = vrsqrt.f32 %v4784_v44 }
 0x65d   : > { %5411 = vrsqrt.f32 %v4785_v13 }
 0x666   : > { %v5406_v54 = vpop.eup %5405 }
 0x668   : > { %v5408_v57 = vpop.eup %5407 }
 0x669   : > { %v5410_v53 = vpop.eup %5409  ;;  %v4794_v2 = vcombine.low %v5406_v54, %v5408_v57 }
 0x66a   : > { %v5412_v25 = vpop.eup %5411 }
 0x66b   : > { %v4795_v60 = vcombine.low %v5410_v53, %v5412_v25  ;;  %v4802_v56 = vrot.slane %v4794_v2, %v7482_v43 }
 0x66d   : > { %v4809_v3 = vrot.slane %v4795_v60, %v7482_v43 }
 0x66f   : > { %v4810_v61 = vcombine.low %v4802_v56, %v4809_v3 }
 0x671   : > { %v4812_v10 = vmul.f32 %v4810_v61, %v4726_v48 }
 0x673   : > { %v4849_v5 = vmul.f32 %v7608_v12, %v4812_v10 }
 0x675   : > { %v4886_v6 = vadd.f32 %v7615_v46, %v4849_v5 }
 0x677   : > { %vm4887_vm1 = vcmp.ge.f32.partialorder %v4886_v6, 0.0  ;;  %v4888_v9 = vmul.f32 0.2, %v4886_v6 }
 0x679   : > { %v4889_v24 = vsel %vm4887_vm1, %v4886_v6, %v4888_v9 }
 0x67a   : > { %v4962_v21 = vrot.slane %v4889_v24, %v7482_v43  ;;  %v4955_v39 = vcombine.high %v4889_v24, %v4889_v24 }
 0x67c   : > { %v4970_v32 = vcombine.high %v4962_v21, %v4962_v21  ;;  %v4969_v14 = vrot.slane %v4955_v39, %v7482_v43 }
 0x67e   : > { %5040 = vmatprep.mubr.f32.mxu0 %v4970_v32  ;;  %v4971_v4 = vcombine.high %v4969_v14, %v4969_v14 }
 0x67f   : > { %5041 = vmatmul.mubr.f32.vlgmr.msra.gmra.mxu0 %v4962_v21 }
 0x680   : > { %5110 = vmatprep.mubr.f32.mxu1 %v4971_v4 }
 0x681   : > { %5111 = vmatmul.mubr.f32.vlgmr.msra.gmra.mxu1 %v4969_v14 }
 0x73f   : > { %v5304_v48 = vpop.f32.mrf.mxu0 }
 0x741   : > { %v5305_v16 = vpop.f32.mrf.mxu0  ;;  %v5339_v12 = vpop.f32.mrf.mxu1 }
 0x742   : > { %v5306_v46 = vadd.f32 %v5305_v16, %v5304_v48 }
 0x743   : > { %v5340_v34 = vpop.f32.mrf.mxu1 }
 0x744   : > { %v5341_v59 = vadd.f32 %v5340_v34, %v5339_v12 }
 0x746   : > { %v5113_v8 = vadd.f32 %v5341_v59, %v5306_v46 }
 0x748   : > { %5117 = vst.msk [vmem:[%s6639_s23] sm:$0x3] %vm5116_vm2, %v5113_v8 }
 0x749 PF: > { %s17_s30 = sadd.s32 1, %s5467_s30   ;;  %s7676_s26 = sld [smem:[#allocation4_spill]] }
 0x74a   : > { %p14_p2 = scmp.ge.s32.totalorder %s17_s30, 6   ;;  %s7677_s27 = sld [smem:[#allocation5_spill]] }
 0x74b   : > { %s7678_s28 = sld [smem:[#allocation6_spill]]  ;;  %s7680_s24 = smov %s5447_s25 }
 0x74c   : > { %s7679_s29 = sld [smem:[#allocation7_spill]]  ;;  %s7681_s25 = smov %s5563_s14 }
 0x74d   :  { %16 = sbr.rel (!%p14_p2) target bundleno = 7 (0x7), region = 132 }

</bundles_post_ra>
